<compile_context>
chip_gen: v7x
topology: tpu7x:2x2x1
jax: 0.10.0
libtpu: 0.0.40
codegen_flags: <defaults>
</compile_context>

<pallas_src>
import numpy as np
import jax
import jax.numpy as jnp
from jax import lax
from jax.experimental import pallas as pl
from jax.experimental.pallas import tpu as pltpu

# ------------------------- synthetic configuration -------------------------
N_ROIS = 2
DIM_IN = 32               # dim_in of the UV head feeding this output module
RES = 16                  # spatial size of the incoming feature map
DECONV_KERNEL = 4         # cfg.UVRCNN.DECONV_KERNEL
DECONV_PAD = DECONV_KERNEL // 2 - 1   # = 1
NUM_PATCHES = 24          # cfg.UVRCNN.NUM_PATCHES
UP_SCALE = 2              # cfg.UVRCNN.UP_SCALE
C_ANN = 15
C_PATCH = NUM_PATCHES + 1             # 25
C_FUSED = 4 * C_PATCH                 # 100 fused output channels (Ann pad absorbed)
H_OUT = RES * 2 * UP_SCALE            # 64


# ------------------------- fused Pallas kernel ------------------------------
def _uv_outputs_kernel(x_ref, wc_ref, wedge_ref, wcorn_ref, o_ref, xp_scr):
    """Fused 4-head deconv (K4,s2,p1) + bilinear 2x upsample, one GEMM per ROI.

    x_ref     : (B, H, W, Cin)        f32   NHWC feature map block
    wc_ref    : (9*Cin+1, 16*CF)      bf16  composite weight (+ bias row)
    wedge_ref : (4, 3*Cin+1, 4*CF)    bf16  [top, bottom, left, right] edge paths
    wcorn_ref : (4, Cin+1, CF)        bf16  [tl, tr, bl, br] corner paths
    o_ref     : (B, H, W, 16*CF)      f32   o[b,u,v,(4t+s)*CF+c] = z[4u+t,4v+s,c]
    xp_scr    : (H+2, W+2, Cin)       bf16  zero-border padded input scratch
    """
    B = x_ref.shape[0]
    H, W, Cin = x_ref.shape[1], x_ref.shape[2], x_ref.shape[3]
    CF = wcorn_ref.shape[2]
    N4, N16 = 4 * CF, 16 * CF

    # Re-zero only the 1-px border (the interior is fully overwritten for every
    # ROI below).  Done every step (a few KB of stores) so it is safe under
    # megacore grid sharding - no program_id guard needed.
    xp_scr[0:1, :, :] = jnp.zeros((1, W + 2, Cin), jnp.bfloat16)
    xp_scr[H + 1:H + 2, :, :] = jnp.zeros((1, W + 2, Cin), jnp.bfloat16)
    xp_scr[:, 0:1, :] = jnp.zeros((H + 2, 1, Cin), jnp.bfloat16)
    xp_scr[:, W + 1:W + 2, :] = jnp.zeros((H + 2, 1, Cin), jnp.bfloat16)

    for b in range(B):
        # --- pad this ROI's feature map into VMEM (bf16 = GEMM operand dtype).
        xp_scr[1:H + 1, 1:W + 1, :] = x_ref[b].astype(jnp.bfloat16)

        # --- single 9-tap im2col (+ ones column for the bias), built once.
        taps = [xp_scr[di:di + H, dj:dj + W, :].reshape(H * W, Cin)
                for di in range(3) for dj in range(3)]
        a_main = jnp.concatenate(
            taps + [jnp.ones((H * W, 1), jnp.bfloat16)], axis=-1)   # (HW, 9Cin+1)

        # --- ONE MXU GEMM = deconv + bilinear 2x upsample + bias (interior).
        zc = jnp.dot(a_main, wc_ref[...], preferred_element_type=jnp.float32)
        o_ref[b] = zc.reshape(H, W, N16)

        # --- border fix-ups: subtract the composite paths that run through the
        # cropped intermediate deconv rows/cols (-1 and 2H / 2W); this also
        # applies the correct (< 1) bilinear bias tap-sums at the border.
        ones_w = jnp.ones((W, 1), jnp.bfloat16)
        ones_h = jnp.ones((H, 1), jnp.bfloat16)
        a_top = jnp.concatenate([xp_scr[1, dj:dj + W, :] for dj in range(3)]
                                + [ones_w], axis=-1)                 # (W, 3Cin+1)
        a_bot = jnp.concatenate([xp_scr[H, dj:dj + W, :] for dj in range(3)]
                                + [ones_w], axis=-1)
        a_lft = jnp.concatenate([xp_scr[di:di + H, 1, :] for di in range(3)]
                                + [ones_h], axis=-1)                 # (H, 3Cin+1)
        a_rgt = jnp.concatenate([xp_scr[di:di + H, W, :] for di in range(3)]
                                + [ones_h], axis=-1)

        g_top = jnp.dot(a_top, wedge_ref[0], preferred_element_type=jnp.float32)
        g_bot = jnp.dot(a_bot, wedge_ref[1], preferred_element_type=jnp.float32)
        h_lft = jnp.dot(a_lft, wedge_ref[2], preferred_element_type=jnp.float32)
        h_rgt = jnp.dot(a_rgt, wedge_ref[3], preferred_element_type=jnp.float32)

        # first / last output image row: (u=0, t=0) / (u=H-1, t=3), all columns
        o_ref[b, 0, :, 0:N4] = o_ref[b, 0, :, 0:N4] - 0.25 * g_top
        o_ref[b, H - 1, :, 3 * N4:N16] = (
            o_ref[b, H - 1, :, 3 * N4:N16] - 0.25 * g_bot)
        # first / last output image column: (v=0, s=0) / (v=W-1, s=3), all rows
        for t in range(4):
            cl = t * N4
            o_ref[b, :, 0, cl:cl + CF] = (
                o_ref[b, :, 0, cl:cl + CF]
                - 0.25 * h_lft[:, t * CF:(t + 1) * CF])
            cr = t * N4 + 3 * CF
            o_ref[b, :, W - 1, cr:cr + CF] = (
                o_ref[b, :, W - 1, cr:cr + CF]
                - 0.25 * h_rgt[:, t * CF:(t + 1) * CF])

        # corners were corrected by both adjacent edges -> add the overlap back
        one1 = jnp.ones((1, 1), jnp.bfloat16)

        def _corner(iu, iv, k):
            a = jnp.concatenate([xp_scr[iu:iu + 1, iv, :], one1], axis=-1)
            a8 = jnp.broadcast_to(a, (8, Cin + 1))      # keep the GEMM M-dim >= 8
            return 0.0625 * jnp.dot(a8, wcorn_ref[k],
                                    preferred_element_type=jnp.float32)[0:1]

        o_ref[b, 0, 0:1, 0:CF] = o_ref[b, 0, 0:1, 0:CF] + _corner(1, 1, 0)
        o_ref[b, 0, W - 1:W, 3 * CF:N4] = (
            o_ref[b, 0, W - 1:W, 3 * CF:N4] + _corner(1, W, 1))
        o_ref[b, H - 1, 0:1, 3 * N4:3 * N4 + CF] = (
            o_ref[b, H - 1, 0:1, 3 * N4:3 * N4 + CF] + _corner(H, 1, 2))
        o_ref[b, H - 1, W - 1:W, N16 - CF:N16] = (
            o_ref[b, H - 1, W - 1:W, N16 - CF:N16] + _corner(H, W, 3))


# ------------------------- wrapper-side weight preparation -------------------
def _prepare_fused_params(p):
    """Compose deconv(K4,s2,p1) with the fixed bilinear 2x upsample.

    Returns bf16 arrays:
      wc    : (9*Cin+1, 16*CF)    main composite GEMM weight (+ bias row)
      wedge : (4, 3*Cin+1, 4*CF)  [top, bottom, left, right] edge-path weights
      wcorn : (4, Cin+1, CF)      [tl, tr, bl, br] corner-path weights
    """
    Cin = p['w_ann'].shape[0]
    CF = C_FUSED
    K = DECONV_KERNEL

    # 1-D composite factor: comp[d, t, kh] = coefficient of W[..., kh, .] applied
    # to x[u + d - 1] in output sub-phase row t, summed over ALL intermediate
    # (virtual) deconv rows (translation-invariant interior rule).
    f = np.array([0.25, 0.75, 0.75, 0.25], np.float32)   # bilinear taps
    comp = np.zeros((3, 4, K), np.float32)
    for d in range(3):
        for t in range(4):
            for kh in range(K):
                kr = t - 4 * (d - 1) + 3 - 2 * kh
                if 0 <= kr <= 3:
                    comp[d, t, kh] = f[kr]
    comp = jnp.asarray(comp)

    # Fuse the 4 heads; absorb the 10 zero channels of x_Ann (-> CF = 100).
    zw = jnp.zeros((Cin, C_PATCH - C_ANN, K, K), jnp.float32)
    zb = jnp.zeros((C_PATCH - C_ANN,), jnp.float32)
    wf = jnp.concatenate([p['w_ann'], zw, p['w_index'], p['w_u'], p['w_v']], 1)
    bf = jnp.concatenate([p['b_ann'], zb, p['b_index'], p['b_u'], p['b_v']])

    # Main composite weight: rows (di, dj, cin) + bias row; cols (t, s, c).
    wc6 = jnp.einsum('iokl,dtk,esl->deitso', wf, comp, comp)
    wc = jnp.concatenate([wc6.reshape(9 * Cin, 16 * CF),
                          jnp.tile(bf, 16)[None, :]], axis=0)

    # Edge paths through the virtual deconv row/col -1 and 2H/2W (+ bias row).
    def _edge(w3):                                   # w3: (Cin, CF, K)
        e = jnp.einsum('iol,dsl->diso', w3, comp)    # (3, Cin, 4, CF)
        return jnp.concatenate([e.reshape(3 * Cin, 4 * CF),
                                jnp.tile(bf, 4)[None, :]], axis=0)

    wedge = jnp.stack([_edge(wf[:, :, 0, :]),        # top    (kh = 0)
                       _edge(wf[:, :, K - 1, :]),    # bottom (kh = 3)
                       _edge(wf[:, :, :, 0]),        # left   (kw = 0)
                       _edge(wf[:, :, :, K - 1])],   # right  (kw = 3)
                      axis=0)

    def _cornw(w2):                                  # (Cin, CF)
        return jnp.concatenate([w2, bf[None, :]], axis=0)

    wcorn = jnp.stack([_cornw(wf[:, :, 0, 0]), _cornw(wf[:, :, 0, K - 1]),
                       _cornw(wf[:, :, K - 1, 0]), _cornw(wf[:, :, K - 1, K - 1])],
                      axis=0)
    return (wc.astype(jnp.bfloat16), wedge.astype(jnp.bfloat16),
            wcorn.astype(jnp.bfloat16))


# ------------------------- wrapper -------------------------------------------
def uv_rcnn_outputs_forward(x_nchw, p, rois_per_step=1):
    """x_nchw: (N, dim_in, H, W). Returns (x_Ann, x_Index, x_U, x_V), NCHW f32."""
    N, Cin, H, W = x_nchw.shape
    CF = C_FUSED
    B = rois_per_step
    assert N % B == 0
    x_nhwc = jnp.transpose(x_nchw, (0, 2, 3, 1))
    wc, wedge, wcorn = _prepare_fused_params(p)

    raw = pl.pallas_call(
        _uv_outputs_kernel,
        out_shape=jax.ShapeDtypeStruct((N, H, W, 16 * CF), jnp.float32),
        grid=(N // B,),
        in_specs=[
            pl.BlockSpec((B, H, W, Cin), lambda n: (n, 0, 0, 0)),
            pl.BlockSpec(wc.shape, lambda n: (0, 0)),
            pl.BlockSpec(wedge.shape, lambda n: (0, 0, 0)),
            pl.BlockSpec(wcorn.shape, lambda n: (0, 0, 0)),
        ],
        out_specs=pl.BlockSpec((B, H, W, 16 * CF), lambda n: (n, 0, 0, 0)),
        scratch_shapes=[pltpu.VMEM((H + 2, W + 2, Cin), jnp.bfloat16)],
        compiler_params=pltpu.CompilerParams(
            dimension_semantics=("parallel",),
            vmem_limit_bytes=32 * 1024 * 1024),
    )(x_nhwc, wc, wedge, wcorn)

    # layout plumbing only: (n, u, v, t, s, c) -> 4 NCHW heads of 25 ch each.
    img = (raw.reshape(N, H, W, 4, 4, CF)
              .transpose(0, 5, 1, 3, 2, 4)
              .reshape(N, CF, 4 * H, 4 * W))
    x_ann = img[:, 0:C_PATCH]               # channels 15..24 are exact zeros
    x_index = img[:, C_PATCH:2 * C_PATCH]
    x_u = img[:, 2 * C_PATCH:3 * C_PATCH]
    x_v = img[:, 3 * C_PATCH:4 * C_PATCH]
    return x_ann, x_index, x_u, x_v


# ------------------------- parameters ----------------------------------------
def init_params(key):
    # Spec init is GaussianFill std=0.001 with zero bias; for a stronger
    # numerics check we use std=0.01 weights and small random biases.
    ks = jax.random.split(key, 8)

    def w(k, cout):
        # PyTorch ConvTranspose2d weight layout: (in_channels, out_channels, kH, kW)
        return 0.01 * jax.random.normal(
            k, (DIM_IN, cout, DECONV_KERNEL, DECONV_KERNEL), jnp.float32)

    def b(k, cout):
        return 0.1 * jax.random.normal(k, (cout,), jnp.float32)

    return {
        'w_ann': w(ks[0], C_ANN), 'b_ann': b(ks[4], C_ANN),
        'w_index': w(ks[1], C_PATCH), 'b_index': b(ks[5], C_PATCH),
        'w_u': w(ks[2], C_PATCH), 'b_u': b(ks[6], C_PATCH),
        'w_v': w(ks[3], C_PATCH), 'b_v': b(ks[7], C_PATCH),
    }


# ------------------------- pure-JAX reference --------------------------------
def _torch_conv_transpose(x, w, b, stride, pad):
    """PyTorch ConvTranspose2d: NCHW, weight (in, out, kH, kW), no kernel flip."""
    K = w.shape[2]
    y = lax.conv_general_dilated(
        x, jnp.flip(w, (2, 3)), window_strides=(1, 1),
        padding=[(K - 1 - pad, K - 1 - pad)] * 2,
        lhs_dilation=(stride, stride),
        dimension_numbers=('NCHW', 'IOHW', 'NCHW'),
        precision=lax.Precision.HIGHEST)
    return y + b[None, :, None, None]


def _bilinear_upsample_ref(x, up_scale):
    """mynn.BilinearInterpolation2d: frozen bilinear ConvTranspose2d."""
    C = x.shape[1]
    ks = 2 * up_scale
    factor = (ks + 1) // 2
    center = factor - 1 if ks % 2 == 1 else factor - 0.5
    og = np.ogrid[:ks, :ks]
    filt = ((1 - abs(og[0] - center) / factor) *
            (1 - abs(og[1] - center) / factor)).astype(np.float32)
    w = np.zeros((C, C, ks, ks), np.float32)
    w[np.arange(C), np.arange(C)] = filt
    return _torch_conv_transpose(x, jnp.asarray(w), jnp.zeros((C,), jnp.float32),
                                 stride=up_scale, pad=up_scale // 2)


def ref_forward(x, p):
    ann = _torch_conv_transpose(x, p['w_ann'], p['b_ann'], 2, DECONV_PAD)
    idx = _torch_conv_transpose(x, p['w_index'], p['b_index'], 2, DECONV_PAD)
    u = _torch_conv_transpose(x, p['w_u'], p['b_u'], 2, DECONV_PAD)
    v = _torch_conv_transpose(x, p['w_v'], p['b_v'], 2, DECONV_PAD)
    zeros = jnp.zeros((ann.shape[0], C_PATCH - C_ANN, ann.shape[2], ann.shape[3]),
                      ann.dtype)
    ann = jnp.concatenate([ann, zeros], axis=1)
    return (_bilinear_upsample_ref(ann, UP_SCALE),
            _bilinear_upsample_ref(idx, UP_SCALE),
            _bilinear_upsample_ref(u, UP_SCALE),
            _bilinear_upsample_ref(v, UP_SCALE))


# ------------------------- main ----------------------------------------------
if __name__ == "__main__":
    key = jax.random.PRNGKey(0)
    kx, kp = jax.random.split(key)
    # Feature map from the UV conv head, PyTorch NCHW convention.
    x = jax.random.normal(kx, (N_ROIS, DIM_IN, RES, RES), jnp.float32)
    params = init_params(kp)

    outs = uv_rcnn_outputs_forward(x, params)
    outs = jax.block_until_ready(outs)
    for o in outs:
        assert o.shape == (N_ROIS, C_PATCH, H_OUT, H_OUT), o.shape

    refs = ref_forward(x, params)
    # bf16 MXU operands with f32 accumulation -> loose-ish tolerance.
    for o, r in zip(outs, refs):
        np.testing.assert_allclose(np.asarray(o), np.asarray(r),
                                   rtol=2e-2, atol=5e-3)

    print("KERNEL_OK")
</pallas_src>

<mosaic_0001>
module attributes {stable_mosaic.version = 11 : i64} {
  func.func @_uv_outputs_kernel(%arg0: i32, %arg1: memref<1x16x16x32xf32, #tpu.memory_space<vmem>>, %arg2: memref<289x1600xbf16, #tpu.memory_space<vmem>>, %arg3: memref<4x97x400xbf16, #tpu.memory_space<vmem>>, %arg4: memref<4x33x100xbf16, #tpu.memory_space<vmem>>, %arg5: memref<1x16x16x1600xf32, #tpu.memory_space<vmem>>, %arg6: memref<18x18x32xbf16, #tpu.memory_space<vmem>>) attributes {dimension_semantics = [#tpu.dimension_semantics<parallel>], iteration_bounds = array<i64: 2>, scalar_prefetch = 0 : i64, scratch_operands = 1 : i64, tpu.core_type = #tpu.core_type<tc>, window_params = [{transform_indices = @transform_0, window_bounds = array<i64: 1, 16, 16, 32>}, {pipeline_mode = #tpu.pipeline_mode<synchronous>, transform_indices = @transform_1, window_bounds = array<i64: 289, 1600>}, {pipeline_mode = #tpu.pipeline_mode<synchronous>, transform_indices = @transform_2, window_bounds = array<i64: 4, 97, 400>}, {pipeline_mode = #tpu.pipeline_mode<synchronous>, transform_indices = @transform_3, window_bounds = array<i64: 4, 33, 100>}, {transform_indices = @transform_4, window_bounds = array<i64: 1, 16, 16, 1600>}]} {
    %cst = arith.constant 0.000000e+00 : bf16
    %0 = vector.broadcast %cst : bf16 to vector<1x18x32xbf16>
    %c0 = arith.constant 0 : index
    %c0_0 = arith.constant 0 : index
    %c0_1 = arith.constant 0 : index
    %1 = vector.load %arg6[%c0, %c0_0, %c0_1] : memref<18x18x32xbf16, #tpu.memory_space<vmem>>, vector<1x18x32xbf16>
    tpu.vector_store %arg6[%c0, %c0_0, %c0_1], %0 {strides = array<i32>} : memref<18x18x32xbf16, #tpu.memory_space<vmem>>, vector<1x18x32xbf16>,
    %cst_2 = arith.constant 0.000000e+00 : bf16
    %2 = vector.broadcast %cst_2 : bf16 to vector<1x18x32xbf16>
    %c17 = arith.constant 17 : index
    %c0_3 = arith.constant 0 : index
    %c0_4 = arith.constant 0 : index
    %3 = vector.load %arg6[%c17, %c0_3, %c0_4] : memref<18x18x32xbf16, #tpu.memory_space<vmem>>, vector<1x18x32xbf16>
    tpu.vector_store %arg6[%c17, %c0_3, %c0_4], %2 {strides = array<i32>} : memref<18x18x32xbf16, #tpu.memory_space<vmem>>, vector<1x18x32xbf16>,
    %cst_5 = arith.constant 0.000000e+00 : bf16
    %4 = vector.broadcast %cst_5 : bf16 to vector<18x1x32xbf16>
    %c0_6 = arith.constant 0 : index
    %c0_7 = arith.constant 0 : index
    %c0_8 = arith.constant 0 : index
    %5 = vector.load %arg6[%c0_6, %c0_7, %c0_8] : memref<18x18x32xbf16, #tpu.memory_space<vmem>>, vector<18x1x32xbf16>
    tpu.vector_store %arg6[%c0_6, %c0_7, %c0_8], %4 {strides = array<i32>} : memref<18x18x32xbf16, #tpu.memory_space<vmem>>, vector<18x1x32xbf16>,
    %cst_9 = arith.constant 0.000000e+00 : bf16
    %6 = vector.broadcast %cst_9 : bf16 to vector<18x1x32xbf16>
    %c0_10 = arith.constant 0 : index
    %c17_11 = arith.constant 17 : index
    %c0_12 = arith.constant 0 : index
    %7 = vector.load %arg6[%c0_10, %c17_11, %c0_12] : memref<18x18x32xbf16, #tpu.memory_space<vmem>>, vector<18x1x32xbf16>
    tpu.vector_store %arg6[%c0_10, %c17_11, %c0_12], %6 {strides = array<i32>} : memref<18x18x32xbf16, #tpu.memory_space<vmem>>, vector<18x1x32xbf16>,
    %c0_13 = arith.constant 0 : index
    %c0_14 = arith.constant 0 : index
    %c0_15 = arith.constant 0 : index
    %c0_16 = arith.constant 0 : index
    %8 = vector.load %arg1[%c0_13, %c0_14, %c0_15, %c0_16] : memref<1x16x16x32xf32, #tpu.memory_space<vmem>>, vector<1x16x16x32xf32>
    %9 = vector.shape_cast %8 : vector<1x16x16x32xf32> to vector<16x16x32xf32>
    %10 = arith.truncf %9 : vector<16x16x32xf32> to vector<16x16x32xbf16>
    %c1 = arith.constant 1 : index
    %c1_17 = arith.constant 1 : index
    %c0_18 = arith.constant 0 : index
    %11 = vector.load %arg6[%c1, %c1_17, %c0_18] : memref<18x18x32xbf16, #tpu.memory_space<vmem>>, vector<16x16x32xbf16>
    tpu.vector_store %arg6[%c1, %c1_17, %c0_18], %10 {strides = array<i32>} : memref<18x18x32xbf16, #tpu.memory_space<vmem>>, vector<16x16x32xbf16>,
    %c0_19 = arith.constant 0 : index
    %c0_20 = arith.constant 0 : index
    %c0_21 = arith.constant 0 : index
    %12 = vector.load %arg6[%c0_19, %c0_20, %c0_21] : memref<18x18x32xbf16, #tpu.memory_space<vmem>>, vector<16x16x32xbf16>
    %13 = vector.shape_cast %12 : vector<16x16x32xbf16> to vector<256x32xbf16>
    %c0_22 = arith.constant 0 : index
    %c1_23 = arith.constant 1 : index
    %c0_24 = arith.constant 0 : index
    %14 = vector.load %arg6[%c0_22, %c1_23, %c0_24] : memref<18x18x32xbf16, #tpu.memory_space<vmem>>, vector<16x16x32xbf16>
    %15 = vector.shape_cast %14 : vector<16x16x32xbf16> to vector<256x32xbf16>
    %c0_25 = arith.constant 0 : index
    %c2 = arith.constant 2 : index
    %c0_26 = arith.constant 0 : index
    %16 = vector.load %arg6[%c0_25, %c2, %c0_26] : memref<18x18x32xbf16, #tpu.memory_space<vmem>>, vector<16x16x32xbf16>
    %17 = vector.shape_cast %16 : vector<16x16x32xbf16> to vector<256x32xbf16>
    %c1_27 = arith.constant 1 : index
    %c0_28 = arith.constant 0 : index
    %c0_29 = arith.constant 0 : index
    %18 = vector.load %arg6[%c1_27, %c0_28, %c0_29] : memref<18x18x32xbf16, #tpu.memory_space<vmem>>, vector<16x16x32xbf16>
    %19 = vector.shape_cast %18 : vector<16x16x32xbf16> to vector<256x32xbf16>
    %c1_30 = arith.constant 1 : index
    %c1_31 = arith.constant 1 : index
    %c0_32 = arith.constant 0 : index
    %20 = vector.load %arg6[%c1_30, %c1_31, %c0_32] : memref<18x18x32xbf16, #tpu.memory_space<vmem>>, vector<16x16x32xbf16>
    %21 = vector.shape_cast %20 : vector<16x16x32xbf16> to vector<256x32xbf16>
    %c1_33 = arith.constant 1 : index
    %c2_34 = arith.constant 2 : index
    %c0_35 = arith.constant 0 : index
    %22 = vector.load %arg6[%c1_33, %c2_34, %c0_35] : memref<18x18x32xbf16, #tpu.memory_space<vmem>>, vector<16x16x32xbf16>
    %23 = vector.shape_cast %22 : vector<16x16x32xbf16> to vector<256x32xbf16>
    %c2_36 = arith.constant 2 : index
    %c0_37 = arith.constant 0 : index
    %c0_38 = arith.constant 0 : index
    %24 = vector.load %arg6[%c2_36, %c0_37, %c0_38] : memref<18x18x32xbf16, #tpu.memory_space<vmem>>, vector<16x16x32xbf16>
    %25 = vector.shape_cast %24 : vector<16x16x32xbf16> to vector<256x32xbf16>
    %c2_39 = arith.constant 2 : index
    %c1_40 = arith.constant 1 : index
    %c0_41 = arith.constant 0 : index
    %26 = vector.load %arg6[%c2_39, %c1_40, %c0_41] : memref<18x18x32xbf16, #tpu.memory_space<vmem>>, vector<16x16x32xbf16>
    %27 = vector.shape_cast %26 : vector<16x16x32xbf16> to vector<256x32xbf16>
    %c2_42 = arith.constant 2 : index
    %c2_43 = arith.constant 2 : index
    %c0_44 = arith.constant 0 : index
    %28 = vector.load %arg6[%c2_42, %c2_43, %c0_44] : memref<18x18x32xbf16, #tpu.memory_space<vmem>>, vector<16x16x32xbf16>
    %29 = vector.shape_cast %28 : vector<16x16x32xbf16> to vector<256x32xbf16>
    %cst_45 = arith.constant 1.000000e+00 : bf16
    %30 = vector.broadcast %cst_45 : bf16 to vector<256x1xbf16>
    %31 = tpu.concatenate %13, %15, %17, %19, %21, %23, %25, %27, %29, %30 in 1 : vector<256x32xbf16>, vector<256x32xbf16>, vector<256x32xbf16>, vector<256x32xbf16>, vector<256x32xbf16>, vector<256x32xbf16>, vector<256x32xbf16>, vector<256x32xbf16>, vector<256x32xbf16>, vector<256x1xbf16> -> vector<256x289xbf16>
    %c0_46 = arith.constant 0 : index
    %c0_47 = arith.constant 0 : index
    %32 = vector.load %arg2[%c0_46, %c0_47] : memref<289x1600xbf16, #tpu.memory_space<vmem>>, vector<289x1600xbf16>
    %cst_48 = arith.constant dense<0.000000e+00> : vector<256x1600xf32>
    %33 = tpu.matmul %31, %32, %cst_48 {dimension_numbers = #tpu.dot_dimension_numbers<[1], [0], [0], [1], [0, 0, 1, 1], [], []>} : vector<256x289xbf16>, vector<289x1600xbf16>, vector<256x1600xf32> -> vector<256x1600xf32>
    %34 = vector.shape_cast %33 : vector<256x1600xf32> to vector<16x16x1600xf32>
    %c0_49 = arith.constant 0 : index
    %c0_50 = arith.constant 0 : index
    %c0_51 = arith.constant 0 : index
    %c0_52 = arith.constant 0 : index
    %35 = vector.load %arg5[%c0_49, %c0_50, %c0_51, %c0_52] : memref<1x16x16x1600xf32, #tpu.memory_space<vmem>>, vector<1x16x16x1600xf32>
    %36 = vector.shape_cast %35 : vector<1x16x16x1600xf32> to vector<16x16x1600xf32>
    %37 = vector.shape_cast %34 : vector<16x16x1600xf32> to vector<1x16x16x1600xf32>
    tpu.vector_store %arg5[%c0_49, %c0_50, %c0_51, %c0_52], %37 {strides = array<i32>} : memref<1x16x16x1600xf32, #tpu.memory_space<vmem>>, vector<1x16x16x1600xf32>,
    %cst_53 = arith.constant 1.000000e+00 : bf16
    %38 = vector.broadcast %cst_53 : bf16 to vector<16x1xbf16>
    %cst_54 = arith.constant 1.000000e+00 : bf16
    %39 = vector.broadcast %cst_54 : bf16 to vector<16x1xbf16>
    %c1_55 = arith.constant 1 : index
    %c0_56 = arith.constant 0 : index
    %c0_57 = arith.constant 0 : index
    %40 = vector.load %arg6[%c1_55, %c0_56, %c0_57] : memref<18x18x32xbf16, #tpu.memory_space<vmem>>, vector<1x16x32xbf16>
    %41 = vector.shape_cast %40 : vector<1x16x32xbf16> to vector<16x32xbf16>
    %c1_58 = arith.constant 1 : index
    %c1_59 = arith.constant 1 : index
    %c0_60 = arith.constant 0 : index
    %42 = vector.load %arg6[%c1_58, %c1_59, %c0_60] : memref<18x18x32xbf16, #tpu.memory_space<vmem>>, vector<1x16x32xbf16>
    %43 = vector.shape_cast %42 : vector<1x16x32xbf16> to vector<16x32xbf16>
    %c1_61 = arith.constant 1 : index
    %c2_62 = arith.constant 2 : index
    %c0_63 = arith.constant 0 : index
    %44 = vector.load %arg6[%c1_61, %c2_62, %c0_63] : memref<18x18x32xbf16, #tpu.memory_space<vmem>>, vector<1x16x32xbf16>
    %45 = vector.shape_cast %44 : vector<1x16x32xbf16> to vector<16x32xbf16>
    %46 = tpu.concatenate %41, %43, %45, %38 in 1 : vector<16x32xbf16>, vector<16x32xbf16>, vector<16x32xbf16>, vector<16x1xbf16> -> vector<16x97xbf16>
    %c16 = arith.constant 16 : index
    %c0_64 = arith.constant 0 : index
    %c0_65 = arith.constant 0 : index
    %47 = vector.load %arg6[%c16, %c0_64, %c0_65] : memref<18x18x32xbf16, #tpu.memory_space<vmem>>, vector<1x16x32xbf16>
    %48 = vector.shape_cast %47 : vector<1x16x32xbf16> to vector<16x32xbf16>
    %c16_66 = arith.constant 16 : index
    %c1_67 = arith.constant 1 : index
    %c0_68 = arith.constant 0 : index
    %49 = vector.load %arg6[%c16_66, %c1_67, %c0_68] : memref<18x18x32xbf16, #tpu.memory_space<vmem>>, vector<1x16x32xbf16>
    %50 = vector.shape_cast %49 : vector<1x16x32xbf16> to vector<16x32xbf16>
    %c16_69 = arith.constant 16 : index
    %c2_70 = arith.constant 2 : index
    %c0_71 = arith.constant 0 : index
    %51 = vector.load %arg6[%c16_69, %c2_70, %c0_71] : memref<18x18x32xbf16, #tpu.memory_space<vmem>>, vector<1x16x32xbf16>
    %52 = vector.shape_cast %51 : vector<1x16x32xbf16> to vector<16x32xbf16>
    %53 = tpu.concatenate %48, %50, %52, %38 in 1 : vector<16x32xbf16>, vector<16x32xbf16>, vector<16x32xbf16>, vector<16x1xbf16> -> vector<16x97xbf16>
    %c0_72 = arith.constant 0 : index
    %c1_73 = arith.constant 1 : index
    %c0_74 = arith.constant 0 : index
    %54 = vector.load %arg6[%c0_72, %c1_73, %c0_74] : memref<18x18x32xbf16, #tpu.memory_space<vmem>>, vector<16x1x32xbf16>
    %55 = vector.shape_cast %54 : vector<16x1x32xbf16> to vector<16x32xbf16>
    %c1_75 = arith.constant 1 : index
    %c1_76 = arith.constant 1 : index
    %c0_77 = arith.constant 0 : index
    %56 = vector.load %arg6[%c1_75, %c1_76, %c0_77] : memref<18x18x32xbf16, #tpu.memory_space<vmem>>, vector<16x1x32xbf16>
    %57 = vector.shape_cast %56 : vector<16x1x32xbf16> to vector<16x32xbf16>
    %c2_78 = arith.constant 2 : index
    %c1_79 = arith.constant 1 : index
    %c0_80 = arith.constant 0 : index
    %58 = vector.load %arg6[%c2_78, %c1_79, %c0_80] : memref<18x18x32xbf16, #tpu.memory_space<vmem>>, vector<16x1x32xbf16>
    %59 = vector.shape_cast %58 : vector<16x1x32xbf16> to vector<16x32xbf16>
    %60 = tpu.concatenate %55, %57, %59, %39 in 1 : vector<16x32xbf16>, vector<16x32xbf16>, vector<16x32xbf16>, vector<16x1xbf16> -> vector<16x97xbf16>
    %c0_81 = arith.constant 0 : index
    %c16_82 = arith.constant 16 : index
    %c0_83 = arith.constant 0 : index
    %61 = vector.load %arg6[%c0_81, %c16_82, %c0_83] : memref<18x18x32xbf16, #tpu.memory_space<vmem>>, vector<16x1x32xbf16>
    %62 = vector.shape_cast %61 : vector<16x1x32xbf16> to vector<16x32xbf16>
    %c1_84 = arith.constant 1 : index
    %c16_85 = arith.constant 16 : index
    %c0_86 = arith.constant 0 : index
    %63 = vector.load %arg6[%c1_84, %c16_85, %c0_86] : memref<18x18x32xbf16, #tpu.memory_space<vmem>>, vector<16x1x32xbf16>
    %64 = vector.shape_cast %63 : vector<16x1x32xbf16> to vector<16x32xbf16>
    %c2_87 = arith.constant 2 : index
    %c16_88 = arith.constant 16 : index
    %c0_89 = arith.constant 0 : index
    %65 = vector.load %arg6[%c2_87, %c16_88, %c0_89] : memref<18x18x32xbf16, #tpu.memory_space<vmem>>, vector<16x1x32xbf16>
    %66 = vector.shape_cast %65 : vector<16x1x32xbf16> to vector<16x32xbf16>
    %67 = tpu.concatenate %62, %64, %66, %39 in 1 : vector<16x32xbf16>, vector<16x32xbf16>, vector<16x32xbf16>, vector<16x1xbf16> -> vector<16x97xbf16>
    %c0_90 = arith.constant 0 : index
    %c0_91 = arith.constant 0 : index
    %c0_92 = arith.constant 0 : index
    %68 = vector.load %arg3[%c0_90, %c0_91, %c0_92] : memref<4x97x400xbf16, #tpu.memory_space<vmem>>, vector<1x97x400xbf16>
    %69 = vector.shape_cast %68 : vector<1x97x400xbf16> to vector<97x400xbf16>
    %cst_93 = arith.constant dense<0.000000e+00> : vector<16x400xf32>
    %70 = tpu.matmul %46, %69, %cst_93 {dimension_numbers = #tpu.dot_dimension_numbers<[1], [0], [0], [1], [0, 0, 1, 1], [], []>} : vector<16x97xbf16>, vector<97x400xbf16>, vector<16x400xf32> -> vector<16x400xf32>
    %c1_94 = arith.constant 1 : index
    %c0_95 = arith.constant 0 : index
    %c0_96 = arith.constant 0 : index
    %71 = vector.load %arg3[%c1_94, %c0_95, %c0_96] : memref<4x97x400xbf16, #tpu.memory_space<vmem>>, vector<1x97x400xbf16>
    %72 = vector.shape_cast %71 : vector<1x97x400xbf16> to vector<97x400xbf16>
    %cst_97 = arith.constant dense<0.000000e+00> : vector<16x400xf32>
    %73 = tpu.matmul %53, %72, %cst_97 {dimension_numbers = #tpu.dot_dimension_numbers<[1], [0], [0], [1], [0, 0, 1, 1], [], []>} : vector<16x97xbf16>, vector<97x400xbf16>, vector<16x400xf32> -> vector<16x400xf32>
    %c2_98 = arith.constant 2 : index
    %c0_99 = arith.constant 0 : index
    %c0_100 = arith.constant 0 : index
    %74 = vector.load %arg3[%c2_98, %c0_99, %c0_100] : memref<4x97x400xbf16, #tpu.memory_space<vmem>>, vector<1x97x400xbf16>
    %75 = vector.shape_cast %74 : vector<1x97x400xbf16> to vector<97x400xbf16>
    %cst_101 = arith.constant dense<0.000000e+00> : vector<16x400xf32>
    %76 = tpu.matmul %60, %75, %cst_101 {dimension_numbers = #tpu.dot_dimension_numbers<[1], [0], [0], [1], [0, 0, 1, 1], [], []>} : vector<16x97xbf16>, vector<97x400xbf16>, vector<16x400xf32> -> vector<16x400xf32>
    %c3 = arith.constant 3 : index
    %c0_102 = arith.constant 0 : index
    %c0_103 = arith.constant 0 : index
    %77 = vector.load %arg3[%c3, %c0_102, %c0_103] : memref<4x97x400xbf16, #tpu.memory_space<vmem>>, vector<1x97x400xbf16>
    %78 = vector.shape_cast %77 : vector<1x97x400xbf16> to vector<97x400xbf16>
    %cst_104 = arith.constant dense<0.000000e+00> : vector<16x400xf32>
    %79 = tpu.matmul %67, %78, %cst_104 {dimension_numbers = #tpu.dot_dimension_numbers<[1], [0], [0], [1], [0, 0, 1, 1], [], []>} : vector<16x97xbf16>, vector<97x400xbf16>, vector<16x400xf32> -> vector<16x400xf32>
    %c0_105 = arith.constant 0 : index
    %c0_106 = arith.constant 0 : index
    %c0_107 = arith.constant 0 : index
    %c0_108 = arith.constant 0 : index
    %80 = vector.load %arg5[%c0_105, %c0_106, %c0_107, %c0_108] : memref<1x16x16x1600xf32, #tpu.memory_space<vmem>>, vector<1x1x16x400xf32>
    %81 = vector.shape_cast %80 : vector<1x1x16x400xf32> to vector<16x400xf32>
    %cst_109 = arith.constant 2.500000e-01 : f32
    %82 = vector.broadcast %cst_109 : f32 to vector<16x400xf32>
    %83 = arith.mulf %82, %70 : vector<16x400xf32>
    %84 = arith.subf %81, %83 : vector<16x400xf32>
    %c0_110 = arith.constant 0 : index
    %c0_111 = arith.constant 0 : index
    %c0_112 = arith.constant 0 : index
    %c0_113 = arith.constant 0 : index
    %85 = vector.load %arg5[%c0_110, %c0_111, %c0_112, %c0_113] : memref<1x16x16x1600xf32, #tpu.memory_space<vmem>>, vector<1x1x16x400xf32>
    %86 = vector.shape_cast %85 : vector<1x1x16x400xf32> to vector<16x400xf32>
    %87 = vector.shape_cast %84 : vector<16x400xf32> to vector<1x1x16x400xf32>
    tpu.vector_store %arg5[%c0_110, %c0_111, %c0_112, %c0_113], %87 {strides = array<i32>} : memref<1x16x16x1600xf32, #tpu.memory_space<vmem>>, vector<1x1x16x400xf32>,
    %c0_114 = arith.constant 0 : index
    %c15 = arith.constant 15 : index
    %c0_115 = arith.constant 0 : index
    %c1200 = arith.constant 1200 : index
    %88 = vector.load %arg5[%c0_114, %c15, %c0_115, %c1200] : memref<1x16x16x1600xf32, #tpu.memory_space<vmem>>, vector<1x1x16x400xf32>
    %89 = vector.shape_cast %88 : vector<1x1x16x400xf32> to vector<16x400xf32>
    %cst_116 = arith.constant 2.500000e-01 : f32
    %90 = vector.broadcast %cst_116 : f32 to vector<16x400xf32>
    %91 = arith.mulf %90, %73 : vector<16x400xf32>
    %92 = arith.subf %89, %91 : vector<16x400xf32>
    %c0_117 = arith.constant 0 : index
    %c15_118 = arith.constant 15 : index
    %c0_119 = arith.constant 0 : index
    %c1200_120 = arith.constant 1200 : index
    %93 = vector.load %arg5[%c0_117, %c15_118, %c0_119, %c1200_120] : memref<1x16x16x1600xf32, #tpu.memory_space<vmem>>, vector<1x1x16x400xf32>
    %94 = vector.shape_cast %93 : vector<1x1x16x400xf32> to vector<16x400xf32>
    %95 = vector.shape_cast %92 : vector<16x400xf32> to vector<1x1x16x400xf32>
    tpu.vector_store %arg5[%c0_117, %c15_118, %c0_119, %c1200_120], %95 {strides = array<i32>} : memref<1x16x16x1600xf32, #tpu.memory_space<vmem>>, vector<1x1x16x400xf32>,
    %c0_121 = arith.constant 0 : index
    %c0_122 = arith.constant 0 : index
    %c0_123 = arith.constant 0 : index
    %c0_124 = arith.constant 0 : index
    %96 = vector.load %arg5[%c0_121, %c0_122, %c0_123, %c0_124] : memref<1x16x16x1600xf32, #tpu.memory_space<vmem>>, vector<1x16x1x100xf32>
    %97 = vector.shape_cast %96 : vector<1x16x1x100xf32> to vector<16x100xf32>
    %98 = vector.extract_strided_slice %76 {offsets = [0, 0], sizes = [16, 100], strides = [1, 1]} : vector<16x400xf32> to vector<16x100xf32>
    %cst_125 = arith.constant 2.500000e-01 : f32
    %99 = vector.broadcast %cst_125 : f32 to vector<16x100xf32>
    %100 = arith.mulf %99, %98 : vector<16x100xf32>
    %101 = arith.subf %97, %100 : vector<16x100xf32>
    %c0_126 = arith.constant 0 : index
    %c0_127 = arith.constant 0 : index
    %c0_128 = arith.constant 0 : index
    %c0_129 = arith.constant 0 : index
    %102 = vector.load %arg5[%c0_126, %c0_127, %c0_128, %c0_129] : memref<1x16x16x1600xf32, #tpu.memory_space<vmem>>, vector<1x16x1x100xf32>
    %103 = vector.shape_cast %102 : vector<1x16x1x100xf32> to vector<16x100xf32>
    %104 = vector.shape_cast %101 : vector<16x100xf32> to vector<1x16x1x100xf32>
    tpu.vector_store %arg5[%c0_126, %c0_127, %c0_128, %c0_129], %104 {strides = array<i32>} : memref<1x16x16x1600xf32, #tpu.memory_space<vmem>>, vector<1x16x1x100xf32>,
    %c0_130 = arith.constant 0 : index
    %c0_131 = arith.constant 0 : index
    %c15_132 = arith.constant 15 : index
    %c300 = arith.constant 300 : index
    %105 = vector.load %arg5[%c0_130, %c0_131, %c15_132, %c300] : memref<1x16x16x1600xf32, #tpu.memory_space<vmem>>, vector<1x16x1x100xf32>
    %106 = vector.shape_cast %105 : vector<1x16x1x100xf32> to vector<16x100xf32>
    %107 = vector.extract_strided_slice %79 {offsets = [0, 0], sizes = [16, 100], strides = [1, 1]} : vector<16x400xf32> to vector<16x100xf32>
    %cst_133 = arith.constant 2.500000e-01 : f32
    %108 = vector.broadcast %cst_133 : f32 to vector<16x100xf32>
    %109 = arith.mulf %108, %107 : vector<16x100xf32>
    %110 = arith.subf %106, %109 : vector<16x100xf32>
    %c0_134 = arith.constant 0 : index
    %c0_135 = arith.constant 0 : index
    %c15_136 = arith.constant 15 : index
    %c300_137 = arith.constant 300 : index
    %111 = vector.load %arg5[%c0_134, %c0_135, %c15_136, %c300_137] : memref<1x16x16x1600xf32, #tpu.memory_space<vmem>>, vector<1x16x1x100xf32>
    %112 = vector.shape_cast %111 : vector<1x16x1x100xf32> to vector<16x100xf32>
    %113 = vector.shape_cast %110 : vector<16x100xf32> to vector<1x16x1x100xf32>
    tpu.vector_store %arg5[%c0_134, %c0_135, %c15_136, %c300_137], %113 {strides = array<i32>} : memref<1x16x16x1600xf32, #tpu.memory_space<vmem>>, vector<1x16x1x100xf32>,
    %c0_138 = arith.constant 0 : index
    %c0_139 = arith.constant 0 : index
    %c0_140 = arith.constant 0 : index
    %c400 = arith.constant 400 : index
    %114 = vector.load %arg5[%c0_138, %c0_139, %c0_140, %c400] : memref<1x16x16x1600xf32, #tpu.memory_space<vmem>>, vector<1x16x1x100xf32>
    %115 = vector.shape_cast %114 : vector<1x16x1x100xf32> to vector<16x100xf32>
    %116 = vector.extract_strided_slice %76 {offsets = [0, 100], sizes = [16, 100], strides = [1, 1]} : vector<16x400xf32> to vector<16x100xf32>
    %cst_141 = arith.constant 2.500000e-01 : f32
    %117 = vector.broadcast %cst_141 : f32 to vector<16x100xf32>
    %118 = arith.mulf %117, %116 : vector<16x100xf32>
    %119 = arith.subf %115, %118 : vector<16x100xf32>
    %c0_142 = arith.constant 0 : index
    %c0_143 = arith.constant 0 : index
    %c0_144 = arith.constant 0 : index
    %c400_145 = arith.constant 400 : index
    %120 = vector.load %arg5[%c0_142, %c0_143, %c0_144, %c400_145] : memref<1x16x16x1600xf32, #tpu.memory_space<vmem>>, vector<1x16x1x100xf32>
    %121 = vector.shape_cast %120 : vector<1x16x1x100xf32> to vector<16x100xf32>
    %122 = vector.shape_cast %119 : vector<16x100xf32> to vector<1x16x1x100xf32>
    tpu.vector_store %arg5[%c0_142, %c0_143, %c0_144, %c400_145], %122 {strides = array<i32>} : memref<1x16x16x1600xf32, #tpu.memory_space<vmem>>, vector<1x16x1x100xf32>,
    %c0_146 = arith.constant 0 : index
    %c0_147 = arith.constant 0 : index
    %c15_148 = arith.constant 15 : index
    %c700 = arith.constant 700 : index
    %123 = vector.load %arg5[%c0_146, %c0_147, %c15_148, %c700] : memref<1x16x16x1600xf32, #tpu.memory_space<vmem>>, vector<1x16x1x100xf32>
    %124 = vector.shape_cast %123 : vector<1x16x1x100xf32> to vector<16x100xf32>
    %125 = vector.extract_strided_slice %79 {offsets = [0, 100], sizes = [16, 100], strides = [1, 1]} : vector<16x400xf32> to vector<16x100xf32>
    %cst_149 = arith.constant 2.500000e-01 : f32
    %126 = vector.broadcast %cst_149 : f32 to vector<16x100xf32>
    %127 = arith.mulf %126, %125 : vector<16x100xf32>
    %128 = arith.subf %124, %127 : vector<16x100xf32>
    %c0_150 = arith.constant 0 : index
    %c0_151 = arith.constant 0 : index
    %c15_152 = arith.constant 15 : index
    %c700_153 = arith.constant 700 : index
    %129 = vector.load %arg5[%c0_150, %c0_151, %c15_152, %c700_153] : memref<1x16x16x1600xf32, #tpu.memory_space<vmem>>, vector<1x16x1x100xf32>
    %130 = vector.shape_cast %129 : vector<1x16x1x100xf32> to vector<16x100xf32>
    %131 = vector.shape_cast %128 : vector<16x100xf32> to vector<1x16x1x100xf32>
    tpu.vector_store %arg5[%c0_150, %c0_151, %c15_152, %c700_153], %131 {strides = array<i32>} : memref<1x16x16x1600xf32, #tpu.memory_space<vmem>>, vector<1x16x1x100xf32>,
    %c0_154 = arith.constant 0 : index
    %c0_155 = arith.constant 0 : index
    %c0_156 = arith.constant 0 : index
    %c800 = arith.constant 800 : index
    %132 = vector.load %arg5[%c0_154, %c0_155, %c0_156, %c800] : memref<1x16x16x1600xf32, #tpu.memory_space<vmem>>, vector<1x16x1x100xf32>
    %133 = vector.shape_cast %132 : vector<1x16x1x100xf32> to vector<16x100xf32>
    %134 = vector.extract_strided_slice %76 {offsets = [0, 200], sizes = [16, 100], strides = [1, 1]} : vector<16x400xf32> to vector<16x100xf32>
    %cst_157 = arith.constant 2.500000e-01 : f32
    %135 = vector.broadcast %cst_157 : f32 to vector<16x100xf32>
    %136 = arith.mulf %135, %134 : vector<16x100xf32>
    %137 = arith.subf %133, %136 : vector<16x100xf32>
    %c0_158 = arith.constant 0 : index
    %c0_159 = arith.constant 0 : index
    %c0_160 = arith.constant 0 : index
    %c800_161 = arith.constant 800 : index
    %138 = vector.load %arg5[%c0_158, %c0_159, %c0_160, %c800_161] : memref<1x16x16x1600xf32, #tpu.memory_space<vmem>>, vector<1x16x1x100xf32>
    %139 = vector.shape_cast %138 : vector<1x16x1x100xf32> to vector<16x100xf32>
    %140 = vector.shape_cast %137 : vector<16x100xf32> to vector<1x16x1x100xf32>
    tpu.vector_store %arg5[%c0_158, %c0_159, %c0_160, %c800_161], %140 {strides = array<i32>} : memref<1x16x16x1600xf32, #tpu.memory_space<vmem>>, vector<1x16x1x100xf32>,
    %c0_162 = arith.constant 0 : index
    %c0_163 = arith.constant 0 : index
    %c15_164 = arith.constant 15 : index
    %c1100 = arith.constant 1100 : index
    %141 = vector.load %arg5[%c0_162, %c0_163, %c15_164, %c1100] : memref<1x16x16x1600xf32, #tpu.memory_space<vmem>>, vector<1x16x1x100xf32>
    %142 = vector.shape_cast %141 : vector<1x16x1x100xf32> to vector<16x100xf32>
    %143 = vector.extract_strided_slice %79 {offsets = [0, 200], sizes = [16, 100], strides = [1, 1]} : vector<16x400xf32> to vector<16x100xf32>
    %cst_165 = arith.constant 2.500000e-01 : f32
    %144 = vector.broadcast %cst_165 : f32 to vector<16x100xf32>
    %145 = arith.mulf %144, %143 : vector<16x100xf32>
    %146 = arith.subf %142, %145 : vector<16x100xf32>
    %c0_166 = arith.constant 0 : index
    %c0_167 = arith.constant 0 : index
    %c15_168 = arith.constant 15 : index
    %c1100_169 = arith.constant 1100 : index
    %147 = vector.load %arg5[%c0_166, %c0_167, %c15_168, %c1100_169] : memref<1x16x16x1600xf32, #tpu.memory_space<vmem>>, vector<1x16x1x100xf32>
    %148 = vector.shape_cast %147 : vector<1x16x1x100xf32> to vector<16x100xf32>
    %149 = vector.shape_cast %146 : vector<16x100xf32> to vector<1x16x1x100xf32>
    tpu.vector_store %arg5[%c0_166, %c0_167, %c15_168, %c1100_169], %149 {strides = array<i32>} : memref<1x16x16x1600xf32, #tpu.memory_space<vmem>>, vector<1x16x1x100xf32>,
    %c0_170 = arith.constant 0 : index
    %c0_171 = arith.constant 0 : index
    %c0_172 = arith.constant 0 : index
    %c1200_173 = arith.constant 1200 : index
    %150 = vector.load %arg5[%c0_170, %c0_171, %c0_172, %c1200_173] : memref<1x16x16x1600xf32, #tpu.memory_space<vmem>>, vector<1x16x1x100xf32>
    %151 = vector.shape_cast %150 : vector<1x16x1x100xf32> to vector<16x100xf32>
    %152 = vector.extract_strided_slice %76 {offsets = [0, 300], sizes = [16, 100], strides = [1, 1]} : vector<16x400xf32> to vector<16x100xf32>
    %cst_174 = arith.constant 2.500000e-01 : f32
    %153 = vector.broadcast %cst_174 : f32 to vector<16x100xf32>
    %154 = arith.mulf %153, %152 : vector<16x100xf32>
    %155 = arith.subf %151, %154 : vector<16x100xf32>
    %c0_175 = arith.constant 0 : index
    %c0_176 = arith.constant 0 : index
    %c0_177 = arith.constant 0 : index
    %c1200_178 = arith.constant 1200 : index
    %156 = vector.load %arg5[%c0_175, %c0_176, %c0_177, %c1200_178] : memref<1x16x16x1600xf32, #tpu.memory_space<vmem>>, vector<1x16x1x100xf32>
    %157 = vector.shape_cast %156 : vector<1x16x1x100xf32> to vector<16x100xf32>
    %158 = vector.shape_cast %155 : vector<16x100xf32> to vector<1x16x1x100xf32>
    tpu.vector_store %arg5[%c0_175, %c0_176, %c0_177, %c1200_178], %158 {strides = array<i32>} : memref<1x16x16x1600xf32, #tpu.memory_space<vmem>>, vector<1x16x1x100xf32>,
    %c0_179 = arith.constant 0 : index
    %c0_180 = arith.constant 0 : index
    %c15_181 = arith.constant 15 : index
    %c1500 = arith.constant 1500 : index
    %159 = vector.load %arg5[%c0_179, %c0_180, %c15_181, %c1500] : memref<1x16x16x1600xf32, #tpu.memory_space<vmem>>, vector<1x16x1x100xf32>
    %160 = vector.shape_cast %159 : vector<1x16x1x100xf32> to vector<16x100xf32>
    %161 = vector.extract_strided_slice %79 {offsets = [0, 300], sizes = [16, 100], strides = [1, 1]} : vector<16x400xf32> to vector<16x100xf32>
    %cst_182 = arith.constant 2.500000e-01 : f32
    %162 = vector.broadcast %cst_182 : f32 to vector<16x100xf32>
    %163 = arith.mulf %162, %161 : vector<16x100xf32>
    %164 = arith.subf %160, %163 : vector<16x100xf32>
    %c0_183 = arith.constant 0 : index
    %c0_184 = arith.constant 0 : index
    %c15_185 = arith.constant 15 : index
    %c1500_186 = arith.constant 1500 : index
    %165 = vector.load %arg5[%c0_183, %c0_184, %c15_185, %c1500_186] : memref<1x16x16x1600xf32, #tpu.memory_space<vmem>>, vector<1x16x1x100xf32>
    %166 = vector.shape_cast %165 : vector<1x16x1x100xf32> to vector<16x100xf32>
    %167 = vector.shape_cast %164 : vector<16x100xf32> to vector<1x16x1x100xf32>
    tpu.vector_store %arg5[%c0_183, %c0_184, %c15_185, %c1500_186], %167 {strides = array<i32>} : memref<1x16x16x1600xf32, #tpu.memory_space<vmem>>, vector<1x16x1x100xf32>,
    %cst_187 = arith.constant 1.000000e+00 : bf16
    %168 = vector.broadcast %cst_187 : bf16 to vector<1x1xbf16>
    %c0_188 = arith.constant 0 : index
    %c0_189 = arith.constant 0 : index
    %c0_190 = arith.constant 0 : index
    %c0_191 = arith.constant 0 : index
    %169 = vector.load %arg5[%c0_188, %c0_189, %c0_190, %c0_191] : memref<1x16x16x1600xf32, #tpu.memory_space<vmem>>, vector<1x1x1x100xf32>
    %170 = vector.shape_cast %169 : vector<1x1x1x100xf32> to vector<1x100xf32>
    %c1_192 = arith.constant 1 : index
    %c1_193 = arith.constant 1 : index
    %c0_194 = arith.constant 0 : index
    %171 = vector.load %arg6[%c1_192, %c1_193, %c0_194] : memref<18x18x32xbf16, #tpu.memory_space<vmem>>, vector<1x1x32xbf16>
    %172 = vector.shape_cast %171 : vector<1x1x32xbf16> to vector<1x32xbf16>
    %173 = tpu.concatenate %172, %168 in 1 : vector<1x32xbf16>, vector<1x1xbf16> -> vector<1x33xbf16>
    %174 = vector.shape_cast %173 : vector<1x33xbf16> to vector<1x33xbf16>
    %175 = vector.broadcast %174 : vector<1x33xbf16> to vector<8x33xbf16>
    %c0_195 = arith.constant 0 : index
    %c0_196 = arith.constant 0 : index
    %c0_197 = arith.constant 0 : index
    %176 = vector.load %arg4[%c0_195, %c0_196, %c0_197] : memref<4x33x100xbf16, #tpu.memory_space<vmem>>, vector<1x33x100xbf16>
    %177 = vector.shape_cast %176 : vector<1x33x100xbf16> to vector<33x100xbf16>
    %cst_198 = arith.constant dense<0.000000e+00> : vector<8x100xf32>
    %178 = tpu.matmul %175, %177, %cst_198 {dimension_numbers = #tpu.dot_dimension_numbers<[1], [0], [0], [1], [0, 0, 1, 1], [], []>} : vector<8x33xbf16>, vector<33x100xbf16>, vector<8x100xf32> -> vector<8x100xf32>
    %179 = vector.extract_strided_slice %178 {offsets = [0, 0], sizes = [1, 100], strides = [1, 1]} : vector<8x100xf32> to vector<1x100xf32>
    %cst_199 = arith.constant 6.250000e-02 : f32
    %180 = vector.broadcast %cst_199 : f32 to vector<1x100xf32>
    %181 = arith.mulf %180, %179 : vector<1x100xf32>
    %182 = arith.addf %170, %181 : vector<1x100xf32>
    %c0_200 = arith.constant 0 : index
    %c0_201 = arith.constant 0 : index
    %c0_202 = arith.constant 0 : index
    %c0_203 = arith.constant 0 : index
    %183 = vector.load %arg5[%c0_200, %c0_201, %c0_202, %c0_203] : memref<1x16x16x1600xf32, #tpu.memory_space<vmem>>, vector<1x1x1x100xf32>
    %184 = vector.shape_cast %183 : vector<1x1x1x100xf32> to vector<1x100xf32>
    %185 = vector.shape_cast %182 : vector<1x100xf32> to vector<1x1x1x100xf32>
    tpu.vector_store %arg5[%c0_200, %c0_201, %c0_202, %c0_203], %185 {strides = array<i32>} : memref<1x16x16x1600xf32, #tpu.memory_space<vmem>>, vector<1x1x1x100xf32>,
    %c0_204 = arith.constant 0 : index
    %c0_205 = arith.constant 0 : index
    %c15_206 = arith.constant 15 : index
    %c300_207 = arith.constant 300 : index
    %186 = vector.load %arg5[%c0_204, %c0_205, %c15_206, %c300_207] : memref<1x16x16x1600xf32, #tpu.memory_space<vmem>>, vector<1x1x1x100xf32>
    %187 = vector.shape_cast %186 : vector<1x1x1x100xf32> to vector<1x100xf32>
    %c1_208 = arith.constant 1 : index
    %c16_209 = arith.constant 16 : index
    %c0_210 = arith.constant 0 : index
    %188 = vector.load %arg6[%c1_208, %c16_209, %c0_210] : memref<18x18x32xbf16, #tpu.memory_space<vmem>>, vector<1x1x32xbf16>
    %189 = vector.shape_cast %188 : vector<1x1x32xbf16> to vector<1x32xbf16>
    %190 = tpu.concatenate %189, %168 in 1 : vector<1x32xbf16>, vector<1x1xbf16> -> vector<1x33xbf16>
    %191 = vector.shape_cast %190 : vector<1x33xbf16> to vector<1x33xbf16>
    %192 = vector.broadcast %191 : vector<1x33xbf16> to vector<8x33xbf16>
    %c1_211 = arith.constant 1 : index
    %c0_212 = arith.constant 0 : index
    %c0_213 = arith.constant 0 : index
    %193 = vector.load %arg4[%c1_211, %c0_212, %c0_213] : memref<4x33x100xbf16, #tpu.memory_space<vmem>>, vector<1x33x100xbf16>
    %194 = vector.shape_cast %193 : vector<1x33x100xbf16> to vector<33x100xbf16>
    %cst_214 = arith.constant dense<0.000000e+00> : vector<8x100xf32>
    %195 = tpu.matmul %192, %194, %cst_214 {dimension_numbers = #tpu.dot_dimension_numbers<[1], [0], [0], [1], [0, 0, 1, 1], [], []>} : vector<8x33xbf16>, vector<33x100xbf16>, vector<8x100xf32> -> vector<8x100xf32>
    %196 = vector.extract_strided_slice %195 {offsets = [0, 0], sizes = [1, 100], strides = [1, 1]} : vector<8x100xf32> to vector<1x100xf32>
    %cst_215 = arith.constant 6.250000e-02 : f32
    %197 = vector.broadcast %cst_215 : f32 to vector<1x100xf32>
    %198 = arith.mulf %197, %196 : vector<1x100xf32>
    %199 = arith.addf %187, %198 : vector<1x100xf32>
    %c0_216 = arith.constant 0 : index
    %c0_217 = arith.constant 0 : index
    %c15_218 = arith.constant 15 : index
    %c300_219 = arith.constant 300 : index
    %200 = vector.load %arg5[%c0_216, %c0_217, %c15_218, %c300_219] : memref<1x16x16x1600xf32, #tpu.memory_space<vmem>>, vector<1x1x1x100xf32>
    %201 = vector.shape_cast %200 : vector<1x1x1x100xf32> to vector<1x100xf32>
    %202 = vector.shape_cast %199 : vector<1x100xf32> to vector<1x1x1x100xf32>
    tpu.vector_store %arg5[%c0_216, %c0_217, %c15_218, %c300_219], %202 {strides = array<i32>} : memref<1x16x16x1600xf32, #tpu.memory_space<vmem>>, vector<1x1x1x100xf32>,
    %c0_220 = arith.constant 0 : index
    %c15_221 = arith.constant 15 : index
    %c0_222 = arith.constant 0 : index
    %c1200_223 = arith.constant 1200 : index
    %203 = vector.load %arg5[%c0_220, %c15_221, %c0_222, %c1200_223] : memref<1x16x16x1600xf32, #tpu.memory_space<vmem>>, vector<1x1x1x100xf32>
    %204 = vector.shape_cast %203 : vector<1x1x1x100xf32> to vector<1x100xf32>
    %c16_224 = arith.constant 16 : index
    %c1_225 = arith.constant 1 : index
    %c0_226 = arith.constant 0 : index
    %205 = vector.load %arg6[%c16_224, %c1_225, %c0_226] : memref<18x18x32xbf16, #tpu.memory_space<vmem>>, vector<1x1x32xbf16>
    %206 = vector.shape_cast %205 : vector<1x1x32xbf16> to vector<1x32xbf16>
    %207 = tpu.concatenate %206, %168 in 1 : vector<1x32xbf16>, vector<1x1xbf16> -> vector<1x33xbf16>
    %208 = vector.shape_cast %207 : vector<1x33xbf16> to vector<1x33xbf16>
    %209 = vector.broadcast %208 : vector<1x33xbf16> to vector<8x33xbf16>
    %c2_227 = arith.constant 2 : index
    %c0_228 = arith.constant 0 : index
    %c0_229 = arith.constant 0 : index
    %210 = vector.load %arg4[%c2_227, %c0_228, %c0_229] : memref<4x33x100xbf16, #tpu.memory_space<vmem>>, vector<1x33x100xbf16>
    %211 = vector.shape_cast %210 : vector<1x33x100xbf16> to vector<33x100xbf16>
    %cst_230 = arith.constant dense<0.000000e+00> : vector<8x100xf32>
    %212 = tpu.matmul %209, %211, %cst_230 {dimension_numbers = #tpu.dot_dimension_numbers<[1], [0], [0], [1], [0, 0, 1, 1], [], []>} : vector<8x33xbf16>, vector<33x100xbf16>, vector<8x100xf32> -> vector<8x100xf32>
    %213 = vector.extract_strided_slice %212 {offsets = [0, 0], sizes = [1, 100], strides = [1, 1]} : vector<8x100xf32> to vector<1x100xf32>
    %cst_231 = arith.constant 6.250000e-02 : f32
    %214 = vector.broadcast %cst_231 : f32 to vector<1x100xf32>
    %215 = arith.mulf %214, %213 : vector<1x100xf32>
    %216 = arith.addf %204, %215 : vector<1x100xf32>
    %c0_232 = arith.constant 0 : index
    %c15_233 = arith.constant 15 : index
    %c0_234 = arith.constant 0 : index
    %c1200_235 = arith.constant 1200 : index
    %217 = vector.load %arg5[%c0_232, %c15_233, %c0_234, %c1200_235] : memref<1x16x16x1600xf32, #tpu.memory_space<vmem>>, vector<1x1x1x100xf32>
    %218 = vector.shape_cast %217 : vector<1x1x1x100xf32> to vector<1x100xf32>
    %219 = vector.shape_cast %216 : vector<1x100xf32> to vector<1x1x1x100xf32>
    tpu.vector_store %arg5[%c0_232, %c15_233, %c0_234, %c1200_235], %219 {strides = array<i32>} : memref<1x16x16x1600xf32, #tpu.memory_space<vmem>>, vector<1x1x1x100xf32>,
    %c0_236 = arith.constant 0 : index
    %c15_237 = arith.constant 15 : index
    %c15_238 = arith.constant 15 : index
    %c1500_239 = arith.constant 1500 : index
    %220 = vector.load %arg5[%c0_236, %c15_237, %c15_238, %c1500_239] : memref<1x16x16x1600xf32, #tpu.memory_space<vmem>>, vector<1x1x1x100xf32>
    %221 = vector.shape_cast %220 : vector<1x1x1x100xf32> to vector<1x100xf32>
    %c16_240 = arith.constant 16 : index
    %c16_241 = arith.constant 16 : index
    %c0_242 = arith.constant 0 : index
    %222 = vector.load %arg6[%c16_240, %c16_241, %c0_242] : memref<18x18x32xbf16, #tpu.memory_space<vmem>>, vector<1x1x32xbf16>
    %223 = vector.shape_cast %222 : vector<1x1x32xbf16> to vector<1x32xbf16>
    %224 = tpu.concatenate %223, %168 in 1 : vector<1x32xbf16>, vector<1x1xbf16> -> vector<1x33xbf16>
    %225 = vector.shape_cast %224 : vector<1x33xbf16> to vector<1x33xbf16>
    %226 = vector.broadcast %225 : vector<1x33xbf16> to vector<8x33xbf16>
    %c3_243 = arith.constant 3 : index
    %c0_244 = arith.constant 0 : index
    %c0_245 = arith.constant 0 : index
    %227 = vector.load %arg4[%c3_243, %c0_244, %c0_245] : memref<4x33x100xbf16, #tpu.memory_space<vmem>>, vector<1x33x100xbf16>
    %228 = vector.shape_cast %227 : vector<1x33x100xbf16> to vector<33x100xbf16>
    %cst_246 = arith.constant dense<0.000000e+00> : vector<8x100xf32>
    %229 = tpu.matmul %226, %228, %cst_246 {dimension_numbers = #tpu.dot_dimension_numbers<[1], [0], [0], [1], [0, 0, 1, 1], [], []>} : vector<8x33xbf16>, vector<33x100xbf16>, vector<8x100xf32> -> vector<8x100xf32>
    %230 = vector.extract_strided_slice %229 {offsets = [0, 0], sizes = [1, 100], strides = [1, 1]} : vector<8x100xf32> to vector<1x100xf32>
    %cst_247 = arith.constant 6.250000e-02 : f32
    %231 = vector.broadcast %cst_247 : f32 to vector<1x100xf32>
    %232 = arith.mulf %231, %230 : vector<1x100xf32>
    %233 = arith.addf %221, %232 : vector<1x100xf32>
    %c0_248 = arith.constant 0 : index
    %c15_249 = arith.constant 15 : index
    %c15_250 = arith.constant 15 : index
    %c1500_251 = arith.constant 1500 : index
    %234 = vector.load %arg5[%c0_248, %c15_249, %c15_250, %c1500_251] : memref<1x16x16x1600xf32, #tpu.memory_space<vmem>>, vector<1x1x1x100xf32>
    %235 = vector.shape_cast %234 : vector<1x1x1x100xf32> to vector<1x100xf32>
    %236 = vector.shape_cast %233 : vector<1x100xf32> to vector<1x1x1x100xf32>
    tpu.vector_store %arg5[%c0_248, %c15_249, %c15_250, %c1500_251], %236 {strides = array<i32>} : memref<1x16x16x1600xf32, #tpu.memory_space<vmem>>, vector<1x1x1x100xf32>,
    return
  }
  func.func @transform_0(%arg0: i32) -> (i32, i32, i32, i32) {
    %c0_i32 = arith.constant 0 : i32
    %c0_i32_0 = arith.constant 0 : i32
    %c0_i32_1 = arith.constant 0 : i32
    %c0_i32_2 = arith.constant 0 : i32
    return %arg0, %c0_i32, %c0_i32_0, %c0_i32_1 : i32, i32, i32, i32
  }
  func.func @transform_1(%arg0: i32) -> (i32, i32) {
    %c0_i32 = arith.constant 0 : i32
    %c0_i32_0 = arith.constant 0 : i32
    %c0_i32_1 = arith.constant 0 : i32
    return %c0_i32, %c0_i32_0 : i32, i32
  }
  func.func @transform_2(%arg0: i32) -> (i32, i32, i32) {
    %c0_i32 = arith.constant 0 : i32
    %c0_i32_0 = arith.constant 0 : i32
    %c0_i32_1 = arith.constant 0 : i32
    %c0_i32_2 = arith.constant 0 : i32
    return %c0_i32, %c0_i32_0, %c0_i32_1 : i32, i32, i32
  }
  func.func @transform_3(%arg0: i32) -> (i32, i32, i32) {
    %c0_i32 = arith.constant 0 : i32
    %c0_i32_0 = arith.constant 0 : i32
    %c0_i32_1 = arith.constant 0 : i32
    %c0_i32_2 = arith.constant 0 : i32
    return %c0_i32, %c0_i32_0, %c0_i32_1 : i32, i32, i32
  }
  func.func @transform_4(%arg0: i32) -> (i32, i32, i32, i32) {
    %c0_i32 = arith.constant 0 : i32
    %c0_i32_0 = arith.constant 0 : i32
    %c0_i32_1 = arith.constant 0 : i32
    %c0_i32_2 = arith.constant 0 : i32
    return %arg0, %c0_i32, %c0_i32_0, %c0_i32_1 : i32, i32, i32, i32
  }
}

</mosaic_0001>

<bundles_post_ra>
// kernel: tpu_custom_call.1
= control target key start
LH: loop header
LB: loop body
LE: loop exit
PB: predicated region body
PF: predicated region fallthrough
CT: control target
= control target key end

     0   :  { %9 = vsyncpa [#allocation4], 0  ;;  %s20675_s0 = inlined_call_operand.hbm [shape: f32[2,16,16,32], index: 0, kind: input, shape index: {}]   ;;  %s20676_s1 = inlined_call_operand.hbm [shape: bf16[289,1600], index: 1, kind: input, shape index: {}]   ;;  %s20677_s2 = inlined_call_operand.vmem [shape: bf16[4,97,400], index: 2, kind: input, shape index: {}]   ;;  %s20678_s3 = inlined_call_operand.vmem [shape: bf16[4,33,100], index: 3, kind: input, shape index: {}]   ;;  %s20679_s4 = inlined_call_operand.hbm [shape: f32[2,16,16,1600], index: 4, kind: output, shape index: {}]  }
   0x1   :  { %11 = vsyncpa [#allocation4 + $0x1], 0 }
   0x2   :  { %12 = vsyncpa [#allocation7], 0 }
   0x3   :  { %13 = vsyncpa [#allocation5], 0 }
   0x4   :  { %15 = vsyncpa [#allocation5 + $0x1], 0  ;;  %s14791_s15 = smov 0   ;;  %s14793_s16 = smov 0  }
   0x5   :  { %s14795_s17 = smov 0   ;;  %s14797_s18 = smov 0  }
   0x6 LB: > { %s14812_s19 = sadd.s32 4294967295, %s14744_s18   ;;  %s12228_s20 = sadd.s32 4294967294, %s14744_s18   ;;  %s14744_s18 = sphi %s14797_s18, %s21021_s18   ;;  %s14740_s17 = sphi %s14795_s17, %s21020_s17   ;;  %s14736_s16 = sphi %s14793_s16, %s21019_s16   ;;  %s14732_s15 = sphi %s14791_s15, %s21018_s15  }
   0x7   : > { %p41_p0 = scmp.ne.s32.totalorder %s14736_s16, %s14732_s15  ;;  %p20680_p1 = scmp.eq.s32.totalorder %s14812_s19, 0 }
   0x8   : > { %p134_p3 = scmp.eq.s32.totalorder %s12228_s20, 1  ;;  %p12229_p5 = scmp.ge.s32.totalorder %s14744_s18, 1 }
   0x9   : > { %p14821_p4 = por %p20680_p1, %p41_p0  ;;  %p141_p7 = scmp.lt.s32.totalorder %s14744_s18, 3 }
   0xa   : > { %p14826_p6 = por %p134_p3, %p41_p0  ;;  %s14746_s24 = smov [#allocation6]  }
   0xb   : > { %s20777_s21 = scalar_select %p14821_p4, 1, 0 }
   0xc   : > { %s20778_s22 = scalar_select %p14826_p6, 1, 0 }
   0xd   : > { %p14831_p8 = pnand %p12229_p5, %p141_p7  ;;  %s153_s25 = sshll.u32 %s14746_s24, 4  ;;  %s14835_s25 = int_to_ptr.vmem [resolvable:$true] %s153_s25 }
   0xe   : > { %s14847_s27 = sadd.s32 1, %s14744_s18   ;;  %s28_s28 = sadd.s32 1, %s14740_s17 }
   0xf   : > { %s20779_s23 = scalar_select %p14831_p8, 1, 0 }
  0x10   : > { %p13830_p9 = pneg %p14831_p8  ;;  %s25_s29 = ssub.s32 %s14744_s18, %s14847_s27 }
  0x11   : > { %s14616_s6 = scalar_lea.hbm %s20676_s1, 30784 }
  0x12   : > { %p14842_p11 = pnand %p13830_p9, %p20680_p1  ;;  %p14617_p12 = scmp.ne.s32.totalorder %s20676_s1, %s14616_s6 }
  0x13   : > { %p14623_p5 = scmp.lt.u32.totalorder %s14616_s6, %s20676_s1 }
  0x14   : > { %p14618_p13 = pneg %p14842_p11 }
  0x16   : > { %p14619_p0 = pnand %p14618_p13, %p14617_p12 }
  0x18   : > { %p14620_p3 = pneg %p14619_p0 }
  0x1a   : > { %p14625_p7 = pnand %p14623_p5, %p14620_p3 }
  0x1c   : > { %14628 = shalt.err (!%p14625_p7)
}
  0x1d   : > { %s14629_s11 = scalar_lea.vmem %s14835_s25, 30784  ;;  %p14637_p2 = scmp.lt.s32.totalorder %s14835_s25, %s14835_s25 }
  0x1e   : > { %p14630_p9 = scmp.ne.s32.totalorder %s14835_s25, %s14629_s11  ;;  %p14638_p6 = scmp.lt.s32.totalorder %s14629_s11, %s14629_s11 }
  0x20   : > { %p14632_p10 = pnand %p14630_p9, %p14618_p13  ;;  %p14639_p4 = por %p14638_p6, %p14637_p2 }
  0x22   : > { %p14633_p1 = pneg %p14632_p10 }
  0x24   : > { %p14640_p8 = pnand %p14639_p4, %p14633_p1 }
  0x26   : > { %14643 = shalt.err (!%p14640_p8)
}
  0x27   : > { %s14747_s12 = smov 832   ;;  %s14748_s13 = smov 52  }
  0x28   : > { %13833 = dma.hbm_to_vmem [thread:$0]  (!%p14842_p11), %s20676_s1, 30784, %s14835_s25, [#allocation7], %s14747_s12, %s14747_s12, %s14748_s13  }
  0x29   : > { %p26_p2 = scmp.eq.s32.totalorder %s25_s29, 0  ;;  %p35_p1 = scmp.ne.s32.totalorder %s14740_s17, %s14736_s16 }
  0x2a   : > { %p36_p4 = scmp.eq.s32.totalorder %s14744_s18, 0  ;;  %p13843_p6 = scmp.lt.s32.totalorder %s14744_s18, 2 }
  0x2b   : > { %s14878_s24 = scalar_select %p26_p2, %s14740_s17, %s28_s28  }
  0x2c   : > { %p37_p8 = por %p36_p4, %p35_p1  ;;  %p20781_p10 = scmp.eq.s32.totalorder %s14812_s19, 1 }
  0x2d   : > { %s173_s5 = sand.u32 1, %s14740_s17   ;;  %s13178_s6 = sshll.u32 %s14744_s18, 12 }
  0x2e   : > { %p14882_p12 = por %p20781_p10, %p35_p1  ;;  %s12232_s7 = sshll.u32 %s173_s5, 8 }
  0x2f   : > { %s14891_s9 = scalar_lea.hbm %s20675_s0, %s13178_s6  ;;  %s177_s25 = scalar_lea.vmem [#allocation3], %s12232_s7 }
  0x30   : > { %s184_s28 = sshll.u32 %s177_s25, 4  ;;  %p14893_p11 = pnand %p13843_p6, %p37_p8  ;;  %s14897_s28 = int_to_ptr.vmem [resolvable:$true] %s184_s28 }
  0x31   : > { %s14899_s10 = scalar_lea.sflag [#allocation4], %s173_s5  ;;  %s14644_s11 = scalar_lea.hbm %s14891_s9, 4096 }
  0x32   : > { %p14645_p13 = scmp.ne.s32.totalorder %s14891_s9, %s14644_s11  ;;  %p14646_p0 = pneg %p14893_p11 }
  0x33   : > { %s14649_s14 = scalar_lea.hbm %s20675_s0, 8192  ;;  %p14650_p7 = scmp.lt.u32.totalorder %s14891_s9, %s20675_s0 }
  0x34   : > { %p14647_p3 = pnand %p14646_p0, %p14645_p13  ;;  %p14651_p9 = scmp.lt.u32.totalorder %s14649_s14, %s14644_s11 }
  0x35   : > { %p14653_p1 = scmp.lt.u32.totalorder %s14644_s11, %s14891_s9 }
  0x36   : > { %p14648_p5 = pneg %p14647_p3  ;;  %p14652_p2 = por %p14651_p9, %p14650_p7 }
  0x38   : > { %p14654_p4 = por %p14653_p1, %p14652_p2 }
  0x3a   : > { %p14655_p6 = pnand %p14654_p4, %p14648_p5 }
  0x3c   : > { %14658 = shalt.err (!%p14655_p6)
}
  0x3d   : > { %s14659_s5 = scalar_lea.vmem %s14897_s28, 4096  ;;  %s14749_s7 = smov [#allocation3]  }
  0x3e   : > { %p14660_p8 = scmp.ne.s32.totalorder %s14897_s28, %s14659_s5  ;;  %s14664_s26 = sshll.u32 %s14749_s7, 4  ;;  %s14665_s26 = int_to_ptr.vmem [resolvable:$false] %s14664_s26 }
  0x3f   : > { %s14666_s8 = scalar_lea.vmem %s14665_s26, 8192  ;;  %p14667_p3 = scmp.lt.s32.totalorder %s14897_s28, %s14665_s26 }
  0x40   : > { %p14662_p10 = pnand %p14660_p8, %p14646_p0  ;;  %p14668_p7 = scmp.lt.s32.totalorder %s14666_s8, %s14659_s5 }
  0x42   : > { %p14663_p13 = pneg %p14662_p10  ;;  %p14669_p9 = por %p14668_p7, %p14667_p3 }
  0x44   : > { %p14670_p2 = pnand %p14669_p9, %p14663_p13 }
  0x46   : > { %14673 = shalt.err (!%p14670_p2)
}
  0x47   : > { %s14750_s25 = smov 128   ;;  %s14751_s11 = smov 8  }
  0x48   : > { %13837 = dma.hbm_to_vmem [thread:$0]  (!%p14893_p11), %s14891_s9, 4096, %s14897_s28, %s14899_s10, %s14750_s25, %s14750_s25, %s14751_s11  }
  0x49   : > { %p20784_p0 = scmp.ne.s32.totalorder %s20779_s23, 0 }
  0x4b   : > { %196 = sbr.rel (%p20784_p0) target bundleno = 2132 (0x854), region = 36 }
  0x52   : > { %s14930_s12 = sand.u32 1, %s14736_s16   ;;  %p20785_p5 = scmp.ne.s32.totalorder %s20777_s21, 0 }
  0x53   : > { %s12236_s13 = sshll.u32 %s14930_s12, 8  ;;  %s199_s14 = scalar_lea.sflag [#allocation4], %s14930_s12 }
  0x54   : > { %s14934_s20 = scalar_lea.vmem [#allocation3], %s12236_s13 }
  0x55   : > { %14719 = dma.done.wait (%p20785_p5), %s199_s14, 4096  }
  0x56   : > { %14721 = vsyncadd (%p20785_p5), %s199_s14, 4294963200  ;;  %p20786_p11 = scmp.eq.s32.totalorder %s14812_s19, 0 }
  0x58   : > { %14723 = dma.done.wait (%p20786_p11), [#allocation7], 30784   ;;  %p20787_p1 = pmov %p20786_p11 }
  0x59   : > { %vm233_vm0 = vcmask 257024   ;;  %vm236_vm1 = vcmask 253952   ;;  %v20685_v0 = vmov 0   ;;  %vm243_vm2 = vsmask.f32 256  ;;  %v359_v4 = vld [vmem:[%s14934_s20 + $0x20] sm:$0xff] }
  0x5a   : > { %14725 = vsyncadd (%p20787_p1), [#allocation7], 4294936512  ;;  %234 = vst.msk [vmem:[#allocation2] sm:$0xf] %vm233_vm0, %v20685_v0  ;;  %vm299_vm3 = vsmask.f32 7938  ;;  %v13183_v9 = vpack.c.bf16 %v359_v4, %v359_v4 }
  0x5b   : > { %235 = vst.msk [vmem:[#allocation2 + $0x4] sm:$0xf] %vm233_vm0, %v20685_v0  ;;  %239 = vst.msk [vmem:[#allocation2 + $0xcc] sm:$0xf] %vm233_vm0, %v20685_v0  ;;  %v254_v3 = vld [vmem:[#allocation2 + $0x24] sm:$0x1] }
  0x5c   : > { %237 = vst.msk [vmem:[#allocation2 + $0x8] sm:$0x1] %vm236_vm1, %v20685_v0  ;;  %241 = vst.msk [vmem:[#allocation2 + $0xd4] sm:$0x1] %vm236_vm1, %v20685_v0  ;;  %v360_v5 = vld [vmem:[%s14934_s20 + $0x28] sm:$0xff]  ;;  %vm1419_vm7 = vcmask 1042432  }
  0x5d   : > { %240 = vst.msk [vmem:[#allocation2 + $0xd0] sm:$0xf] %vm233_vm0, %v20685_v0  ;;  %vm14958_vm4 = vmand %vm236_vm1, %vm243_vm2  ;;  %vm483_vm6 = vsmask.f32 4368  ;;  %v13184_v10 = vpack.c.bf16 %v360_v5, %v360_v5  ;;  %v520_v16 = vshrl.u32 %v13183_v9, 16  ;;  %v523_v17 = vshll.u32 %v13183_v9, 16 }
  0x5e   : > { %vm14964_vm5 = vmand %vm236_vm1, %vm299_vm3  ;;  %v255_v14 = vsel %vm14958_vm4, 0, %v254_v3  ;;  %v251_v19 = vld [vmem:[#allocation2 + $0x18] sm:$0x1]  ;;  %vm1420_vm8 = vcmask 1046532   ;;  %v357_v22 = vld [vmem:[%s14934_s20 + $0x10] sm:$0xff]  ;;  %s14753_s21 = smov 64  }
  0x5f   : > { %256 = vst [vmem:[#allocation2 + $0x24] sm:$0x1] %v255_v14  ;;  %v528_v18 = vshrl.u32 %v13184_v10, 16  ;;  %v531_v20 = vshll.u32 %v13184_v10, 16  ;;  %v252_v21 = vsel %vm14958_vm4, 0, %v251_v19  ;;  %v358_v23 = vld [vmem:[%s14934_s20 + $0x18] sm:$0xff]  ;;  %v13181_v27 = vpack.c.bf16 %v357_v22, %v357_v22  ;;  %vm14989_vm9 = vmor %vm243_vm2, %vm483_vm6 }
  0x60   : > { %v361_v24 = vld [vmem:[%s14934_s20 + $0x30] sm:$0xff]  ;;  %v522_v25 = vrot.slane %v520_v16, 7  ;;  %253 = vst [vmem:[#allocation2 + $0x18] sm:$0x1] %v252_v21  ;;  %v13182_v28 = vpack.c.bf16 %v358_v23, %v358_v23  ;;  %v257_v29 = vld [vmem:[#allocation2 + $0x30] sm:$0x1]  ;;  %vm14997_vm10 = vmor %vm1419_vm7, %vm1420_vm8 }
  0x61   : > { %v1355_v8 = vld [vmem:[#allocation2] sm:$0xe]  ;;  %v245_v13 = vld [vmem:[#allocation2] sm:$0x1]  ;;  %v14984_v26 = vrot.slane %v528_v18, 7  ;;  %v362_v30 = vld [vmem:[%s14934_s20 + $0x38] sm:$0xff]  ;;  %v13185_v34 = vpack.c.bf16 %v361_v24, %v361_v24 }
  0x62   : > { %v14970_v7 = vld [vmem:[#allocation2 + $0x4] sm:$0xf]  ;;  %v246_v15 = vsel %vm14958_vm4, 0, %v245_v13  ;;  %v12270_v31 = vrot.slane %v1355_v8, 9  ;;  %v258_v33 = vsel %vm14958_vm4, 0, %v257_v29  ;;  %v13186_v35 = vpack.c.bf16 %v362_v30, %v362_v30  ;;  %vm15004_vm11 = vmand %vm233_vm0, %vm299_vm3  ;;  %v355_v46 = vld [vmem:[%s14934_s20] sm:$0xff] }
  0x63   : > { %v301_v6 = vld [vmem:[#allocation2 + $0x8] sm:$0x1]  ;;  %v1424_v12 = vrot.slane %v14970_v7, 5  ;;  %247 = vst [vmem:[#allocation2] sm:$0x1] %v246_v15  ;;  %v525_v38 = vor.u32 %v523_v17, %v522_v25  ;;  %v526_v39 = vrot.slane %v522_v25, 4  ;;  %v533_v40 = vor.u32 %v531_v20, %v14984_v26 }
  0x64   : > { %v302_v11 = vsel %vm14964_vm5, 0, %v301_v6  ;;  %259 = vst [vmem:[#allocation2 + $0x30] sm:$0x1] %v258_v33  ;;  %v503_v42 = vshrl.u32 %v13181_v27, 16  ;;  %v506_v43 = vshll.u32 %v13181_v27, 16  ;;  %v511_v44 = vshrl.u32 %v13182_v28, 16 }
  0x65   : > { %303 = vst [vmem:[#allocation2 + $0x8] sm:$0x1] %v302_v11  ;;  %v1426_v37 = vrot.slane %v1424_v12, 4  ;;  %v514_v45 = vshll.u32 %v13182_v28, 16  ;;  %v534_v47 = vsel %vm14989_vm9, %v526_v39, %v533_v40  ;;  %v537_v48 = vshrl.u32 %v13185_v34, 16  ;;  %v356_v51 = vld [vmem:[%s14934_s20 + $0x8] sm:$0xff] }
  0x66   : > { %v540_v49 = vshll.u32 %v13185_v34, 16  ;;  %v545_v50 = vshrl.u32 %v13186_v35, 16  ;;  %v1425_v53 = vsel %vm14997_vm10, %v12270_v31, %v1424_v12  ;;  %v822_v54 = vld [vmem:[#allocation2 + $0x24] sm:$0xf]  ;;  %825 = vst.msk [vmem:[#allocation2 + $0x28] sm:$0xf] %vm233_vm0, %v534_v47  ;;  %v13179_v60 = vpack.c.bf16 %v355_v46, %v355_v46 }
  0x67   : > { %v505_v55 = vrot.slane %v503_v42, 7  ;;  %v15017_v56 = vrot.slane %v511_v44, 7  ;;  %v823_v58 = vsel %vm15004_vm11, %v525_v38, %v822_v54  ;;  %v539_v59 = vrot.slane %v537_v48, 7  ;;  %v815_v3 = vld [vmem:[#allocation2 + $0x18] sm:$0xf]  ;;  %v364_v44 = vld [vmem:[%s14934_s20 + $0x48] sm:$0xff] }
  0x68   : > { %824 = vst [vmem:[#allocation2 + $0x24] sm:$0xf] %v823_v58  ;;  %v248_v4 = vld [vmem:[#allocation2 + $0xc] sm:$0x1]  ;;  %v13180_v5 = vpack.c.bf16 %v356_v51, %v356_v51  ;;  %v15025_v10 = vrot.slane %v545_v50, 7  ;;  %v548_v14 = vshll.u32 %v13186_v35, 16 }
  0x69   : > { %v508_v61 = vor.u32 %v506_v43, %v505_v55  ;;  %v509_v62 = vrot.slane %v505_v55, 4  ;;  %v516_v63 = vor.u32 %v514_v45, %v15017_v56  ;;  %v542_v8 = vor.u32 %v540_v49, %v539_v59  ;;  %v363_v43 = vld [vmem:[%s14934_s20 + $0x40] sm:$0xff]  ;;  %s14754_s23 = smov 96   ;;  %s14755_s9 = smov 32   ;;  %v14041_v36 = vld [vmem:[#allocation6 + $0x18] ss:$52 sps:$4 sm:$0xff]  }
  0x6a   : > { %v543_v9 = vrot.slane %v539_v59, 4  ;;  %v249_v17 = vsel %vm14958_vm4, 0, %v248_v4  ;;  %v486_v18 = vshrl.u32 %v13179_v60, 16  ;;  %v550_v19 = vor.u32 %v548_v14, %v15025_v10  ;;  %v15038_v21 = vld [vmem:[#allocation2] sm:$0xf]  ;;  %s13820_s28 = smul.u32 3328, %s14930_s12 }
  0x6b   : > { %v517_v12 = vsel %vm14989_vm9, %v509_v62, %v516_v63  ;;  %v816_v13 = vsel %vm15004_vm11, %v508_v61, %v815_v3  ;;  %v829_v15 = vld [vmem:[#allocation2 + $0x30] sm:$0xf]  ;;  %250 = vst [vmem:[#allocation2 + $0xc] sm:$0x1] %v249_v17  ;;  %v494_v20 = vshrl.u32 %v13180_v5, 16  ;;  %v489_v25 = vshll.u32 %v13179_v60, 16 }
  0x6c   : > { %v15012_v52 = vld [vmem:[#allocation2 + $0x8] sm:$0x1]  ;;  %817 = vst [vmem:[#allocation2 + $0x18] sm:$0xf] %v816_v13  ;;  %818 = vst.msk [vmem:[#allocation2 + $0x1c] sm:$0xf] %vm233_vm0, %v517_v12  ;;  %v830_v16 = vsel %vm15004_vm11, %v542_v8, %v829_v15  ;;  %v551_v28 = vsel %vm14989_vm9, %v543_v9, %v550_v19  ;;  %v15076_v8 = vpack.c.bf16 %v364_v44, %v364_v44 }
  0x6d   : > { %v1427_v57 = vrot.slane %v15012_v52, 5  ;;  %831 = vst [vmem:[#allocation2 + $0x30] sm:$0xf] %v830_v16  ;;  %v991_v22 = vshll.u32 %v15012_v52, 16  ;;  %v15042_v24 = vld [vmem:[#allocation2 + $0x28] sm:$0xf] }
  0x6e   : > { %20798 = vst [vmem:[#allocation12_spill] sm:$0xff] %v15042_v24  ;;  %v2229_v27 = vshrl.u32 %v15042_v24, 16  ;;  %v488_v29 = vrot.slane %v486_v18, 7  ;;  %v497_v30 = vshll.u32 %v13180_v5, 16  ;;  %v518_v33 = vrot.slane %v15017_v56, 4  ;;  %s17425_s29 = scalar_lea.vmem [#allocation8], %s13820_s28 }
  0x6f   : > { %v1428_v6 = vsel %vm14997_vm10, %v1426_v37, %v1427_v57  ;;  %v2145_v31 = vld [vmem:[#allocation2 + $0x24] sm:$0xf]  ;;  %832 = vst.msk [vmem:[#allocation2 + $0x34] sm:$0xf] %vm233_vm0, %v551_v28  ;;  %v15050_v35 = vrot.slane %v494_v20, 7  ;;  %v972_v37 = vshrl.u32 %v15038_v21, 16 }
  0x70   : > { %v12350_v11 = vcombine.low %v1425_v53, %v1428_v6  ;;  %v12415_v39 = vcombine.low %v2145_v31, %v15042_v24  ;;  %v975_v40 = vshll.u32 %v15038_v21, 16  ;;  %v981_v42 = vshll.u32 %v14970_v7, 16  ;;  %v15059_v45 = vld [vmem:[#allocation2 + $0x24] sm:$0xe]  ;;  %v15068_v57 = vld [vmem:[#allocation2 + $0x28] sm:$0xf] }
  0x71   : > { %20799 = vst [vmem:[#allocation13_spill] sm:$0xff] %v15059_v45  ;;  %v20687_v46 = vrot.slane %v15042_v24, 5  ;;  %v2216_v47 = vshrl.u32 %v2145_v31, 16  ;;  %v2219_v48 = vshll.u32 %v2145_v31, 16  ;;  %v15062_v49 = vrot.slane %v2229_v27, 4  ;;  %s14758_s26 = smov 48  }
  0x72   : > { %2943 = vrot.lane.b32.xlu1 %v12350_v11, %s14753_s21  ;;  %3265 = vrot.lane.b32.xlu0 %v12415_v39, %s14753_s21  ;;  %v491_v53 = vor.u32 %v489_v25, %v488_v29  ;;  %v492_v54 = vrot.slane %v488_v29, 4  ;;  %v499_v55 = vor.u32 %v497_v30, %v15050_v35  ;;  %v15070_v62 = vld [vmem:[#allocation2 + $0x24] sm:$0xf]  ;;  %v808_v5 = vld [vmem:[#allocation2 + $0xc] sm:$0xf]  ;;  %v15074_v6 = vpack.c.bf16 %v363_v43, %v363_v43  ;;  %s14759_s8 = smov 44  }
  0x73   : > { %v2143_v50 = vld [vmem:[#allocation2 + $0x18] sm:$0xf]  ;;  %v15065_v51 = vld [vmem:[#allocation2 + $0x1c] sm:$0xf]  ;;  %v2218_v58 = vrot.slane %v2216_v47, 4  ;;  %v2221_v59 = vrot.slane %v2219_v48, 5  ;;  %v12368_v27 = vcombine.low %v15070_v62, %v15068_v57 }
  0x74   : > { %20800 = vst [vmem:[#allocation14_spill] sm:$0xff] %v15065_v51  ;;  %v2192_v60 = vshrl.u32 %v2143_v50, 16  ;;  %v2195_v61 = vshll.u32 %v2143_v50, 16  ;;  %v12414_v3 = vcombine.low %v2143_v50, %v15065_v51  ;;  %v2147_v4 = vld [vmem:[#allocation2 + $0x30] sm:$0xf]  ;;  %v15080_v9 = vrot.slane %v20687_v46, 4 }
  0x75   : > { %vm968_vm12 = vsmask.f32 3328  ;;  %vm969_vm13 = vsmask.f32 7440  ;;  %v2222_v11 = vor.u32 %v2221_v59, %v2218_v58  ;;  %v20684_v12 = vrot.slane %v15065_v51, 5  ;;  %s14760_s25 = smov 88  }
  0x76   : > { %20801 = vst [vmem:[#allocation15_spill] sm:$0xff] %v15080_v9  ;;  %v2240_v13 = vshrl.u32 %v2147_v4, 16  ;;  %3263 = vrot.lane.b32.xlu1 %v12414_v3, %s14753_s21  ;;  %v15084_v14 = vld [vmem:[#allocation2 + $0x34] sm:$0xf]  ;;  %v2243_v15 = vshll.u32 %v2147_v4, 16  ;;  %v500_v16 = vsel %vm14989_vm9, %v492_v54, %v499_v55  ;;  %v501_v17 = vrot.slane %v15050_v35, 4  ;;  %vm15143_vm14 = vmor %vm968_vm12, %vm969_vm13 }
  0x77   : > { %20802 = vst [vmem:[#allocation16_spill] sm:$0xff] %v15084_v14  ;;  %v809_v18 = vsel %vm15004_vm11, %v491_v53, %v808_v5  ;;  %v15091_v19 = vrot.slane %v2192_v60, 4  ;;  %v15093_v20 = vrot.slane %v2195_v61, 5  ;;  %811 = vst.msk [vmem:[#allocation2 + $0x10] sm:$0xf] %vm233_vm0, %v500_v16  ;;  %v20683_v28 = vrot.slane %v15084_v14, 5 }
  0x78   : > { %810 = vst [vmem:[#allocation2 + $0xc] sm:$0xf] %v809_v18  ;;  %v15097_v25 = vld [vmem:[#allocation2 + $0x18] sm:$0xf]  ;;  %v12416_v29 = vcombine.low %v2147_v4, %v15084_v14  ;;  %v15103_v30 = vld [vmem:[#allocation2 + $0x1c] sm:$0xf] }
  0x79   : > { %v1607_v31 = vshrl.u32 %v15097_v25, 16  ;;  %v1610_v39 = vshll.u32 %v15097_v25, 16  ;;  %v15107_v43 = vrot.slane %v2222_v11, 4  ;;  %v15111_v44 = vrot.slane %v20684_v12, 4  ;;  %v304_v58 = vld [vmem:[#allocation2 + $0x14] sm:$0x1] }
  0x7a   : > { %v15113_v47 = vrot.slane %v2240_v13, 4  ;;  %v974_v48 = vrot.slane %v972_v37, 4  ;;  %v15115_v50 = vrot.slane %v2243_v15, 5  ;;  %3267 = vrot.lane.b32.xlu0 %v12416_v29, %s14753_s21  ;;  %v977_v55 = vrot.slane %v975_v40, 5  ;;  %v365_v4 = vld [vmem:[%s14934_s20 + $0x50] sm:$0xff]  ;;  %s14761_s5 = smov 4  }
  0x7b   : > { %20803 = vst [vmem:[#allocation17_spill] sm:$0xff] %v15111_v44  ;;  %v1609_v59 = vrot.slane %v1607_v31, 4  ;;  %v1612_v60 = vrot.slane %v1610_v39, 5  ;;  %v985_v61 = vshrl.u32 %v14970_v7, 16  ;;  %v1631_v3 = vshrl.u32 %v15070_v62, 16  ;;  %s12132_s6 = scalar_lea.sflag [#allocation5], %s14930_s12 }
  0x7c   : > { %v15125_v37 = vrot.slane %v20683_v28, 4  ;;  %v978_v5 = vor.u32 %v977_v55, %v974_v48  ;;  %v983_v11 = vrot.slane %v981_v42, 5  ;;  %v1634_v13 = vshll.u32 %v15070_v62, 16  ;;  %v13924_v45 = vld [vmem:[#allocation6 + $0xd4] ss:$52 sps:$4 sm:$0xff]   ;;  %s14763_s7 = smov [#allocation8]  }
  0x7d   : > { %v1620_v40 = vshrl.u32 %v15103_v30, 16  ;;  %v987_v15 = vrot.slane %v985_v61, 4  ;;  %v993_v16 = vrot.slane %v991_v22, 5  ;;  %v305_v18 = vsel %vm14964_vm5, 0, %v304_v58  ;;  %v307_v58 = vld [vmem:[#allocation2 + $0x20] sm:$0x1] }
  0x7e   : > { %20804 = vst [vmem:[#allocation18_spill] sm:$0xff] %v15125_v37  ;;  %v15135_v31 = vld [vmem:[#allocation2 + $0x10] sm:$0xf]  ;;  %v12367_v39 = vcombine.low %v15097_v25, %v15103_v30  ;;  %v979_v48 = vrot.slane %v978_v5, 4  ;;  %v1633_v7 = vrot.slane %v1631_v3, 4  ;;  %v15139_v42 = vpack.c.bf16 %v365_v4, %v365_v4  ;;  %s14678_s11 = sshll.u32 %s14763_s7, 4  ;;  %s14679_s11 = int_to_ptr.vmem [resolvable:$false] %s14678_s11 }
  0x7f   : > { %v1534_v29 = vld [vmem:[#allocation2 + $0xc] sm:$0xf]  ;;  %306 = vst [vmem:[#allocation2 + $0x14] sm:$0x1] %v305_v18  ;;  %v1613_v61 = vor.u32 %v1612_v60, %v1609_v59  ;;  %v1644_v22 = vshrl.u32 %v15068_v57, 16  ;;  %v1596_v12 = vshrl.u32 %v15135_v31, 16  ;;  %v988_v3 = vor.u32 %v987_v15, %v983_v11 }
  0x80   : > { %v1583_v55 = vshrl.u32 %v1534_v29, 16  ;;  %v1586_v28 = vshll.u32 %v1534_v29, 16  ;;  %v12366_v25 = vcombine.low %v1534_v29, %v15135_v31  ;;  %v1636_v5 = vrot.slane %v1634_v13, 5  ;;  %v15150_v4 = vld [vmem:[#allocation2 + $0x10] sm:$0xf]  ;;  %s14680_s13 = scalar_lea.vmem %s14679_s11, 106496 }
  0x81   : > { %v15152_v59 = vrot.slane %v1620_v40, 4  ;;  %v1966_v63 = vld [vmem:[#allocation2 + $0xc] sm:$0xe]  ;;  %v984_v46 = vsel %vm15143_vm14, %v979_v48, %v983_v11  ;;  %v989_v54 = vrot.slane %v988_v3, 4  ;;  %v2032_v15 = vrot.slane %v15135_v31, 5 }
  0x82   : > { %v1585_v18 = vrot.slane %v1583_v55, 4  ;;  %v1588_v0 = vrot.slane %v1586_v28, 5  ;;  %3039 = vrot.lane.b32.xlu1 %v12366_v25, %s14754_s23  ;;  %v1637_v53 = vor.u32 %v1636_v5, %v1633_v7  ;;  %v1356_v13 = vld [vmem:[#allocation2 + $0xc] sm:$0xe]  ;;  %v310_v29 = vld [vmem:[#allocation2 + $0x2c] sm:$0x1] }
  0x83   : > { %v15159_v55 = vrot.slane %v1613_v61, 4  ;;  %v1431_v28 = vrot.slane %v15150_v4, 5  ;;  %v308_v40 = vsel %vm14964_vm5, 0, %v307_v58  ;;  %v1967_v60 = vld [vmem:[#allocation2 + $0x18] sm:$0xe]  ;;  %v15165_v21 = vrot.slane %v1596_v12, 4 }
  0x84   : > { %v1589_v38 = vor.u32 %v1588_v0, %v1585_v18  ;;  %v994_v11 = vsel %vm15143_vm14, %v989_v54, %v993_v16  ;;  %v15169_v48 = vrot.slane %v1644_v22, 4  ;;  %309 = vst [vmem:[#allocation2 + $0x20] sm:$0x1] %v308_v40  ;;  %v15171_v7 = vld [vmem:[#allocation2 + $0x1c] sm:$0xf]  ;;  %v12286_v18 = vrot.slane %v1966_v63, 9 }
  0x85   : > { %v1357_v0 = vld [vmem:[#allocation2 + $0x18] sm:$0xe]  ;;  %v15173_v61 = vld [vmem:[#allocation2 + $0x24] sm:$0xe]  ;;  %v12334_v3 = vcombine.low %v984_v46, %v994_v11  ;;  %v12271_v58 = vrot.slane %v1356_v13, 9  ;;  %v15180_v54 = vrot.slane %v1637_v53, 4 }
  0x86   : > { %v812_v5 = vld [vmem:[#allocation2 + $0x14] sm:$0x1]  ;;  %v922_v34 = vld [vmem:[#allocation2 + $0xc] sm:$0xf]  ;;  %v15177_v25 = vrot.slane %v1589_v38, 4  ;;  %3041 = vrot.lane.b32.xlu1 %v12367_v39, %s14754_s23  ;;  %v15186_v22 = vrot.slane %v2032_v15, 4 }
  0x87   : > { %v813_v16 = vsel %vm14958_vm4, %v501_v17, %v812_v5  ;;  %v313_v46 = vld [vmem:[#allocation2 + $0x38] sm:$0x1]  ;;  %2863 = vrot.lane.b32.xlu0 %v12334_v3, %s14755_s9  ;;  %v15191_v38 = vrot.slane %v1431_v28, 4  ;;  %v12287_v13 = vrot.slane %v1967_v60, 9  ;;  %v2039_v53 = vrot.slane %v15103_v30, 5 }
  0x88   : > { %v15188_v63 = vld [vmem:[#allocation2 + $0x18] sm:$0xf]  ;;  %814 = vst [vmem:[#allocation2 + $0x14] sm:$0x1] %v813_v16  ;;  %v311_v35 = vsel %vm14964_vm5, 0, %v310_v29  ;;  %v12272_v40 = vrot.slane %v1357_v0, 9  ;;  %v15200_v3 = vsel %vm14997_vm10, %v12286_v18, %v2032_v15  ;;  %v15204_v60 = vsel %vm14997_vm10, %v12271_v58, %v1431_v28 }
  0x89   : > { %v13910_v39 = vld [vmem:[#allocation6 + $0x4] ss:$52 sps:$4 sm:$0xff]   ;;  %312 = vst [vmem:[#allocation2 + $0x2c] sm:$0x1] %v311_v35  ;;  %v996_v17 = vshrl.u32 %v922_v34, 16  ;;  %v999_v11 = vshll.u32 %v922_v34, 16 }
  0x8a   : > { %v13912_v12 = vld [vmem:[#allocation6 + $0xc] ss:$52 sps:$4 sm:$0xff]   ;;  %v1438_v16 = vrot.slane %v15171_v7, 5  ;;  %v12288_v29 = vrot.slane %v15173_v61, 9  ;;  %5270 = vmatprep.subr.bf16.mxu0 %v13910_v39  ;;  %v13915_v35 = vld [vmem:[#allocation6 + $0x8] ss:$52 sps:$4 sm:$0xff]   ;;  %3043 = vrot.lane.b32.xlu1 %v12368_v27, %s14754_s23  ;;  %v15216_v61 = vsel %vm14997_vm10, %v12287_v13, %v2039_v53 }
  0x8b   : > { %v13914_v0 = vld [vmem:[#allocation6] ss:$52 sps:$4 sm:$0xff]   ;;  %v998_v34 = vrot.slane %v996_v17, 4  ;;  %v1001_v5 = vrot.slane %v999_v11, 5  ;;  %v1005_v15 = vshll.u32 %v15150_v4, 16  ;;  %v1009_v18 = vshrl.u32 %v15150_v4, 16  ;;  %5656 = vmatprep.subr.bf16.mxu1 %v13912_v12 }
  0x8c   : > { %v13916_v28 = vld [vmem:[#allocation6 + $0x6c] ss:$52 sps:$4 sm:$0xff]   ;;  %v819_v58 = vld [vmem:[#allocation2 + $0x20] sm:$0x1]  ;;  %v2046_v39 = vrot.slane %v15068_v57, 5  ;;  %v314_v23 = vsel %vm14964_vm5, 0, %v313_v46  ;;  %5271 = vmatpush1.bf16.msra.mxu0 %v13914_v0  ;;  %5657 = vmatpush1.bf16.msra.mxu1 %v13915_v35  ;;  %v15232_v46 = vsel %vm14997_vm10, %v12272_v40, %v1438_v16 }
  0x8d   : > { %v1020_v62 = vshrl.u32 %v15188_v63, 16  ;;  %v820_v27 = vsel %vm14958_vm4, %v518_v33, %v819_v58  ;;  %v1002_v4 = vor.u32 %v1001_v5, %v998_v34  ;;  %v15226_v12 = vrot.slane %v1005_v15, 5  ;;  %315 = vst [vmem:[#allocation2 + $0x38] sm:$0x1] %v314_v23  ;;  %5272 = vmatprep.subr.bf16.mxu0 %v13916_v28  ;;  %v13918_v13 = vld [vmem:[#allocation6 + $0x74] ss:$52 sps:$4 sm:$0xff]  }
  0x8e   : > { %v1011_v17 = vrot.slane %v1009_v18, 4  ;;  %v13920_v11 = vld [vmem:[#allocation6 + $0x68] ss:$52 sps:$4 sm:$0xff]   ;;  %821 = vst [vmem:[#allocation2 + $0x20] sm:$0x1] %v820_v27  ;;  %v15228_v37 = vrot.slane %v2039_v53, 4  ;;  %v15241_v23 = vsel %vm14997_vm10, %v12288_v29, %v2046_v39  ;;  %5658 = vmatprep.subr.bf16.mxu1 %v13918_v13 }
  0x8f   : > { %v15234_v0 = vrot.slane %v1438_v16, 4  ;;  %v1023_v56 = vshll.u32 %v15188_v63, 16  ;;  %v13921_v33 = vld [vmem:[#allocation6 + $0x70] ss:$52 sps:$4 sm:$0xff]   ;;  %v15237_v5 = vld [vmem:[#allocation2 + $0x14] sm:$0x1] }
  0x90   : > { %v953_v35 = vld [vmem:[#allocation2 + $0x14] sm:$0x1]  ;;  %v1012_v34 = vor.u32 %v1011_v17, %v15226_v12  ;;  %v15246_v15 = vld [vmem:[#allocation2 + $0x30] sm:$0xe]  ;;  %v1022_v40 = vrot.slane %v1020_v62, 4  ;;  %v1029_v16 = vshll.u32 %v15171_v7, 16  ;;  %5273 = vmatpush1.bf16.msra.mxu0 %v13920_v11  ;;  %5659 = vmatpush1.bf16.msra.mxu1 %v13921_v33 }
  0x91   : > { %v15244_v53 = vld [vmem:[#allocation2 + $0x34] sm:$0xf]  ;;  %v2035_v63 = vrot.slane %v15237_v5, 5  ;;  %v1434_v18 = vrot.slane %v953_v35, 5  ;;  %v826_v28 = vld [vmem:[#allocation2 + $0x2c] sm:$0x1]  ;;  %5274 = vmatprep.subr.bf16.mxu0 %v13924_v45 }
  0x92   : > { %v1003_v58 = vrot.slane %v1002_v4, 4  ;;  %v1015_v27 = vshll.u32 %v953_v35, 16  ;;  %v20807_v29 = vrot.slane %v14984_v26, 4  ;;  %v15254_v9 = vrot.slane %v2046_v39, 4  ;;  %v13926_v26 = vld [vmem:[#allocation6 + $0xdc] ss:$52 sps:$4 sm:$0xff]  }
  0x93   : > { %v1013_v44 = vrot.slane %v1012_v34, 4  ;;  %v1025_v62 = vrot.slane %v1023_v56, 5  ;;  %v2036_v13 = vsel %vm14997_vm10, %v15186_v22, %v2035_v63  ;;  %v1435_v4 = vsel %vm14997_vm10, %v15191_v38, %v1434_v18  ;;  %5660 = vmatprep.subr.bf16.mxu1 %v13926_v26 }
  0x94   : > { %v827_v17 = vsel %vm14958_vm4, %v20807_v29, %v826_v28  ;;  %v1017_v11 = vrot.slane %v1015_v27, 5  ;;  %v15262_v33 = vrot.slane %v1029_v16, 5  ;;  %v12398_v35 = vcombine.low %v15200_v3, %v2036_v13  ;;  %v13928_v28 = vld [vmem:[#allocation6 + $0xd0] ss:$52 sps:$4 sm:$0xff]   ;;  %v13929_v29 = vld [vmem:[#allocation6 + $0xd8] ss:$52 sps:$4 sm:$0xff]  }
  0x95   : > { %828 = vst [vmem:[#allocation2 + $0x2c] sm:$0x1] %v827_v17  ;;  %v12351_v39 = vcombine.low %v15204_v60, %v1435_v4  ;;  %v1026_v34 = vor.u32 %v1025_v62, %v1022_v40  ;;  %v1033_v56 = vshrl.u32 %v15171_v7, 16  ;;  %v1008_v22 = vsel %vm15143_vm14, %v1003_v58, %v15226_v12  ;;  %v833_v38 = vld [vmem:[#allocation2 + $0x38] sm:$0x1]  ;;  %5275 = vmatpush1.bf16.msra.mxu0 %v13928_v28 }
  0x96   : > { %v12289_v63 = vrot.slane %v15246_v15, 9  ;;  %v2053_v16 = vrot.slane %v15244_v53, 5  ;;  %v2201_v18 = vshll.u32 %v15065_v51, 16  ;;  %3167 = vrot.lane.b32.xlu0 %v12398_v35, %s14755_s9  ;;  %v15275_v7 = vld [vmem:[#allocation2 + $0x20] sm:$0x1]  ;;  %v1018_v3 = vsel %vm15143_vm14, %v1013_v44, %v1017_v11  ;;  %5661 = vmatpush1.bf16.msra.mxu1 %v13929_v29 }
  0x97   : > { %2945 = vrot.lane.b32.xlu1 %v12351_v39, %s14753_s21  ;;  %v954_v45 = vld [vmem:[#allocation2 + $0x20] sm:$0x1]  ;;  %v20808_v60 = vrot.slane %v15025_v10, 4  ;;  %v1035_v40 = vrot.slane %v1033_v56, 4  ;;  %v20809_v58 = vshrl.u32 %v15065_v51, 16  ;;  %v2042_v17 = vrot.slane %v15275_v7, 5 }
  0x98   : > { %v1441_v62 = vrot.slane %v954_v45, 5  ;;  %v1027_v13 = vrot.slane %v1026_v34, 4  ;;  %v1039_v4 = vshll.u32 %v954_v45, 16  ;;  %v15286_v26 = vld [vmem:[#allocation2 + $0x20] sm:$0x1]  ;;  %v20811_v44 = vor.u32 %v15093_v20, %v15091_v19 }
  0x99   : > { %v834_v12 = vsel %vm14958_vm4, %v20808_v60, %v833_v38  ;;  %v2207_v27 = vrot.slane %v20809_v58, 4  ;;  %20810 = vst [vmem:[#allocation19_spill] sm:$0xff] %v15286_v26  ;;  %v926_v35 = vld [vmem:[#allocation2 + $0x24] sm:$0xf]  ;;  %v15288_v39 = vld [vmem:[#allocation2 + $0x28] sm:$0xf]  ;;  %v1036_v10 = vor.u32 %v1035_v40, %v15262_v33  ;;  %v2043_v34 = vsel %vm14997_vm10, %v15228_v37, %v2042_v17 }
  0x9a   : > { %835 = vst [vmem:[#allocation2 + $0x38] sm:$0x1] %v834_v12  ;;  %v2199_v11 = vrot.slane %v20811_v44, 4  ;;  %v2203_v56 = vrot.slane %v2201_v18, 5  ;;  %v2211_v38 = vshll.u32 %v15286_v26, 16  ;;  %v1442_v45 = vsel %vm14997_vm10, %v15234_v0, %v1441_v62 }
  0x9b   : > { %v13930_v60 = vld [vmem:[#allocation6 + $0x13c] ss:$52 sps:$4 sm:$0xff]   ;;  %v2055_v28 = vrot.slane %v2053_v16, 4  ;;  %v1041_v29 = vrot.slane %v1039_v4, 5  ;;  %v13932_v12 = vld [vmem:[#allocation6 + $0x144] ss:$52 sps:$4 sm:$0xff]   ;;  %v12399_v19 = vcombine.low %v15216_v61, %v2043_v34  ;;  %v12352_v20 = vcombine.low %v15232_v46, %v1442_v45 }
  0x9c   : > { %v15305_v18 = vld [vmem:[#allocation2 + $0x2c] sm:$0x1]  ;;  %v12335_v40 = vcombine.low %v1008_v22, %v1018_v3  ;;  %v1037_v58 = vrot.slane %v1036_v10, 4  ;;  %5276 = vmatprep.subr.bf16.mxu0 %v13930_v60  ;;  %v1032_v0 = vsel %vm15143_vm14, %v1027_v13, %v15262_v33  ;;  %v2208_v17 = vor.u32 %v2207_v27, %v2203_v56  ;;  %5662 = vmatprep.subr.bf16.mxu1 %v13932_v12  ;;  %v13934_v10 = vld [vmem:[#allocation6 + $0x138] ss:$52 sps:$4 sm:$0xff]  }
  0x9d   : > { %v2049_v37 = vrot.slane %v15305_v18, 5  ;;  %v2213_v62 = vrot.slane %v2211_v38, 5  ;;  %v15311_v44 = vld [vmem:[#allocation2 + $0x2c] sm:$0x1]  ;;  %3169 = vrot.lane.b32.xlu0 %v12399_v19, %s14755_s9  ;;  %2947 = vrot.lane.b32.xlu1 %v12352_v20, %s14753_s21  ;;  %v2204_v61 = vsel %vm15143_vm14, %v2199_v11, %v2203_v56  ;;  %v1044_v46 = vshrl.u32 %v926_v35, 16 }
  0x9e   : > { %v1047_v22 = vshll.u32 %v926_v35, 16  ;;  %v1053_v3 = vshll.u32 %v15288_v39, 16  ;;  %v15318_v4 = vld [vmem:[#allocation2 + $0x2c] sm:$0x1]  ;;  %v1042_v27 = vsel %vm15143_vm14, %v1037_v58, %v1041_v29  ;;  %v2209_v13 = vrot.slane %v2208_v17, 4  ;;  %5277 = vmatpush1.bf16.msra.mxu0 %v13934_v10 }
  0x9f   : > { %20812 = vst [vmem:[#allocation20_spill] sm:$0xff] %v15318_v4  ;;  %v2050_v33 = vsel %vm14997_vm10, %v15254_v9, %v2049_v37  ;;  %v1057_v38 = vshrl.u32 %v15288_v39, 16  ;;  %v13935_v60 = vld [vmem:[#allocation6 + $0x140] ss:$52 sps:$4 sm:$0xff]   ;;  %v13936_v34 = vld [vmem:[#allocation6 + $0x1a4] ss:$52 sps:$4 sm:$0xff]   ;;  %v2054_v9 = vsel %vm14997_vm10, %v12289_v63, %v2053_v16 }
  0xa0   : > { %v12400_v11 = vcombine.low %v15241_v23, %v2050_v33  ;;  %v1046_v56 = vrot.slane %v1044_v46, 4  ;;  %v1049_v45 = vrot.slane %v1047_v22, 5  ;;  %v1055_v12 = vrot.slane %v1053_v3, 5  ;;  %5663 = vmatpush1.bf16.msra.mxu1 %v13935_v60  ;;  %5278 = vmatprep.subr.bf16.mxu0 %v13936_v34  ;;  %v1358_v63 = vld [vmem:[#allocation2 + $0x24] sm:$0xe] }
  0xa1   : > { %v15327_v35 = vld [vmem:[#allocation2 + $0x38] sm:$0x1]  ;;  %v2214_v19 = vsel %vm15143_vm14, %v2209_v13, %v2213_v62  ;;  %v1059_v20 = vrot.slane %v1057_v38, 4  ;;  %2865 = vrot.lane.b32.xlu1 %v12335_v40, %s14755_s9  ;;  %v12336_v23 = vcombine.low %v1032_v0, %v1042_v27  ;;  %v1063_v37 = vshll.u32 %v15311_v44, 16  ;;  %v13941_v33 = vld [vmem:[#allocation6 + $0x1a8] ss:$52 sps:$4 sm:$0xff]  }
  0xa2   : > { %v2056_v29 = vrot.slane %v15327_v35, 5  ;;  %3171 = vrot.lane.b32.xlu0 %v12400_v11, %s14755_s9  ;;  %v1050_v58 = vor.u32 %v1049_v45, %v1046_v56  ;;  %v20813_v15 = vshll.u32 %v15042_v24, 16  ;;  %v13938_v16 = vld [vmem:[#allocation6 + $0x1ac] ss:$52 sps:$4 sm:$0xff]   ;;  %v12430_v62 = vcombine.low %v2204_v61, %v2214_v19 }
  0xa3   : > { %v1060_v22 = vor.u32 %v1059_v20, %v1055_v12  ;;  %v2235_v3 = vshll.u32 %v15318_v4, 16  ;;  %v13940_v10 = vld [vmem:[#allocation6 + $0x1a0] ss:$52 sps:$4 sm:$0xff]   ;;  %v1065_v0 = vrot.slane %v1063_v37, 5  ;;  %5664 = vmatprep.subr.bf16.mxu1 %v13938_v16  ;;  %v12273_v61 = vrot.slane %v1358_v63, 9 }
  0xa4   : > { %v2227_v17 = vrot.slane %v20813_v15, 5  ;;  %v2057_v46 = vsel %vm14997_vm10, %v2055_v28, %v2056_v29  ;;  %v1051_v40 = vrot.slane %v1050_v58, 4  ;;  %v15349_v38 = vld [vmem:[#allocation2 + $0x38] sm:$0x1]  ;;  %5279 = vmatpush1.bf16.msra.mxu0 %v13940_v10  ;;  %5665 = vmatpush1.bf16.msra.mxu1 %v13941_v33  ;;  %v1448_v45 = vrot.slane %v15311_v44, 5 }
  0xa5   : > { %v12401_v13 = vcombine.low %v2054_v9, %v2057_v46  ;;  %20814 = vst [vmem:[#allocation21_spill] sm:$0xff] %v15349_v38  ;;  %v1061_v60 = vrot.slane %v1060_v22, 4  ;;  %v2237_v28 = vrot.slane %v2235_v3, 5  ;;  %v13944_v11 = vld [vmem:[#allocation6 + $0x20c] ss:$52 sps:$4 sm:$0xff]   ;;  %2867 = vrot.lane.b32.xlu1 %v12336_v23, %s14755_s9  ;;  %v20815_v9 = vor.u32 %v15115_v50, %v15113_v47 }
  0xa6   : > { %v2228_v27 = vsel %vm15143_vm14, %v15107_v43, %v2227_v17  ;;  %v2232_v34 = vor.u32 %v15062_v49, %v2227_v17  ;;  %v1056_v56 = vsel %vm15143_vm14, %v1051_v40, %v1055_v12  ;;  %v1445_v43 = vrot.slane %v15288_v39, 5  ;;  %v15363_v29 = vld [vmem:[#allocation2 + $0x30] sm:$0xf]  ;;  %v260_v37 = vld [vmem:[#allocation2 + $0x3c] sm:$0x1]  ;;  %5280 = vmatprep.subr.bf16.mxu0 %v13944_v11 }
  0xa7   : > { %3173 = vrot.lane.b32.xlu0 %v12401_v13, %s14755_s9  ;;  %v15361_v49 = vrot.slane %v20815_v9, 4  ;;  %v1066_v19 = vsel %vm15143_vm14, %v1061_v60, %v1065_v0  ;;  %v2249_v23 = vshll.u32 %v15084_v14, 16  ;;  %v20816_v58 = vshrl.u32 %v15084_v14, 16  ;;  %v13946_v39 = vld [vmem:[#allocation6 + $0x214] ss:$52 sps:$4 sm:$0xff]  }
  0xa8   : > { %v2233_v20 = vrot.slane %v2232_v34, 4  ;;  %v12337_v44 = vcombine.low %v1056_v56, %v1066_v19  ;;  %v1446_v47 = vsel %vm14997_vm10, %v12273_v61, %v1445_v43  ;;  %v1447_v50 = vrot.slane %v1445_v43, 4  ;;  %v15373_v17 = vld [vmem:[#allocation2 + $0x30] sm:$0xf]  ;;  %v13948_v63 = vld [vmem:[#allocation6 + $0x208] ss:$52 sps:$4 sm:$0xff]   ;;  %5666 = vmatprep.subr.bf16.mxu1 %v13946_v39 }
  0xa9   : > { %v2255_v12 = vrot.slane %v20816_v58, 4  ;;  %v2259_v15 = vshll.u32 %v15349_v38, 16  ;;  %v13949_v16 = vld [vmem:[#allocation6 + $0x210] ss:$52 sps:$4 sm:$0xff]   ;;  %v2251_v10 = vrot.slane %v2249_v23, 5  ;;  %v1655_v60 = vshrl.u32 %v15363_v29, 16  ;;  %5281 = vmatpush1.bf16.msra.mxu0 %v13948_v63 }
  0xaa   : > { %v2238_v3 = vsel %vm15143_vm14, %v2233_v20, %v2237_v28  ;;  %v15379_v33 = vld [vmem:[#allocation2 + $0x34] sm:$0xf]  ;;  %2869 = vrot.lane.b32.xlu1 %v12337_v44, %s14755_s9  ;;  %v1449_v0 = vsel %vm14997_vm10, %v1447_v50, %v1448_v45  ;;  %v13950_v34 = vld [vmem:[#allocation6 + $0x274] ss:$52 sps:$4 sm:$0xff]   ;;  %v12369_v56 = vcombine.low %v15363_v29, %v15244_v53  ;;  %5667 = vmatpush1.bf16.msra.mxu1 %v13949_v16  ;;  %v261_v45 = vsel %vm14958_vm4, 0, %v260_v37 }
  0xab   : > { %3343 = vrot.lane.b32.xlu0 %v12430_v62, %s14754_s23  ;;  %v12431_v40 = vcombine.low %v2228_v27, %v2238_v3  ;;  %v12353_v61 = vcombine.low %v1446_v47, %v1449_v0  ;;  %v2256_v28 = vor.u32 %v2255_v12, %v2251_v10  ;;  %v2261_v11 = vrot.slane %v2259_v15, 5  ;;  %v13952_v43 = vld [vmem:[#allocation6 + $0x27c] ss:$52 sps:$4 sm:$0xff]   ;;  %5282 = vmatprep.subr.bf16.mxu0 %v13950_v34  ;;  %v13955_v23 = vld [vmem:[#allocation6 + $0x278] ss:$52 sps:$4 sm:$0xff]  }
  0xac   : > { %v13954_v62 = vld [vmem:[#allocation6 + $0x270] ss:$52 sps:$4 sm:$0xff]   ;;  %v2252_v27 = vsel %vm15143_vm14, %v15361_v49, %v2251_v10  ;;  %v554_v9 = vshrl.u32 %v15074_v6, 16  ;;  %v557_v19 = vshll.u32 %v15074_v6, 16  ;;  %v366_v20 = vld [vmem:[%s14934_s20 + $0x58] sm:$0xff]  ;;  %v562_v53 = vshrl.u32 %v15076_v8, 16  ;;  %5668 = vmatprep.subr.bf16.mxu1 %v13952_v43 }
  0xad   : > { %v2257_v58 = vrot.slane %v2256_v28, 4  ;;  %262 = vst [vmem:[#allocation2 + $0x3c] sm:$0x1] %v261_v45  ;;  %v565_v12 = vshll.u32 %v15076_v8, 16  ;;  %v15399_v39 = vld [vmem:[#allocation2 + $0x38] sm:$0x1]  ;;  %5283 = vmatpush1.bf16.msra.mxu0 %v13954_v62  ;;  %v15416_v28 = vpack.c.bf16 %v366_v20, %v366_v20 }
  0xae   : > { %v1068_v49 = vshrl.u32 %v15373_v17, 16  ;;  %v316_v44 = vld [vmem:[#allocation2 + $0x44] sm:$0x1]  ;;  %v15402_v47 = vld [vmem:[#allocation2 + $0x30] sm:$0xe]  ;;  %2949 = vrot.lane.b32.xlu1 %v12353_v61, %s14753_s21  ;;  %v1658_v6 = vshll.u32 %v15363_v29, 16  ;;  %5669 = vmatpush1.bf16.msra.mxu1 %v13955_v23 }
  0xaf   : > { %v13956_v37 = vld [vmem:[#allocation6 + $0x2dc] ss:$52 sps:$4 sm:$0xff]   ;;  %3345 = vrot.lane.b32.xlu0 %v12431_v40, %s14754_s23  ;;  %v556_v50 = vrot.slane %v554_v9, 7  ;;  %v1071_v15 = vshll.u32 %v15373_v17, 16  ;;  %v1077_v8 = vshll.u32 %v15379_v33, 16  ;;  %v2262_v63 = vsel %vm15143_vm14, %v2257_v58, %v2261_v11 }
  0xb0   : > { %v15411_v16 = vrot.slane %v562_v53, 7  ;;  %v1070_v3 = vrot.slane %v1068_v49, 4  ;;  %v1081_v10 = vshrl.u32 %v15379_v33, 16  ;;  %v13958_v40 = vld [vmem:[#allocation6 + $0x2e4] ss:$52 sps:$4 sm:$0xff]   ;;  %v12432_v0 = vcombine.low %v2252_v27, %v2262_v63  ;;  %5284 = vmatprep.subr.bf16.mxu0 %v13956_v37 }
  0xb1   : > { %v15414_v34 = vrot.slane %v1655_v60, 4  ;;  %v560_v61 = vrot.slane %v556_v50, 4  ;;  %v13960_v17 = vld [vmem:[#allocation6 + $0x2d8] ss:$52 sps:$4 sm:$0xff]   ;;  %v13961_v43 = vld [vmem:[#allocation6 + $0x2e0] ss:$52 sps:$4 sm:$0xff]   ;;  %v559_v45 = vor.u32 %v557_v19, %v556_v50  ;;  %5670 = vmatprep.subr.bf16.mxu1 %v13958_v40 }
  0xb2   : > { %v567_v11 = vor.u32 %v565_v12, %v15411_v16  ;;  %v1073_v9 = vrot.slane %v1071_v15, 5  ;;  %v1079_v58 = vrot.slane %v1077_v8, 5  ;;  %v263_v53 = vld [vmem:[#allocation2 + $0x48] sm:$0x1]  ;;  %3045 = vrot.lane.b32.xlu1 %v12369_v56, %s14754_s23  ;;  %v1083_v62 = vrot.slane %v1081_v10, 4  ;;  %5285 = vmatpush1.bf16.msra.mxu0 %v13960_v17 }
  0xb3   : > { %3347 = vrot.lane.b32.xlu0 %v12432_v0, %s14754_s23  ;;  %v1087_v60 = vshll.u32 %v15399_v39, 16  ;;  %v317_v27 = vsel %vm14964_vm5, 0, %v316_v44  ;;  %v12274_v20 = vrot.slane %v15402_v47, 9  ;;  %v319_v23 = vld [vmem:[#allocation2 + $0x50] sm:$0x1]  ;;  %v1452_v49 = vrot.slane %v15379_v33, 5  ;;  %5671 = vmatpush1.bf16.msra.mxu1 %v13961_v43 }
  0xb4   : > { %v568_v19 = vsel %vm14989_vm9, %v560_v61, %v567_v11  ;;  %v1074_v12 = vor.u32 %v1073_v9, %v1070_v3  ;;  %318 = vst [vmem:[#allocation2 + $0x44] sm:$0x1] %v317_v27  ;;  %v1455_v37 = vrot.slane %v15399_v39, 5  ;;  %v13964_v56 = vld [vmem:[#allocation6 + $0x344] ss:$52 sps:$4 sm:$0xff]   ;;  %v1084_v15 = vor.u32 %v1083_v62, %v1079_v58 }
  0xb5   : > { %v836_v50 = vld [vmem:[#allocation2 + $0x3c] sm:$0xf]  ;;  %839 = vst.msk [vmem:[#allocation2 + $0x40] sm:$0xf] %vm233_vm0, %v568_v19  ;;  %v1089_v44 = vrot.slane %v1087_v60, 5  ;;  %v264_v47 = vsel %vm14958_vm4, 0, %v263_v53  ;;  %5286 = vmatprep.subr.bf16.mxu0 %v13964_v56 }
  0xb6   : > { %v571_v8 = vshrl.u32 %v15139_v42, 16  ;;  %v266_v63 = vld [vmem:[#allocation2 + $0x54] sm:$0x1]  ;;  %v837_v3 = vsel %vm15004_vm11, %v559_v45, %v836_v50  ;;  %v1075_v33 = vrot.slane %v1074_v12, 4  ;;  %v1454_v10 = vrot.slane %v1452_v49, 4 }
  0xb7   : > { %265 = vst [vmem:[#allocation2 + $0x48] sm:$0x1] %v264_v47  ;;  %v322_v39 = vld [vmem:[#allocation2 + $0x5c] sm:$0x1]  ;;  %v269_v40 = vld [vmem:[#allocation2 + $0x60] sm:$0x1] }
  0xb8   : > { %v13966_v0 = vld [vmem:[#allocation6 + $0x34c] ss:$52 sps:$4 sm:$0xff]   ;;  %838 = vst [vmem:[#allocation2 + $0x3c] sm:$0xf] %v837_v3  ;;  %v1085_v17 = vrot.slane %v1084_v15, 4  ;;  %v573_v43 = vrot.slane %v571_v8, 7  ;;  %v1080_v45 = vsel %vm15143_vm14, %v1075_v33, %v1079_v58  ;;  %v1456_v12 = vsel %vm14997_vm10, %v1454_v10, %v1455_v37 }
  0xb9   : > { %v13968_v61 = vld [vmem:[#allocation6 + $0x340] ss:$52 sps:$4 sm:$0xff]   ;;  %v574_v11 = vshll.u32 %v15139_v42, 16  ;;  %v579_v9 = vshrl.u32 %v15416_v28, 16  ;;  %v13969_v53 = vld [vmem:[#allocation6 + $0x348] ss:$52 sps:$4 sm:$0xff]   ;;  %5672 = vmatprep.subr.bf16.mxu1 %v13966_v0  ;;  %v1453_v42 = vsel %vm14997_vm10, %v12274_v20, %v1452_v49 }
  0xba   : > { %v569_v62 = vrot.slane %v15411_v16, 4  ;;  %v582_v60 = vshll.u32 %v15416_v28, 16  ;;  %v320_v27 = vsel %vm14964_vm5, 0, %v319_v23  ;;  %5287 = vmatpush1.bf16.msra.mxu0 %v13968_v61  ;;  %v1090_v19 = vsel %vm15143_vm14, %v1085_v17, %v1089_v44  ;;  %5673 = vmatpush1.bf16.msra.mxu1 %v13969_v53  ;;  %v369_v37 = vld [vmem:[%s14934_s20 + $0x70] sm:$0xff] }
  0xbb   : > { %v576_v16 = vor.u32 %v574_v11, %v573_v43  ;;  %321 = vst [vmem:[#allocation2 + $0x50] sm:$0x1] %v320_v27  ;;  %v12338_v58 = vcombine.low %v1080_v45, %v1090_v19  ;;  %v577_v56 = vrot.slane %v573_v43, 4  ;;  %v581_v28 = vrot.slane %v579_v9, 7  ;;  %v840_v15 = vld [vmem:[#allocation2 + $0x44] sm:$0x1] }
  0xbc   : > { %v267_v23 = vsel %vm14958_vm4, 0, %v266_v63  ;;  %v1660_v50 = vrot.slane %v1658_v6, 5  ;;  %v323_v20 = vsel %vm14964_vm5, 0, %v322_v39  ;;  %v270_v49 = vsel %vm14958_vm4, 0, %v269_v40  ;;  %v15458_v44 = vld [vmem:[#allocation2 + $0x40] sm:$0xf] }
  0xbd   : > { %268 = vst [vmem:[#allocation2 + $0x54] sm:$0x1] %v267_v23  ;;  %20817 = vst [vmem:[#allocation22_spill] sm:$0xff] %v15458_v44  ;;  %2871 = vrot.lane.b32.xlu1 %v12338_v58, %s14755_s9  ;;  %v841_v47 = vsel %vm14958_vm4, %v569_v62, %v840_v15  ;;  %v12354_v8 = vcombine.low %v1453_v42, %v1456_v12  ;;  %v584_v29 = vor.u32 %v582_v60, %v581_v28  ;;  %v1543_v3 = vld [vmem:[#allocation2 + $0x40] sm:$0xf]  ;;  %vm3423_vm15 = vcmask 261120  }
  0xbe   : > { %324 = vst [vmem:[#allocation2 + $0x5c] sm:$0x1] %v323_v20  ;;  %271 = vst [vmem:[#allocation2 + $0x60] sm:$0x1] %v270_v49  ;;  %v2277_v6 = vshrl.u32 %v15458_v44, 16  ;;  %v2273_v63 = vshll.u32 %v15458_v44, 16  ;;  %v1661_v43 = vor.u32 %v1660_v50, %v15414_v34 }
  0xbf   : > { %842 = vst [vmem:[#allocation2 + $0x44] sm:$0x1] %v841_v47  ;;  %v843_v33 = vld [vmem:[#allocation2 + $0x48] sm:$0xf]  ;;  %v2149_v40 = vld [vmem:[#allocation2 + $0x3c] sm:$0xf]  ;;  %v585_v61 = vsel %vm14989_vm9, %v577_v56, %v584_v29 }
  0xc0   : > { %v15467_v0 = vld [vmem:[#allocation2 + $0x3c] sm:$0xf]  ;;  %v844_v17 = vsel %vm15004_vm11, %v576_v16, %v843_v33  ;;  %v2264_v11 = vshrl.u32 %v2149_v40, 16  ;;  %v2267_v9 = vshll.u32 %v2149_v40, 16  ;;  %v12417_v53 = vcombine.low %v2149_v40, %v15458_v44  ;;  %846 = vst.msk [vmem:[#allocation2 + $0x4c] sm:$0xf] %vm233_vm0, %v585_v61 }
  0xc1   : > { %845 = vst [vmem:[#allocation2 + $0x48] sm:$0xf] %v844_v17  ;;  %v930_v62 = vld [vmem:[#allocation2 + $0x3c] sm:$0xf]  ;;  %v2275_v45 = vrot.slane %v2273_v63, 5  ;;  %v2279_v60 = vrot.slane %v2277_v6, 4  ;;  %2951 = vrot.lane.b32.xlu1 %v12354_v8, %s14753_s21  ;;  %v12370_v23 = vcombine.low %v15467_v0, %v1543_v3 }
  0xc2   : > { %v2060_v27 = vrot.slane %v1543_v3, 5  ;;  %v586_v19 = vrot.slane %v581_v28, 4  ;;  %v2266_v42 = vrot.slane %v2264_v11, 4  ;;  %v2269_v12 = vrot.slane %v2267_v9, 5  ;;  %3269 = vrot.lane.b32.xlu0 %v12417_v53, %s14753_s21  ;;  %v1970_v34 = vld [vmem:[#allocation2 + $0x3c] sm:$0xe] }
  0xc3   : > { %v847_v16 = vld [vmem:[#allocation2 + $0x50] sm:$0x1]  ;;  %v2280_v56 = vor.u32 %v2279_v60, %v2275_v45  ;;  %v1092_v50 = vshrl.u32 %v930_v62, 16  ;;  %v15480_v15 = vrot.slane %v1661_v43, 4  ;;  %v20689_v20 = vrot.slane %v15458_v44, 5  ;;  %v367_v8 = vld [vmem:[%s14934_s20 + $0x60] sm:$0xff] }
  0xc4   : > { %v2270_v49 = vor.u32 %v2269_v12, %v2266_v42  ;;  %v1095_v47 = vshll.u32 %v930_v62, 16  ;;  %v12290_v6 = vrot.slane %v1970_v34, 9  ;;  %v2062_v63 = vrot.slane %v2060_v27, 4  ;;  %v13974_v44 = vld [vmem:[#allocation6 + $0x3a8] ss:$52 sps:$4 sm:$0xff]  }
  0xc5   : > { %3047 = vrot.lane.b32.xlu1 %v12370_v23, %s14754_s23  ;;  %v848_v33 = vsel %vm14958_vm4, %v586_v19, %v847_v16  ;;  %v2281_v40 = vrot.slane %v2280_v56, 4  ;;  %v1094_v17 = vrot.slane %v1092_v50, 4  ;;  %v15497_v62 = vpack.c.bf16 %v367_v8, %v367_v8  ;;  %v15506_v56 = vld [vmem:[#allocation2 + $0x40] sm:$0xf] }
  0xc6   : > { %v15484_v28 = vld [vmem:[#allocation2 + $0x44] sm:$0x1]  ;;  %v2271_v3 = vrot.slane %v2270_v49, 4  ;;  %849 = vst [vmem:[#allocation2 + $0x50] sm:$0x1] %v848_v33  ;;  %v1097_v53 = vrot.slane %v1095_v47, 5  ;;  %v2061_v34 = vsel %vm14997_vm10, %v12290_v6, %v2060_v27 }
  0xc7   : > { %20818 = vst [vmem:[#allocation23_spill] sm:$0xff] %v15484_v28  ;;  %v15486_v29 = vld [vmem:[#allocation2 + $0x44] sm:$0x1]  ;;  %v2283_v61 = vshll.u32 %v15484_v28, 16  ;;  %v15495_v9 = vld [vmem:[#allocation2 + $0x4c] sm:$0xf] }
  0xc8   : > { %20819 = vst [vmem:[#allocation24_spill] sm:$0xff] %v15486_v29  ;;  %v2063_v43 = vrot.slane %v15486_v29, 5  ;;  %v15493_v11 = vld [vmem:[#allocation2 + $0x48] sm:$0xf]  ;;  %20820 = vst [vmem:[#allocation25_spill] sm:$0xff] %v15495_v9  ;;  %v2276_v60 = vsel %vm15143_vm14, %v2271_v3, %v2275_v45  ;;  %v2301_v16 = vshrl.u32 %v15495_v9, 16  ;;  %v1098_v6 = vor.u32 %v1097_v53, %v1094_v17 }
  0xc9   : > { %v2285_v42 = vrot.slane %v2283_v61, 5  ;;  %v2288_v19 = vshrl.u32 %v15493_v11, 16  ;;  %v2291_v12 = vshll.u32 %v15493_v11, 16  ;;  %v15508_v23 = vld [vmem:[#allocation2 + $0x44] sm:$0x1]  ;;  %v15516_v8 = vrot.slane %v20689_v20, 4 }
  0xca   : > { %v2064_v45 = vsel %vm14997_vm10, %v2062_v63, %v2063_v43  ;;  %v1360_v33 = vld [vmem:[#allocation2 + $0x3c] sm:$0xe]  ;;  %v1101_v61 = vshll.u32 %v15506_v56, 16  ;;  %v1105_v58 = vshrl.u32 %v15506_v56, 16  ;;  %v2303_v17 = vrot.slane %v2301_v16, 4  ;;  %v370_v3 = vld [vmem:[%s14934_s20 + $0x78] sm:$0xff] }
  0xcb   : > { %v2286_v50 = vsel %vm15143_vm14, %v2281_v40, %v2285_v42  ;;  %v2290_v49 = vrot.slane %v2288_v19, 4  ;;  %v2293_v47 = vrot.slane %v2291_v12, 5  ;;  %20821 = vst [vmem:[#allocation26_spill] sm:$0xff] %v15516_v8  ;;  %v1111_v40 = vshll.u32 %v15508_v23, 16  ;;  %v15526_v53 = vld [vmem:[#allocation2 + $0x4c] sm:$0xf] }
  0xcc   : > { %v12433_v27 = vcombine.low %v2276_v60, %v2286_v50  ;;  %v12402_v43 = vcombine.low %v2061_v34, %v2064_v45  ;;  %v1099_v42 = vrot.slane %v1098_v6, 4  ;;  %v2297_v60 = vshll.u32 %v15495_v9, 16  ;;  %v368_v12 = vld [vmem:[%s14934_s20 + $0x68] sm:$0xff]  ;;  %v1971_v10 = vld [vmem:[#allocation2 + $0x48] sm:$0xe] }
  0xcd   : > { %v2294_v63 = vor.u32 %v2293_v47, %v2290_v49  ;;  %v15523_v19 = vld [vmem:[#allocation2 + $0x50] sm:$0x1]  ;;  %v1679_v50 = vshrl.u32 %v15467_v0, 16  ;;  %v1103_v20 = vrot.slane %v1101_v61, 5  ;;  %v1107_v39 = vrot.slane %v1105_v58, 4 }
  0xce   : > { %3349 = vrot.lane.b32.xlu0 %v12433_v27, %s14754_s23  ;;  %20822 = vst [vmem:[#allocation27_spill] sm:$0xff] %v15523_v19  ;;  %v12275_v13 = vrot.slane %v1360_v33, 9  ;;  %v2299_v47 = vrot.slane %v2297_v60, 5  ;;  %v2307_v34 = vshll.u32 %v15523_v19, 16  ;;  %v1459_v45 = vrot.slane %v15506_v56, 5 }
  0xcf   : > { %v2295_v49 = vrot.slane %v2294_v63, 4  ;;  %v15533_v27 = vld [vmem:[#allocation2 + $0x50] sm:$0x1]  ;;  %v1108_v16 = vor.u32 %v1107_v39, %v1103_v20  ;;  %v1113_v6 = vrot.slane %v1111_v40, 5  ;;  %v1462_v22 = vrot.slane %v15508_v23, 5 }
  0xd0   : > { %20823 = vst [vmem:[#allocation28_spill] sm:$0xff] %v15533_v27  ;;  %v15536_v46 = vpack.c.bf16 %v368_v12, %v368_v12  ;;  %v13970_v61 = vld [vmem:[#allocation6 + $0x3ac] ss:$52 sps:$4 sm:$0xff]   ;;  %v13972_v58 = vld [vmem:[#allocation6 + $0x3b4] ss:$52 sps:$4 sm:$0xff]   ;;  %v12418_v33 = vcombine.low %v15493_v11, %v15495_v9  ;;  %v1104_v63 = vsel %vm15143_vm14, %v1099_v42, %v1103_v20  ;;  %v2304_v60 = vor.u32 %v2303_v17, %v2299_v47 }
  0xd1   : > { %v2309_v56 = vrot.slane %v2307_v34, 5  ;;  %v13975_v39 = vld [vmem:[#allocation6 + $0x3b0] ss:$52 sps:$4 sm:$0xff]   ;;  %v1109_v40 = vrot.slane %v1108_v16, 4  ;;  %v1461_v8 = vrot.slane %v1459_v45, 4  ;;  %v12291_v23 = vrot.slane %v1971_v10, 9  ;;  %5288 = vmatprep.subr.bf16.mxu0 %v13970_v61  ;;  %5674 = vmatprep.subr.bf16.mxu1 %v13972_v58 }
  0xd2   : > { %3175 = vrot.lane.b32.xlu0 %v12402_v43, %s14755_s9  ;;  %v2067_v12 = vrot.slane %v15526_v53, 5  ;;  %v13976_v14 = vld [vmem:[#allocation6 + $0x414] ss:$52 sps:$4 sm:$0xff]   ;;  %v2300_v43 = vsel %vm15143_vm14, %v2295_v49, %v2299_v47  ;;  %v2305_v11 = vrot.slane %v2304_v60, 4  ;;  %v2070_v38 = vrot.slane %v15533_v27, 5  ;;  %5289 = vmatpush1.bf16.msra.mxu0 %v13974_v44 }
  0xd3   : > { %v932_v20 = vld [vmem:[#allocation2 + $0x48] sm:$0xf]  ;;  %v15548_v42 = vpack.c.bf16 %v369_v37, %v369_v37  ;;  %5675 = vmatpush1.bf16.msra.mxu1 %v13975_v39  ;;  %v1114_v10 = vsel %vm15143_vm14, %v1109_v40, %v1113_v6  ;;  %v1460_v34 = vsel %vm14997_vm10, %v12275_v13, %v1459_v45  ;;  %v1463_v16 = vsel %vm14997_vm10, %v1461_v8, %v1462_v22  ;;  %v13981_v47 = vld [vmem:[#allocation6 + $0x418] ss:$52 sps:$4 sm:$0xff]   ;;  %v850_v39 = vld [vmem:[#allocation2 + $0x54] sm:$0xf] }
  0xd4   : > { %v13978_v17 = vld [vmem:[#allocation6 + $0x41c] ss:$52 sps:$4 sm:$0xff]   ;;  %v2069_v61 = vrot.slane %v2067_v12, 4  ;;  %5290 = vmatprep.subr.bf16.mxu0 %v13976_v14  ;;  %v12339_v37 = vcombine.low %v1104_v63, %v1114_v10  ;;  %v2310_v44 = vsel %vm15143_vm14, %v2305_v11, %v2309_v56  ;;  %v2068_v6 = vsel %vm14997_vm10, %v12291_v23, %v2067_v12  ;;  %v13986_v22 = vld [vmem:[#allocation6 + $0x484] ss:$52 sps:$4 sm:$0xff]  }
  0xd5   : > { %v13980_v49 = vld [vmem:[#allocation6 + $0x410] ss:$52 sps:$4 sm:$0xff]   ;;  %5676 = vmatprep.subr.bf16.mxu1 %v13978_v17  ;;  %v15564_v8 = vrot.slane %v1679_v50, 4  ;;  %v12434_v14 = vcombine.low %v2300_v43, %v2310_v44  ;;  %v15570_v63 = vpack.c.bf16 %v370_v3, %v370_v3  ;;  %v13988_v56 = vld [vmem:[#allocation6 + $0x478] ss:$52 sps:$4 sm:$0xff]   ;;  %v12355_v40 = vcombine.low %v1460_v34, %v1463_v16 }
  0xd6   : > { %3271 = vrot.lane.b32.xlu0 %v12418_v33, %s14753_s21  ;;  %v15562_v60 = vld [vmem:[#allocation2 + $0x48] sm:$0xf]  ;;  %v2071_v45 = vsel %vm14997_vm10, %v2069_v61, %v2070_v38  ;;  %v15568_v33 = vld [vmem:[#allocation2 + $0x4c] sm:$0xf]  ;;  %2873 = vrot.lane.b32.xlu1 %v12339_v37, %s14755_s9  ;;  %v20824_v23 = vshrl.u32 %v15497_v62, 16  ;;  %v591_v11 = vshll.u32 %v15497_v62, 16 }
  0xd7   : > { %v13984_v13 = vld [vmem:[#allocation6 + $0x47c] ss:$52 sps:$4 sm:$0xff]   ;;  %v596_v50 = vshrl.u32 %v15536_v46, 16  ;;  %v15577_v43 = vld [vmem:[#allocation2 + $0x50] sm:$0x1]  ;;  %5291 = vmatpush1.bf16.msra.mxu0 %v13980_v49  ;;  %v12403_v10 = vcombine.low %v2068_v6, %v2071_v45  ;;  %v599_v3 = vshll.u32 %v15536_v46, 16  ;;  %5677 = vmatpush1.bf16.msra.mxu1 %v13981_v47  ;;  %v12371_v49 = vcombine.low %v15562_v60, %v15526_v53 }
  0xd8   : > { %v590_v12 = vrot.slane %v20824_v23, 7  ;;  %v15579_v17 = vld [vmem:[#allocation2 + $0x48] sm:$0xe]  ;;  %v13989_v38 = vld [vmem:[#allocation6 + $0x480] ss:$52 sps:$4 sm:$0xff]   ;;  %v1116_v61 = vshrl.u32 %v932_v20, 16  ;;  %5292 = vmatprep.subr.bf16.mxu0 %v13984_v13  ;;  %5678 = vmatprep.subr.bf16.mxu1 %v13986_v22 }
  0xd9   : > { %v1119_v44 = vshll.u32 %v932_v20, 16  ;;  %v13990_v34 = vld [vmem:[#allocation6 + $0x4e4] ss:$52 sps:$4 sm:$0xff]   ;;  %v598_v37 = vrot.slane %v596_v50, 7  ;;  %v1125_v23 = vshll.u32 %v15568_v33, 16  ;;  %v1129_v46 = vshrl.u32 %v15568_v33, 16 }
  0xda   : > { %3351 = vrot.lane.b32.xlu0 %v12434_v14, %s14754_s23  ;;  %v593_v16 = vor.u32 %v591_v11, %v590_v12  ;;  %v594_v62 = vrot.slane %v590_v12, 4  ;;  %v13992_v58 = vld [vmem:[#allocation6 + $0x4ec] ss:$52 sps:$4 sm:$0xff]   ;;  %v1118_v6 = vrot.slane %v1116_v61, 4  ;;  %v854_v20 = vld [vmem:[#allocation2 + $0x5c] sm:$0x1]  ;;  %2953 = vrot.lane.b32.xlu1 %v12355_v40, %s14753_s21 }
  0xdb   : > { %v1121_v45 = vrot.slane %v1119_v44, 5  ;;  %v601_v47 = vor.u32 %v599_v3, %v598_v37  ;;  %v603_v13 = vrot.slane %v598_v37, 4  ;;  %v1127_v12 = vrot.slane %v1125_v23, 5  ;;  %5293 = vmatpush1.bf16.msra.mxu0 %v13988_v56  ;;  %v13994_v11 = vld [vmem:[#allocation6 + $0x4e0] ss:$52 sps:$4 sm:$0xff]   ;;  %5679 = vmatpush1.bf16.msra.mxu1 %v13989_v38 }
  0xdc   : > { %v851_v14 = vsel %vm15004_vm11, %v593_v16, %v850_v39  ;;  %v13995_v22 = vld [vmem:[#allocation6 + $0x4e8] ss:$52 sps:$4 sm:$0xff]   ;;  %v1131_v4 = vrot.slane %v1129_v46, 4  ;;  %v1135_v53 = vshll.u32 %v15577_v43, 16  ;;  %v12276_v61 = vrot.slane %v15579_v17, 9  ;;  %5294 = vmatprep.subr.bf16.mxu0 %v13990_v34  ;;  %5680 = vmatprep.subr.bf16.mxu1 %v13992_v58 }
  0xdd   : > { %852 = vst [vmem:[#allocation2 + $0x54] sm:$0xf] %v851_v14  ;;  %v1122_v50 = vor.u32 %v1121_v45, %v1118_v6  ;;  %v325_v44 = vld [vmem:[#allocation2 + $0x68] sm:$0x1]  ;;  %v13996_v40 = vld [vmem:[#allocation6 + $0x54c] ss:$52 sps:$4 sm:$0xff]   ;;  %v602_v39 = vsel %vm14989_vm9, %v594_v62, %v601_v47  ;;  %v855_v56 = vsel %vm14958_vm4, %v603_v13, %v854_v20 }
  0xde   : > { %3177 = vrot.lane.b32.xlu0 %v12403_v10, %s14755_s9  ;;  %v1466_v3 = vrot.slane %v15568_v33, 5  ;;  %v1469_v16 = vrot.slane %v15577_v43, 5  ;;  %v272_v37 = vld [vmem:[#allocation2 + $0x6c] sm:$0x1]  ;;  %853 = vst.msk [vmem:[#allocation2 + $0x58] sm:$0xf] %vm233_vm0, %v602_v39  ;;  %v1132_v38 = vor.u32 %v1131_v4, %v1127_v12  ;;  %3049 = vrot.lane.b32.xlu1 %v12371_v49, %s14754_s23 }
  0xdf   : > { %v13998_v23 = vld [vmem:[#allocation6 + $0x554] ss:$52 sps:$4 sm:$0xff]   ;;  %v1123_v17 = vrot.slane %v1122_v50, 4  ;;  %v1137_v34 = vrot.slane %v1135_v53, 5  ;;  %856 = vst [vmem:[#allocation2 + $0x5c] sm:$0x1] %v855_v56  ;;  %5295 = vmatpush1.bf16.msra.mxu0 %v13994_v11  ;;  %5681 = vmatpush1.bf16.msra.mxu1 %v13995_v22 }
  0xe0   : > { %v605_v10 = vshrl.u32 %v15548_v42, 16  ;;  %v14000_v6 = vld [vmem:[#allocation6 + $0x548] ss:$52 sps:$4 sm:$0xff]   ;;  %v1468_v62 = vrot.slane %v1466_v3, 4  ;;  %v608_v45 = vshll.u32 %v15548_v42, 16  ;;  %v613_v33 = vshrl.u32 %v15570_v63, 16  ;;  %5296 = vmatprep.subr.bf16.mxu0 %v13996_v40  ;;  %5682 = vmatprep.subr.bf16.mxu1 %v13998_v23 }
  0xe1   : > { %v14001_v43 = vld [vmem:[#allocation6 + $0x550] ss:$52 sps:$4 sm:$0xff]   ;;  %v1128_v58 = vsel %vm15143_vm14, %v1123_v17, %v1127_v12  ;;  %v1133_v46 = vrot.slane %v1132_v38, 4  ;;  %v616_v4 = vshll.u32 %v15570_v63, 16  ;;  %v1467_v47 = vsel %vm14997_vm10, %v12276_v61, %v1466_v3  ;;  %v857_v13 = vld [vmem:[#allocation2 + $0x60] sm:$0xf] }
  0xe2   : > { %v607_v20 = vrot.slane %v605_v10, 7  ;;  %v15609_v49 = vrot.slane %v613_v33, 7  ;;  %v326_v42 = vsel %vm14964_vm5, 0, %v325_v44  ;;  %v273_v14 = vsel %vm14958_vm4, 0, %v272_v37  ;;  %v14004_v50 = vld [vmem:[#allocation6 + $0x5b4] ss:$52 sps:$4 sm:$0xff]  }
  0xe3   : > { %v1138_v12 = vsel %vm15143_vm14, %v1133_v46, %v1137_v34  ;;  %v1470_v63 = vsel %vm14997_vm10, %v1468_v62, %v1469_v16  ;;  %327 = vst [vmem:[#allocation2 + $0x68] sm:$0x1] %v326_v42  ;;  %274 = vst [vmem:[#allocation2 + $0x6c] sm:$0x1] %v273_v14  ;;  %v14006_v53 = vld [vmem:[#allocation6 + $0x5bc] ss:$52 sps:$4 sm:$0xff]   ;;  %5297 = vmatpush1.bf16.msra.mxu0 %v14000_v6  ;;  %5683 = vmatpush1.bf16.msra.mxu1 %v14001_v43 }
  0xe4   : > { %v610_v11 = vor.u32 %v608_v45, %v607_v20  ;;  %v611_v22 = vrot.slane %v607_v20, 4  ;;  %v20825_v44 = vshll.u32 %v15467_v0, 16  ;;  %v2153_v39 = vld [vmem:[#allocation2 + $0x54] sm:$0xf]  ;;  %v12340_v56 = vcombine.low %v1128_v58, %v1138_v12  ;;  %v371_v38 = vld [vmem:[%s14934_s20 + $0x80] sm:$0xff]  ;;  %5298 = vmatprep.subr.bf16.mxu0 %v14004_v50  ;;  %5684 = vmatprep.subr.bf16.mxu1 %v14006_v53  ;;  %v372_v50 = vld [vmem:[%s14934_s20 + $0x88] sm:$0xff] }
  0xe5   : > { %v618_v3 = vor.u32 %v616_v4, %v15609_v49  ;;  %v1703_v37 = vshrl.u32 %v15562_v60, 16  ;;  %v2312_v23 = vshrl.u32 %v2153_v39, 16  ;;  %v2315_v17 = vshll.u32 %v2153_v39, 16  ;;  %v15628_v34 = vld [vmem:[#allocation2 + $0x58] sm:$0xf] }
  0xe6   : > { %v15622_v40 = vrot.slane %v20825_v44, 5  ;;  %20826 = vst [vmem:[#allocation29_spill] sm:$0xff] %v15628_v34  ;;  %2875 = vrot.lane.b32.xlu1 %v12340_v56, %s14755_s9  ;;  %v15631_v0 = vld [vmem:[#allocation2 + $0x5c] sm:$0x1]  ;;  %v12356_v10 = vcombine.low %v1467_v47, %v1470_v63  ;;  %v1972_v62 = vld [vmem:[#allocation2 + $0x54] sm:$0xe]  ;;  %v858_v45 = vsel %vm15004_vm11, %v610_v11, %v857_v13  ;;  %v12419_v4 = vcombine.low %v2153_v39, %v15628_v34 }
  0xe7   : > { %20827 = vst [vmem:[#allocation30_spill] sm:$0xff] %v15631_v0  ;;  %v619_v6 = vsel %vm14989_vm9, %v611_v22, %v618_v3  ;;  %v20694_v33 = vrot.slane %v15495_v9, 5  ;;  %v2314_v58 = vrot.slane %v2312_v23, 4  ;;  %v2317_v43 = vrot.slane %v2315_v17, 5  ;;  %v1547_v20 = vld [vmem:[#allocation2 + $0x58] sm:$0xf] }
  0xe8   : > { %v2325_v46 = vshrl.u32 %v15628_v34, 16  ;;  %859 = vst [vmem:[#allocation2 + $0x60] sm:$0xf] %v858_v45  ;;  %860 = vst.msk [vmem:[#allocation2 + $0x64] sm:$0xf] %vm233_vm0, %v619_v6  ;;  %v2321_v47 = vshll.u32 %v15628_v34, 16  ;;  %v1685_v53 = vor.u32 %v15622_v40, %v15564_v8  ;;  %3273 = vrot.lane.b32.xlu0 %v12419_v4, %s14753_s21  ;;  %v15657_v23 = vpack.c.bf16 %v371_v38, %v371_v38 }
  0xe9   : > { %v2331_v42 = vshll.u32 %v15631_v0, 16  ;;  %v15643_v14 = vld [vmem:[#allocation2 + $0x5c] sm:$0x1]  ;;  %v15645_v13 = vld [vmem:[#allocation2 + $0x54] sm:$0xf]  ;;  %v15647_v12 = vrot.slane %v1703_v37, 4  ;;  %v2318_v11 = vor.u32 %v2317_v43, %v2314_v58  ;;  %v15664_v61 = vpack.c.bf16 %v372_v50, %v372_v50 }
  0xea   : > { %20828 = vst [vmem:[#allocation31_spill] sm:$0xff] %v15643_v14  ;;  %v1706_v63 = vshll.u32 %v15562_v60, 16  ;;  %v2327_v22 = vrot.slane %v2325_v46, 4  ;;  %v2323_v44 = vrot.slane %v2321_v47, 5  ;;  %2955 = vrot.lane.b32.xlu1 %v12356_v10, %s14753_s21  ;;  %v2074_v39 = vrot.slane %v1547_v20, 5 }
  0xeb   : > { %v934_v56 = vld [vmem:[#allocation2 + $0x54] sm:$0xf]  ;;  %v15655_v3 = vld [vmem:[#allocation2 + $0x58] sm:$0xf]  ;;  %v2319_v37 = vrot.slane %v2318_v11, 4  ;;  %v12292_v17 = vrot.slane %v1972_v62, 9  ;;  %v12372_v6 = vcombine.low %v15645_v13, %v1547_v20 }
  0xec   : > { %v2077_v60 = vrot.slane %v15643_v14, 5  ;;  %v861_v45 = vld [vmem:[#allocation2 + $0x68] sm:$0x1]  ;;  %v2328_v58 = vor.u32 %v2327_v22, %v2323_v44  ;;  %v2333_v8 = vrot.slane %v2331_v42, 5  ;;  %v2076_v40 = vrot.slane %v2074_v39, 4 }
  0xed   : > { %v620_v43 = vrot.slane %v15609_v49, 4  ;;  %v14008_v46 = vld [vmem:[#allocation6 + $0x5b0] ss:$52 sps:$4 sm:$0xff]   ;;  %v15662_v10 = vrot.slane %v1706_v63, 5  ;;  %v1140_v4 = vshrl.u32 %v934_v56, 16  ;;  %v1143_v47 = vshll.u32 %v934_v56, 16 }
  0xee   : > { %v14009_v38 = vld [vmem:[#allocation6 + $0x5b8] ss:$52 sps:$4 sm:$0xff]   ;;  %v2324_v62 = vsel %vm15143_vm14, %v2319_v37, %v2323_v44  ;;  %v2329_v11 = vrot.slane %v2328_v58, 4  ;;  %3051 = vrot.lane.b32.xlu1 %v12372_v6, %s14754_s23  ;;  %v1149_v49 = vshll.u32 %v15655_v3, 16  ;;  %5299 = vmatpush1.bf16.msra.mxu0 %v14008_v46  ;;  %v2075_v22 = vsel %vm14997_vm10, %v12292_v17, %v2074_v39  ;;  %v959_v17 = vld [vmem:[#allocation2 + $0x5c] sm:$0x1] }
  0xef   : > { %v15669_v20 = vld [vmem:[#allocation2 + $0x60] sm:$0xf]  ;;  %v15671_v42 = vld [vmem:[#allocation2 + $0x64] sm:$0xf]  ;;  %v862_v63 = vsel %vm14958_vm4, %v620_v43, %v861_v45  ;;  %v2078_v50 = vsel %vm14997_vm10, %v2076_v40, %v2077_v60  ;;  %5685 = vmatpush1.bf16.msra.mxu1 %v14009_v38  ;;  %v15682_v37 = vrot.slane %v1685_v53, 4  ;;  %v15686_v6 = vrot.slane %v20694_v33, 4 }
  0xf0   : > { %v2336_v44 = vshrl.u32 %v15669_v20, 16  ;;  %v2339_v56 = vshll.u32 %v15669_v20, 16  ;;  %863 = vst [vmem:[#allocation2 + $0x68] sm:$0x1] %v862_v63  ;;  %v2334_v45 = vsel %vm15143_vm14, %v2329_v11, %v2333_v8  ;;  %v2349_v39 = vshrl.u32 %v15671_v42, 16 }
  0xf1   : > { %20829 = vst [vmem:[#allocation32_spill] sm:$0xff] %v15682_v37  ;;  %20830 = vst [vmem:[#allocation33_spill] sm:$0xff] %v15686_v6  ;;  %v1709_v60 = vor.u32 %v15662_v10, %v15647_v12  ;;  %v12435_v58 = vcombine.low %v2324_v62, %v2334_v45  ;;  %v1362_v46 = vld [vmem:[#allocation2 + $0x54] sm:$0xe]  ;;  %v12404_v38 = vcombine.low %v2075_v22, %v2078_v50  ;;  %v1142_v53 = vrot.slane %v1140_v4, 4 }
  0xf2   : > { %v2338_v40 = vrot.slane %v2336_v44, 4  ;;  %v2341_v43 = vrot.slane %v2339_v56, 5  ;;  %v1145_v63 = vrot.slane %v1143_v47, 5  ;;  %v1151_v16 = vrot.slane %v1149_v49, 5  ;;  %v14010_v6 = vld [vmem:[#allocation6 + $0x61c] ss:$52 sps:$4 sm:$0xff]  }
  0xf3   : > { %3353 = vrot.lane.b32.xlu0 %v12435_v58, %s14754_s23  ;;  %v1153_v33 = vshrl.u32 %v15655_v3, 16  ;;  %v1159_v9 = vshll.u32 %v959_v17, 16  ;;  %v2345_v11 = vshll.u32 %v15671_v42, 16  ;;  %v2351_v51 = vrot.slane %v2349_v39, 4  ;;  %v14012_v62 = vld [vmem:[#allocation6 + $0x624] ss:$52 sps:$4 sm:$0xff]   ;;  %5300 = vmatprep.subr.bf16.mxu0 %v14010_v6 }
  0xf4   : > { %v2342_v8 = vor.u32 %v2341_v43, %v2338_v40  ;;  %v1146_v28 = vor.u32 %v1145_v63, %v1142_v53  ;;  %v12277_v12 = vrot.slane %v1362_v46, 9  ;;  %v1473_v10 = vrot.slane %v15655_v3, 5  ;;  %v15698_v50 = vld [vmem:[#allocation2 + $0x64] sm:$0xf]  ;;  %v1973_v44 = vld [vmem:[#allocation2 + $0x60] sm:$0xe]  ;;  %5686 = vmatprep.subr.bf16.mxu1 %v14012_v62 }
  0xf5   : > { %v1155_v4 = vrot.slane %v1153_v33, 4  ;;  %v2347_v49 = vrot.slane %v2345_v11, 5  ;;  %v14014_v56 = vld [vmem:[#allocation6 + $0x618] ss:$52 sps:$4 sm:$0xff]   ;;  %v12420_v45 = vcombine.low %v15669_v20, %v15671_v42  ;;  %v1476_v43 = vrot.slane %v959_v17, 5  ;;  %v373_v11 = vld [vmem:[%s14934_s20 + $0x90] sm:$0xff] }
  0xf6   : > { %v2343_v47 = vrot.slane %v2342_v8, 4  ;;  %v1147_v58 = vrot.slane %v1146_v28, 4  ;;  %v1475_v39 = vrot.slane %v1473_v10, 4  ;;  %v1161_v33 = vrot.slane %v1159_v9, 5  ;;  %5301 = vmatpush1.bf16.msra.mxu0 %v14014_v56  ;;  %v14015_v42 = vld [vmem:[#allocation6 + $0x620] ss:$52 sps:$4 sm:$0xff]  }
  0xf7   : > { %v2181_v40 = vld [vmem:[#allocation2 + $0x68] sm:$0x1]  ;;  %3179 = vrot.lane.b32.xlu0 %v12404_v38, %s14755_s9  ;;  %v1156_v3 = vor.u32 %v1155_v4, %v1151_v16  ;;  %v2352_v46 = vor.u32 %v2351_v51, %v2347_v49  ;;  %v15706_v8 = vrot.slane %v1709_v60, 4  ;;  %v1474_v20 = vsel %vm14997_vm10, %v12277_v12, %v1473_v10  ;;  %5687 = vmatpush1.bf16.msra.mxu1 %v14015_v42 }
  0xf8   : > { %v2355_v53 = vshll.u32 %v2181_v40, 16  ;;  %v15703_v63 = vld [vmem:[#allocation2 + $0x68] sm:$0x1]  ;;  %v2348_v28 = vsel %vm15143_vm14, %v2343_v47, %v2347_v49  ;;  %v1152_v9 = vsel %vm15143_vm14, %v1147_v58, %v1151_v16  ;;  %v1477_v62 = vsel %vm14997_vm10, %v1475_v39, %v1476_v43  ;;  %v936_v47 = vld [vmem:[#allocation2 + $0x60] sm:$0xf]  ;;  %v374_v49 = vld [vmem:[%s14934_s20 + $0x98] sm:$0xff] }
  0xf9   : > { %20831 = vst [vmem:[#allocation34_spill] sm:$0xff] %v15703_v63  ;;  %20832 = vst [vmem:[#allocation35_spill] sm:$0xff] %v15706_v8  ;;  %v1157_v51 = vrot.slane %v1156_v3, 4  ;;  %v2353_v17 = vrot.slane %v2352_v46, 4  ;;  %v12293_v4 = vrot.slane %v1973_v44, 9  ;;  %v2081_v60 = vrot.slane %v15698_v50, 5 }
  0xfa   : > { %v2357_v38 = vrot.slane %v2355_v53, 5  ;;  %v2084_v56 = vrot.slane %v15703_v63, 5  ;;  %v12357_v3 = vcombine.low %v1474_v20, %v1477_v62  ;;  %v15729_v46 = vld [vmem:[#allocation2 + $0x60] sm:$0xf]  ;;  %v622_v53 = vshrl.u32 %v15657_v23, 16 }
  0xfb   : > { %3275 = vrot.lane.b32.xlu0 %v12420_v45, %s14753_s21  ;;  %v1162_v16 = vsel %vm15143_vm14, %v1157_v51, %v1161_v33  ;;  %v2082_v39 = vsel %vm14997_vm10, %v12293_v4, %v2081_v60  ;;  %v2083_v43 = vrot.slane %v2081_v60, 4  ;;  %v625_v42 = vshll.u32 %v15657_v23, 16  ;;  %v937_v45 = vld [vmem:[#allocation2 + $0x64] sm:$0xf]  ;;  %v864_v51 = vld [vmem:[#allocation2 + $0x6c] sm:$0xf] }
  0xfc   : > { %v2358_v58 = vsel %vm15143_vm14, %v2353_v17, %v2357_v38  ;;  %v12341_v44 = vcombine.low %v1152_v9, %v1162_v16  ;;  %v15733_v22 = vpack.c.bf16 %v373_v11, %v373_v11  ;;  %v633_v9 = vshll.u32 %v15664_v61, 16  ;;  %v328_v17 = vld [vmem:[#allocation2 + $0x74] sm:$0x1]  ;;  %v960_v23 = vld [vmem:[#allocation2 + $0x68] sm:$0x1] }
  0xfd   : > { %v12436_v40 = vcombine.low %v2348_v28, %v2358_v58  ;;  %v2085_v33 = vsel %vm14997_vm10, %v2083_v43, %v2084_v56  ;;  %v630_v28 = vshrl.u32 %v15664_v61, 16  ;;  %v1164_v20 = vshrl.u32 %v936_v47, 16  ;;  %v1363_v11 = vld [vmem:[#allocation2 + $0x60] sm:$0xe]  ;;  %v275_v43 = vld [vmem:[#allocation2 + $0x78] sm:$0x1] }
  0xfe   : > { %2877 = vrot.lane.b32.xlu1 %v12341_v44, %s14755_s9  ;;  %v12405_v38 = vcombine.low %v2082_v39, %v2085_v33  ;;  %v624_v62 = vrot.slane %v622_v53, 7  ;;  %v1167_v4 = vshll.u32 %v936_v47, 16  ;;  %v15741_v60 = vpack.c.bf16 %v374_v49, %v374_v49 }
  0xff   : > { %3355 = vrot.lane.b32.xlu0 %v12436_v40, %s14754_s23  ;;  %v15743_v16 = vrot.slane %v630_v28, 7  ;;  %v1166_v58 = vrot.slane %v1164_v20, 4  ;;  %v1173_v56 = vshll.u32 %v937_v45, 16  ;;  %v1177_v44 = vshrl.u32 %v937_v45, 16  ;;  %v331_v20 = vld [vmem:[#allocation2 + $0x80] sm:$0x1] }
 0x100   : > { %v627_v12 = vor.u32 %v625_v42, %v624_v62  ;;  %v628_v6 = vrot.slane %v624_v62, 4  ;;  %v1169_v10 = vrot.slane %v1167_v4, 5  ;;  %v12373_v40 = vcombine.low %v15729_v46, %v15698_v50  ;;  %v278_v4 = vld [vmem:[#allocation2 + $0x84] sm:$0x1] }
 0x101   : > { %v635_v47 = vor.u32 %v633_v9, %v15743_v16  ;;  %v1175_v49 = vrot.slane %v1173_v56, 5  ;;  %v1179_v39 = vrot.slane %v1177_v44, 4  ;;  %v1183_v28 = vshll.u32 %v960_v23, 16 }
 0x102   : > { %2957 = vrot.lane.b32.xlu1 %v12357_v3, %s14753_s21  ;;  %v865_v53 = vsel %vm15004_vm11, %v627_v12, %v864_v51  ;;  %v1170_v33 = vor.u32 %v1169_v10, %v1166_v58  ;;  %v329_v42 = vsel %vm14964_vm5, 0, %v328_v17  ;;  %v12278_v9 = vrot.slane %v1363_v11, 9 }
 0x103   : > { %3181 = vrot.lane.b32.xlu0 %v12405_v38, %s14755_s9  ;;  %v636_v3 = vsel %vm14989_vm9, %v628_v6, %v635_v47  ;;  %866 = vst [vmem:[#allocation2 + $0x6c] sm:$0xf] %v865_v53  ;;  %v1180_v50 = vor.u32 %v1179_v39, %v1175_v49  ;;  %330 = vst [vmem:[#allocation2 + $0x74] sm:$0x1] %v329_v42  ;;  %v1480_v62 = vrot.slane %v937_v45, 5  ;;  %v1185_v56 = vrot.slane %v1183_v28, 5 }
 0x104   : > { %867 = vst.msk [vmem:[#allocation2 + $0x70] sm:$0xf] %vm233_vm0, %v636_v3  ;;  %v1171_v38 = vrot.slane %v1170_v33, 4  ;;  %v1483_v12 = vrot.slane %v960_v23, 5  ;;  %v276_v10 = vsel %vm14958_vm4, 0, %v275_v43  ;;  %v639_v6 = vshrl.u32 %v15733_v22, 16 }
 0x105   : > { %v1181_v51 = vrot.slane %v1180_v50, 4  ;;  %v1482_v17 = vrot.slane %v1480_v62, 4  ;;  %277 = vst [vmem:[#allocation2 + $0x78] sm:$0x1] %v276_v10  ;;  %v637_v58 = vrot.slane %v15743_v16, 4  ;;  %v1481_v11 = vsel %vm14997_vm10, %v12278_v9, %v1480_v62 }
 0x106   : > { %3053 = vrot.lane.b32.xlu1 %v12373_v40, %s14754_s23  ;;  %v1176_v45 = vsel %vm15143_vm14, %v1171_v38, %v1175_v49  ;;  %v647_v23 = vshrl.u32 %v15741_v60, 16  ;;  %v641_v40 = vrot.slane %v639_v6, 7  ;;  %v332_v47 = vsel %vm14964_vm5, 0, %v331_v20 }
 0x107   : > { %v1186_v44 = vsel %vm15143_vm14, %v1181_v51, %v1185_v56  ;;  %v1484_v43 = vsel %vm14997_vm10, %v1482_v17, %v1483_v12  ;;  %v650_v49 = vshll.u32 %v15741_v60, 16  ;;  %333 = vst [vmem:[#allocation2 + $0x80] sm:$0x1] %v332_v47  ;;  %v279_v53 = vsel %vm14958_vm4, 0, %v278_v4 }
 0x108   : > { %v12342_v39 = vcombine.low %v1176_v45, %v1186_v44  ;;  %v15774_v16 = vrot.slane %v647_v23, 7  ;;  %v1730_v33 = vshll.u32 %v15645_v13, 16  ;;  %v1751_v28 = vshrl.u32 %v15729_v46, 16  ;;  %280 = vst [vmem:[#allocation2 + $0x84] sm:$0x1] %v279_v53  ;;  %v375_v53 = vld [vmem:[%s14934_s20 + $0xa0] sm:$0xff] }
 0x109   : > { %v642_v42 = vshll.u32 %v15733_v22, 16  ;;  %v1754_v3 = vshll.u32 %v15729_v46, 16  ;;  %v12358_v9 = vcombine.low %v1481_v11, %v1484_v43  ;;  %v645_v62 = vrot.slane %v641_v40, 4 }
 0x10a   : > { %v2157_v50 = vld [vmem:[#allocation2 + $0x6c] sm:$0xf]  ;;  %2879 = vrot.lane.b32.xlu1 %v12342_v39, %s14755_s9  ;;  %v868_v20 = vld [vmem:[#allocation2 + $0x74] sm:$0x1]  ;;  %v652_v46 = vor.u32 %v650_v49, %v15774_v16  ;;  %v20833_v44 = vshrl.u32 %v15645_v13, 16  ;;  %vm3472_vm2 = vcmask 523264  }
 0x10b   : > { %v2158_v60 = vld [vmem:[#allocation2 + $0x70] sm:$0xf]  ;;  %v2360_v38 = vshrl.u32 %v2157_v50, 16  ;;  %v2363_v56 = vshll.u32 %v2157_v50, 16  ;;  %v869_v4 = vsel %vm14958_vm4, %v637_v58, %v868_v20  ;;  %v1974_v45 = vld [vmem:[#allocation2 + $0x6c] sm:$0xe]  ;;  %v644_v11 = vor.u32 %v642_v42, %v641_v40 }
 0x10c   : > { %v1551_v12 = vld [vmem:[#allocation2 + $0x70] sm:$0xf]  ;;  %v2373_v10 = vshrl.u32 %v2158_v60, 16  ;;  %v12421_v51 = vcombine.low %v2157_v50, %v2158_v60  ;;  %870 = vst [vmem:[#allocation2 + $0x74] sm:$0x1] %v869_v4  ;;  %v2369_v22 = vshll.u32 %v2158_v60, 16  ;;  %v653_v4 = vsel %vm14989_vm9, %v645_v62, %v652_v46 }
 0x10d   : > { %v2362_v17 = vrot.slane %v2360_v38, 4  ;;  %v2365_v6 = vrot.slane %v2363_v56, 5  ;;  %v15787_v23 = vld [vmem:[#allocation2 + $0x6c] sm:$0xf]  ;;  %v15791_v43 = vrot.slane %v20833_v44, 4  ;;  %v2088_v39 = vrot.slane %v1551_v12, 5 }
 0x10e   : > { %3277 = vrot.lane.b32.xlu0 %v12421_v51, %s14753_s21  ;;  %v15794_v58 = vrot.slane %v2369_v22, 5  ;;  %v2375_v47 = vrot.slane %v2373_v10, 4  ;;  %2959 = vrot.lane.b32.xlu1 %v12358_v9, %s14753_s21  ;;  %v871_v49 = vld [vmem:[#allocation2 + $0x78] sm:$0xf]  ;;  %v15798_v50 = vrot.slane %v1730_v33, 5  ;;  %v15800_v20 = vrot.slane %v1751_v28, 4  ;;  %v15809_v51 = vpop.permute.xlu0 %3265 }
 0x10f   : > { %v2366_v40 = vor.u32 %v2365_v6, %v2362_v17  ;;  %v938_v42 = vld [vmem:[#allocation2 + $0x6c] sm:$0xf]  ;;  %v15802_v13 = vld [vmem:[#allocation2 + $0x70] sm:$0xf]  ;;  %v12294_v38 = vrot.slane %v1974_v45, 9  ;;  %v12374_v56 = vcombine.low %v15787_v23, %v1551_v12  ;;  %v376_v10 = vld [vmem:[%s14934_s20 + $0xa8] sm:$0xff]  ;;  %v872_v17 = vsel %vm15004_vm11, %v644_v11, %v871_v49  ;;  %v15817_v6 = vpop.permute.xlu1 %2943 }
 0x110   : > { %v2376_v60 = vor.u32 %v2375_v47, %v15794_v58  ;;  %v875_v9 = vld [vmem:[#allocation2 + $0x80] sm:$0x1]  ;;  %20834 = vst [vmem:[#allocation36_spill] sm:$0xff] %v15809_v51  ;;  %v15811_v33 = vrot.slane %v1754_v3, 5  ;;  %v654_v22 = vrot.slane %v15774_v16, 4  ;;  %v2090_v12 = vrot.slane %v2088_v39, 4 }
 0x111   : > { %v2367_v28 = vrot.slane %v2366_v40, 4  ;;  %874 = vst.msk [vmem:[#allocation2 + $0x7c] sm:$0xf] %vm233_vm0, %v653_v4  ;;  %873 = vst [vmem:[#allocation2 + $0x78] sm:$0xf] %v872_v17  ;;  %v1188_v62 = vshrl.u32 %v938_v42, 16  ;;  %v15829_v49 = vpack.c.bf16 %v375_v53, %v375_v53  ;;  %v15831_v40 = vpack.c.bf16 %v376_v10, %v376_v10 }
 0x112   : > { %3055 = vrot.lane.b32.xlu1 %v12374_v56, %s14754_s23  ;;  %v1191_v46 = vshll.u32 %v938_v42, 16  ;;  %v1197_v45 = vshll.u32 %v15802_v13, 16  ;;  %v876_v11 = vsel %vm14958_vm4, %v654_v22, %v875_v9  ;;  %v2377_v56 = vrot.slane %v2376_v60, 4  ;;  %v1364_v61 = vld [vmem:[#allocation2 + $0x6c] sm:$0xe] }
 0x113   : > { %v2182_v44 = vld [vmem:[#allocation2 + $0x74] sm:$0x1]  ;;  %v2089_v42 = vsel %vm14997_vm10, %v12294_v38, %v2088_v39  ;;  %877 = vst [vmem:[#allocation2 + $0x80] sm:$0x1] %v876_v11  ;;  %v2372_v3 = vsel %vm15143_vm14, %v2367_v28, %v15794_v58  ;;  %v1190_v0 = vrot.slane %v1188_v62, 4  ;;  %v1201_v60 = vshrl.u32 %v15802_v13, 16  ;;  %v15843_v39 = vpop.permute.xlu0 %3267  ;;  %v15848_v28 = vpop.permute.xlu1 %3263 }
 0x114   : > { %v15823_v16 = vld [vmem:[#allocation2 + $0x74] sm:$0x1]  ;;  %v2379_v4 = vshll.u32 %v2182_v44, 16  ;;  %v1193_v19 = vrot.slane %v1191_v46, 5  ;;  %v1199_v9 = vrot.slane %v1197_v45, 5  ;;  %20836 = vst [vmem:[#allocation38_spill] sm:$0xff] %v15843_v39 }
 0x115   : > { %20835 = vst [vmem:[#allocation37_spill] sm:$0xff] %v15823_v16  ;;  %v15825_v47 = vld [vmem:[#allocation2 + $0x74] sm:$0x1]  ;;  %v2091_v17 = vrot.slane %v15823_v16, 5  ;;  %v656_v11 = vshrl.u32 %v15829_v49, 16  ;;  %20837 = vst [vmem:[#allocation39_spill] sm:$0xff] %v15848_v28 }
 0x116   : > { %v2381_v53 = vrot.slane %v2379_v4, 5  ;;  %v1207_v22 = vshll.u32 %v15825_v47, 16  ;;  %v1194_v44 = vor.u32 %v1193_v19, %v1190_v0  ;;  %v1203_v45 = vrot.slane %v1201_v60, 4 }
 0x117   : > { %v2092_v10 = vsel %vm14997_vm10, %v2090_v12, %v2091_v17  ;;  %v12279_v4 = vrot.slane %v1364_v61, 9  ;;  %v1487_v38 = vrot.slane %v15802_v13, 5  ;;  %v1490_v61 = vrot.slane %v15825_v47, 5  ;;  %v15859_v29 = vpop.permute.xlu0 %2863 }
 0x118   : > { %v2382_v62 = vsel %vm15143_vm14, %v2377_v56, %v2381_v53  ;;  %v12406_v46 = vcombine.low %v2089_v42, %v2092_v10  ;;  %v2160_v12 = vld [vmem:[#allocation2 + $0x7c] sm:$0xf]  ;;  %v2159_v34 = vld [vmem:[#allocation2 + $0x78] sm:$0xf]  ;;  %v1195_v24 = vrot.slane %v1194_v44, 4  ;;  %v1204_v8 = vor.u32 %v1203_v45, %v1199_v9 }
 0x119   : > { %v12437_v17 = vcombine.low %v2372_v3, %v2382_v62  ;;  %v2397_v26 = vshrl.u32 %v2160_v12, 16  ;;  %v2384_v19 = vshrl.u32 %v2159_v34, 16  ;;  %v2387_v0 = vshll.u32 %v2159_v34, 16  ;;  %v15857_v3 = vld [vmem:[#allocation2 + $0x7c] sm:$0xf] }
 0x11a   : > { %v1209_v27 = vrot.slane %v1207_v22, 5  ;;  %v1200_v58 = vsel %vm15143_vm14, %v1195_v24, %v1199_v9  ;;  %v2183_v56 = vld [vmem:[#allocation2 + $0x80] sm:$0x1]  ;;  %v2393_v42 = vshll.u32 %v2160_v12, 16  ;;  %v1205_v44 = vrot.slane %v1204_v8, 4  ;;  %v15864_v9 = vpop.permute.xlu1 %3039 }
 0x11b   : > { %3357 = vrot.lane.b32.xlu0 %v12437_v17, %s14754_s23  ;;  %v2399_v53 = vrot.slane %v2397_v26, 4  ;;  %v2386_v10 = vrot.slane %v2384_v19, 4  ;;  %v2389_v60 = vrot.slane %v2387_v0, 5  ;;  %v2403_v13 = vshll.u32 %v2183_v56, 16  ;;  %v1975_v62 = vld [vmem:[#allocation2 + $0x78] sm:$0xe] }
 0x11c   : > { %v1778_v22 = vshll.u32 %v15787_v23, 16  ;;  %v12422_v45 = vcombine.low %v2159_v34, %v2160_v12  ;;  %v2395_v17 = vrot.slane %v2393_v42, 5  ;;  %v1489_v37 = vrot.slane %v1487_v38, 4  ;;  %v15862_v24 = vld [vmem:[#allocation2 + $0x80] sm:$0x1] }
 0x11d   : > { %20838 = vst [vmem:[#allocation40_spill] sm:$0xff] %v15862_v24  ;;  %v1210_v26 = vsel %vm15143_vm14, %v1205_v44, %v1209_v27  ;;  %v2390_v47 = vor.u32 %v2389_v60, %v2386_v10  ;;  %v2405_v19 = vrot.slane %v2403_v13, 5  ;;  %v1488_v8 = vsel %vm14997_vm10, %v12279_v4, %v1487_v38  ;;  %v15875_v28 = vld [vmem:[#allocation2 + $0x78] sm:$0xf] }
 0x11e   : > { %v12343_v0 = vcombine.low %v1200_v58, %v1210_v26  ;;  %v2400_v56 = vor.u32 %v2399_v53, %v2395_v17  ;;  %v1491_v34 = vsel %vm14997_vm10, %v1489_v37, %v1490_v61  ;;  %v12295_v12 = vrot.slane %v1975_v62, 9  ;;  %v878_v37 = vld [vmem:[#allocation2 + $0x84] sm:$0xf]  ;;  %v940_v53 = vld [vmem:[#allocation2 + $0x78] sm:$0xf]  ;;  %v15890_v62 = vpop.permute.xlu0 %3167 }
 0x11f   : > { %3183 = vrot.lane.b32.xlu0 %v12406_v46, %s14755_s9  ;;  %v2391_v42 = vrot.slane %v2390_v47, 4  ;;  %v2095_v39 = vrot.slane %v15857_v3, 5  ;;  %v2098_v51 = vrot.slane %v15862_v24, 5  ;;  %v20839_v38 = vor.u32 %v15798_v50, %v15791_v43  ;;  %v15884_v61 = vld [vmem:[#allocation2 + $0x7c] sm:$0xf] }
 0x120   : > { %2881 = vrot.lane.b32.xlu1 %v12343_v0, %s14755_s9  ;;  %v2401_v58 = vrot.slane %v2400_v56, 4  ;;  %v12359_v46 = vcombine.low %v1488_v8, %v1491_v34  ;;  %v1757_v10 = vor.u32 %v15811_v33, %v15800_v20  ;;  %v658_v13 = vrot.slane %v656_v11, 7  ;;  %v15898_v0 = vld [vmem:[#allocation2 + $0x80] sm:$0x1]  ;;  %v15900_v20 = vpop.permute.xlu1 %3041 }
 0x121   : > { %v15881_v4 = vrot.slane %v20839_v38, 4  ;;  %v2396_v60 = vsel %vm15143_vm14, %v2391_v42, %v2395_v17  ;;  %v2097_v44 = vrot.slane %v2095_v39, 4  ;;  %v20841_v43 = vshrl.u32 %v15787_v23, 16  ;;  %20842 = vst [vmem:[#allocation42_spill] sm:$0xff] %v15900_v20  ;;  %v1365_v38 = vld [vmem:[#allocation2 + $0x78] sm:$0xe] }
 0x122   : > { %v1780_v26 = vrot.slane %v1778_v22, 5  ;;  %v2406_v47 = vsel %vm15143_vm14, %v2401_v58, %v2405_v19  ;;  %v664_v8 = vshrl.u32 %v15831_v40, 16  ;;  %v2096_v11 = vsel %vm14997_vm10, %v12295_v12, %v2095_v39 }
 0x123   : > { %20840 = vst [vmem:[#allocation41_spill] sm:$0xff] %v15881_v4  ;;  %v1777_v50 = vrot.slane %v20841_v43, 4  ;;  %3279 = vrot.lane.b32.xlu0 %v12422_v45, %s14753_s21  ;;  %v12438_v33 = vcombine.low %v2396_v60, %v2406_v47  ;;  %v2099_v23 = vsel %vm14997_vm10, %v2097_v44, %v2098_v51  ;;  %v20843_v22 = vshll.u32 %v15829_v49, 16  ;;  %v334_v45 = vld [vmem:[#allocation2 + $0x8c] sm:$0x1] }
 0x124   : > { %2961 = vrot.lane.b32.xlu1 %v12359_v46, %s14753_s21  ;;  %v12375_v19 = vcombine.low %v15875_v28, %v15857_v3  ;;  %v662_v56 = vrot.slane %v658_v13, 4  ;;  %v15911_v34 = vrot.slane %v664_v8, 7  ;;  %v667_v42 = vshll.u32 %v15831_v40, 16  ;;  %v377_v44 = vld [vmem:[%s14934_s20 + $0xb0] sm:$0xff]  ;;  %v15922_v8 = vpop.permute.xlu0 %3169 }
 0x125   : > { %v661_v17 = vor.u32 %v20843_v22, %v658_v13  ;;  %v1212_v51 = vshrl.u32 %v940_v53, 16  ;;  %v1215_v12 = vshll.u32 %v940_v53, 16  ;;  %v1221_v49 = vshll.u32 %v15884_v61, 16 }
 0x126   : > { %v1781_v58 = vor.u32 %v1780_v26, %v1777_v50  ;;  %v12407_v46 = vcombine.low %v2096_v11, %v2099_v23  ;;  %v669_v60 = vor.u32 %v667_v42, %v15911_v34  ;;  %v1225_v3 = vshrl.u32 %v15884_v61, 16  ;;  %v15930_v11 = vpop.permute.xlu1 %3043 }
 0x127   : > { %v879_v39 = vsel %vm15004_vm11, %v661_v17, %v878_v37  ;;  %3359 = vrot.lane.b32.xlu0 %v12438_v33, %s14754_s23  ;;  %v1214_v13 = vrot.slane %v1212_v51, 4  ;;  %v1217_v40 = vrot.slane %v1215_v12, 5  ;;  %v1223_v43 = vrot.slane %v1221_v49, 5  ;;  %v281_v37 = vld [vmem:[#allocation2 + $0x90] sm:$0x1]  ;;  %20844 = vst [vmem:[#allocation43_spill] sm:$0xff] %v15930_v11 }
 0x128   : > { %880 = vst [vmem:[#allocation2 + $0x84] sm:$0xf] %v879_v39  ;;  %v1231_v47 = vshll.u32 %v15898_v0, 16  ;;  %3057 = vrot.lane.b32.xlu1 %v12375_v19, %s14754_s23  ;;  %v670_v50 = vsel %vm14989_vm9, %v662_v56, %v669_v60  ;;  %v1227_v26 = vrot.slane %v1225_v3, 4  ;;  %v335_v33 = vsel %vm14964_vm5, 0, %v334_v45 }
 0x129   : > { %v15932_v23 = vrot.slane %v1757_v10, 4  ;;  %881 = vst.msk [vmem:[#allocation2 + $0x88] sm:$0xf] %vm233_vm0, %v670_v50  ;;  %v1218_v22 = vor.u32 %v1217_v40, %v1214_v13  ;;  %336 = vst [vmem:[#allocation2 + $0x8c] sm:$0x1] %v335_v33  ;;  %v12280_v17 = vrot.slane %v1365_v38, 9  ;;  %v15941_v49 = vpack.c.bf16 %v377_v44, %v377_v44 }
 0x12a   : > { %v1494_v42 = vrot.slane %v15884_v61, 5  ;;  %v1228_v56 = vor.u32 %v1227_v26, %v1223_v43  ;;  %v1233_v39 = vrot.slane %v1231_v47, 5  ;;  %v1497_v51 = vrot.slane %v15898_v0, 5  ;;  %v15944_v61 = vld [vmem:[#allocation2 + $0x4] sm:$0xf]  ;;  %v378_v50 = vld [vmem:[%s14934_s20 + $0xb8] sm:$0xff]  ;;  %v15956_v26 = vpop.permute.xlu0 %3171 }
 0x12b   : > { %20845 = vst [vmem:[#allocation44_spill] sm:$0xff] %v15932_v23  ;;  %3185 = vrot.lane.b32.xlu0 %v12407_v46, %s14755_s9  ;;  %v15939_v45 = vrot.slane %v1781_v58, 4  ;;  %v1219_v10 = vrot.slane %v1218_v22, 4  ;;  %v1799_v38 = vshrl.u32 %v15875_v28, 16  ;;  %v14558_v3 = vld [vmem:[#allocation2] sm:$0xf] }
 0x12c   : > { %v1496_v12 = vrot.slane %v1494_v42, 4  ;;  %v1229_v60 = vrot.slane %v1228_v56, 4  ;;  %v12318_v46 = vcombine.low %v14558_v3, %v15944_v61  ;;  %v282_v13 = vsel %vm14958_vm4, 0, %v281_v37  ;;  %v379_v33 = vld [vmem:[%s14934_s20 + $0xc0] sm:$0xff]  ;;  %v15963_v61 = vpop.permute.xlu1 %2945 }
 0x12d   : > { %20846 = vst [vmem:[#allocation45_spill] sm:$0xff] %v15939_v45  ;;  %v1802_v0 = vshll.u32 %v15875_v28, 16  ;;  %v671_v58 = vrot.slane %v15911_v34, 4  ;;  %v1224_v44 = vsel %vm15143_vm14, %v1219_v10, %v1223_v43  ;;  %v1495_v47 = vsel %vm14997_vm10, %v12280_v17, %v1494_v42  ;;  %283 = vst [vmem:[#allocation2 + $0x90] sm:$0x1] %v282_v13 }
 0x12e   : > { %v1234_v37 = vsel %vm15143_vm14, %v1229_v60, %v1233_v39  ;;  %v1498_v28 = vsel %vm14997_vm10, %v1496_v12, %v1497_v51  ;;  %v673_v3 = vshrl.u32 %v15941_v49, 16  ;;  %v13202_v45 = vpack.c.bf16 %v378_v50, %v378_v50 }
 0x12f   : > { %v2161_v40 = vld [vmem:[#allocation2 + $0x84] sm:$0xf]  ;;  %v12344_v10 = vcombine.low %v1224_v44, %v1234_v37  ;;  %v15969_v39 = vpack.c.bf16 %v379_v33, %v379_v33  ;;  %v12360_v44 = vcombine.low %v1495_v47, %v1498_v28  ;;  %v15974_v43 = vrot.slane %v1799_v38, 4  ;;  %v15986_v38 = vpop.permute.xlu0 %3173 }
 0x130   : > { %v2408_v22 = vshrl.u32 %v2161_v40, 16  ;;  %v2411_v56 = vshll.u32 %v2161_v40, 16  ;;  %v1554_v34 = vld [vmem:[#allocation2 + $0x84] sm:$0xf]  ;;  %v2162_v13 = vld [vmem:[#allocation2 + $0x88] sm:$0xf] }
 0x131   : > { %v15966_v17 = vld [vmem:[#allocation2 + $0x84] sm:$0xe]  ;;  %v1823_v42 = vshrl.u32 %v1554_v34, 16  ;;  %v882_v27 = vld [vmem:[#allocation2 + $0x8c] sm:$0x1]  ;;  %v2421_v60 = vshrl.u32 %v2162_v13, 16  ;;  %v12423_v51 = vcombine.low %v2161_v40, %v2162_v13  ;;  %2883 = vrot.lane.b32.xlu1 %v12344_v10, %s14755_s9 }
 0x132   : > { %v2410_v19 = vrot.slane %v2408_v22, 4  ;;  %v2413_v53 = vrot.slane %v2411_v56, 5  ;;  %v883_v12 = vsel %vm14958_vm4, %v671_v58, %v882_v27  ;;  %v1555_v37 = vld [vmem:[#allocation2 + $0x88] sm:$0xf]  ;;  %v15976_v24 = vrot.slane %v1802_v0, 5  ;;  %20847 = vst [vmem:[#allocation46_spill] sm:$0xff] %v15986_v38 }
 0x133   : > { %884 = vst [vmem:[#allocation2 + $0x8c] sm:$0x1] %v883_v12  ;;  %v2417_v22 = vshll.u32 %v2162_v13, 16  ;;  %3281 = vrot.lane.b32.xlu0 %v12423_v51, %s14753_s21  ;;  %v2423_v50 = vrot.slane %v2421_v60, 4  ;;  %v12296_v33 = vrot.slane %v15966_v17, 9  ;;  %v1826_v40 = vshll.u32 %v1554_v34, 16  ;;  %v15990_v51 = vpop.permute.xlu1 %2947 }
 0x134   : > { %v15980_v56 = vld [vmem:[#allocation2 + $0x10] sm:$0xf]  ;;  %v15982_v10 = vld [vmem:[#allocation2 + $0xc] sm:$0xf]  ;;  %v2414_v0 = vor.u32 %v2413_v53, %v2410_v19  ;;  %v2102_v47 = vrot.slane %v1555_v37, 5  ;;  %v15988_v28 = vrot.slane %v1823_v42, 4  ;;  %v12376_v17 = vcombine.low %v1554_v34, %v1555_v37 }
 0x135   : > { %v2419_v58 = vrot.slane %v2417_v22, 5  ;;  %v942_v13 = vld [vmem:[#allocation2 + $0x84] sm:$0xf]  ;;  %2963 = vrot.lane.b32.xlu1 %v12360_v44, %s14753_s21  ;;  %v675_v60 = vrot.slane %v673_v3, 7  ;;  %v676_v12 = vshll.u32 %v15941_v49, 16  ;;  %v681_v16 = vshrl.u32 %v13202_v45, 16 }
 0x136   : > { %v15996_v27 = vsel %vm3423_vm15, %v12318_v46, %v15859_v29  ;;  %v684_v53 = vshll.u32 %v13202_v45, 16  ;;  %v885_v19 = vld [vmem:[#allocation2 + $0x90] sm:$0xf]  ;;  %v20848_v42 = vshll.u32 %v15135_v31, 16  ;;  %v16000_v63 = vrot.slane %v1826_v40, 5 }
 0x137   : > { %v2424_v23 = vor.u32 %v2423_v50, %v2419_v58  ;;  %v678_v4 = vor.u32 %v676_v12, %v675_v60  ;;  %v679_v14 = vrot.slane %v675_v60, 4  ;;  %v16002_v44 = vrot.slane %v681_v16, 7  ;;  %v16004_v34 = vld [vmem:[#allocation2 + $0x88] sm:$0xf]  ;;  %v16018_v60 = vpop.permute.xlu0 %3343  ;;  %v14024_v38 = vld [vmem:[#allocation6 + $0x68c] ss:$52 sps:$4 sm:$0xff]  }
 0x138   : > { %v1594_v22 = vrot.slane %v20848_v42, 5  ;;  %v2415_v49 = vrot.slane %v2414_v0, 4  ;;  %v2104_v3 = vrot.slane %v2102_v47, 4  ;;  %v20849_v50 = vshll.u32 %v15237_v5, 16  ;;  %5849 = vmatprep.subr.bf16.mxu1 %v14024_v38 }
 0x139   : > { %3059 = vrot.lane.b32.xlu1 %v12376_v17, %s14754_s23  ;;  %v686_v31 = vor.u32 %v684_v53, %v16002_v44  ;;  %v886_v16 = vsel %vm15004_vm11, %v678_v4, %v885_v19  ;;  %v1236_v0 = vshrl.u32 %v942_v13, 16  ;;  %v2425_v12 = vrot.slane %v2424_v23, 4  ;;  %v16025_v53 = vpop.permute.xlu1 %2865 }
 0x13a   : > { %v1595_v29 = vsel %vm15143_vm14, %v15177_v25, %v1594_v22  ;;  %v1599_v45 = vor.u32 %v15165_v21, %v1594_v22  ;;  %v2184_v46 = vld [vmem:[#allocation2 + $0x8c] sm:$0x1]  ;;  %v1604_v40 = vrot.slane %v20849_v50, 5  ;;  %v2103_v21 = vsel %vm14997_vm10, %v12296_v33, %v2102_v47  ;;  %887 = vst [vmem:[#allocation2 + $0x90] sm:$0xf] %v886_v16 }
 0x13b   : > { %v16010_v37 = vld [vmem:[#allocation2 + $0x8c] sm:$0x1]  ;;  %v2427_v25 = vshll.u32 %v2184_v46, 16  ;;  %v687_v4 = vsel %vm14989_vm9, %v679_v14, %v686_v31  ;;  %v1238_v19 = vrot.slane %v1236_v0, 4  ;;  %v1239_v22 = vshll.u32 %v942_v13, 16 }
 0x13c   : > { %v2105_v42 = vrot.slane %v16010_v37, 5  ;;  %v16023_v17 = vld [vmem:[#allocation2 + $0x8c] sm:$0x1]  ;;  %v1600_v5 = vrot.slane %v1599_v45, 4  ;;  %v337_v50 = vld [vmem:[#allocation2 + $0x98] sm:$0x1]  ;;  %v2420_v23 = vsel %vm15143_vm14, %v2415_v49, %v2419_v58 }
 0x13d   : > { %v2429_v46 = vrot.slane %v2427_v25, 5  ;;  %888 = vst.msk [vmem:[#allocation2 + $0x94] sm:$0xf] %vm233_vm0, %v687_v4  ;;  %v1245_v33 = vshll.u32 %v16004_v34, 16  ;;  %v1249_v47 = vshrl.u32 %v16004_v34, 16  ;;  %v1241_v45 = vrot.slane %v1239_v22, 5 }
 0x13e   : > { %v1366_v16 = vld [vmem:[#allocation2 + $0x84] sm:$0xe]  ;;  %v2106_v14 = vsel %vm14997_vm10, %v2104_v3, %v2105_v42  ;;  %v1605_v13 = vsel %vm15143_vm14, %v1600_v5, %v1604_v40  ;;  %v1255_v31 = vshll.u32 %v16023_v17, 16  ;;  %v688_v11 = vrot.slane %v16002_v44, 4  ;;  %v16046_v42 = vpop.permute.xlu0 %3345 }
 0x13f   : > { %v2430_v58 = vsel %vm15143_vm14, %v2425_v12, %v2429_v46  ;;  %v16041_v49 = vcombine.low %v1595_v29, %v1605_v13  ;;  %v1247_v0 = vrot.slane %v1245_v33, 5  ;;  %v1251_v25 = vrot.slane %v1249_v47, 4  ;;  %v16050_v46 = vpop.permute.xlu1 %2867 }
 0x140   : > { %v12439_v4 = vcombine.low %v2420_v23, %v2430_v58  ;;  %v1242_v20 = vor.u32 %v1241_v45, %v1238_v19  ;;  %v338_v3 = vsel %vm14964_vm5, 0, %v337_v50  ;;  %v12408_v40 = vcombine.low %v2103_v21, %v2106_v14 }
 0x141   : > { %v1252_v5 = vor.u32 %v1251_v25, %v1247_v0  ;;  %v1257_v22 = vrot.slane %v1255_v31, 5  ;;  %339 = vst [vmem:[#allocation2 + $0x98] sm:$0x1] %v338_v3  ;;  %v20850_v12 = vshll.u32 %v15103_v30, 16  ;;  %v2163_v38 = vld [vmem:[#allocation2 + $0x90] sm:$0xf] }
 0x142   : > { %3361 = vrot.lane.b32.xlu0 %v12439_v4, %s14754_s23  ;;  %v1243_v23 = vrot.slane %v1242_v20, 4  ;;  %v20851_v44 = vshll.u32 %v15275_v7, 16  ;;  %v12281_v33 = vrot.slane %v1366_v16, 9  ;;  %v1501_v50 = vrot.slane %v16004_v34, 5 }
 0x143   : > { %v1618_v29 = vrot.slane %v20850_v12, 5  ;;  %v2432_v47 = vshrl.u32 %v2163_v38, 16  ;;  %v2435_v21 = vshll.u32 %v2163_v38, 16  ;;  %v1253_v14 = vrot.slane %v1252_v5, 4  ;;  %v16068_v5 = vpop.permute.xlu0 %3347 }
 0x144   : > { %v1628_v19 = vrot.slane %v20851_v44, 5  ;;  %v2164_v13 = vld [vmem:[#allocation2 + $0x94] sm:$0xf]  ;;  %v1248_v45 = vsel %vm15143_vm14, %v1243_v23, %v1247_v0  ;;  %v1503_v20 = vrot.slane %v1501_v50, 4  ;;  %v1504_v7 = vrot.slane %v16023_v17, 5 }
 0x145   : > { %v1619_v30 = vsel %vm15143_vm14, %v15159_v55, %v1618_v29  ;;  %v1623_v31 = vor.u32 %v15152_v59, %v1618_v29  ;;  %v2434_v58 = vrot.slane %v2432_v47, 4  ;;  %v2437_v16 = vrot.slane %v2435_v21, 5  ;;  %v16074_v29 = vld [vmem:[#allocation2 + $0x94] sm:$0xf]  ;;  %v16076_v23 = vld [vmem:[#allocation2 + $0x90] sm:$0xe] }
 0x146   : > { %v2445_v34 = vshrl.u32 %v2164_v13, 16  ;;  %v1502_v25 = vsel %vm14997_vm10, %v12281_v33, %v1501_v50  ;;  %3187 = vrot.lane.b32.xlu0 %v12408_v40, %s14755_s9  ;;  %v12424_v4 = vcombine.low %v2163_v38, %v2164_v13  ;;  %v1258_v55 = vsel %vm15143_vm14, %v1253_v14, %v1257_v22  ;;  %v380_v40 = vld [vmem:[%s14934_s20 + $0xc8] sm:$0xff]  ;;  %v16079_v38 = vpop.permute.xlu1 %2869  ;;  %v14029_v50 = vld [vmem:[#allocation6 + $0x684] ss:$52 sps:$4 sm:$0xff]  }
 0x147   : > { %v2441_v3 = vshll.u32 %v2164_v13, 16  ;;  %v1624_v0 = vrot.slane %v1623_v31, 4  ;;  %v1805_v59 = vor.u32 %v15976_v24, %v15974_v43  ;;  %vm3505_vm3 = vcmask 785408   ;;  %v284_v21 = vld [vmem:[#allocation2 + $0x9c] sm:$0x1]  ;;  %5463 = vmatprep.subr.bf16.mxu0 %v14029_v50 }
 0x148   : > { %v1829_v17 = vor.u32 %v16000_v63, %v15988_v28  ;;  %v12345_v12 = vcombine.low %v1248_v45, %v1258_v55  ;;  %v3474_v22 = vsel %vm3472_vm2, %v15996_v27, %v15817_v6  ;;  %v889_v44 = vld [vmem:[#allocation2 + $0x98] sm:$0x1]  ;;  %v1505_v43 = vsel %vm14997_vm10, %v1503_v20, %v1504_v7  ;;  %v16088_v63 = vld [vmem:[#allocation2 + $0x90] sm:$0xf] }
 0x149   : > { %v1629_v24 = vsel %vm15143_vm14, %v1624_v0, %v1628_v19  ;;  %v20852_v28 = vcombine.low %v15982_v10, %v15980_v56  ;;  %v890_v6 = vsel %vm14958_vm4, %v688_v11, %v889_v44  ;;  %v2438_v27 = vor.u32 %v2437_v16, %v2434_v58  ;;  %v16123_v16 = vpop.permute.xlu0 %3269 }
 0x14a   : > { %2885 = vrot.lane.b32.xlu1 %v12345_v12, %s14755_s9  ;;  %v16098_v47 = vcombine.low %v1619_v30, %v1629_v24  ;;  %v12361_v19 = vcombine.low %v1502_v25, %v1505_v43  ;;  %3283 = vrot.lane.b32.xlu0 %v12424_v4, %s14753_s21  ;;  %891 = vst [vmem:[#allocation2 + $0x98] sm:$0x1] %v890_v6  ;;  %v16101_v14 = vrot.slane %v2441_v3, 5  ;;  %v2447_v13 = vrot.slane %v2445_v34, 4  ;;  %v16131_v3 = vpop.permute.xlu1 %2949  ;;  %v944_v6 = vld [vmem:[#allocation2 + $0x90] sm:$0xf] }
 0x14b   : > { %v3429_v33 = vsel %vm3423_vm15, %v20852_v28, %v16025_v53  ;;  %v20853_v56 = vshll.u32 %v15068_v57, 16  ;;  %v13204_v53 = vpack.c.bf16 %v380_v40, %v380_v40  ;;  %v16105_v45 = vrot.slane %v1805_v59, 4 }
 0x14c   : > { %v16110_v30 = vsel %vm3505_vm3, %v3474_v22, %v15864_v9  ;;  %v16112_v31 = vrot.slane %v1829_v17, 4  ;;  %v12297_v20 = vrot.slane %v16076_v23, 9  ;;  %v2109_v7 = vrot.slane %v16074_v29, 5  ;;  %v14561_v22 = vld [vmem:[#allocation2 + $0x34] sm:$0xf] }
 0x14d   : > { %v1642_v10 = vrot.slane %v20853_v56, 5  ;;  %20854 = vst [vmem:[#allocation47_spill] sm:$0xff] %v16110_v30  ;;  %v16121_v58 = vsel %vm3472_vm2, %v3429_v33, %v15963_v61  ;;  %v2439_v34 = vrot.slane %v2438_v27, 4  ;;  %v20855_v25 = vshll.u32 %v15305_v18, 16  ;;  %v16153_v56 = vld [vmem:[#allocation2 + $0x94] sm:$0xf] }
 0x14e   : > { %2965 = vrot.lane.b32.xlu1 %v12361_v19, %s14753_s21  ;;  %v12377_v55 = vcombine.low %v16088_v63, %v16074_v29  ;;  %v285_v61 = vsel %vm14958_vm4, 0, %v284_v21  ;;  %v690_v0 = vshrl.u32 %v15969_v39, 16  ;;  %v698_v59 = vshrl.u32 %v13204_v53, 16 }
 0x14f   : > { %v1643_v57 = vsel %vm15143_vm14, %v15180_v54, %v1642_v10  ;;  %v1647_v9 = vor.u32 %v15169_v48, %v1642_v10  ;;  %v1652_v4 = vrot.slane %v20855_v25, 5  ;;  %v2448_v54 = vor.u32 %v2447_v13, %v16101_v14  ;;  %286 = vst [vmem:[#allocation2 + $0x9c] sm:$0x1] %v285_v61 }
 0x150   : > { %v1847_v12 = vshrl.u32 %v16088_v63, 16  ;;  %v693_v48 = vshll.u32 %v15969_v39, 16  ;;  %v701_v18 = vshll.u32 %v13204_v53, 16  ;;  %v2111_v23 = vrot.slane %v2109_v7, 4 }
 0x151   : > { %v1648_v17 = vrot.slane %v1647_v9, 4  ;;  %v692_v40 = vrot.slane %v690_v0, 7  ;;  %v16139_v29 = vrot.slane %v698_v59, 7  ;;  %v1664_v44 = vshll.u32 %v14561_v22, 16  ;;  %v2185_v24 = vld [vmem:[#allocation2 + $0x98] sm:$0x1] }
 0x152   : > { %v2444_v43 = vsel %vm15143_vm14, %v2439_v34, %v16101_v14  ;;  %v16144_v28 = vld [vmem:[#allocation2 + $0x98] sm:$0x1]  ;;  %v1850_v50 = vshll.u32 %v16088_v63, 16  ;;  %3061 = vrot.lane.b32.xlu1 %v12377_v55, %s14754_s23  ;;  %v1668_v39 = vshrl.u32 %v14561_v22, 16  ;;  %v2449_v27 = vrot.slane %v2448_v54, 4  ;;  %v16155_v14 = vpop.permute.xlu0 %3349 }
 0x153   : > { %v1653_v33 = vsel %vm15143_vm14, %v1648_v17, %v1652_v4  ;;  %v2451_v19 = vshll.u32 %v2185_v24, 16  ;;  %v2110_v21 = vsel %vm14997_vm10, %v12297_v20, %v2109_v7  ;;  %v2112_v13 = vrot.slane %v16144_v28, 5  ;;  %v16160_v25 = vld [vmem:[#allocation2 + $0x98] sm:$0x1]  ;;  %v16162_v4 = vpop.permute.xlu1 %3045  ;;  %v14562_v17 = vld [vmem:[#allocation2 + $0x1c] sm:$0xf] }
 0x154   : > { %v16157_v10 = vcombine.low %v1643_v57, %v1653_v33  ;;  %v695_v53 = vor.u32 %v693_v48, %v692_v40  ;;  %v696_v34 = vrot.slane %v692_v40, 4  ;;  %v703_v9 = vor.u32 %v701_v18, %v16139_v29  ;;  %v14563_v48 = vld [vmem:[#allocation2 + $0x18] sm:$0xf]  ;;  %v340_v24 = vld [vmem:[#allocation2 + $0xa4] sm:$0x1] }
 0x155   : > { %v2453_v55 = vrot.slane %v2451_v19, 5  ;;  %v2113_v20 = vsel %vm14997_vm10, %v2111_v23, %v2112_v13  ;;  %v1666_v7 = vrot.slane %v1664_v44, 5  ;;  %v20856_v54 = vshll.u32 %v15327_v35, 16  ;;  %v1367_v19 = vld [vmem:[#allocation2 + $0x90] sm:$0xe] }
 0x156   : > { %v3556_v57 = vsel %vm3423_vm15, %v16041_v49, %v15890_v62  ;;  %v704_v0 = vsel %vm14989_vm9, %v696_v34, %v703_v9  ;;  %v1670_v59 = vrot.slane %v1668_v39, 4  ;;  %v12320_v18 = vcombine.low %v14563_v48, %v14562_v17  ;;  %v892_v23 = vld [vmem:[#allocation2 + $0x9c] sm:$0xf]  ;;  %v16181_v9 = vpop.permute.xlu0 %3175 }
 0x157   : > { %v1676_v61 = vrot.slane %v20856_v54, 5  ;;  %v2454_v40 = vsel %vm15143_vm14, %v2449_v27, %v2453_v55  ;;  %v12409_v22 = vcombine.low %v2110_v21, %v2113_v20  ;;  %895 = vst.msk [vmem:[#allocation2 + $0xa0] sm:$0xf] %vm233_vm0, %v704_v0  ;;  %v1260_v35 = vshrl.u32 %v944_v6, 16  ;;  %v16191_v20 = vpop.permute.xlu1 %2871  ;;  %v14027_v54 = vld [vmem:[#allocation6 + $0x680] ss:$52 sps:$4 sm:$0xff]  }
 0x158   : > { %v1263_v44 = vshll.u32 %v944_v6, 16  ;;  %v12440_v33 = vcombine.low %v2444_v43, %v2454_v40  ;;  %v893_v62 = vsel %vm15004_vm11, %v695_v53, %v892_v23  ;;  %v1671_v49 = vor.u32 %v1670_v59, %v1666_v7  ;;  %v20857_v23 = vld [vmem:[#allocation39_spill] sm:$0xff] }
 0x159   : > { %v1269_v39 = vshll.u32 %v16153_v56, 16  ;;  %894 = vst [vmem:[#allocation2 + $0x9c] sm:$0xf] %v893_v62  ;;  %v1262_v13 = vrot.slane %v1260_v35, 4  ;;  %v1273_v27 = vshrl.u32 %v16153_v56, 16  ;;  %v1279_v21 = vshll.u32 %v16160_v25, 16 }
 0x15a   : > { %v1265_v34 = vrot.slane %v1263_v44, 5  ;;  %3363 = vrot.lane.b32.xlu0 %v12440_v33, %s14754_s23  ;;  %v1667_v43 = vsel %vm15143_vm14, %v15480_v15, %v1666_v7  ;;  %v1672_v6 = vrot.slane %v1671_v49, 4  ;;  %v341_v55 = vsel %vm14964_vm5, 0, %v340_v24  ;;  %v14022_v15 = vld [vmem:[#allocation6 + $0x688] ss:$52 sps:$4 sm:$0xff]  }
 0x15b   : > { %v16187_v53 = vrot.slane %v1269_v39, 5  ;;  %v16195_v0 = vrot.slane %v1847_v12, 4  ;;  %v1275_v17 = vrot.slane %v1273_v27, 4  ;;  %342 = vst [vmem:[#allocation2 + $0xa4] sm:$0x1] %v341_v55  ;;  %v3432_v48 = vsel %vm3423_vm15, %v12320_v18, %v16050_v46 }
 0x15c   : > { %v1266_v59 = vor.u32 %v1265_v34, %v1262_v13  ;;  %v14035_v7 = vld [vmem:[#allocation6 + $0x6ec] ss:$52 sps:$4 sm:$0xff]   ;;  %v1677_v40 = vsel %vm15143_vm14, %v1672_v6, %v1676_v61  ;;  %v3603_v35 = vsel %vm3472_vm2, %v3556_v57, %v20857_v23  ;;  %v12282_v44 = vrot.slane %v1367_v19, 9  ;;  %v14032_v33 = vld [vmem:[#allocation6 + $0x6f4] ss:$52 sps:$4 sm:$0xff]  }
 0x15d   : > { %v1508_v24 = vrot.slane %v16153_v56, 5  ;;  %v16204_v12 = vcombine.low %v1667_v43, %v1677_v40  ;;  %v1276_v49 = vor.u32 %v1275_v17, %v16187_v53  ;;  %v16209_v46 = vsel %vm3505_vm3, %v3603_v35, %v16018_v60  ;;  %v287_v40 = vld [vmem:[#allocation2 + $0xa8] sm:$0x1] }
 0x15e   : > { %v1267_v62 = vrot.slane %v1266_v59, 4  ;;  %20858 = vst [vmem:[#allocation39_spill] sm:$0xff] %v16209_v46  ;;  %3189 = vrot.lane.b32.xlu0 %v12409_v22, %s14755_s9  ;;  %v16214_v61 = vrot.slane %v1850_v50, 5  ;;  %v2166_v57 = vld [vmem:[#allocation2 + $0xa0] sm:$0xf]  ;;  %v1281_v18 = vrot.slane %v1279_v21, 5  ;;  %5302 = vmatprep.mubr.bf16.mxu0 %v16209_v46  ;;  %v3559_v19 = vsel %vm3423_vm15, %v16098_v47, %v15922_v8  ;;  %v16229_v22 = vpop.permute.xlu0 %3271 }
 0x15f   : > { %v1510_v39 = vrot.slane %v1508_v24, 4  ;;  %v1511_v56 = vrot.slane %v16160_v25, 5  ;;  %v16224_v60 = vsel %vm3423_vm15, %v16157_v10, %v15956_v26  ;;  %v705_v63 = vrot.slane %v16139_v29, 4  ;;  %5688 = vmatprep.mubr.bf16.mxu1 %v16209_v46  ;;  %5303 = vmatmul.mubr.bf16.vlgmr.msra.gmra.mrb[0].mxu0 %v16110_v30  ;;  %v14030_v25 = vld [vmem:[#allocation6 + $0x6f0] ss:$52 sps:$4 sm:$0xff]   ;;  %v16237_v29 = vpop.permute.xlu1 %2951 }
 0x160   : > { %v2469_v50 = vshrl.u32 %v2166_v57, 16  ;;  %v2165_v13 = vld [vmem:[#allocation2 + $0x9c] sm:$0xf]  ;;  %v1272_v8 = vsel %vm15143_vm14, %v1267_v62, %v16187_v53  ;;  %v1277_v47 = vrot.slane %v1276_v49, 4  ;;  %v2465_v34 = vshll.u32 %v2166_v57, 16  ;;  %5689 = vmatmul.mubr.bf16.vlgmr.msra.gmra.mrb[0].mxu1 %v16110_v30  ;;  %5464 = vmatpush1.bf16.msra.mxu0 %v14027_v54 }
 0x161   : > { %v3478_v26 = vsel %vm3472_vm2, %v3432_v48, %v15990_v51  ;;  %v14033_v10 = vld [vmem:[#allocation6 + $0x6e8] ss:$52 sps:$4 sm:$0xff]   ;;  %v2456_v27 = vshrl.u32 %v2165_v13, 16  ;;  %v2459_v21 = vshll.u32 %v2165_v13, 16  ;;  %v12425_v43 = vcombine.low %v2165_v13, %v2166_v57  ;;  %5850 = vmatpush1.bf16.msra.mxu1 %v14022_v15  ;;  %5465 = vmatprep.subr.bf16.mxu0 %v14035_v7  ;;  %v1978_v48 = vld [vmem:[#allocation2 + $0x9c] sm:$0xe] }
 0x162   : > { %v1509_v6 = vsel %vm14997_vm10, %v12282_v44, %v1508_v24  ;;  %v16241_v55 = vld [vmem:[#allocation2 + $0xa0] sm:$0xf]  ;;  %v1282_v53 = vsel %vm15143_vm14, %v1277_v47, %v1281_v18  ;;  %v896_v51 = vld [vmem:[#allocation2 + $0xa4] sm:$0x1]  ;;  %v16245_v59 = vrot.slane %v2465_v34, 5  ;;  %v2471_v17 = vrot.slane %v2469_v50, 4  ;;  %5851 = vmatprep.subr.bf16.mxu1 %v14032_v33 }
 0x163   : > { %v1512_v54 = vsel %vm14997_vm10, %v1510_v39, %v1511_v56  ;;  %v2458_v23 = vrot.slane %v2456_v27, 4  ;;  %v2461_v35 = vrot.slane %v2459_v21, 5  ;;  %3285 = vrot.lane.b32.xlu0 %v12425_v43, %s14753_s21  ;;  %v12346_v15 = vcombine.low %v1272_v8, %v1282_v53  ;;  %v1558_v44 = vld [vmem:[#allocation2 + $0x9c] sm:$0xf]  ;;  %v14564_v49 = vld [vmem:[#allocation2 + $0x24] sm:$0xf]  ;;  %v16265_v27 = vpop.permute.xlu0 %3351 }
 0x164   : > { %v897_v7 = vsel %vm14958_vm4, %v705_v63, %v896_v51  ;;  %v2472_v24 = vor.u32 %v2471_v17, %v16245_v59  ;;  %v2116_v62 = vrot.slane %v16241_v55, 5  ;;  %v14565_v57 = vld [vmem:[#allocation2 + $0x28] sm:$0xf]  ;;  %v20859_v39 = vld [vmem:[#allocation36_spill] sm:$0xff]  ;;  %5466 = vmatpush1.bf16.msra.mxu0 %v14033_v10  ;;  %v12362_v13 = vcombine.low %v1509_v6, %v1512_v54  ;;  %v382_v34 = vld [vmem:[%s14934_s20 + $0xd8] sm:$0xff] }
 0x165   : > { %898 = vst [vmem:[#allocation2 + $0xa4] sm:$0x1] %v897_v7  ;;  %v12321_v18 = vcombine.low %v14564_v49, %v14565_v57  ;;  %v3605_v33 = vsel %vm3472_vm2, %v3559_v19, %v20859_v39  ;;  %v381_v56 = vld [vmem:[%s14934_s20 + $0xd0] sm:$0xff]  ;;  %v16257_v50 = vld [vmem:[#allocation2 + $0x9c] sm:$0xf]  ;;  %2887 = vrot.lane.b32.xlu1 %v12346_v15, %s14755_s9  ;;  %v2462_v63 = vor.u32 %v2461_v35, %v2458_v23  ;;  %v12298_v8 = vrot.slane %v1978_v48, 9 }
 0x166   : > { %v16262_v47 = vsel %vm3505_vm3, %v3605_v33, %v16046_v42  ;;  %5852 = vmatpush1.bf16.msra.mxu1 %v14030_v25  ;;  %v20861_v21 = vld [vmem:[#allocation42_spill] sm:$0xff]  ;;  %v1871_v43 = vshrl.u32 %v1558_v44, 16  ;;  %v1874_v53 = vshll.u32 %v1558_v44, 16  ;;  %v16276_v42 = vpop.permute.xlu1 %3047  ;;  %v2473_v51 = vrot.slane %v2472_v24, 4  ;;  %v20863_v54 = vld [vmem:[#allocation43_spill] sm:$0xff]  ;;  %v20882_v30 = vld [vmem:[#allocation28_spill] sm:$0xff] }
 0x167   : > { %20860 = vst [vmem:[#allocation36_spill] sm:$0xff] %v16262_v47  ;;  %v16272_v10 = vsel %vm3505_vm3, %v16121_v58, %v20861_v21  ;;  %5312 = vmatprep.mubr.bf16.mxu0 %v16262_v47  ;;  %5698 = vmatprep.mubr.bf16.mxu1 %v16262_v47  ;;  %v2463_v6 = vrot.slane %v2462_v63, 4  ;;  %v2118_v17 = vrot.slane %v2116_v62, 4  ;;  %v288_v25 = vsel %vm14958_vm4, 0, %v287_v40  ;;  %v20865_v35 = vld [vmem:[#allocation38_spill] sm:$0xff]  ;;  %v383_v19 = vld [vmem:[%s14934_s20 + $0xe0] sm:$0xff] }
 0x168   : > { %20862 = vst [vmem:[#allocation42_spill] sm:$0xff] %v16272_v10  ;;  %5313 = vmatmul.mubr.bf16.gmra.mrb[4].mxu0 %v16272_v10  ;;  %v16283_v58 = vsel %vm3505_vm3, %v3478_v26, %v20863_v54  ;;  %289 = vst [vmem:[#allocation2 + $0xa8] sm:$0x1] %v288_v25  ;;  %v13205_v48 = vpack.c.bf16 %v381_v56, %v381_v56  ;;  %v13206_v23 = vpack.c.bf16 %v382_v34, %v382_v34  ;;  %v16288_v7 = vld [vmem:[#allocation2 + $0xa0] sm:$0xf]  ;;  %v20867_v56 = vld [vmem:[#allocation46_spill] sm:$0xff] }
 0x169   : > { %20864 = vst [vmem:[#allocation43_spill] sm:$0xff] %v16283_v58  ;;  %v3607_v15 = vsel %vm3472_vm2, %v16224_v60, %v20865_v35  ;;  %5699 = vmatmul.mubr.bf16.gmra.mrb[4].mxu1 %v16272_v10  ;;  %2967 = vrot.lane.b32.xlu1 %v12362_v13, %s14753_s21  ;;  %v3435_v40 = vsel %vm3423_vm15, %v12321_v18, %v16079_v38  ;;  %v1284_v49 = vshrl.u32 %v16257_v50, 16  ;;  %v16300_v57 = vrot.slane %v1871_v43, 4  ;;  %v16315_v13 = vpop.permute.xlu0 %3177  ;;  %v1368_v35 = vld [vmem:[#allocation2 + $0x9c] sm:$0xe] }
 0x16a   : > { %v12378_v24 = vcombine.low %v1558_v44, %v16241_v55  ;;  %v16297_v26 = vsel %vm3505_vm3, %v3607_v15, %v16068_v5  ;;  %v16302_v60 = vrot.slane %v1874_v53, 5  ;;  %v707_v39 = vshrl.u32 %v13205_v48, 16  ;;  %v16322_v25 = vpop.permute.xlu1 %2873 }
 0x16b   : > { %20866 = vst [vmem:[#allocation38_spill] sm:$0xff] %v16297_v26  ;;  %v715_v33 = vshrl.u32 %v13206_v23, 16  ;;  %5322 = vmatprep.mubr.bf16.mxu0 %v16297_v26  ;;  %5708 = vmatprep.mubr.bf16.mxu1 %v16297_v26  ;;  %v3565_v38 = vsel %vm3423_vm15, %v16204_v12, %v20867_v56  ;;  %v16313_v5 = vsel %vm14997_vm10, %v12298_v8, %v2116_v62  ;;  %v710_v18 = vshll.u32 %v13205_v48, 16 }
 0x16c   : > { %v2186_v55 = vld [vmem:[#allocation2 + $0xa4] sm:$0x1]  ;;  %v718_v63 = vshll.u32 %v13206_v23, 16  ;;  %v3480_v43 = vsel %vm3472_vm2, %v3435_v40, %v16131_v3  ;;  %v1286_v12 = vrot.slane %v1284_v49, 4  ;;  %v709_v54 = vrot.slane %v707_v39, 7 }
 0x16d   : > { %v16309_v44 = vld [vmem:[#allocation2 + $0xa4] sm:$0x1]  ;;  %v2475_v34 = vshll.u32 %v2186_v55, 16  ;;  %3063 = vrot.lane.b32.xlu1 %v12378_v24, %s14754_s23  ;;  %v16325_v62 = vrot.slane %v715_v33, 7  ;;  %v1287_v8 = vshll.u32 %v16257_v50, 16  ;;  %v1293_v48 = vshll.u32 %v16288_v7, 16 }
 0x16e   : > { %v2119_v21 = vrot.slane %v16309_v44, 5  ;;  %v16320_v53 = vld [vmem:[#allocation2 + $0xa4] sm:$0x1]  ;;  %v343_v23 = vld [vmem:[#allocation2 + $0xb0] sm:$0x1]  ;;  %v2468_v3 = vsel %vm15143_vm14, %v2463_v6, %v16245_v59  ;;  %v1297_v40 = vshrl.u32 %v16288_v7, 16  ;;  %v712_v24 = vor.u32 %v710_v18, %v709_v54 }
 0x16f   : > { %v2477_v15 = vrot.slane %v2475_v34, 5  ;;  %v1303_v49 = vshll.u32 %v16320_v53, 16  ;;  %v713_v39 = vrot.slane %v709_v54, 4  ;;  %v720_v33 = vor.u32 %v718_v63, %v16325_v62  ;;  %v899_v56 = vld [vmem:[#allocation2 + $0xa8] sm:$0xf]  ;;  %v16348_v54 = vpop.permute.xlu0 %3273 }
 0x170   : > { %v3609_v50 = vsel %vm3472_vm2, %v3565_v38, %v16123_v16  ;;  %v290_v55 = vld [vmem:[#allocation2 + $0xb4] sm:$0x1]  ;;  %5323 = vmatmul.mubr.bf16.gmra.mrb[8].mxu0 %v16283_v58  ;;  %v2120_v59 = vsel %vm14997_vm10, %v2118_v17, %v2119_v21  ;;  %v1289_v6 = vrot.slane %v1287_v8, 5  ;;  %v1295_v34 = vrot.slane %v1293_v48, 5 }
 0x171   : > { %v2478_v11 = vsel %vm15143_vm14, %v2473_v51, %v2477_v15  ;;  %5709 = vmatmul.mubr.bf16.gmra.mrb[8].mxu1 %v16283_v58  ;;  %v721_v63 = vsel %vm14989_vm9, %v713_v39, %v720_v33  ;;  %v900_v16 = vsel %vm15004_vm11, %v712_v24, %v899_v56  ;;  %v1299_v38 = vrot.slane %v1297_v40, 4  ;;  %v384_v24 = vld [vmem:[%s14934_s20 + $0xe8] sm:$0xff] }
 0x172   : > { %v12441_v18 = vcombine.low %v2468_v3, %v2478_v11  ;;  %901 = vst [vmem:[#allocation2 + $0xa8] sm:$0xf] %v900_v16  ;;  %902 = vst.msk [vmem:[#allocation2 + $0xac] sm:$0xf] %vm233_vm0, %v721_v63  ;;  %v1290_v51 = vor.u32 %v1289_v6, %v1286_v12  ;;  %v1305_v17 = vrot.slane %v1303_v49, 5  ;;  %v344_v21 = vsel %vm14964_vm5, 0, %v343_v23  ;;  %v16353_v11 = vpop.permute.xlu1 %2953 }
 0x173   : > { %v12283_v8 = vrot.slane %v1368_v35, 9  ;;  %v12410_v48 = vcombine.low %v16313_v5, %v2120_v59  ;;  %v1300_v3 = vor.u32 %v1299_v38, %v1295_v34  ;;  %345 = vst [vmem:[#allocation2 + $0xb0] sm:$0x1] %v344_v21  ;;  %v1515_v15 = vrot.slane %v16288_v7, 5  ;;  %v14567_v21 = vld [vmem:[#allocation2 + $0x34] sm:$0xf] }
 0x174   : > { %3365 = vrot.lane.b32.xlu0 %v12441_v18, %s14754_s23  ;;  %v1518_v40 = vrot.slane %v16320_v53, 5  ;;  %v1291_v39 = vrot.slane %v1290_v51, 4  ;;  %v16362_v12 = vsel %vm3505_vm3, %v3609_v50, %v16155_v14  ;;  %v291_v23 = vsel %vm14958_vm4, 0, %v290_v55  ;;  %v16383_v55 = vpop.permute.xlu0 %3353 }
 0x175   : > { %20868 = vst [vmem:[#allocation46_spill] sm:$0xff] %v16362_v12  ;;  %v13207_v35 = vpack.c.bf16 %v383_v19, %v383_v19  ;;  %v1301_v49 = vrot.slane %v1300_v3, 4  ;;  %v1517_v33 = vrot.slane %v1515_v15, 4  ;;  %292 = vst [vmem:[#allocation2 + $0xb4] sm:$0x1] %v291_v23  ;;  %5332 = vmatprep.mubr.bf16.mxu0 %v16362_v12  ;;  %5718 = vmatprep.mubr.bf16.mxu1 %v16362_v12  ;;  %v722_v19 = vrot.slane %v16325_v62, 4 }
 0x176   : > { %v1296_v7 = vsel %vm15143_vm14, %v1291_v39, %v1295_v34  ;;  %v16372_v5 = vsel %vm3505_vm3, %v3480_v43, %v16162_v4  ;;  %v1516_v14 = vsel %vm14997_vm10, %v12283_v8, %v1515_v15  ;;  %v20870_v4 = vor.u32 %v16214_v61, %v16195_v0  ;;  %v16391_v62 = vpop.permute.xlu1 %3049 }
 0x177   : > { %20869 = vst [vmem:[#allocation48_spill] sm:$0xff] %v16372_v5  ;;  %v724_v53 = vshrl.u32 %v13207_v35, 16  ;;  %v1306_v56 = vsel %vm15143_vm14, %v1301_v49, %v1305_v17  ;;  %v1519_v50 = vsel %vm14997_vm10, %v1517_v33, %v1518_v40  ;;  %v13208_v6 = vpack.c.bf16 %v384_v24, %v384_v24  ;;  %v14566_v17 = vld [vmem:[#allocation2 + $0x30] sm:$0xf] }
 0x178   : > { %3191 = vrot.lane.b32.xlu0 %v12410_v48, %s14755_s9  ;;  %5333 = vmatmul.mubr.bf16.gmra.mrb[12].mxu0 %v16372_v5  ;;  %v16388_v43 = vrot.slane %v20870_v4, 4  ;;  %v12347_v59 = vcombine.low %v1296_v7, %v1306_v56  ;;  %v727_v34 = vshll.u32 %v13207_v35, 16  ;;  %v1877_v18 = vor.u32 %v16302_v60, %v16300_v57 }
 0x179   : > { %5719 = vmatmul.mubr.bf16.gmra.mrb[12].mxu1 %v16372_v5  ;;  %v2167_v63 = vld [vmem:[#allocation2 + $0xa8] sm:$0xf]  ;;  %v2168_v16 = vld [vmem:[#allocation2 + $0xac] sm:$0xf]  ;;  %v12363_v38 = vcombine.low %v1516_v14, %v1519_v50  ;;  %v12322_v8 = vcombine.low %v14566_v17, %v14567_v21  ;;  %v726_v15 = vrot.slane %v724_v53, 7  ;;  %v732_v7 = vshrl.u32 %v13208_v6, 16 }
 0x17a   : > { %v1561_v51 = vld [vmem:[#allocation2 + $0xac] sm:$0xf]  ;;  %v2480_v0 = vshrl.u32 %v2167_v63, 16  ;;  %v2483_v61 = vshll.u32 %v2167_v63, 16  ;;  %v2493_v48 = vshrl.u32 %v2168_v16, 16  ;;  %2889 = vrot.lane.b32.xlu1 %v12347_v59, %s14755_s9  ;;  %v12426_v40 = vcombine.low %v2167_v63, %v2168_v16 }
 0x17b   : > { %v903_v3 = vld [vmem:[#allocation2 + $0xb0] sm:$0x1]  ;;  %v2489_v39 = vshll.u32 %v2168_v16, 16  ;;  %v2123_v57 = vrot.slane %v1561_v51, 5  ;;  %v16398_v60 = vld [vmem:[#allocation2 + $0xa8] sm:$0xf]  ;;  %v729_v17 = vor.u32 %v727_v34, %v726_v15 }
 0x17c   : > { %v904_v24 = vsel %vm14958_vm4, %v722_v19, %v903_v3  ;;  %v2482_v23 = vrot.slane %v2480_v0, 4  ;;  %v2485_v35 = vrot.slane %v2483_v61, 5  ;;  %v2495_v49 = vrot.slane %v2493_v48, 4  ;;  %v1979_v33 = vld [vmem:[#allocation2 + $0xa8] sm:$0xe]  ;;  %3287 = vrot.lane.b32.xlu0 %v12426_v40, %s14753_s21  ;;  %v16404_v19 = vpop.permute.xlu0 %3179  ;;  %v16409_v0 = vpop.permute.xlu1 %2875 }
 0x17d   : > { %905 = vst [vmem:[#allocation2 + $0xb0] sm:$0x1] %v904_v24  ;;  %v16401_v56 = vrot.slane %v1877_v18, 4  ;;  %v2491_v53 = vrot.slane %v2489_v39, 5  ;;  %v14568_v50 = vld [vmem:[#allocation2 + $0x40] sm:$0xf]  ;;  %v12379_v16 = vcombine.low %v16398_v60, %v1561_v51  ;;  %v3438_v3 = vsel %vm3423_vm15, %v12322_v8, %v16191_v20 }
 0x17e   : > { %v1688_v4 = vshll.u32 %v14568_v50, 16  ;;  %v2486_v63 = vor.u32 %v2485_v35, %v2482_v23  ;;  %2969 = vrot.lane.b32.xlu1 %v12363_v38, %s14753_s21  ;;  %v906_v21 = vld [vmem:[#allocation2 + $0xb4] sm:$0xf]  ;;  %v12299_v61 = vrot.slane %v1979_v33, 9  ;;  %v2125_v48 = vrot.slane %v2123_v57, 4 }
 0x17f   : > { %20871 = vst [vmem:[#allocation49_spill] sm:$0xff] %v16401_v56  ;;  %v2496_v18 = vor.u32 %v2495_v49, %v2491_v53  ;;  %v16414_v39 = vrot.slane %v732_v7, 7  ;;  %v735_v23 = vshll.u32 %v13208_v6, 16  ;;  %v948_v35 = vld [vmem:[#allocation2 + $0xa8] sm:$0xf]  ;;  %v730_v38 = vrot.slane %v726_v15, 4 }
 0x180   : > { %v2487_v40 = vrot.slane %v2486_v63, 4  ;;  %v907_v34 = vsel %vm15004_vm11, %v729_v17, %v906_v21  ;;  %v1690_v51 = vrot.slane %v1688_v4, 5  ;;  %v1692_v59 = vshrl.u32 %v14568_v50, 16  ;;  %v16418_v14 = vld [vmem:[#allocation2 + $0xac] sm:$0xf]  ;;  %v16431_v4 = vpop.permute.xlu0 %3275  ;;  %v20872_v21 = vld [vmem:[#allocation32_spill] sm:$0xff] }
 0x181   : > { %v737_v20 = vor.u32 %v735_v23, %v16414_v39  ;;  %908 = vst [vmem:[#allocation2 + $0xb4] sm:$0xf] %v907_v34  ;;  %v2497_v33 = vrot.slane %v2496_v18, 4  ;;  %v2124_v6 = vsel %vm14997_vm10, %v12299_v61, %v2123_v57  ;;  %v16429_v15 = vsel %vm3472_vm2, %v3438_v3, %v16237_v29  ;;  %v346_v57 = vld [vmem:[#allocation2 + $0xbc] sm:$0x1]  ;;  %v16441_v61 = vpop.permute.xlu1 %2955 }
 0x182   : > { %3065 = vrot.lane.b32.xlu1 %v12379_v16, %s14754_s23  ;;  %v1694_v50 = vrot.slane %v1692_v59, 4  ;;  %v2492_v63 = vsel %vm15143_vm14, %v2487_v40, %v2491_v53  ;;  %v1691_v18 = vsel %vm15143_vm14, %v20872_v21, %v1690_v51  ;;  %v20873_v3 = vld [vmem:[#allocation24_spill] sm:$0xff]  ;;  %v1308_v53 = vshrl.u32 %v948_v35, 16  ;;  %v1369_v5 = vld [vmem:[#allocation2 + $0xa8] sm:$0xe] }
 0x183   : > { %v738_v29 = vsel %vm14989_vm9, %v730_v38, %v737_v20  ;;  %v20874_v34 = vshll.u32 %v20873_v3, 16  ;;  %v1311_v21 = vshll.u32 %v948_v35, 16  ;;  %v1317_v24 = vshll.u32 %v16418_v14, 16 }
 0x184   : > { %v2187_v8 = vld [vmem:[#allocation2 + $0xb0] sm:$0x1]  ;;  %v1695_v59 = vor.u32 %v1694_v50, %v1690_v51  ;;  %909 = vst.msk [vmem:[#allocation2 + $0xb8] sm:$0xf] %vm233_vm0, %v738_v29  ;;  %v1310_v26 = vrot.slane %v1308_v53, 4  ;;  %v1321_v38 = vshrl.u32 %v16418_v14, 16  ;;  %v16460_v3 = vpop.permute.xlu0 %3355 }
 0x185   : > { %v16423_v7 = vld [vmem:[#allocation2 + $0xb0] sm:$0x1]  ;;  %v2499_v16 = vshll.u32 %v2187_v8, 16  ;;  %v1700_v49 = vrot.slane %v20874_v34, 5  ;;  %v1313_v20 = vrot.slane %v1311_v21, 5  ;;  %v1319_v50 = vrot.slane %v1317_v24, 5 }
 0x186   : > { %v2126_v17 = vrot.slane %v16423_v7, 5  ;;  %v16439_v23 = vld [vmem:[#allocation2 + $0xb0] sm:$0x1]  ;;  %v1696_v58 = vrot.slane %v1695_v59, 4  ;;  %v1323_v29 = vrot.slane %v1321_v38, 4  ;;  %v385_v59 = vld [vmem:[%s14934_s20 + $0xf0] sm:$0xff] }
 0x187   : > { %v2501_v40 = vrot.slane %v2499_v16, 5  ;;  %v386_v24 = vld [vmem:[%s14934_s20 + $0xf8] sm:$0xff]  ;;  %v16467_v10 = vpack.c.bf16 %v385_v59, %v385_v59  ;;  %v20875_v47 = vshrl.u32 %v16398_v60, 16  ;;  %v20883_v46 = vshll.u32 %v20882_v30, 16 }
 0x188   : > { %v2127_v8 = vsel %vm14997_vm10, %v2125_v48, %v2126_v17  ;;  %v1327_v48 = vshll.u32 %v16439_v23, 16  ;;  %v2169_v17 = vld [vmem:[#allocation2 + $0xb4] sm:$0xf]  ;;  %v1701_v35 = vsel %vm15143_vm14, %v1696_v58, %v1700_v49  ;;  %v12284_v58 = vrot.slane %v1369_v5, 9 }
 0x189   : > { %v12411_v12 = vcombine.low %v2124_v6, %v2127_v8  ;;  %v2502_v51 = vsel %vm15143_vm14, %v2497_v33, %v2501_v40  ;;  %v347_v6 = vsel %vm14964_vm5, 0, %v346_v57  ;;  %v2504_v34 = vshrl.u32 %v2169_v17, 16  ;;  %v16463_v8 = vpop.permute.xlu1 %3051  ;;  %v20884_v30 = vld [vmem:[#allocation35_spill] sm:$0xff] }
 0x18a   : > { %v12442_v16 = vcombine.low %v2492_v63, %v2502_v51  ;;  %v2507_v53 = vshll.u32 %v2169_v17, 16  ;;  %v12386_v33 = vcombine.low %v1691_v18, %v1701_v35  ;;  %v1314_v40 = vor.u32 %v1313_v20, %v1310_v26  ;;  %348 = vst [vmem:[#allocation2 + $0xbc] sm:$0x1] %v347_v6 }
 0x18b   : > { %v1324_v63 = vor.u32 %v1323_v29, %v1319_v50  ;;  %v1329_v21 = vrot.slane %v1327_v48, 5  ;;  %v1522_v49 = vrot.slane %v16418_v14, 5  ;;  %v2506_v38 = vrot.slane %v2504_v34, 4  ;;  %v2170_v26 = vld [vmem:[#allocation2 + $0xb8] sm:$0xf] }
 0x18c   : > { %3367 = vrot.lane.b32.xlu0 %v12442_v16, %s14754_s23  ;;  %v2509_v57 = vrot.slane %v2507_v53, 5  ;;  %v1315_v51 = vrot.slane %v1314_v40, 4  ;;  %v16471_v18 = vrot.slane %v20875_v47, 4  ;;  %v16473_v6 = vpack.c.bf16 %v386_v24, %v386_v24  ;;  %v16480_v29 = vld [vmem:[#allocation2 + $0xb8] sm:$0xf] }
 0x18d   : > { %v1325_v20 = vrot.slane %v1324_v63, 4  ;;  %v1524_v35 = vrot.slane %v1522_v49, 4  ;;  %v739_v16 = vrot.slane %v16414_v39, 4  ;;  %v2517_v48 = vshrl.u32 %v2170_v26, 16  ;;  %20876 = vst [vmem:[#allocation32_spill] sm:$0xff] %v16480_v29  ;;  %v16486_v39 = vpop.permute.xlu0 %3181 }
 0x18e   : > { %v1320_v5 = vsel %vm15143_vm14, %v1315_v51, %v1319_v50  ;;  %v1523_v14 = vsel %vm14997_vm10, %v12284_v58, %v1522_v49  ;;  %v12427_v47 = vcombine.low %v2169_v17, %v2170_v26  ;;  %v2513_v34 = vshll.u32 %v2170_v26, 16  ;;  %v293_v40 = vld [vmem:[#allocation2 + $0xc0] sm:$0x1]  ;;  %v16494_v17 = vpop.permute.xlu1 %2877 }
 0x18f   : > { %v1330_v59 = vsel %vm15143_vm14, %v1325_v20, %v1329_v21  ;;  %v1525_v53 = vrot.slane %v16439_v23, 5  ;;  %v20877_v24 = vshll.u32 %v16398_v60, 16  ;;  %v3568_v63 = vsel %vm3423_vm15, %v12386_v33, %v16181_v9  ;;  %v1562_v20 = vld [vmem:[#allocation2 + $0xb4] sm:$0xf] }
 0x190   : > { %3193 = vrot.lane.b32.xlu0 %v12411_v12, %s14755_s9  ;;  %v12348_v58 = vcombine.low %v1320_v5, %v1330_v59  ;;  %v2510_v49 = vor.u32 %v2509_v57, %v2506_v38  ;;  %v1980_v12 = vld [vmem:[#allocation2 + $0xb4] sm:$0xe]  ;;  %v16496_v21 = vrot.slane %v2513_v34, 5  ;;  %v2519_v26 = vrot.slane %v2517_v48, 4  ;;  %v14569_v5 = vld [vmem:[#allocation2 + $0x3c] sm:$0xf] }
 0x191   : > { %v16490_v50 = vrot.slane %v20877_v24, 5  ;;  %v910_v51 = vld [vmem:[#allocation2 + $0xbc] sm:$0x1]  ;;  %v3611_v23 = vsel %vm3472_vm2, %v3568_v63, %v16229_v22  ;;  %v1526_v60 = vsel %vm14997_vm10, %v1524_v35, %v1525_v53  ;;  %v2130_v38 = vrot.slane %v16480_v29, 5  ;;  %v16517_v48 = vld [vmem:[#allocation2 + $0xb4] sm:$0xf]  ;;  %v16530_v24 = vpop.permute.xlu0 %3277 }
 0x192   : > { %2891 = vrot.lane.b32.xlu1 %v12348_v58, %s14755_s9  ;;  %v911_v9 = vsel %vm14958_vm4, %v739_v16, %v910_v51  ;;  %v12364_v33 = vcombine.low %v1523_v14, %v1526_v60  ;;  %v16508_v57 = vsel %vm3505_vm3, %v3611_v23, %v16265_v27  ;;  %v16514_v22 = vsel %vm3505_vm3, %v16429_v15, %v16276_v42  ;;  %v14570_v14 = vld [vmem:[#allocation2 + $0x40] sm:$0xf]  ;;  %v16535_v51 = vpop.permute.xlu1 %2957 }
 0x193   : > { %20878 = vst [vmem:[#allocation24_spill] sm:$0xff] %v16508_v57  ;;  %912 = vst [vmem:[#allocation2 + $0xbc] sm:$0x1] %v911_v9  ;;  %v12300_v35 = vrot.slane %v1980_v12, 9  ;;  %5342 = vmatprep.mubr.bf16.mxu0 %v16508_v57  ;;  %v16519_v16 = vrot.slane %v2510_v49, 4  ;;  %v12323_v59 = vcombine.low %v14569_v5, %v14570_v14  ;;  %v1919_v27 = vshrl.u32 %v1562_v20, 16  ;;  %5728 = vmatprep.mubr.bf16.mxu1 %v16508_v57 }
 0x194   : > { %3289 = vrot.lane.b32.xlu0 %v12427_v47, %s14753_s21  ;;  %20879 = vst [vmem:[#allocation50_spill] sm:$0xff] %v16514_v22  ;;  %20880 = vst [vmem:[#allocation51_spill] sm:$0xff] %v16517_v48  ;;  %v294_v47 = vsel %vm14958_vm4, 0, %v293_v40  ;;  %5343 = vmatmul.mubr.bf16.gmra.mrb[16].mxu0 %v16514_v22  ;;  %v2520_v42 = vor.u32 %v2519_v26, %v16496_v21  ;;  %v741_v15 = vshrl.u32 %v16467_v10, 16  ;;  %v744_v34 = vshll.u32 %v16467_v10, 16 }
 0x195   : > { %295 = vst [vmem:[#allocation2 + $0xc0] sm:$0x1] %v294_v47  ;;  %v749_v53 = vshrl.u32 %v16473_v6, 16  ;;  %5729 = vmatmul.mubr.bf16.gmra.mrb[16].mxu1 %v16514_v22  ;;  %v2132_v40 = vrot.slane %v2130_v38, 4  ;;  %v12380_v63 = vcombine.low %v1562_v20, %v16480_v29  ;;  %v752_v58 = vshll.u32 %v16473_v6, 16 }
 0x196   : > { %2971 = vrot.lane.b32.xlu1 %v12364_v33, %s14753_s21  ;;  %v14571_v49 = vld [vmem:[#allocation2 + $0x4c] sm:$0xf]  ;;  %v1922_v26 = vshll.u32 %v1562_v20, 16  ;;  %v743_v23 = vrot.slane %v741_v15, 7  ;;  %v3441_v9 = vsel %vm3423_vm15, %v12323_v59, %v16322_v25  ;;  %v16541_v14 = vld [vmem:[#allocation2 + $0xb8] sm:$0xf]  ;;  %v16568_v56 = vpop.permute.xlu1 %3053 }
 0x197   : > { %v1712_v12 = vshll.u32 %v14571_v49, 16  ;;  %v16537_v10 = vrot.slane %v749_v53, 7  ;;  %v1716_v60 = vshrl.u32 %v14571_v49, 16  ;;  %v1332_v33 = vshrl.u32 %v16517_v48, 16 }
 0x198   : > { %v1335_v47 = vshll.u32 %v16517_v48, 16  ;;  %v16545_v6 = vrot.slane %v1919_v27, 4  ;;  %v746_v22 = vor.u32 %v744_v34, %v743_v23  ;;  %v747_v57 = vrot.slane %v743_v23, 4  ;;  %v349_v34 = vld [vmem:[#allocation2 + $0xc8] sm:$0x1] }
 0x199   : > { %v1714_v5 = vrot.slane %v1712_v12, 5  ;;  %v754_v20 = vor.u32 %v752_v58, %v16537_v10  ;;  %v2516_v53 = vsel %vm15143_vm14, %v16519_v16, %v16496_v21  ;;  %v2521_v25 = vrot.slane %v2520_v42, 4  ;;  %v16564_v16 = vpop.permute.xlu0 %3357 }
 0x19a   : > { %v2188_v15 = vld [vmem:[#allocation2 + $0xbc] sm:$0x1]  ;;  %v16556_v49 = vsel %vm14997_vm10, %v12300_v35, %v2130_v38  ;;  %3067 = vrot.lane.b32.xlu1 %v12380_v63, %s14754_s23  ;;  %v1718_v27 = vrot.slane %v1716_v60, 4  ;;  %v16560_v23 = vrot.slane %v1922_v26, 5  ;;  %v1724_v48 = vrot.slane %v20883_v46, 5 }
 0x19b   : > { %v16552_v59 = vld [vmem:[#allocation2 + $0xbc] sm:$0x1]  ;;  %v2523_v12 = vshll.u32 %v2188_v15, 16  ;;  %v755_v42 = vsel %vm14989_vm9, %v747_v57, %v754_v20  ;;  %v1334_v29 = vrot.slane %v1332_v33, 4  ;;  %v1337_v63 = vrot.slane %v1335_v47, 5 }
 0x19c   : > { %20881 = vst [vmem:[#allocation52_spill] sm:$0xff] %v16552_v59  ;;  %v2133_v58 = vrot.slane %v16552_v59, 5  ;;  %v967_v21 = vld [vmem:[#allocation2 + $0xbc] sm:$0x1]  ;;  %v913_v38 = vld [vmem:[#allocation2 + $0xc0] sm:$0xf]  ;;  %v1719_v35 = vor.u32 %v1718_v27, %v1714_v5  ;;  %v1715_v46 = vsel %vm15143_vm14, %v20884_v30, %v1714_v5 }
 0x19d   : > { %v1370_v60 = vld [vmem:[#allocation2 + $0xb4] sm:$0xe]  ;;  %v2525_v15 = vrot.slane %v2523_v12, 5  ;;  %v914_v26 = vsel %vm15004_vm11, %v746_v22, %v913_v38  ;;  %916 = vst.msk [vmem:[#allocation2 + $0xc4] sm:$0xf] %vm233_vm0, %v755_v42  ;;  %v1341_v32 = vshll.u32 %v16541_v14, 16  ;;  %v1338_v47 = vor.u32 %v1337_v63, %v1334_v29 }
 0x19e   : > { %v2134_v57 = vsel %vm14997_vm10, %v2132_v40, %v2133_v58  ;;  %915 = vst [vmem:[#allocation2 + $0xc0] sm:$0xf] %v914_v26  ;;  %v1720_v33 = vrot.slane %v1719_v35, 4  ;;  %v1345_v20 = vshrl.u32 %v16541_v14, 16  ;;  %v296_v27 = vld [vmem:[#allocation2 + $0xcc] sm:$0x1]  ;;  %v16587_v26 = vpop.permute.xlu0 %3183 }
 0x19f   : > { %v2526_v41 = vsel %vm15143_vm14, %v2521_v25, %v2525_v15  ;;  %v1343_v22 = vrot.slane %v1341_v32, 5  ;;  %v1351_v12 = vshll.u32 %v967_v21, 16  ;;  %v350_v42 = vsel %vm14964_vm5, 0, %v349_v34 }
 0x1a0   : > { %v12443_v5 = vcombine.low %v2516_v53, %v2526_v41  ;;  %v1725_v38 = vsel %vm15143_vm14, %v1720_v33, %v1724_v48  ;;  %v1339_v30 = vrot.slane %v1338_v47, 4  ;;  %v1347_v40 = vrot.slane %v1345_v20, 4  ;;  %351 = vst [vmem:[#allocation2 + $0xc8] sm:$0x1] %v350_v42  ;;  %v16591_v53 = vpop.permute.xlu1 %2879 }
 0x1a1   : > { %v12387_v58 = vcombine.low %v1715_v46, %v1725_v38  ;;  %v1353_v29 = vrot.slane %v1351_v12, 5  ;;  %v12285_v35 = vrot.slane %v1370_v60, 9  ;;  %v1529_v63 = vrot.slane %v16541_v14, 5 }
 0x1a2   : > { %3369 = vrot.lane.b32.xlu0 %v12443_v5, %s14754_s23  ;;  %v12412_v25 = vcombine.low %v16556_v49, %v2134_v57  ;;  %v1348_v15 = vor.u32 %v1347_v40, %v1343_v22  ;;  %v1532_v34 = vrot.slane %v967_v21, 5  ;;  %v1901_v48 = vor.u32 %v16490_v50, %v16471_v18  ;;  %v16617_v40 = vld [vmem:[#allocation2 + $0xd0] sm:$0xf] }
 0x1a3   : > { %v3484_v46 = vsel %vm3472_vm2, %v3441_v9, %v16353_v11  ;;  %v1531_v32 = vrot.slane %v1529_v63, 4  ;;  %v297_v60 = vsel %vm14958_vm4, 0, %v296_v27  ;;  %v1925_v33 = vor.u32 %v16560_v23, %v16545_v6 }
 0x1a4   : > { %v756_v47 = vrot.slane %v16537_v10, 4  ;;  %v2172_v49 = vld [vmem:[#allocation2 + $0xc4] sm:$0xf]  ;;  %v1344_v21 = vsel %vm15143_vm14, %v1339_v30, %v1343_v22  ;;  %v1349_v57 = vrot.slane %v1348_v15, 4  ;;  %298 = vst [vmem:[#allocation2 + $0xcc] sm:$0x1] %v297_v60  ;;  %v1530_v11 = vsel %vm14997_vm10, %v12285_v35, %v1529_v63  ;;  %v16619_v35 = vpop.permute.xlu0 %3279 }
 0x1a5   : > { %v2171_v20 = vld [vmem:[#allocation2 + $0xc0] sm:$0xf]  ;;  %v2541_v18 = vshrl.u32 %v2172_v49, 16  ;;  %v2537_v50 = vshll.u32 %v2172_v49, 16  ;;  %v1533_v9 = vsel %vm14997_vm10, %v1531_v32, %v1532_v34  ;;  %v3571_v41 = vsel %vm3423_vm15, %v12387_v58, %v16315_v13  ;;  %v16615_v38 = vld [vmem:[#allocation2 + $0xc4] sm:$0xf]  ;;  %v16625_v58 = vpop.permute.xlu1 %2959 }
 0x1a6   : > { %3195 = vrot.lane.b32.xlu0 %v12412_v25, %s14755_s9  ;;  %v2528_v6 = vshrl.u32 %v2171_v20, 16  ;;  %v2531_v23 = vshll.u32 %v2171_v20, 16  ;;  %v12428_v10 = vcombine.low %v2171_v20, %v2172_v49  ;;  %v1354_v27 = vsel %vm15143_vm14, %v1349_v57, %v1353_v29  ;;  %20885 = vst [vmem:[#allocation28_spill] sm:$0xff] %v16615_v38  ;;  %v1981_v30 = vld [vmem:[#allocation2 + $0xc0] sm:$0xe] }
 0x1a7   : > { %v12349_v22 = vcombine.low %v1344_v21, %v1354_v27  ;;  %v917_v12 = vld [vmem:[#allocation2 + $0xc8] sm:$0x1]  ;;  %v16613_v42 = vrot.slane %v2537_v50, 5  ;;  %v2543_v5 = vrot.slane %v2541_v18, 4  ;;  %v3613_v13 = vsel %vm3472_vm2, %v3571_v41, %v16348_v54  ;;  %v1564_v32 = vld [vmem:[#allocation2 + $0xc0] sm:$0xf] }
 0x1a8   : > { %v2530_v63 = vrot.slane %v2528_v6, 4  ;;  %v2533_v25 = vrot.slane %v2531_v23, 5  ;;  %v918_v29 = vsel %vm14958_vm4, %v756_v47, %v917_v12  ;;  %v12365_v15 = vcombine.low %v1530_v11, %v1533_v9  ;;  %v352_v49 = vld [vmem:[#allocation2 + $0xd4] sm:$0x1]  ;;  %v16656_v6 = vpop.permute.xlu0 %3359  ;;  %v14572_v27 = vld [vmem:[#allocation2 + $0x48] sm:$0xf] }
 0x1a9   : > { %2893 = vrot.lane.b32.xlu1 %v12349_v22, %s14755_s9  ;;  %919 = vst [vmem:[#allocation2 + $0xc8] sm:$0x1] %v918_v29  ;;  %v16630_v34 = vsel %vm3505_vm3, %v3613_v13, %v16383_v55  ;;  %v2544_v47 = vor.u32 %v2543_v5, %v16613_v42  ;;  %v16637_v54 = vsel %vm3505_vm3, %v3484_v46, %v16391_v62  ;;  %v16640_v21 = vrot.slane %v1901_v48, 4  ;;  %v14573_v41 = vld [vmem:[#allocation2 + $0x4c] sm:$0xf] }
 0x1aa   : > { %20886 = vst [vmem:[#allocation35_spill] sm:$0xff] %v16630_v34  ;;  %3291 = vrot.lane.b32.xlu0 %v12428_v10, %s14753_s21  ;;  %v2534_v1 = vor.u32 %v2533_v25, %v2530_v63  ;;  %20887 = vst [vmem:[#allocation53_spill] sm:$0xff] %v16637_v54  ;;  %5352 = vmatprep.mubr.bf16.mxu0 %v16630_v34  ;;  %v16643_v57 = vrot.slane %v1925_v33, 4  ;;  %v12301_v18 = vrot.slane %v1981_v30, 9  ;;  %v2137_v50 = vrot.slane %v16615_v38, 5  ;;  %v16658_v30 = vpop.permute.xlu1 %3055 }
 0x1ab   : > { %v16645_v20 = vld [vmem:[#allocation2 + $0xcc] sm:$0xf]  ;;  %5738 = vmatprep.mubr.bf16.mxu1 %v16630_v34  ;;  %5353 = vmatmul.mubr.bf16.gmra.mrb[20].mxu0 %v16637_v54  ;;  %v2565_v46 = vshrl.u32 %v16617_v40, 16  ;;  %v1943_v48 = vshrl.u32 %v1564_v32, 16  ;;  %v1946_v33 = vshll.u32 %v1564_v32, 16  ;;  %v12381_v11 = vcombine.low %v1564_v32, %v16615_v38 }
 0x1ac   : > { %20888 = vst [vmem:[#allocation54_spill] sm:$0xff] %v16643_v57  ;;  %v2552_v62 = vshrl.u32 %v16645_v20, 16  ;;  %5739 = vmatmul.mubr.bf16.gmra.mrb[20].mxu1 %v16637_v54  ;;  %v2555_v9 = vshll.u32 %v16645_v20, 16  ;;  %v2535_v23 = vrot.slane %v2534_v1, 4  ;;  %v2545_v10 = vrot.slane %v2544_v47, 4  ;;  %v20892_v57 = vld [vmem:[#allocation41_spill] sm:$0xff] }
 0x1ad   : > { %2973 = vrot.lane.b32.xlu1 %v12365_v15, %s14753_s21  ;;  %v12324_v22 = vcombine.low %v14572_v27, %v14573_v41  ;;  %v14574_v12 = vld [vmem:[#allocation2 + $0x58] sm:$0xf]  ;;  %v353_v13 = vsel %vm14964_vm5, 0, %v352_v49  ;;  %v2139_v55 = vrot.slane %v2137_v50, 4  ;;  %v16668_v41 = vrot.slane %v1943_v48, 4 }
 0x1ae   : > { %v1736_v5 = vshll.u32 %v14574_v12, 16  ;;  %v2554_v63 = vrot.slane %v2552_v62, 4  ;;  %v2557_v25 = vrot.slane %v2555_v9, 5  ;;  %v1740_v29 = vshrl.u32 %v14574_v12, 16  ;;  %354 = vst [vmem:[#allocation2 + $0xd4] sm:$0x1] %v353_v13 }
 0x1af   : > { %v16670_v60 = vrot.slane %v1946_v33, 5  ;;  %v2138_v2 = vsel %vm14997_vm10, %v12301_v18, %v2137_v50  ;;  %v3444_v49 = vsel %vm3423_vm15, %v12324_v22, %v16409_v0  ;;  %v2561_v9 = vshll.u32 %v16617_v40, 16  ;;  %v16681_v33 = vpop.permute.xlu0 %3185  ;;  %v20890_v18 = vld [vmem:[#allocation31_spill] sm:$0xff]  ;;  %v16687_v22 = vpop.permute.xlu1 %2881 }
 0x1b0   : > { %v16662_v15 = vld [vmem:[#allocation2 + $0xc8] sm:$0x1]  ;;  %v1738_v1 = vrot.slane %v1736_v5, 5  ;;  %v1742_v62 = vrot.slane %v1740_v29, 4  ;;  %v2540_v12 = vsel %vm15143_vm14, %v2535_v23, %v16613_v42  ;;  %v2558_v48 = vor.u32 %v2557_v25, %v2554_v63  ;;  %v14576_v42 = vld [vmem:[#allocation2 + $0x58] sm:$0xf] }
 0x1b1   : > { %20889 = vst [vmem:[#allocation55_spill] sm:$0xff] %v16662_v15  ;;  %v16664_v32 = vld [vmem:[#allocation2 + $0xc8] sm:$0x1]  ;;  %v2547_v47 = vshll.u32 %v16662_v15, 16  ;;  %3069 = vrot.lane.b32.xlu1 %v12381_v11, %s14754_s23  ;;  %v2567_v13 = vrot.slane %v2565_v46, 4  ;;  %v20891_v50 = vshll.u32 %v20890_v18, 16 }
 0x1b2   : > { %v2140_v27 = vrot.slane %v16664_v32, 5  ;;  %v1743_v54 = vor.u32 %v1742_v62, %v1738_v1  ;;  %v2563_v0 = vrot.slane %v2561_v9, 5  ;;  %v14575_v15 = vld [vmem:[#allocation2 + $0x54] sm:$0xf]  ;;  %v14577_v63 = vld [vmem:[#allocation2 + $0x64] sm:$0xf] }
 0x1b3   : > { %v2549_v5 = vrot.slane %v2547_v47, 5  ;;  %v1748_v34 = vrot.slane %v20891_v50, 5  ;;  %v12325_v23 = vcombine.low %v14575_v15, %v14576_v42  ;;  %v1760_v46 = vshll.u32 %v14577_v63, 16 }
 0x1b4   : > { %v2141_v11 = vsel %vm14997_vm10, %v2139_v55, %v2140_v27  ;;  %v1764_v25 = vshrl.u32 %v14577_v63, 16  ;;  %v1739_v55 = vsel %vm15143_vm14, %v20892_v57, %v1738_v1  ;;  %v1744_v27 = vrot.slane %v1743_v54, 4  ;;  %v20895_v57 = vld [vmem:[#allocation12_spill] sm:$0xff]  ;;  %v20897_v1 = vld [vmem:[#allocation13_spill] sm:$0xff]  ;;  %v16710_v63 = vpop.permute.xlu0 %3281 }
 0x1b5   : > { %v2550_v29 = vsel %vm15143_vm14, %v2545_v10, %v2549_v5  ;;  %v2568_v62 = vor.u32 %v2567_v13, %v2563_v0  ;;  %v12413_v18 = vcombine.low %v2138_v2, %v2141_v11  ;;  %v16694_v9 = vld [vmem:[#allocation2 + $0xd4] sm:$0x1]  ;;  %v2559_v50 = vrot.slane %v2558_v48, 4  ;;  %v20893_v5 = vld [vmem:[#allocation34_spill] sm:$0xff] }
 0x1b6   : > { %v12444_v47 = vcombine.low %v2540_v12, %v2550_v29  ;;  %v1762_v59 = vrot.slane %v1760_v46, 5  ;;  %v1766_v38 = vrot.slane %v1764_v25, 4  ;;  %v1749_v10 = vsel %vm15143_vm14, %v1744_v27, %v1748_v34  ;;  %v14578_v25 = vld [vmem:[#allocation2 + $0x70] sm:$0xf] }
 0x1b7   : > { %v2569_v15 = vrot.slane %v2568_v62, 4  ;;  %v2571_v12 = vshll.u32 %v16694_v9, 16  ;;  %v20894_v29 = vshll.u32 %v20893_v5, 16  ;;  %v20896_v54 = vrot.slane %v20895_v57, 5  ;;  %v16714_v62 = vpop.permute.xlu1 %2961  ;;  %v20899_v57 = vld [vmem:[#allocation44_spill] sm:$0xff] }
 0x1b8   : > { %3371 = vrot.lane.b32.xlu0 %v12444_v47, %s14754_s23  ;;  %v20898_v2 = vrot.slane %v20897_v1, 9  ;;  %v12388_v13 = vcombine.low %v1739_v55, %v1749_v10  ;;  %v1767_v11 = vor.u32 %v1766_v38, %v1762_v59  ;;  %v12429_v34 = vcombine.low %v16645_v20, %v16617_v40 }
 0x1b9   : > { %v1772_v42 = vrot.slane %v20894_v29, 5  ;;  %v2573_v46 = vrot.slane %v2571_v12, 5  ;;  %v1784_v47 = vshll.u32 %v14578_v25, 16  ;;  %v1788_v27 = vshrl.u32 %v14578_v25, 16 }
 0x1ba   : > { %v16708_v48 = vsel %vm14997_vm10, %v20898_v2, %v20896_v54  ;;  %v3486_v5 = vsel %vm3472_vm2, %v3444_v49, %v16441_v61  ;;  %v3574_v29 = vsel %vm3423_vm15, %v12388_v13, %v16404_v19  ;;  %v1763_v38 = vsel %vm15143_vm14, %v20899_v57, %v1762_v59  ;;  %v14580_v2 = vld [vmem:[#allocation2 + $0x60] sm:$0xf]  ;;  %v14581_v13 = vld [vmem:[#allocation2 + $0x64] sm:$0xf]  ;;  %v14582_v57 = vld [vmem:[#allocation2 + $0x6c] sm:$0xf] }
 0x1bb   : > { %v1768_v55 = vrot.slane %v1767_v11, 4  ;;  %v2564_v40 = vsel %vm15143_vm14, %v2559_v50, %v2563_v0  ;;  %v3615_v20 = vsel %vm3472_vm2, %v3574_v29, %v16431_v4  ;;  %v3447_v10 = vsel %vm3423_vm15, %v12325_v23, %v16494_v17  ;;  %v14579_v23 = vld [vmem:[#allocation2 + $0x7c] sm:$0xf]  ;;  %v16757_v25 = vpop.permute.xlu1 %3057 }
 0x1bc   : > { %3197 = vrot.lane.b32.xlu0 %v12413_v18, %s14755_s9  ;;  %v1786_v61 = vrot.slane %v1784_v47, 5  ;;  %v2574_v19 = vsel %vm15143_vm14, %v2569_v15, %v2573_v46  ;;  %v16734_v49 = vsel %vm3505_vm3, %v3615_v20, %v16460_v3  ;;  %v1790_v18 = vrot.slane %v1788_v27, 4  ;;  %v20902_v47 = vld [vmem:[#allocation45_spill] sm:$0xff] }
 0x1bd   : > { %v1773_v59 = vsel %vm15143_vm14, %v1768_v55, %v1772_v42  ;;  %v1949_v0 = vor.u32 %v16670_v60, %v16668_v41  ;;  %v16742_v4 = vsel %vm3505_vm3, %v3486_v5, %v16463_v8  ;;  %5362 = vmatprep.mubr.bf16.mxu0 %v16734_v49  ;;  %5748 = vmatprep.mubr.bf16.mxu1 %v16734_v49  ;;  %v1808_v50 = vshll.u32 %v14579_v23, 16  ;;  %v20900_v60 = vld [vmem:[#allocation37_spill] sm:$0xff]  ;;  %v16752_v42 = vpop.permute.xlu0 %3361 }
 0x1be   : > { %v12389_v17 = vcombine.low %v1763_v38, %v1773_v59  ;;  %5363 = vmatmul.mubr.bf16.gmra.mrb[24].mxu0 %v16742_v4  ;;  %5749 = vmatmul.mubr.bf16.gmra.mrb[24].mxu1 %v16742_v4  ;;  %v3488_v3 = vsel %vm3472_vm2, %v3447_v10, %v16535_v51  ;;  %v1791_v15 = vor.u32 %v1790_v18, %v1786_v61  ;;  %v20901_v41 = vshll.u32 %v20900_v60, 16  ;;  %v14583_v38 = vld [vmem:[#allocation2 + $0x70] sm:$0xf] }
 0x1bf   : > { %v1812_v8 = vshrl.u32 %v14579_v23, 16  ;;  %v12445_v54 = vcombine.low %v2564_v40, %v2574_v19  ;;  %v12326_v11 = vcombine.low %v14580_v2, %v14581_v13  ;;  %v1810_v46 = vrot.slane %v1808_v50, 5  ;;  %v14584_v40 = vld [vmem:[#allocation2 + $0x88] sm:$0xf] }
 0x1c0   : > { %v1796_v12 = vrot.slane %v20901_v41, 5  ;;  %3293 = vrot.lane.b32.xlu0 %v12429_v34, %s14753_s21  ;;  %v3577_v1 = vsel %vm3423_vm15, %v12389_v17, %v16486_v39  ;;  %v1787_v27 = vsel %vm15143_vm14, %v20902_v47, %v1786_v61  ;;  %v1792_v5 = vrot.slane %v1791_v15, 4  ;;  %v20903_v61 = vld [vmem:[#allocation40_spill] sm:$0xff] }
 0x1c1   : > { %v3617_v51 = vsel %vm3472_vm2, %v3577_v1, %v16530_v24  ;;  %v1814_v29 = vrot.slane %v1812_v8, 4  ;;  %v16764_v34 = vrot.slane %v1949_v0, 4  ;;  %v12327_v55 = vcombine.low %v14582_v57, %v14583_v38  ;;  %v3188_v41 = vpop.permute.xlu0 %3187  ;;  %v14586_v38 = vld [vmem:[#allocation2 + $0xa0] sm:$0xf] }
 0x1c2   : > { %v16768_v39 = vsel %vm3505_vm3, %v3617_v51, %v16564_v16  ;;  %v1832_v20 = vshll.u32 %v14584_v40, 16  ;;  %v1797_v24 = vsel %vm15143_vm14, %v1792_v5, %v1796_v12  ;;  %v20904_v19 = vshll.u32 %v20903_v61, 16  ;;  %v14585_v12 = vld [vmem:[#allocation2 + $0x94] sm:$0xf] }
 0x1c3   : > { %5372 = vmatprep.mubr.bf16.mxu0 %v16768_v39  ;;  %5758 = vmatprep.mubr.bf16.mxu1 %v16768_v39  ;;  %v1815_v10 = vor.u32 %v1814_v29, %v1810_v46  ;;  %v1836_v18 = vshrl.u32 %v14584_v40, 16  ;;  %v16779_v16 = vsel %vm3505_vm3, %v3488_v3, %v16568_v56  ;;  %v3450_v0 = vsel %vm3423_vm15, %v12326_v11, %v16591_v53  ;;  %v16790_v3 = vpop.permute.xlu1 %2883  ;;  %v3968_v40 = vld [vmem:[#allocation6 + $0x758] sm:$0x11] }
 0x1c4   : > { %v1820_v59 = vrot.slane %v20904_v19, 5  ;;  %3373 = vrot.lane.b32.xlu0 %v12445_v54, %s14754_s23  ;;  %v12390_v17 = vcombine.low %v1787_v27, %v1797_v24  ;;  %v1834_v23 = vrot.slane %v1832_v20, 5  ;;  %v1811_v50 = vsel %vm15143_vm14, %v16105_v45, %v1810_v46 }
 0x1c5   : > { %v1816_v15 = vrot.slane %v1815_v10, 4  ;;  %v1838_v60 = vrot.slane %v1836_v18, 4  ;;  %v1856_v8 = vshll.u32 %v14585_v12, 16  ;;  %v3453_v56 = vsel %vm3423_vm15, %v12327_v55, %v16687_v22  ;;  %v3284_v24 = vpop.permute.xlu0 %3283 }
 0x1c6   : > { %v3580_v54 = vsel %vm3423_vm15, %v12390_v17, %v16587_v26  ;;  %v20905_v53 = vshll.u32 %v16010_v37, 16  ;;  %v1860_v2 = vshrl.u32 %v14585_v12, 16  ;;  %5373 = vmatmul.mubr.bf16.gmra.mrb[28].mxu0 %v16779_v16  ;;  %5759 = vmatmul.mubr.bf16.gmra.mrb[28].mxu1 %v16779_v16  ;;  %v1962_v22 = vshll.u32 %v16664_v32, 16 }
 0x1c7   : > { %v3619_v45 = vsel %vm3472_vm2, %v3580_v54, %v16619_v35  ;;  %v1821_v13 = vsel %vm15143_vm14, %v1816_v15, %v1820_v59  ;;  %v1839_v26 = vor.u32 %v1838_v60, %v1834_v23  ;;  %v1858_v11 = vrot.slane %v1856_v8, 5  ;;  %v16827_v19 = vpop.permute.xlu1 %2963  ;;  %v14587_v15 = vld [vmem:[#allocation2 + $0x78] sm:$0xf]  ;;  %v14588_v60 = vld [vmem:[#allocation2 + $0x7c] sm:$0xf] }
 0x1c8   : > { %v1844_v1 = vrot.slane %v20905_v53, 5  ;;  %v16803_v46 = vsel %vm3505_vm3, %v3619_v45, %v16656_v6  ;;  %v12391_v37 = vcombine.low %v1811_v50, %v1821_v13  ;;  %v1862_v51 = vrot.slane %v1860_v2, 4  ;;  %v3967_v50 = vld [vmem:[#allocation6 + $0x750] sm:$0x11] }
 0x1c9   : > { %20906 = vst [vmem:[#allocation31_spill] sm:$0xff] %v16803_v46  ;;  %v3490_v47 = vsel %vm3472_vm2, %v3450_v0, %v16625_v58  ;;  %5382 = vmatprep.mubr.bf16.mxu0 %v16803_v46  ;;  %5768 = vmatprep.mubr.bf16.mxu1 %v16803_v46  ;;  %v3492_v35 = vsel %vm3472_vm2, %v3453_v56, %v16714_v62  ;;  %v1840_v5 = vrot.slane %v1839_v26, 4  ;;  %v20907_v57 = vshll.u32 %v16144_v28, 16  ;;  %v14043_v8 = vld [vmem:[#allocation6 + $0x1c] ss:$52 sps:$4 sm:$0xff]  }
 0x1ca   : > { %v1835_v27 = vsel %vm15143_vm14, %v16112_v31, %v1834_v23  ;;  %v1859_v6 = vsel %vm15143_vm14, %v16388_v43, %v1858_v11  ;;  %v1863_v29 = vor.u32 %v1862_v51, %v1858_v11  ;;  %v1880_v55 = vshll.u32 %v14586_v38, 16  ;;  %v14589_v45 = vld [vmem:[#allocation2 + $0xac] sm:$0xf] }
 0x1cb   : > { %v1868_v58 = vrot.slane %v20907_v57, 5  ;;  %v3583_v20 = vsel %vm3423_vm15, %v12391_v37, %v16681_v33  ;;  %v1845_v62 = vsel %vm15143_vm14, %v1840_v5, %v1844_v1  ;;  %v1884_v31 = vshrl.u32 %v14586_v38, 16  ;;  %v20913_v37 = vld [vmem:[#allocation49_spill] sm:$0xff] }
 0x1cc   : > { %v20908_v10 = vshll.u32 %v16309_v44, 16  ;;  %v3621_v43 = vsel %vm3472_vm2, %v3583_v20, %v16710_v63  ;;  %v12392_v28 = vcombine.low %v1835_v27, %v1845_v62  ;;  %v1864_v59 = vrot.slane %v1863_v29, 4  ;;  %v3364_v11 = vpop.permute.xlu0 %3363  ;;  %v16859_v27 = vpop.permute.xlu1 %3059  ;;  %v2575_v62 = vld [vmem:[#allocation2 + $0x18] sm:$0xe] }
 0x1cd   : > { %v1882_v18 = vrot.slane %v1880_v55, 5  ;;  %v16831_v0 = vsel %vm3505_vm3, %v3621_v43, %v16752_v42  ;;  %v1886_v33 = vrot.slane %v1884_v31, 4  ;;  %v12698_v17 = vcombine.low %v3968_v40, %v3968_v40  ;;  %v20915_v55 = vld [vmem:[#allocation32_spill] sm:$0xff] }
 0x1ce   : > { %v1892_v61 = vrot.slane %v20908_v10, 5  ;;  %20909 = vst [vmem:[#allocation41_spill] sm:$0xff] %v16831_v0  ;;  %v12699_v23 = vcombine.high %v3968_v40, %v3968_v40  ;;  %v16835_v44 = vsel %vm3505_vm3, %v3490_v47, %v16658_v30  ;;  %v12328_v63 = vcombine.low %v14587_v15, %v14588_v60 }
 0x1cf   : > { %20910 = vst [vmem:[#allocation34_spill] sm:$0xff] %v16835_v44  ;;  %v1869_v12 = vsel %vm15143_vm14, %v1864_v59, %v1868_v58  ;;  %vm5228_vm0 = vcmask 1040384   ;;  %5383 = vmatmul.mubr.bf16.gmra.mrb[32].mxu0 %v16835_v44  ;;  %5769 = vmatmul.mubr.bf16.gmra.mrb[32].mxu1 %v16835_v44  ;;  %v16843_v42 = vsel %vm3505_vm3, %v3492_v35, %v16757_v25  ;;  %v20912_v56 = vmov 0  }
 0x1d0   : > { %20911 = vst [vmem:[#allocation12_spill] sm:$0xff] %v16843_v42  ;;  %v16845_v54 = vcombine.low %v1859_v6, %v1869_v12  ;;  %v1887_v30 = vor.u32 %v1886_v33, %v1882_v18  ;;  %v16848_v53 = vsel %vm5228_vm0, 65535, %v20912_v56  ;;  %5392 = vmatprep.mubr.bf16.mxu0 %v16831_v0  ;;  %5778 = vmatprep.mubr.bf16.mxu1 %v16831_v0  ;;  %v1904_v13 = vshll.u32 %v14589_v45, 16 }
 0x1d1   : > { %v3586_v1 = vsel %vm3423_vm15, %v12392_v28, %v3188_v41  ;;  %v5241_v2 = vand.u32 %v12699_v23, %v16848_v53  ;;  %v1908_v26 = vshrl.u32 %v14589_v45, 16  ;;  %v1883_v51 = vsel %vm15143_vm14, %v20913_v37, %v1882_v18  ;;  %v14049_v18 = vld [vmem:[#allocation6 + $0x14] ss:$52 sps:$4 sm:$0xff]  }
 0x1d2   : > { %v3623_v25 = vsel %vm3472_vm2, %v3586_v1, %v3284_v24  ;;  %v1888_v47 = vrot.slane %v1887_v30, 4  ;;  %v5238_v35 = vand.u32 %v12698_v17, %v16848_v53  ;;  %v1906_v5 = vrot.slane %v1904_v13, 5  ;;  %v2886_v1 = vpop.permute.xlu1 %2885  ;;  %v20921_v45 = vld [vmem:[#allocation54_spill] sm:$0xff] }
 0x1d3   : > { %5853 = vmatprep.subr.bf16.mxu1 %v5241_v2  ;;  %v1910_v41 = vrot.slane %v1908_v26, 4  ;;  %v20914_v6 = vshll.u32 %v16423_v7, 16  ;;  %v12696_v57 = vcombine.low %v3967_v50, %v3967_v50  ;;  %v12697_v38 = vcombine.high %v3967_v50, %v3967_v50  ;;  %v20918_v50 = vld [vmem:[#allocation28_spill] sm:$0xff] }
 0x1d4   : > { %v1893_v58 = vsel %vm15143_vm14, %v1888_v47, %v1892_v61  ;;  %5854 = vmatpush1.bf16.msra.mxu1 %v5238_v35  ;;  %v1928_v40 = vshll.u32 %v20915_v55, 16  ;;  %v1932_v20 = vshrl.u32 %v20915_v55, 16  ;;  %v3456_v24 = vsel %vm3423_vm15, %v12328_v63, %v16790_v3  ;;  %v20917_v3 = vld [vmem:[#allocation51_spill] sm:$0xff]  ;;  %v20919_v63 = vld [vmem:[#allocation52_spill] sm:$0xff] }
 0x1d5   : > { %v1916_v29 = vrot.slane %v20914_v6, 5  ;;  %v16870_v31 = vsel %vm3505_vm3, %v3623_v25, %v3364_v11  ;;  %v16872_v10 = vcombine.low %v1883_v51, %v1893_v58  ;;  %v1911_v7 = vor.u32 %v1910_v41, %v1906_v5  ;;  %6428 = vmatprep.subr.bf16.mxu1 %v14043_v8  ;;  %v3190_v25 = vpop.permute.xlu0 %3189  ;;  %v20922_v47 = vld [vmem:[#allocation19_spill] sm:$0xff]  ;;  %v2577_v6 = vld [vmem:[#allocation2 + $0x30] sm:$0xe] }
 0x1d6   : > { %20916 = vst [vmem:[#allocation13_spill] sm:$0xff] %v16870_v31  ;;  %v1907_v61 = vsel %vm15143_vm14, %v16640_v21, %v1906_v5  ;;  %v5235_v43 = vand.u32 %v12697_v38, %v16848_v53  ;;  %v1930_v28 = vrot.slane %v1928_v40, 5  ;;  %v1934_v59 = vrot.slane %v1932_v20, 4  ;;  %v20924_v5 = vld [vmem:[#allocation17_spill] sm:$0xff]  ;;  %v20925_v58 = vld [vmem:[#allocation14_spill] sm:$0xff]  ;;  %v20927_v40 = vld [vmem:[#allocation20_spill] sm:$0xff] }
 0x1d7   : > { %v1912_v33 = vrot.slane %v1911_v7, 4  ;;  %v5232_v17 = vand.u32 %v12696_v57, %v16848_v53  ;;  %v1952_v15 = vshll.u32 %v20918_v50, 16  ;;  %5393 = vmatmul.mubr.bf16.gmra.mrb[36].mxu0 %v16843_v42  ;;  %5779 = vmatmul.mubr.bf16.gmra.mrb[36].mxu1 %v16843_v42  ;;  %v3494_v21 = vsel %vm3472_vm2, %v3456_v24, %v16827_v19  ;;  %v2578_v7 = vld [vmem:[#allocation2 + $0x3c] sm:$0xe] }
 0x1d8   : > { %v1935_v60 = vor.u32 %v1934_v59, %v1930_v28  ;;  %v20920_v12 = vshll.u32 %v20919_v63, 16  ;;  %v1956_v30 = vshrl.u32 %v20918_v50, 16  ;;  %5402 = vmatprep.mubr.bf16.mxu0 %v16870_v31  ;;  %5788 = vmatprep.mubr.bf16.mxu1 %v16870_v31  ;;  %v1931_v13 = vsel %vm15143_vm14, %v20921_v45, %v1930_v28  ;;  %v20930_v28 = vld [vmem:[#allocation29_spill] sm:$0xff]  ;;  %v20934_v63 = vld [vmem:[#allocation18_spill] sm:$0xff] }
 0x1d9   : > { %v1917_v2 = vsel %vm15143_vm14, %v1912_v33, %v1916_v29  ;;  %v1954_v26 = vrot.slane %v1952_v15, 5  ;;  %v12302_v19 = vrot.slane %v2575_v62, 9  ;;  %5467 = vmatprep.subr.bf16.mxu0 %v5235_v43  ;;  %v20923_v35 = vrot.slane %v20922_v47, 5  ;;  %v20929_v62 = vld [vmem:[#allocation15_spill] sm:$0xff]  ;;  %v2579_v43 = vld [vmem:[#allocation2 + $0x48] sm:$0xe] }
 0x1da   : > { %v1940_v8 = vrot.slane %v20920_v12, 5  ;;  %v16896_v11 = vcombine.low %v1907_v61, %v1917_v2  ;;  %v1936_v37 = vrot.slane %v1935_v60, 4  ;;  %v1958_v51 = vrot.slane %v1956_v30, 4  ;;  %5468 = vmatpush1.bf16.msra.mxu0 %v5232_v17  ;;  %v20932_v15 = vld [vmem:[#allocation21_spill] sm:$0xff]  ;;  %v20938_v47 = vld [vmem:[#allocation23_spill] sm:$0xff] }
 0x1db   : > { %v16903_v41 = vsel %vm14997_vm10, %v20924_v5, %v20923_v35  ;;  %v1955_v29 = vsel %vm15143_vm14, %v16764_v34, %v1954_v26  ;;  %v1964_v57 = vrot.slane %v1962_v22, 5  ;;  %v20926_v38 = vrot.slane %v20925_v58, 5  ;;  %6042 = vmatprep.subr.bf16.mxu0 %v14049_v18  ;;  %v14590_v30 = vld [vmem:[#allocation2 + $0x84] sm:$0xf]  ;;  %v14591_v18 = vld [vmem:[#allocation2 + $0x88] sm:$0xf] }
 0x1dc   : > { %v20928_v20 = vrot.slane %v20927_v40, 5  ;;  %v1941_v34 = vsel %vm15143_vm14, %v1936_v37, %v1940_v8  ;;  %v1959_v61 = vor.u32 %v1958_v51, %v1954_v26  ;;  %v20931_v59 = vrot.slane %v20930_v28, 5  ;;  %v20940_v5 = vld [vmem:[#allocation26_spill] sm:$0xff] }
 0x1dd   : > { %v16914_v55 = vsel %vm14997_vm10, %v12302_v19, %v20926_v38  ;;  %v16931_v17 = vcombine.low %v1931_v13, %v1941_v34  ;;  %v12304_v50 = vrot.slane %v2577_v6, 9  ;;  %v20933_v60 = vrot.slane %v20932_v15, 5  ;;  %v2966_v19 = vpop.permute.xlu1 %2965  ;;  %v20936_v13 = vld [vmem:[#allocation16_spill] sm:$0xff]  ;;  %v20943_v38 = vld [vmem:[#allocation33_spill] sm:$0xff]  ;;  %v20944_v34 = vld [vmem:[#allocation22_spill] sm:$0xff] }
 0x1de   : > { %v16921_v24 = vsel %vm14997_vm10, %v20929_v62, %v20928_v20  ;;  %v2678_v33 = vrot.slane %v20931_v59, 4  ;;  %v16942_v8 = vsel %vm3505_vm3, %v3494_v21, %v16859_v27  ;;  %v12329_v2 = vcombine.low %v14590_v30, %v14591_v18  ;;  %v20941_v21 = vld [vmem:[#allocation27_spill] sm:$0xff]  ;;  %v3286_v20 = vpop.permute.xlu0 %3285  ;;  %v20946_v15 = vld [vmem:[#allocation25_spill] sm:$0xff] }
 0x1df   : > { %v16938_v12 = vsel %vm14997_vm10, %v20934_v63, %v20933_v60  ;;  %20935 = vst [vmem:[#allocation44_spill] sm:$0xff] %v16942_v8  ;;  %v1960_v45 = vrot.slane %v1959_v61, 4  ;;  %v12305_v26 = vrot.slane %v2578_v7, 9  ;;  %v20937_v37 = vrot.slane %v20936_v13, 5  ;;  %5403 = vmatmul.mubr.bf16.gmra.mrb[40].mxu0 %v16942_v8  ;;  %5789 = vmatmul.mubr.bf16.gmra.mrb[40].mxu1 %v16942_v8  ;;  %v14592_v30 = vld [vmem:[#allocation2 + $0x64] sm:$0xf] }
 0x1e0   : > { %v20939_v35 = vrot.slane %v20938_v47, 5  ;;  %v12306_v27 = vrot.slane %v2579_v43, 9  ;;  %v20942_v58 = vrot.slane %v20941_v21, 5  ;;  %v20945_v61 = vrot.slane %v20944_v34, 5  ;;  %v2580_v13 = vld [vmem:[#allocation2 + $0x54] sm:$0xe] }
 0x1e1   : > { %v16948_v51 = vsel %vm14997_vm10, %v12304_v50, %v20937_v37  ;;  %v1965_v62 = vsel %vm15143_vm14, %v1960_v45, %v1964_v57  ;;  %v20947_v60 = vrot.slane %v20946_v15, 5  ;;  %v3459_v57 = vsel %vm3423_vm15, %v12329_v2, %v2886_v1  ;;  %v20948_v45 = vld [vmem:[#allocation30_spill] sm:$0xff]  ;;  %v14593_v21 = vld [vmem:[#allocation2 + $0x68] sm:$0x1]  ;;  %v14605_v63 = vld [vmem:[#allocation2 + $0x9c] sm:$0xf] }
 0x1e2   : > { %v16955_v6 = vsel %vm14997_vm10, %v20940_v5, %v20939_v35  ;;  %v16962_v40 = vsel %vm14997_vm10, %v20943_v38, %v20942_v58  ;;  %v16974_v43 = vsel %vm14997_vm10, %v12305_v26, %v20945_v61  ;;  %v16976_v59 = vcombine.low %v1955_v29, %v1965_v62  ;;  %v3062_v35 = vpop.permute.xlu1 %3061  ;;  %v14606_v50 = vld [vmem:[#allocation2 + $0xa0] sm:$0xf]  ;;  %v14607_v7 = vld [vmem:[#allocation2 + $0xa4] sm:$0x1] }
 0x1e3   : > { %v16984_v52 = vsel %vm14997_vm10, %v12306_v27, %v20947_v60  ;;  %v2683_v18 = vrot.slane %v14592_v30, 5  ;;  %v20949_v26 = vrot.slane %v20948_v45, 5  ;;  %v3496_v37 = vsel %vm3472_vm2, %v3459_v57, %v2966_v19  ;;  %v14595_v57 = vld [vmem:[#allocation2 + $0x74] sm:$0x1] }
 0x1e4   : > { %v3589_v47 = vsel %vm3423_vm15, %v16845_v54, %v3190_v25  ;;  %v12307_v5 = vrot.slane %v2580_v13, 9  ;;  %v2686_v58 = vrot.slane %v14593_v21, 5  ;;  %v17009_v19 = vsel %vm3505_vm3, %v3496_v37, %v3062_v35  ;;  %v14594_v25 = vld [vmem:[#allocation2 + $0x70] sm:$0xf]  ;;  %v14596_v37 = vld [vmem:[#allocation2 + $0x7c] sm:$0xf] }
 0x1e5   : > { %v16993_v29 = vsel %vm14997_vm10, %v2678_v33, %v20949_v26  ;;  %v3625_v1 = vsel %vm3472_vm2, %v3589_v47, %v3286_v20  ;;  %v2685_v27 = vrot.slane %v2683_v18, 4  ;;  %v20951_v33 = vrot.slane %v20930_v28, 5  ;;  %20952 = vst [vmem:[#allocation45_spill] sm:$0xff] %v17009_v19  ;;  %v2581_v20 = vld [vmem:[#allocation2 + $0x60] sm:$0xe] }
 0x1e6   : > { %v3366_v2 = vpop.permute.xlu0 %3365  ;;  %v2690_v28 = vrot.slane %v14594_v25, 5  ;;  %v12308_v61 = vrot.slane %v2581_v20, 9  ;;  %v2693_v30 = vrot.slane %v14595_v57, 5  ;;  %v2888_v26 = vpop.permute.xlu1 %2887  ;;  %v2697_v47 = vrot.slane %v14596_v37, 5  ;;  %v2582_v35 = vld [vmem:[#allocation2 + $0x6c] sm:$0xe] }
 0x1e7   : > { %v17000_v38 = vsel %vm3505_vm3, %v3625_v1, %v3366_v2  ;;  %v17006_v62 = vsel %vm14997_vm10, %v12307_v5, %v20951_v33  ;;  %v17019_v34 = vsel %vm14997_vm10, %v2685_v27, %v2686_v58  ;;  %v12309_v1 = vrot.slane %v2582_v35, 9  ;;  %v14597_v2 = vld [vmem:[#allocation2 + $0x90] sm:$0xf]  ;;  %v14598_v27 = vld [vmem:[#allocation2 + $0x94] sm:$0xf] }
 0x1e8   : > { %20950 = vst [vmem:[#allocation37_spill] sm:$0xff] %v17000_v38  ;;  %5412 = vmatprep.mubr.bf16.mxu0 %v17000_v38  ;;  %5798 = vmatprep.mubr.bf16.mxu1 %v17000_v38  ;;  %v17023_v15 = vsel %vm14997_vm10, %v12308_v61, %v2683_v18  ;;  %v2692_v60 = vrot.slane %v2690_v28, 4  ;;  %v12330_v18 = vcombine.low %v14597_v2, %v14598_v27  ;;  %v2699_v58 = vrot.slane %v2697_v47, 4  ;;  %v14599_v33 = vld [vmem:[#allocation2 + $0x80] sm:$0x1]  ;;  %v20957_v38 = vld [vmem:[#allocation55_spill] sm:$0xff] }
 0x1e9   : > { %5413 = vmatmul.mubr.bf16.gmra.mrb[44].mxu0 %v17009_v19  ;;  %5799 = vmatmul.mubr.bf16.gmra.mrb[44].mxu1 %v17009_v19  ;;  %v17033_v21 = vsel %vm14997_vm10, %v12309_v1, %v2690_v28  ;;  %v2700_v25 = vrot.slane %v14599_v33, 5  ;;  %v2583_v35 = vld [vmem:[#allocation2 + $0x78] sm:$0xe]  ;;  %vm5195_vm4 = vcmask 269312   ;;  %vm8336_vm5 = vsmask.f32 7424 }
 0x1ea   : > { %v3192_v13 = vpop.permute.xlu0 %3191  ;;  %v17029_v5 = vsel %vm14997_vm10, %v2692_v60, %v2693_v30  ;;  %v2968_v20 = vpop.permute.xlu1 %2967  ;;  %v3462_v37 = vsel %vm3423_vm15, %v12330_v18, %v2888_v26  ;;  %v14600_v60 = vld [vmem:[#allocation2 + $0x88] sm:$0xf]  ;;  %v12310_v27 = vrot.slane %v2583_v35, 9  ;;  %vm8354_vm6 = vcmask 1046528  }
 0x1eb   : > { %v2704_v30 = vrot.slane %v14600_v60, 5  ;;  %v17040_v2 = vsel %vm14997_vm10, %v2699_v58, %v2700_v25  ;;  %v3498_v28 = vsel %vm3472_vm2, %v3462_v37, %v2968_v20  ;;  %v3592_v1 = vsel %vm3423_vm15, %v16872_v10, %v3192_v13  ;;  %v14601_v60 = vld [vmem:[#allocation2 + $0x8c] sm:$0x1]  ;;  %v14602_v10 = vld [vmem:[#allocation2 + $0x94] sm:$0xf] }
 0x1ec   : > { %v17048_v26 = vsel %vm14997_vm10, %v12310_v27, %v2697_v47  ;;  %v2707_v54 = vrot.slane %v14601_v60, 5  ;;  %v2711_v13 = vrot.slane %v14602_v10, 5  ;;  %v2584_v47 = vld [vmem:[#allocation2 + $0x84] sm:$0xe]  ;;  %v14603_v27 = vld [vmem:[#allocation2 + $0x98] sm:$0x1] }
 0x1ed   : > { %v2706_v18 = vrot.slane %v2704_v30, 4  ;;  %v14604_v60 = vld [vmem:[#allocation2 + $0xa0] sm:$0xf]  ;;  %v2585_v25 = vld [vmem:[#allocation2 + $0x90] sm:$0xe]  ;;  %vm8518_vm7 = vcmask 1042434  }
 0x1ee   : > { %v3288_v57 = vpop.permute.xlu0 %3287  ;;  %v3064_v33 = vpop.permute.xlu1 %3063  ;;  %v2713_v35 = vrot.slane %v2711_v13, 4  ;;  %v2718_v10 = vrot.slane %v14604_v60, 5  ;;  %vm8521_vm8 = vcmask 1043459   ;;  %vm8524_vm9 = vcmask 1044484  }
 0x1ef   : > { %v3627_v45 = vsel %vm3472_vm2, %v3592_v1, %v3288_v57  ;;  %v17056_v20 = vsel %vm3505_vm3, %v3498_v28, %v3064_v33  ;;  %v2714_v28 = vrot.slane %v14603_v27, 5  ;;  %v2721_v1 = vrot.slane %v14607_v7, 5 }
 0x1f0   : > { %20954 = vst [vmem:[#allocation49_spill] sm:$0xff] %v17056_v20  ;;  %v2720_v27 = vrot.slane %v2718_v10, 4  ;;  %vm8527_vm11 = vcmask 1045509   ;;  %vm8530_vm12 = vcmask 1046534   ;;  %vm8533_vm13 = vcmask 1047559  }
 0x1f1   : > { %vm9248_vm14 = vcmask 793600   ;;  %vm10158_vm0 = vcmask 130048  }
 0x1f2   : > { %v2890_v57 = vpop.permute.xlu1 %2889 }
 0x1fe   : > { %v3368_v61 = vpop.permute.xlu0 %3367 }
 0x1ff   : > { %v17051_v58 = vsel %vm3505_vm3, %v3627_v45, %v3368_v61  ;;  %v17064_v45 = vsel %vm14997_vm10, %v2706_v18, %v2707_v54  ;;  %v12311_v61 = vrot.slane %v2584_v47, 9  ;;  %v17074_v54 = vsel %vm14997_vm10, %v2713_v35, %v2714_v28  ;;  %v2970_v18 = vpop.permute.xlu1 %2969  ;;  %v14608_v28 = vld [vmem:[#allocation2 + $0xac] sm:$0xf] }
 0x200   : > { %20953 = vst [vmem:[#allocation40_spill] sm:$0xff] %v17051_v58  ;;  %5422 = vmatprep.mubr.bf16.mxu0 %v17051_v58  ;;  %5808 = vmatprep.mubr.bf16.mxu1 %v17051_v58  ;;  %v12312_v47 = vrot.slane %v2585_v25, 9  ;;  %v2725_v23 = vrot.slane %v14608_v28, 5  ;;  %v2586_v25 = vld [vmem:[#allocation2 + $0x9c] sm:$0xe] }
 0x201   : > { %5423 = vmatmul.mubr.bf16.gmra.mrb[48].mxu0 %v17056_v20  ;;  %5809 = vmatmul.mubr.bf16.gmra.mrb[48].mxu1 %v17056_v20  ;;  %v17068_v37 = vsel %vm14997_vm10, %v12311_v61, %v2704_v30  ;;  %v12331_v30 = vcombine.low %v14605_v63, %v14606_v50  ;;  %v17085_v50 = vsel %vm14997_vm10, %v2720_v27, %v2721_v1  ;;  %v12313_v7 = vrot.slane %v2586_v25, 9  ;;  %v14609_v28 = vld [vmem:[#allocation2 + $0xb0] sm:$0x1] }
 0x202   : > { %v3194_v33 = vpop.permute.xlu0 %3193  ;;  %v17078_v61 = vsel %vm14997_vm10, %v12312_v47, %v2711_v13  ;;  %v2728_v1 = vrot.slane %v14609_v28, 5  ;;  %v2742_v28 = vrot.slane %v20957_v38, 5 }
 0x203   : > { %v3465_v32 = vsel %vm3423_vm15, %v12331_v30, %v2890_v57  ;;  %v3066_v35 = vpop.permute.xlu1 %3065  ;;  %v3595_v13 = vsel %vm3423_vm15, %v16896_v11, %v3194_v33  ;;  %v17096_v57 = vsel %vm14997_vm10, %v12313_v7, %v2718_v10  ;;  %v2727_v30 = vrot.slane %v2725_v23, 4  ;;  %v2587_v33 = vld [vmem:[#allocation2 + $0xa8] sm:$0xe]  ;;  %v14612_v11 = vld [vmem:[#allocation2 + $0xc4] sm:$0xf] }
 0x204   : > { %v3500_v63 = vsel %vm3472_vm2, %v3465_v32, %v2970_v18  ;;  %v12314_v18 = vrot.slane %v2587_v33, 9 }
 0x205   : > { %v17099_v27 = vsel %vm3505_vm3, %v3500_v63, %v3066_v35  ;;  %v17109_v10 = vsel %vm14997_vm10, %v2727_v30, %v2728_v1  ;;  %v2588_v30 = vld [vmem:[#allocation2 + $0xb4] sm:$0xe] }
 0x206   : > { %v3290_v22 = vpop.permute.xlu0 %3289  ;;  %20956 = vst [vmem:[#allocation51_spill] sm:$0xff] %v17099_v27  ;;  %v17113_v25 = vsel %vm14997_vm10, %v12314_v18, %v2725_v23  ;;  %v12315_v23 = vrot.slane %v2588_v30, 9  ;;  %v14615_v30 = vld [vmem:[#allocation2 + $0xd0] sm:$0xf] }
 0x207   : > { %v3629_v47 = vsel %vm3472_vm2, %v3595_v13, %v3290_v22  ;;  %v2892_v32 = vpop.permute.xlu1 %2891  ;;  %v14610_v22 = vld [vmem:[#allocation2 + $0xb8] sm:$0xf]  ;;  %v14611_v13 = vld [vmem:[#allocation2 + $0xbc] sm:$0x1]  ;;  %v2746_v8 = vrot.slane %v14615_v30, 5 }
 0x208   : > { %v2735_v7 = vrot.slane %v14611_v13, 5 }
 0x20b   : > { %v2972_v35 = vpop.permute.xlu1 %2971 }
 0x20f   : > { %v3068_v33 = vpop.permute.xlu1 %3067 }
 0x214   : > { %v3370_v20 = vpop.permute.xlu0 %3369 }
 0x215   : > { %v17092_v60 = vsel %vm3505_vm3, %v3629_v47, %v3370_v20  ;;  %v2732_v20 = vrot.slane %v14610_v22, 5  ;;  %v2739_v22 = vrot.slane %v14612_v11, 5 }
 0x216   : > { %20955 = vst [vmem:[#allocation32_spill] sm:$0xff] %v17092_v60  ;;  %5432 = vmatprep.mubr.bf16.mxu0 %v17092_v60  ;;  %5818 = vmatprep.mubr.bf16.mxu1 %v17092_v60  ;;  %v14614_v60 = vld [vmem:[#allocation2 + $0xac] sm:$0xf] }
 0x217   : > { %5433 = vmatmul.mubr.bf16.gmra.mrb[52].mxu0 %v17099_v27  ;;  %5819 = vmatmul.mubr.bf16.gmra.mrb[52].mxu1 %v17099_v27  ;;  %v2734_v63 = vrot.slane %v2732_v20, 4  ;;  %v14613_v27 = vld [vmem:[#allocation2 + $0xa8] sm:$0xf]  ;;  %v17123_v13 = vsel %vm14997_vm10, %v12315_v23, %v2732_v20  ;;  %v2741_v19 = vrot.slane %v2739_v22, 4  ;;  %v2589_v23 = vld [vmem:[#allocation2 + $0xc0] sm:$0xe] }
 0x218   : > { %v3196_v47 = vpop.permute.xlu0 %3195  ;;  %v12332_v58 = vcombine.low %v14613_v27, %v14614_v60 }
 0x219   : > { %v17119_v1 = vsel %vm14997_vm10, %v2734_v63, %v2735_v7  ;;  %v3598_v63 = vsel %vm3423_vm15, %v16931_v17, %v3196_v47  ;;  %v17135_v38 = vsel %vm14997_vm10, %v2741_v19, %v2742_v28  ;;  %v2748_v19 = vrot.slane %v2746_v8, 4 }
 0x21a   : > { %v3468_v11 = vsel %vm3423_vm15, %v12332_v58, %v2892_v32  ;;  %v12459_v60 = vcombine.low %v17123_v13, %v17119_v1  ;;  %v12316_v32 = vrot.slane %v2589_v23, 9  ;;  %v3970_v1 = vld [vmem:[#allocation6 + $0x768] sm:$0x11]  ;;  %v3969_v13 = vld [vmem:[#allocation6 + $0x760] sm:$0x11] }
 0x21b   : > { %v3502_v27 = vsel %vm3472_vm2, %v3468_v11, %v2972_v35  ;;  %v2894_v7 = vpop.permute.xlu1 %2893 }
 0x21c   : > { %v3292_v18 = vpop.permute.xlu0 %3291  ;;  %v17141_v35 = vsel %vm3505_vm3, %v3502_v27, %v3068_v33  ;;  %v17149_v17 = vsel %vm14997_vm10, %v12316_v32, %v2739_v22 }
 0x21d   : > { %v3631_v31 = vsel %vm3472_vm2, %v3598_v63, %v3292_v18  ;;  %20959 = vst [vmem:[#allocation52_spill] sm:$0xff] %v17141_v35  ;;  %v12460_v28 = vcombine.low %v17149_v17, %v17135_v38  ;;  %v20960_v18 = vcombine.low %v20917_v3, %v16541_v14  ;;  %v2590_v63 = vld [vmem:[#allocation2 + $0xcc] sm:$0xe]  ;;  %v14140_v38 = vld [vmem:[#allocation6 + $0x690] ss:$52 sps:$4 sm:$0xff]   ;;  %v12703_v17 = vcombine.high %v3970_v1, %v3970_v1 }
 0x21e   : > { %v12317_v22 = vrot.slane %v2590_v63, 9 }
 0x21f   : > { %v2974_v33 = vpop.permute.xlu1 %2973  ;;  %v3471_v11 = vsel %vm3423_vm15, %v20960_v18, %v2894_v7  ;;  %v14055_v18 = vld [vmem:[#allocation6 + $0x7c] ss:$52 sps:$4 sm:$0xff]  }
 0x220   : > { %v17167_v32 = vsel %vm14997_vm10, %v12317_v22, %v2746_v8  ;;  %v20963_v8 = vcombine.low %v16914_v55, %v16903_v41  ;;  %v14052_v41 = vld [vmem:[#allocation6 + $0xec] ss:$52 sps:$4 sm:$0xff]   ;;  %v14050_v22 = vld [vmem:[#allocation6 + $0xe8] ss:$52 sps:$4 sm:$0xff]  }
 0x221   : > { %v14053_v55 = vld [vmem:[#allocation6 + $0x78] ss:$52 sps:$4 sm:$0xff]  }
 0x223   : > { %v3070_v23 = vpop.permute.xlu1 %3069 }
 0x22a   : > { %v3372_v20 = vpop.permute.xlu0 %3371 }
 0x22b   : > { %v17138_v58 = vsel %vm3505_vm3, %v3631_v31, %v3372_v20  ;;  %v2749_v31 = vrot.slane %v16694_v9, 5  ;;  %v3504_v20 = vsel %vm3472_vm2, %v3471_v11, %v2974_v33  ;;  %v14047_v33 = vld [vmem:[#allocation6 + $0x10] ss:$52 sps:$4 sm:$0xff]   ;;  %v14044_v11 = vld [vmem:[#allocation6 + $0x80] ss:$52 sps:$4 sm:$0xff]  }
 0x22c   : > { %20958 = vst [vmem:[#allocation28_spill] sm:$0xff] %v17138_v58  ;;  %5442 = vmatprep.mubr.bf16.mxu0 %v17138_v58  ;;  %5828 = vmatprep.mubr.bf16.mxu1 %v17138_v58 }
 0x22d   : > { %5443 = vmatmul.mubr.bf16.gmra.mrb[56].mxu0 %v17141_v35  ;;  %5829 = vmatmul.mubr.bf16.gmra.mrb[56].mxu1 %v17141_v35  ;;  %v17160_v30 = vsel %vm14997_vm10, %v2748_v19, %v2749_v31  ;;  %v17176_v31 = vsel %vm3505_vm3, %v3504_v20, %v3070_v23  ;;  %v14061_v20 = vld [vmem:[#allocation6 + $0xe4] ss:$52 sps:$4 sm:$0xff]   ;;  %v14059_v23 = vld [vmem:[#allocation6 + $0xe0] ss:$52 sps:$4 sm:$0xff]   ;;  %vm8536_vm10 = vcmask 1041409  }
 0x22e   : > { %v3198_v47 = vpop.permute.xlu0 %3197  ;;  %v12461_v7 = vcombine.low %v17167_v32, %v17160_v30  ;;  %20962 = vst [vmem:[#allocation19_spill] sm:$0xff] %v17176_v31  ;;  %v14148_v30 = vld [vmem:[#allocation6 + $0x6fc] ss:$52 sps:$4 sm:$0xff]   ;;  %v12701_v32 = vcombine.high %v3969_v13, %v3969_v13 }
 0x22f   : > { %v3601_v9 = vsel %vm3423_vm15, %v16976_v59, %v3198_v47  ;;  %v17188_v59 = vsel %vm3423_vm15, %v20963_v8, 1065369472  ;;  %v14046_v47 = vld [vmem:[#allocation6 + $0x84] ss:$52 sps:$4 sm:$0xff]  }
 0x232   : > { %v3294_v27 = vpop.permute.xlu0 %3293 }
 0x233   : > { %v3633_v14 = vsel %vm3472_vm2, %v3601_v9, %v3294_v27  ;;  %v20964_v27 = vcombine.low %v16708_v48, %v16921_v24  ;;  %v14058_v9 = vld [vmem:[#allocation6 + $0x154] ss:$52 sps:$4 sm:$0xff]   ;;  %v14056_v48 = vld [vmem:[#allocation6 + $0x150] ss:$52 sps:$4 sm:$0xff]  }
 0x234   : > { %v14064_v24 = vld [vmem:[#allocation6 + $0x1bc] ss:$52 sps:$4 sm:$0xff]  }
 0x235   : > { %v17200_v63 = vsel %vm3423_vm15, %v20964_v27, 1065369472  ;;  %v20966_v27 = vcombine.low %v16974_v43, %v16955_v6  ;;  %v14080_v6 = vld [vmem:[#allocation6 + $0x2f0] ss:$52 sps:$4 sm:$0xff]  }
 0x236   : > { %v3374_v3 = vpop.permute.xlu0 %3373  ;;  %v14088_v43 = vld [vmem:[#allocation6 + $0x35c] ss:$52 sps:$4 sm:$0xff]  }
 0x237   : > { %v17173_v19 = vsel %vm3505_vm3, %v3633_v14, %v3374_v3  ;;  %v14067_v14 = vld [vmem:[#allocation6 + $0x14c] ss:$52 sps:$4 sm:$0xff]   ;;  %v14065_v3 = vld [vmem:[#allocation6 + $0x148] ss:$52 sps:$4 sm:$0xff]  }
 0x238   : > { %20961 = vst [vmem:[#allocation54_spill] sm:$0xff] %v17173_v19  ;;  %5452 = vmatprep.mubr.bf16.mxu0 %v17173_v19  ;;  %5838 = vmatprep.mubr.bf16.mxu1 %v17173_v19 }
 0x239   : > { %5453 = vmatmul.mubr.bf16.gmra.mrb[60].mxu0 %v17176_v31  ;;  %5839 = vmatmul.mubr.bf16.gmra.mrb[60].mxu1 %v17176_v31 }
 0x23a   : > { %5495 = vmatprep.mubr.bf16.mxu0 %v20912_v56  ;;  %5881 = vmatprep.mubr.bf16.mxu1 %v20912_v56 }
 0x241   : > { %12709 = vmatmul.mubr.msk.bf16.vlgmr.msra.gmra.mrb[0].mxu0 %vm5195_vm4, %v17188_v59  ;;  %12725 = vmatmul.mubr.msk.bf16.vlgmr.msra.gmra.mrb[0].mxu1 %vm5195_vm4, %v17188_v59 }
 0x242   : > { %6429 = vmatpush1.bf16.msra.mxu1 %v14041_v36  ;;  %5505 = vmatprep.mubr.bf16.mxu0 %v20912_v56  ;;  %v20965_v36 = vcombine.low %v16948_v51, %v16938_v12  ;;  %v14068_v12 = vld [vmem:[#allocation6 + $0x220] ss:$52 sps:$4 sm:$0xff]  }
 0x243   : > { %5891 = vmatprep.mubr.bf16.mxu1 %v20912_v56  ;;  %6430 = vmatprep.subr.bf16.mxu1 %v14046_v47  ;;  %v14062_v47 = vld [vmem:[#allocation6 + $0x1b8] ss:$52 sps:$4 sm:$0xff]  }
 0x244   : > { %6043 = vmatpush1.bf16.msra.mxu0 %v14047_v33  ;;  %v17212_v8 = vsel %vm3423_vm15, %v20965_v36, 1065369472  ;;  %v14073_v33 = vld [vmem:[#allocation6 + $0x1b4] ss:$52 sps:$4 sm:$0xff]   ;;  %v14076_v51 = vld [vmem:[#allocation6 + $0x28c] ss:$52 sps:$4 sm:$0xff]  }
 0x245   : > { %6044 = vmatprep.subr.bf16.mxu0 %v14055_v18  ;;  %v14070_v18 = vld [vmem:[#allocation6 + $0x224] ss:$52 sps:$4 sm:$0xff]  }
 0x246   : > { %6431 = vmatpush1.bf16.msra.mxu1 %v14044_v11  ;;  %v14071_v11 = vld [vmem:[#allocation6 + $0x1b0] ss:$52 sps:$4 sm:$0xff]  }
 0x247   : > { %6432 = vmatprep.subr.bf16.mxu1 %v14052_v41  ;;  %v14079_v41 = vld [vmem:[#allocation6 + $0x21c] ss:$52 sps:$4 sm:$0xff]  }
 0x248   : > { %6045 = vmatpush1.bf16.msra.mxu0 %v14053_v55  ;;  %v14077_v55 = vld [vmem:[#allocation6 + $0x218] ss:$52 sps:$4 sm:$0xff]  }
 0x249   : > { %12710 = vmatmul.mubr.msk.bf16.gmra.mrb[4].mxu0 %vm5195_vm4, %v17200_v63  ;;  %12726 = vmatmul.mubr.msk.bf16.gmra.mrb[4].mxu1 %vm5195_vm4, %v17200_v63 }
 0x24a   : > { %5515 = vmatprep.mubr.bf16.mxu0 %v20912_v56  ;;  %5901 = vmatprep.mubr.bf16.mxu1 %v20912_v56 }
 0x24b   : > { %6433 = vmatpush1.bf16.msra.mxu1 %v14050_v22  ;;  %6046 = vmatprep.subr.bf16.mxu0 %v14061_v20  ;;  %v17224_v22 = vsel %vm3423_vm15, %v20966_v27, 1065369472  ;;  %v14074_v20 = vld [vmem:[#allocation6 + $0x288] ss:$52 sps:$4 sm:$0xff]  }
 0x24c   : > { %6434 = vmatprep.subr.bf16.mxu1 %v14058_v9  ;;  %6047 = vmatpush1.bf16.msra.mxu0 %v14059_v23  ;;  %v14085_v9 = vld [vmem:[#allocation6 + $0x284] ss:$52 sps:$4 sm:$0xff]   ;;  %v14082_v23 = vld [vmem:[#allocation6 + $0x2f4] ss:$52 sps:$4 sm:$0xff]  }
 0x24d   : > { %6048 = vmatprep.subr.bf16.mxu0 %v14067_v14  ;;  %v14083_v14 = vld [vmem:[#allocation6 + $0x280] ss:$52 sps:$4 sm:$0xff]   ;;  %v14098_v27 = vld [vmem:[#allocation6 + $0x428] ss:$52 sps:$4 sm:$0xff]  }
 0x24f   : > { %6435 = vmatpush1.bf16.msra.mxu1 %v14056_v48  ;;  %v14091_v48 = vld [vmem:[#allocation6 + $0x2ec] ss:$52 sps:$4 sm:$0xff]  }
 0x250   : > { %6436 = vmatprep.subr.bf16.mxu1 %v14064_v24  ;;  %6049 = vmatpush1.bf16.msra.mxu0 %v14065_v3  ;;  %v14089_v24 = vld [vmem:[#allocation6 + $0x2e8] ss:$52 sps:$4 sm:$0xff]   ;;  %v20967_v3 = vcombine.low %v16984_v52, %v16962_v40  ;;  %v14092_v40 = vld [vmem:[#allocation6 + $0x3c0] ss:$52 sps:$4 sm:$0xff]  }
 0x251   : > { %12711 = vmatmul.mubr.msk.bf16.gmra.mrb[8].mxu0 %vm5195_vm4, %v17212_v8  ;;  %12727 = vmatmul.mubr.msk.bf16.gmra.mrb[8].mxu1 %vm5195_vm4, %v17212_v8  ;;  %v14100_v52 = vld [vmem:[#allocation6 + $0x42c] ss:$52 sps:$4 sm:$0xff]  }
 0x252   : > { %5525 = vmatprep.mubr.bf16.mxu0 %v20912_v56  ;;  %5911 = vmatprep.mubr.bf16.mxu1 %v20912_v56  ;;  %v17236_v36 = vsel %vm3423_vm15, %v20967_v3, 1065369472  ;;  %v14121_v3 = vld [vmem:[#allocation6 + $0x4f4] ss:$52 sps:$4 sm:$0xff]  }
 0x253   : > { %6437 = vmatpush1.bf16.msra.mxu1 %v14062_v47  ;;  %6050 = vmatprep.subr.bf16.mxu0 %v14073_v33  ;;  %v14086_v47 = vld [vmem:[#allocation6 + $0x358] ss:$52 sps:$4 sm:$0xff]   ;;  %v14097_v33 = vld [vmem:[#allocation6 + $0x354] ss:$52 sps:$4 sm:$0xff]  }
 0x254   : > { %6438 = vmatprep.subr.bf16.mxu1 %v14070_v18  ;;  %6051 = vmatpush1.bf16.msra.mxu0 %v14071_v11  ;;  %v14094_v18 = vld [vmem:[#allocation6 + $0x3c4] ss:$52 sps:$4 sm:$0xff]  }
 0x255   : > { %6052 = vmatprep.subr.bf16.mxu0 %v14079_v41  ;;  %v14095_v11 = vld [vmem:[#allocation6 + $0x350] ss:$52 sps:$4 sm:$0xff]  }
 0x256   : > { %v14103_v41 = vld [vmem:[#allocation6 + $0x3bc] ss:$52 sps:$4 sm:$0xff]  }
 0x257   : > { %6439 = vmatpush1.bf16.msra.mxu1 %v14068_v12  ;;  %v14101_v12 = vld [vmem:[#allocation6 + $0x3b8] ss:$52 sps:$4 sm:$0xff]  }
 0x258   : > { %6440 = vmatprep.subr.bf16.mxu1 %v14076_v51  ;;  %6053 = vmatpush1.bf16.msra.mxu0 %v14077_v55  ;;  %v20968_v51 = vcombine.low %v17006_v62, %v16993_v29  ;;  %v14104_v29 = vld [vmem:[#allocation6 + $0x490] ss:$52 sps:$4 sm:$0xff]  }
 0x259   : > { %12712 = vmatmul.mubr.msk.bf16.gmra.mrb[12].mxu0 %vm5195_vm4, %v17224_v22  ;;  %12728 = vmatmul.mubr.msk.bf16.gmra.mrb[12].mxu1 %vm5195_vm4, %v17224_v22  ;;  %v14112_v62 = vld [vmem:[#allocation6 + $0x4fc] ss:$52 sps:$4 sm:$0xff]  }
 0x25a   : > { %5535 = vmatprep.mubr.bf16.mxu0 %v20912_v56  ;;  %5921 = vmatprep.mubr.bf16.mxu1 %v20912_v56  ;;  %v17248_v55 = vsel %vm3423_vm15, %v20968_v51, 1065369472  ;;  %v14130_v51 = vld [vmem:[#allocation6 + $0x634] ss:$52 sps:$4 sm:$0xff]  }
 0x25b   : > { %6441 = vmatpush1.bf16.msra.mxu1 %v14074_v20  ;;  %6054 = vmatprep.subr.bf16.mxu0 %v14085_v9  ;;  %v14109_v20 = vld [vmem:[#allocation6 + $0x424] ss:$52 sps:$4 sm:$0xff]   ;;  %v14106_v9 = vld [vmem:[#allocation6 + $0x494] ss:$52 sps:$4 sm:$0xff]  }
 0x25c   : > { %6442 = vmatprep.subr.bf16.mxu1 %v14082_v23  ;;  %6055 = vmatpush1.bf16.msra.mxu0 %v14083_v14  ;;  %v14107_v23 = vld [vmem:[#allocation6 + $0x420] ss:$52 sps:$4 sm:$0xff]  }
 0x25d   : > { %6056 = vmatprep.subr.bf16.mxu0 %v14091_v48  ;;  %v14115_v14 = vld [vmem:[#allocation6 + $0x48c] ss:$52 sps:$4 sm:$0xff]   ;;  %v14113_v48 = vld [vmem:[#allocation6 + $0x488] ss:$52 sps:$4 sm:$0xff]  }
 0x25f   : > { %6443 = vmatpush1.bf16.msra.mxu1 %v14080_v6  ;;  %v20969_v6 = vcombine.low %v17023_v15, %v17019_v34  ;;  %v14116_v34 = vld [vmem:[#allocation6 + $0x560] ss:$52 sps:$4 sm:$0xff]  }
 0x260   : > { %6444 = vmatprep.subr.bf16.mxu1 %v14088_v43  ;;  %6057 = vmatpush1.bf16.msra.mxu0 %v14089_v24  ;;  %v14110_v24 = vld [vmem:[#allocation6 + $0x4f8] ss:$52 sps:$4 sm:$0xff]  }
 0x261   : > { %12713 = vmatmul.mubr.msk.bf16.gmra.mrb[16].mxu0 %vm5195_vm4, %v17236_v36  ;;  %12729 = vmatmul.mubr.msk.bf16.gmra.mrb[16].mxu1 %vm5195_vm4, %v17236_v36  ;;  %v17260_v43 = vsel %vm3423_vm15, %v20969_v6, 1065369472  ;;  %v14124_v15 = vld [vmem:[#allocation6 + $0x5cc] ss:$52 sps:$4 sm:$0xff]   ;;  %v20978_v6 = vld [vmem:[#allocation36_spill] sm:$0xff] }
 0x262   : > { %5545 = vmatprep.mubr.bf16.mxu0 %v20912_v56  ;;  %5931 = vmatprep.mubr.bf16.mxu1 %v20912_v56 }
 0x263   : > { %6445 = vmatpush1.bf16.msra.mxu1 %v14086_v47  ;;  %6058 = vmatprep.subr.bf16.mxu0 %v14097_v33  ;;  %v14118_v47 = vld [vmem:[#allocation6 + $0x564] ss:$52 sps:$4 sm:$0xff]  }
 0x264   : > { %6446 = vmatprep.subr.bf16.mxu1 %v14094_v18  ;;  %6059 = vmatpush1.bf16.msra.mxu0 %v14095_v11  ;;  %v14119_v33 = vld [vmem:[#allocation6 + $0x4f0] ss:$52 sps:$4 sm:$0xff]   ;;  %v14125_v11 = vld [vmem:[#allocation6 + $0x558] ss:$52 sps:$4 sm:$0xff]  }
 0x265   : > { %6060 = vmatprep.subr.bf16.mxu0 %v14103_v41  ;;  %v14127_v18 = vld [vmem:[#allocation6 + $0x55c] ss:$52 sps:$4 sm:$0xff]   ;;  %v20970_v41 = vcombine.low %v17033_v21, %v17029_v5 }
 0x266   : > { %v14128_v5 = vld [vmem:[#allocation6 + $0x630] ss:$52 sps:$4 sm:$0xff]   ;;  %v14134_v21 = vld [vmem:[#allocation6 + $0x628] ss:$52 sps:$4 sm:$0xff]  }
 0x267   : > { %6447 = vmatpush1.bf16.msra.mxu1 %v14092_v40  ;;  %v17272_v40 = vsel %vm3423_vm15, %v20970_v41, 1065369472  ;;  %v14155_v41 = vld [vmem:[#allocation6 + $0x2c] ss:$52 sps:$4 sm:$0xff]  }
 0x268   : > { %6448 = vmatprep.subr.bf16.mxu1 %v14100_v52  ;;  %6061 = vmatpush1.bf16.msra.mxu0 %v14101_v12  ;;  %v14122_v52 = vld [vmem:[#allocation6 + $0x5c8] ss:$52 sps:$4 sm:$0xff]   ;;  %v14133_v12 = vld [vmem:[#allocation6 + $0x5c4] ss:$52 sps:$4 sm:$0xff]  }
 0x269   : > { %12714 = vmatmul.mubr.msk.bf16.gmra.mrb[20].mxu0 %vm5195_vm4, %v17248_v55  ;;  %12730 = vmatmul.mubr.msk.bf16.gmra.mrb[20].mxu1 %vm5195_vm4, %v17248_v55 }
 0x26a   : > { %5555 = vmatprep.mubr.bf16.mxu0 %v20912_v56  ;;  %5941 = vmatprep.mubr.bf16.mxu1 %v20912_v56 }
 0x26b   : > { %6449 = vmatpush1.bf16.msra.mxu1 %v14098_v27  ;;  %6062 = vmatprep.subr.bf16.mxu0 %v14109_v20  ;;  %v14131_v27 = vld [vmem:[#allocation6 + $0x5c0] ss:$52 sps:$4 sm:$0xff]  }
 0x26c   : > { %6450 = vmatprep.subr.bf16.mxu1 %v14106_v9  ;;  %6063 = vmatpush1.bf16.msra.mxu0 %v14107_v23  ;;  %v14136_v20 = vld [vmem:[#allocation6 + $0x62c] ss:$52 sps:$4 sm:$0xff]   ;;  %v14139_v9 = vld [vmem:[#allocation6 + $0x69c] ss:$52 sps:$4 sm:$0xff]   ;;  %v20971_v23 = vcombine.low %v17048_v26, %v17040_v2  ;;  %v20972_v2 = vcombine.low %v17068_v37, %v17064_v45  ;;  %v20974_v45 = vcombine.low %v17096_v57, %v17085_v50  ;;  %v17344_v50 = vsel %vm3423_vm15, %v12459_v60, 1065369472 }
 0x26d   : > { %6064 = vmatprep.subr.bf16.mxu0 %v14115_v14  ;;  %v17356_v57 = vsel %vm3423_vm15, %v12460_v28, 1065369472  ;;  %v14137_v60 = vld [vmem:[#allocation6 + $0x698] ss:$52 sps:$4 sm:$0xff]  }
 0x26e   : > { %v17284_v14 = vsel %vm3423_vm15, %v20971_v23, 1065369472  ;;  %v17296_v26 = vsel %vm3423_vm15, %v20972_v2, 1065369472  ;;  %v17320_v37 = vsel %vm3423_vm15, %v20974_v45, 1065369472 }
 0x26f   : > { %6451 = vmatpush1.bf16.msra.mxu1 %v14104_v29  ;;  %v14142_v29 = vld [vmem:[#allocation6 + $0x694] ss:$52 sps:$4 sm:$0xff]   ;;  %v14145_v28 = vld [vmem:[#allocation6 + $0x704] ss:$52 sps:$4 sm:$0xff]   ;;  %v20986_v23 = vld [vmem:[#allocation35_spill] sm:$0xff] }
 0x270   : > { %6452 = vmatprep.subr.bf16.mxu1 %v14112_v62  ;;  %6065 = vmatpush1.bf16.msra.mxu0 %v14113_v48  ;;  %v20973_v62 = vcombine.low %v17078_v61, %v17074_v54  ;;  %v20975_v54 = vcombine.low %v17113_v25, %v17109_v10  ;;  %v17368_v10 = vsel %vm3423_vm15, %v12461_v7, 1065369472  ;;  %v20976_v25 = vld [vmem:[#allocation39_spill] sm:$0xff]  ;;  %v20988_v2 = vld [vmem:[#allocation13_spill] sm:$0xff] }
 0x271   : > { %12715 = vmatmul.mubr.msk.bf16.gmra.mrb[24].mxu0 %vm5195_vm4, %v17260_v43  ;;  %12731 = vmatmul.mubr.msk.bf16.gmra.mrb[24].mxu1 %vm5195_vm4, %v17260_v43  ;;  %v20977_v7 = vld [vmem:[#allocation47_spill] sm:$0xff]  ;;  %v20990_v45 = vld [vmem:[#allocation37_spill] sm:$0xff] }
 0x272   : > { %5565 = vmatprep.mubr.bf16.mxu0 %v20912_v56  ;;  %5951 = vmatprep.mubr.bf16.mxu1 %v20912_v56  ;;  %v17308_v48 = vsel %vm3423_vm15, %v20973_v62, 1065369472  ;;  %v17332_v61 = vsel %vm3423_vm15, %v20975_v54, 1065369472  ;;  %v20989_v62 = vld [vmem:[#allocation44_spill] sm:$0xff] }
 0x273   : > { %6453 = vmatpush1.bf16.msra.mxu1 %v14110_v24  ;;  %6066 = vmatprep.subr.bf16.mxu0 %v14121_v3  ;;  %v14143_v24 = vld [vmem:[#allocation6 + $0x700] ss:$52 sps:$4 sm:$0xff]   ;;  %v14146_v3 = vld [vmem:[#allocation6 + $0x6f8] ss:$52 sps:$4 sm:$0xff]  }
 0x274   : > { %6454 = vmatprep.subr.bf16.mxu1 %v14118_v47  ;;  %6067 = vmatpush1.bf16.msra.mxu0 %v14119_v33  ;;  %v12702_v47 = vcombine.low %v3970_v1, %v3970_v1  ;;  %v5253_v33 = vand.u32 %v12703_v17, %v16848_v53 }
 0x275   : > { %6068 = vmatprep.subr.bf16.mxu0 %v14127_v18  ;;  %v12700_v18 = vcombine.low %v3969_v13, %v3969_v13 }
 0x277   : > { %6455 = vmatpush1.bf16.msra.mxu1 %v14116_v34  ;;  %v5247_v34 = vand.u32 %v12701_v32, %v16848_v53  ;;  %v20991_v32 = vld [vmem:[#allocation45_spill] sm:$0xff] }
 0x278   : > { %6456 = vmatprep.subr.bf16.mxu1 %v14124_v15  ;;  %6069 = vmatpush1.bf16.msra.mxu0 %v14125_v11  ;;  %v5250_v15 = vand.u32 %v12702_v47, %v16848_v53  ;;  %v5244_v11 = vand.u32 %v12700_v18, %v16848_v53 }
 0x279   : > { %12716 = vmatmul.mubr.msk.bf16.gmra.mrb[28].mxu0 %vm5195_vm4, %v17272_v40  ;;  %12732 = vmatmul.mubr.msk.bf16.gmra.mrb[28].mxu1 %vm5195_vm4, %v17272_v40 }
 0x27a   : > { %5575 = vmatprep.mubr.bf16.mxu0 %v20912_v56  ;;  %5961 = vmatprep.mubr.bf16.mxu1 %v20912_v56 }
 0x27b   : > { %6457 = vmatpush1.bf16.msra.mxu1 %v14122_v52  ;;  %6070 = vmatprep.subr.bf16.mxu0 %v14133_v12  ;;  %v20979_v52 = vld [vmem:[#allocation42_spill] sm:$0xff] }
 0x27c   : > { %6458 = vmatprep.subr.bf16.mxu1 %v14130_v51  ;;  %6071 = vmatpush1.bf16.msra.mxu0 %v14131_v27  ;;  %v14161_v12 = vld [vmem:[#allocation6 + $0x24] ss:$52 sps:$4 sm:$0xff]   ;;  %v20981_v27 = vld [vmem:[#allocation43_spill] sm:$0xff] }
 0x27d   : > { %6072 = vmatprep.subr.bf16.mxu0 %v14136_v20  ;;  %v20980_v51 = vld [vmem:[#allocation38_spill] sm:$0xff] }
 0x27e   : > { %v20982_v20 = vld [vmem:[#allocation46_spill] sm:$0xff] }
 0x27f   : > { %6459 = vmatpush1.bf16.msra.mxu1 %v14128_v5  ;;  %v20983_v5 = vld [vmem:[#allocation48_spill] sm:$0xff] }
 0x280   : > { %6073 = vmatpush1.bf16.msra.mxu0 %v14134_v21  ;;  %6621 = vmatprep.subr.bf16.mxu1 %v14139_v9  ;;  %v20984_v21 = vld [vmem:[#allocation24_spill] sm:$0xff]  ;;  %v20985_v9 = vld [vmem:[#allocation50_spill] sm:$0xff] }
 0x281   : > { %12717 = vmatmul.mubr.msk.bf16.gmra.mrb[32].mxu0 %vm5195_vm4, %v17284_v14  ;;  %12733 = vmatmul.mubr.msk.bf16.gmra.mrb[32].mxu1 %vm5195_vm4, %v17284_v14 }
 0x282   : > { %5585 = vmatprep.mubr.bf16.mxu0 %v20912_v56  ;;  %5971 = vmatprep.mubr.bf16.mxu1 %v20912_v56 }
 0x283   : > { %6235 = vmatprep.subr.bf16.mxu0 %v14142_v29  ;;  %v20987_v29 = vld [vmem:[#allocation53_spill] sm:$0xff] }
 0x289   : > { %12718 = vmatmul.mubr.msk.bf16.gmra.mrb[36].mxu0 %vm5195_vm4, %v17296_v26  ;;  %12734 = vmatmul.mubr.msk.bf16.gmra.mrb[36].mxu1 %vm5195_vm4, %v17296_v26 }
 0x28a   : > { %5595 = vmatprep.mubr.bf16.mxu0 %v20912_v56  ;;  %5981 = vmatprep.mubr.bf16.mxu1 %v20912_v56 }
 0x291   : > { %12719 = vmatmul.mubr.msk.bf16.gmra.mrb[40].mxu0 %vm5195_vm4, %v17308_v48  ;;  %12735 = vmatmul.mubr.msk.bf16.gmra.mrb[40].mxu1 %vm5195_vm4, %v17308_v48 }
 0x292   : > { %5605 = vmatprep.mubr.bf16.mxu0 %v20912_v56  ;;  %5991 = vmatprep.mubr.bf16.mxu1 %v20912_v56 }
 0x299   : > { %12720 = vmatmul.mubr.msk.bf16.gmra.mrb[44].mxu0 %vm5195_vm4, %v17320_v37  ;;  %12736 = vmatmul.mubr.msk.bf16.gmra.mrb[44].mxu1 %vm5195_vm4, %v17320_v37 }
 0x29a   : > { %5615 = vmatprep.mubr.bf16.mxu0 %v20912_v56  ;;  %6001 = vmatprep.mubr.bf16.mxu1 %v20912_v56 }
 0x2a1   : > { %12721 = vmatmul.mubr.msk.bf16.gmra.mrb[48].mxu0 %vm5195_vm4, %v17332_v61  ;;  %12737 = vmatmul.mubr.msk.bf16.gmra.mrb[48].mxu1 %vm5195_vm4, %v17332_v61 }
 0x2a2   : > { %5625 = vmatprep.mubr.bf16.mxu0 %v20912_v56  ;;  %6011 = vmatprep.mubr.bf16.mxu1 %v20912_v56 }
 0x2a9   : > { %12722 = vmatmul.mubr.msk.bf16.gmra.mrb[52].mxu0 %vm5195_vm4, %v17344_v50  ;;  %12738 = vmatmul.mubr.msk.bf16.gmra.mrb[52].mxu1 %vm5195_vm4, %v17344_v50 }
 0x2aa   : > { %5635 = vmatprep.mubr.bf16.mxu0 %v20912_v56  ;;  %6021 = vmatprep.mubr.bf16.mxu1 %v20912_v56 }
 0x2b1   : > { %12723 = vmatmul.mubr.msk.bf16.gmra.mrb[56].mxu0 %vm5195_vm4, %v17356_v57  ;;  %12739 = vmatmul.mubr.msk.bf16.gmra.mrb[56].mxu1 %vm5195_vm4, %v17356_v57 }
 0x2b2   : > { %5645 = vmatprep.mubr.bf16.mxu0 %v20912_v56  ;;  %6031 = vmatprep.mubr.bf16.mxu1 %v20912_v56 }
 0x2b9   : > { %12724 = vmatmul.mubr.msk.bf16.gmra.mrb[60].mxu0 %vm5195_vm4, %v17368_v10  ;;  %12740 = vmatmul.mubr.msk.bf16.gmra.mrb[60].mxu1 %vm5195_vm4, %v17368_v10 }
 0x2ba   : > { %6074 = vmatprep.mubr.bf16.mxu0 %v20976_v25  ;;  %6460 = vmatprep.mubr.bf16.mxu1 %v20976_v25 }
 0x2c1   : > { %6075 = vmatmul.mubr.bf16.vlgmr.msra.gmra.mrb[64].mxu0 %v20977_v7  ;;  %6461 = vmatmul.mubr.bf16.vlgmr.msra.gmra.mrb[64].mxu1 %v20977_v7 }
 0x2c2   : > { %6622 = vmatpush1.bf16.msra.mxu1 %v14137_v60  ;;  %6084 = vmatprep.mubr.bf16.mxu0 %v20978_v6 }
 0x2c3   : > { %6470 = vmatprep.mubr.bf16.mxu1 %v20978_v6  ;;  %6236 = vmatpush1.bf16.msra.mxu0 %v14140_v38 }
 0x2c4   : > { %6623 = vmatprep.subr.bf16.mxu1 %v14145_v28  ;;  %6237 = vmatprep.subr.bf16.mxu0 %v14148_v30 }
 0x2c6   : > { %6624 = vmatpush1.bf16.msra.mxu1 %v14143_v24  ;;  %v20992_v24 = vld [vmem:[#allocation40_spill] sm:$0xff] }
 0x2c7   : > { %6238 = vmatpush1.bf16.msra.mxu0 %v14146_v3  ;;  %6625 = vmatprep.subr.bf16.mxu1 %v5253_v33 }
 0x2c8   : > { %6239 = vmatprep.subr.bf16.mxu0 %v5247_v34 }
 0x2c9   : > { %6085 = vmatmul.mubr.bf16.gmra.mrb[68].mxu0 %v20979_v52  ;;  %6471 = vmatmul.mubr.bf16.gmra.mrb[68].mxu1 %v20979_v52 }
 0x2ca   : > { %6094 = vmatprep.mubr.bf16.mxu0 %v20980_v51  ;;  %6480 = vmatprep.mubr.bf16.mxu1 %v20980_v51 }
 0x2cb   : > { %6626 = vmatpush1.bf16.msra.mxu1 %v5250_v15  ;;  %6240 = vmatpush1.bf16.msra.mxu0 %v5244_v11 }
 0x2cc   : > { %7200 = vmatprep.subr.bf16.mxu1 %v14155_v41  ;;  %6814 = vmatprep.subr.bf16.mxu0 %v14161_v12  ;;  %v20993_v12 = vld [vmem:[#allocation49_spill] sm:$0xff] }
 0x2d1   : > { %6095 = vmatmul.mubr.bf16.gmra.mrb[72].mxu0 %v20981_v27  ;;  %6481 = vmatmul.mubr.bf16.gmra.mrb[72].mxu1 %v20981_v27 }
 0x2d2   : > { %6104 = vmatprep.mubr.bf16.mxu0 %v20982_v20  ;;  %6490 = vmatprep.mubr.bf16.mxu1 %v20982_v20 }
 0x2d9   : > { %6105 = vmatmul.mubr.bf16.gmra.mrb[76].mxu0 %v20983_v5  ;;  %6491 = vmatmul.mubr.bf16.gmra.mrb[76].mxu1 %v20983_v5 }
 0x2da   : > { %6114 = vmatprep.mubr.bf16.mxu0 %v20984_v21  ;;  %6500 = vmatprep.mubr.bf16.mxu1 %v20984_v21 }
 0x2e1   : > { %6115 = vmatmul.mubr.bf16.gmra.mrb[80].mxu0 %v20985_v9  ;;  %6501 = vmatmul.mubr.bf16.gmra.mrb[80].mxu1 %v20985_v9 }
 0x2e2   : > { %6124 = vmatprep.mubr.bf16.mxu0 %v20986_v23  ;;  %6510 = vmatprep.mubr.bf16.mxu1 %v20986_v23 }
 0x2e9   : > { %6125 = vmatmul.mubr.bf16.gmra.mrb[84].mxu0 %v20987_v29  ;;  %6511 = vmatmul.mubr.bf16.gmra.mrb[84].mxu1 %v20987_v29 }
 0x2ea   : > { %6134 = vmatprep.mubr.bf16.mxu0 %v16734_v49  ;;  %6520 = vmatprep.mubr.bf16.mxu1 %v16734_v49 }
 0x2f1   : > { %6135 = vmatmul.mubr.bf16.gmra.mrb[88].mxu0 %v16742_v4  ;;  %6521 = vmatmul.mubr.bf16.gmra.mrb[88].mxu1 %v16742_v4 }
 0x2f2   : > { %6144 = vmatprep.mubr.bf16.mxu0 %v16768_v39  ;;  %6530 = vmatprep.mubr.bf16.mxu1 %v16768_v39 }
 0x2f9   : > { %6145 = vmatmul.mubr.bf16.gmra.mrb[92].mxu0 %v16779_v16  ;;  %6531 = vmatmul.mubr.bf16.gmra.mrb[92].mxu1 %v16779_v16 }
 0x2fa   : > { %6154 = vmatprep.mubr.bf16.mxu0 %v16803_v46  ;;  %6540 = vmatprep.mubr.bf16.mxu1 %v16803_v46 }
 0x301   : > { %6155 = vmatmul.mubr.bf16.gmra.mrb[96].mxu0 %v16835_v44  ;;  %6541 = vmatmul.mubr.bf16.gmra.mrb[96].mxu1 %v16835_v44 }
 0x302   : > { %6164 = vmatprep.mubr.bf16.mxu0 %v16831_v0  ;;  %6550 = vmatprep.mubr.bf16.mxu1 %v16831_v0 }
 0x309   : > { %6165 = vmatmul.mubr.bf16.gmra.mrb[100].mxu0 %v16843_v42  ;;  %6551 = vmatmul.mubr.bf16.gmra.mrb[100].mxu1 %v16843_v42 }
 0x30a   : > { %6174 = vmatprep.mubr.bf16.mxu0 %v20988_v2  ;;  %6560 = vmatprep.mubr.bf16.mxu1 %v20988_v2 }
 0x311   : > { %6175 = vmatmul.mubr.bf16.gmra.mrb[104].mxu0 %v20989_v62  ;;  %6561 = vmatmul.mubr.bf16.gmra.mrb[104].mxu1 %v20989_v62 }
 0x312   : > { %6184 = vmatprep.mubr.bf16.mxu0 %v20990_v45  ;;  %6570 = vmatprep.mubr.bf16.mxu1 %v20990_v45 }
 0x314   : > { %v5497_v54 = vpop.f32.mrb[0].mxu0  ;;  %v5883_v1 = vpop.f32.mrb[0].mxu1 }
 0x315   : > { %7908 = vst [vmem:[%s17425_s29] sm:$0xff] %v5497_v54  ;;  %7910 = vst [vmem:[%s17425_s29 + $0x10] sm:$0xff] %v5883_v1  ;;  %v5499_v13 = vpop.f32.mrb[1].mxu0  ;;  %v5885_v60 = vpop.f32.mrb[1].mxu1  ;;  %v20994_v54 = vld [vmem:[#allocation32_spill] sm:$0xff] }
 0x316   : > { %7909 = vst [vmem:[%s17425_s29 + $0x8] sm:$0xff] %v5499_v13  ;;  %7911 = vst [vmem:[%s17425_s29 + $0x18] sm:$0xff] %v5885_v60  ;;  %v5501_v38 = vpop.f32.mrb[2].mxu0  ;;  %v5887_v17 = vpop.f32.mrb[2].mxu1 }
 0x317   : > { %7921 = vst [vmem:[%s17425_s29 + $0x68] sm:$0xff] %v5501_v38  ;;  %7923 = vst [vmem:[%s17425_s29 + $0x78] sm:$0xff] %v5887_v17  ;;  %v5503_v28 = vpop.f32.mrb[3].mxu0  ;;  %v5889_v30 = vpop.f32.mrb[3].mxu1 }
 0x318   : > { %7922 = vst [vmem:[%s17425_s29 + $0x70] sm:$0xff] %v5503_v28  ;;  %7924 = vst [vmem:[%s17425_s29 + $0x80] sm:$0xff] %v5889_v30 }
 0x319   : > { %6185 = vmatmul.mubr.bf16.gmra.mrb[108].mxu0 %v20991_v32  ;;  %6571 = vmatmul.mubr.bf16.gmra.mrb[108].mxu1 %v20991_v32 }
 0x31a   : > { %6194 = vmatprep.mubr.bf16.mxu0 %v20992_v24  ;;  %6580 = vmatprep.mubr.bf16.mxu1 %v20992_v24 }
 0x31c   : > { %v5507_v3 = vpop.f32.mrb[4].mxu0  ;;  %v5893_v47 = vpop.f32.mrb[4].mxu1 }
 0x31d   : > { %7934 = vst [vmem:[%s17425_s29 + $0xd0] sm:$0xff] %v5507_v3  ;;  %7936 = vst [vmem:[%s17425_s29 + $0xe0] sm:$0xff] %v5893_v47  ;;  %v5509_v33 = vpop.f32.mrb[5].mxu0  ;;  %v5895_v18 = vpop.f32.mrb[5].mxu1  ;;  %v20995_v47 = vld [vmem:[#allocation51_spill] sm:$0xff] }
 0x31e   : > { %7935 = vst [vmem:[%s17425_s29 + $0xd8] sm:$0xff] %v5509_v33  ;;  %7937 = vst [vmem:[%s17425_s29 + $0xe8] sm:$0xff] %v5895_v18  ;;  %v5511_v34 = vpop.f32.mrb[6].mxu0  ;;  %v5897_v15 = vpop.f32.mrb[6].mxu1 }
 0x31f   : > { %7947 = vst [vmem:[%s17425_s29 + $0x138] sm:$0xff] %v5511_v34  ;;  %7949 = vst [vmem:[%s17425_s29 + $0x148] sm:$0xff] %v5897_v15  ;;  %v5513_v11 = vpop.f32.mrb[7].mxu0  ;;  %v5899_v41 = vpop.f32.mrb[7].mxu1 }
 0x320   : > { %7948 = vst [vmem:[%s17425_s29 + $0x140] sm:$0xff] %v5513_v11  ;;  %7950 = vst [vmem:[%s17425_s29 + $0x150] sm:$0xff] %v5899_v41 }
 0x321   : > { %6195 = vmatmul.mubr.bf16.gmra.mrb[112].mxu0 %v20993_v12  ;;  %6581 = vmatmul.mubr.bf16.gmra.mrb[112].mxu1 %v20993_v12 }
 0x322   : > { %6204 = vmatprep.mubr.bf16.mxu0 %v20994_v54  ;;  %6590 = vmatprep.mubr.bf16.mxu1 %v20994_v54 }
 0x324   : > { %v5517_v1 = vpop.f32.mrb[8].mxu0  ;;  %v5903_v13 = vpop.f32.mrb[8].mxu1 }
 0x325   : > { %7960 = vst [vmem:[%s17425_s29 + $0x1a0] sm:$0xff] %v5517_v1  ;;  %7962 = vst [vmem:[%s17425_s29 + $0x1b0] sm:$0xff] %v5903_v13  ;;  %v5519_v60 = vpop.f32.mrb[9].mxu0  ;;  %v5905_v38 = vpop.f32.mrb[9].mxu1 }
 0x326   : > { %7961 = vst [vmem:[%s17425_s29 + $0x1a8] sm:$0xff] %v5519_v60  ;;  %7963 = vst [vmem:[%s17425_s29 + $0x1b8] sm:$0xff] %v5905_v38  ;;  %v5521_v17 = vpop.f32.mrb[10].mxu0  ;;  %v5907_v28 = vpop.f32.mrb[10].mxu1 }
 0x327   : > { %7973 = vst [vmem:[%s17425_s29 + $0x208] sm:$0xff] %v5521_v17  ;;  %7975 = vst [vmem:[%s17425_s29 + $0x218] sm:$0xff] %v5907_v28  ;;  %v5523_v30 = vpop.f32.mrb[11].mxu0  ;;  %v5909_v3 = vpop.f32.mrb[11].mxu1 }
 0x328   : > { %7974 = vst [vmem:[%s17425_s29 + $0x210] sm:$0xff] %v5523_v30  ;;  %7976 = vst [vmem:[%s17425_s29 + $0x220] sm:$0xff] %v5909_v3 }
 0x329   : > { %6205 = vmatmul.mubr.bf16.gmra.mrb[116].mxu0 %v20995_v47  ;;  %6591 = vmatmul.mubr.bf16.gmra.mrb[116].mxu1 %v20995_v47 }
 0x32a   : > { %6214 = vmatprep.mubr.bf16.mxu0 %v17138_v58  ;;  %6600 = vmatprep.mubr.bf16.mxu1 %v17138_v58 }
 0x32c   : > { %v5527_v33 = vpop.f32.mrb[12].mxu0  ;;  %v5913_v18 = vpop.f32.mrb[12].mxu1 }
 0x32d   : > { %7986 = vst [vmem:[%s17425_s29 + $0x270] sm:$0xff] %v5527_v33  ;;  %7988 = vst [vmem:[%s17425_s29 + $0x280] sm:$0xff] %v5913_v18  ;;  %v5529_v34 = vpop.f32.mrb[13].mxu0  ;;  %v5915_v15 = vpop.f32.mrb[13].mxu1 }
 0x32e   : > { %7987 = vst [vmem:[%s17425_s29 + $0x278] sm:$0xff] %v5529_v34  ;;  %7989 = vst [vmem:[%s17425_s29 + $0x288] sm:$0xff] %v5915_v15  ;;  %v5531_v11 = vpop.f32.mrb[14].mxu0  ;;  %v5917_v41 = vpop.f32.mrb[14].mxu1 }
 0x32f   : > { %7999 = vst [vmem:[%s17425_s29 + $0x2d8] sm:$0xff] %v5531_v11  ;;  %8001 = vst [vmem:[%s17425_s29 + $0x2e8] sm:$0xff] %v5917_v41  ;;  %v5533_v1 = vpop.f32.mrb[15].mxu0  ;;  %v5919_v13 = vpop.f32.mrb[15].mxu1 }
 0x330   : > { %8000 = vst [vmem:[%s17425_s29 + $0x2e0] sm:$0xff] %v5533_v1  ;;  %8002 = vst [vmem:[%s17425_s29 + $0x2f0] sm:$0xff] %v5919_v13 }
 0x331   : > { %6215 = vmatmul.mubr.bf16.gmra.mrb[120].mxu0 %v17141_v35  ;;  %6601 = vmatmul.mubr.bf16.gmra.mrb[120].mxu1 %v17141_v35 }
 0x332   : > { %6224 = vmatprep.mubr.bf16.mxu0 %v17173_v19  ;;  %6610 = vmatprep.mubr.bf16.mxu1 %v17173_v19 }
 0x334   : > { %v5537_v60 = vpop.f32.mrb[16].mxu0  ;;  %v5923_v38 = vpop.f32.mrb[16].mxu1 }
 0x335   : > { %8012 = vst [vmem:[%s17425_s29 + $0x340] sm:$0xff] %v5537_v60  ;;  %8014 = vst [vmem:[%s17425_s29 + $0x350] sm:$0xff] %v5923_v38  ;;  %v5539_v17 = vpop.f32.mrb[17].mxu0  ;;  %v5925_v28 = vpop.f32.mrb[17].mxu1  ;;  %v14153_v60 = vld [vmem:[#allocation6 + $0x28] ss:$52 sps:$4 sm:$0xff]  }
 0x336   : > { %8013 = vst [vmem:[%s17425_s29 + $0x348] sm:$0xff] %v5539_v17  ;;  %8015 = vst [vmem:[%s17425_s29 + $0x358] sm:$0xff] %v5925_v28  ;;  %v5541_v30 = vpop.f32.mrb[18].mxu0  ;;  %v5927_v3 = vpop.f32.mrb[18].mxu1  ;;  %v14158_v28 = vld [vmem:[#allocation6 + $0x94] ss:$52 sps:$4 sm:$0xff]  }
 0x337   : > { %8025 = vst [vmem:[%s17425_s29 + $0x3a8] sm:$0xff] %v5541_v30  ;;  %8027 = vst [vmem:[%s17425_s29 + $0x3b8] sm:$0xff] %v5927_v3  ;;  %v5543_v33 = vpop.f32.mrb[19].mxu0  ;;  %v5929_v18 = vpop.f32.mrb[19].mxu1  ;;  %v14159_v30 = vld [vmem:[#allocation6 + $0x20] ss:$52 sps:$4 sm:$0xff]  }
 0x338   : > { %8026 = vst [vmem:[%s17425_s29 + $0x3b0] sm:$0xff] %v5543_v33  ;;  %8028 = vst [vmem:[%s17425_s29 + $0x3c0] sm:$0xff] %v5929_v18  ;;  %v14167_v3 = vld [vmem:[#allocation6 + $0x8c] ss:$52 sps:$4 sm:$0xff]   ;;  %v14156_v33 = vld [vmem:[#allocation6 + $0x90] ss:$52 sps:$4 sm:$0xff]  }
 0x339   : > { %6225 = vmatmul.mubr.bf16.gmra.mrb[124].mxu0 %v17176_v31  ;;  %6611 = vmatmul.mubr.bf16.gmra.mrb[124].mxu1 %v17176_v31  ;;  %v14164_v18 = vld [vmem:[#allocation6 + $0xfc] ss:$52 sps:$4 sm:$0xff]  }
 0x33a   : > { %6267 = vmatprep.mubr.bf16.mxu0 %v20912_v56  ;;  %6653 = vmatprep.mubr.bf16.mxu1 %v20912_v56 }
 0x33c   : > { %v5547_v34 = vpop.f32.mrb[20].mxu0  ;;  %v5933_v15 = vpop.f32.mrb[20].mxu1 }
 0x33d   : > { %8038 = vst [vmem:[%s17425_s29 + $0x410] sm:$0xff] %v5547_v34  ;;  %8040 = vst [vmem:[%s17425_s29 + $0x420] sm:$0xff] %v5933_v15  ;;  %v5549_v11 = vpop.f32.mrb[21].mxu0  ;;  %v5935_v41 = vpop.f32.mrb[21].mxu1 }
 0x33e   : > { %8039 = vst [vmem:[%s17425_s29 + $0x418] sm:$0xff] %v5549_v11  ;;  %8041 = vst [vmem:[%s17425_s29 + $0x428] sm:$0xff] %v5935_v41  ;;  %v5551_v1 = vpop.f32.mrb[22].mxu0  ;;  %v5937_v13 = vpop.f32.mrb[22].mxu1  ;;  %v14165_v11 = vld [vmem:[#allocation6 + $0x88] ss:$52 sps:$4 sm:$0xff]  }
 0x33f   : > { %8051 = vst [vmem:[%s17425_s29 + $0x478] sm:$0xff] %v5551_v1  ;;  %8053 = vst [vmem:[%s17425_s29 + $0x488] sm:$0xff] %v5937_v13  ;;  %v5553_v38 = vpop.f32.mrb[23].mxu0  ;;  %v5939_v17 = vpop.f32.mrb[23].mxu1 }
 0x340   : > { %8052 = vst [vmem:[%s17425_s29 + $0x480] sm:$0xff] %v5553_v38  ;;  %8054 = vst [vmem:[%s17425_s29 + $0x490] sm:$0xff] %v5939_v17 }
 0x341   : > { %12741 = vmatmul.mubr.msk.bf16.vlgmr.msra.gmra.mrb[64].mxu0 %vm5195_vm4, %v17188_v59  ;;  %12757 = vmatmul.mubr.msk.bf16.vlgmr.msra.gmra.mrb[64].mxu1 %vm5195_vm4, %v17188_v59 }
 0x342   : > { %7201 = vmatpush1.bf16.msra.mxu1 %v14153_v60  ;;  %6277 = vmatprep.mubr.bf16.mxu0 %v20912_v56 }
 0x343   : > { %6663 = vmatprep.mubr.bf16.mxu1 %v20912_v56  ;;  %7202 = vmatprep.subr.bf16.mxu1 %v14158_v28  ;;  %v14162_v28 = vld [vmem:[#allocation6 + $0xf8] ss:$52 sps:$4 sm:$0xff]  }
 0x344   : > { %v5557_v34 = vpop.f32.mrb[24].mxu0  ;;  %v5943_v15 = vpop.f32.mrb[24].mxu1  ;;  %6815 = vmatpush1.bf16.msra.mxu0 %v14159_v30  ;;  %v14173_v30 = vld [vmem:[#allocation6 + $0xf4] ss:$52 sps:$4 sm:$0xff]  }
 0x345   : > { %8064 = vst [vmem:[%s17425_s29 + $0x4e0] sm:$0xff] %v5557_v34  ;;  %8066 = vst [vmem:[%s17425_s29 + $0x4f0] sm:$0xff] %v5943_v15  ;;  %v5559_v41 = vpop.f32.mrb[25].mxu0  ;;  %v5945_v1 = vpop.f32.mrb[25].mxu1  ;;  %6816 = vmatprep.subr.bf16.mxu0 %v14167_v3  ;;  %v14170_v34 = vld [vmem:[#allocation6 + $0x164] ss:$52 sps:$4 sm:$0xff]  }
 0x346   : > { %8065 = vst [vmem:[%s17425_s29 + $0x4e8] sm:$0xff] %v5559_v41  ;;  %8067 = vst [vmem:[%s17425_s29 + $0x4f8] sm:$0xff] %v5945_v1  ;;  %v5561_v13 = vpop.f32.mrb[26].mxu0  ;;  %v5947_v60 = vpop.f32.mrb[26].mxu1  ;;  %7203 = vmatpush1.bf16.msra.mxu1 %v14156_v33  ;;  %v14171_v15 = vld [vmem:[#allocation6 + $0xf0] ss:$52 sps:$4 sm:$0xff]  }
 0x347   : > { %8077 = vst [vmem:[%s17425_s29 + $0x548] sm:$0xff] %v5561_v13  ;;  %8079 = vst [vmem:[%s17425_s29 + $0x558] sm:$0xff] %v5947_v60  ;;  %v5563_v38 = vpop.f32.mrb[27].mxu0  ;;  %v5949_v17 = vpop.f32.mrb[27].mxu1  ;;  %7204 = vmatprep.subr.bf16.mxu1 %v14164_v18  ;;  %v14179_v3 = vld [vmem:[#allocation6 + $0x15c] ss:$52 sps:$4 sm:$0xff]  }
 0x348   : > { %8078 = vst [vmem:[%s17425_s29 + $0x550] sm:$0xff] %v5563_v38  ;;  %8080 = vst [vmem:[%s17425_s29 + $0x560] sm:$0xff] %v5949_v17  ;;  %6817 = vmatpush1.bf16.msra.mxu0 %v14165_v11  ;;  %v14168_v33 = vld [vmem:[#allocation6 + $0x160] ss:$52 sps:$4 sm:$0xff]   ;;  %v14177_v1 = vld [vmem:[#allocation6 + $0x158] ss:$52 sps:$4 sm:$0xff]  }
 0x349   : > { %12742 = vmatmul.mubr.msk.bf16.gmra.mrb[68].mxu0 %vm5195_vm4, %v17200_v63  ;;  %12758 = vmatmul.mubr.msk.bf16.gmra.mrb[68].mxu1 %vm5195_vm4, %v17200_v63  ;;  %v14176_v41 = vld [vmem:[#allocation6 + $0x1cc] ss:$52 sps:$4 sm:$0xff]  }
 0x34a   : > { %6287 = vmatprep.mubr.bf16.mxu0 %v20912_v56  ;;  %6673 = vmatprep.mubr.bf16.mxu1 %v20912_v56 }
 0x34b   : > { %7205 = vmatpush1.bf16.msra.mxu1 %v14162_v28  ;;  %6818 = vmatprep.subr.bf16.mxu0 %v14173_v30 }
 0x34c   : > { %v5567_v18 = vpop.f32.mrb[28].mxu0  ;;  %v5953_v11 = vpop.f32.mrb[28].mxu1  ;;  %7206 = vmatprep.subr.bf16.mxu1 %v14170_v34  ;;  %6819 = vmatpush1.bf16.msra.mxu0 %v14171_v15  ;;  %v14174_v34 = vld [vmem:[#allocation6 + $0x1c8] ss:$52 sps:$4 sm:$0xff]   ;;  %v14185_v15 = vld [vmem:[#allocation6 + $0x1c4] ss:$52 sps:$4 sm:$0xff]  }
 0x34d   : > { %8090 = vst [vmem:[%s17425_s29 + $0x5b0] sm:$0xff] %v5567_v18  ;;  %8092 = vst [vmem:[%s17425_s29 + $0x5c0] sm:$0xff] %v5953_v11  ;;  %v5569_v13 = vpop.f32.mrb[29].mxu0  ;;  %v5955_v60 = vpop.f32.mrb[29].mxu1  ;;  %6820 = vmatprep.subr.bf16.mxu0 %v14179_v3  ;;  %v14182_v18 = vld [vmem:[#allocation6 + $0x234] ss:$52 sps:$4 sm:$0xff]  }
 0x34e   : > { %8091 = vst [vmem:[%s17425_s29 + $0x5b8] sm:$0xff] %v5569_v13  ;;  %8093 = vst [vmem:[%s17425_s29 + $0x5c8] sm:$0xff] %v5955_v60  ;;  %v5571_v38 = vpop.f32.mrb[30].mxu0  ;;  %v5957_v17 = vpop.f32.mrb[30].mxu1  ;;  %v14183_v11 = vld [vmem:[#allocation6 + $0x1c0] ss:$52 sps:$4 sm:$0xff]  }
 0x34f   : > { %8103 = vst [vmem:[%s17425_s29 + $0x618] sm:$0xff] %v5571_v38  ;;  %8105 = vst [vmem:[%s17425_s29 + $0x628] sm:$0xff] %v5957_v17  ;;  %v5573_v28 = vpop.f32.mrb[31].mxu0  ;;  %v5959_v30 = vpop.f32.mrb[31].mxu1  ;;  %7207 = vmatpush1.bf16.msra.mxu1 %v14168_v33  ;;  %v14191_v3 = vld [vmem:[#allocation6 + $0x22c] ss:$52 sps:$4 sm:$0xff]  }
 0x350   : > { %8104 = vst [vmem:[%s17425_s29 + $0x620] sm:$0xff] %v5573_v28  ;;  %8106 = vst [vmem:[%s17425_s29 + $0x630] sm:$0xff] %v5959_v30  ;;  %7208 = vmatprep.subr.bf16.mxu1 %v14176_v41  ;;  %6821 = vmatpush1.bf16.msra.mxu0 %v14177_v1  ;;  %v14180_v33 = vld [vmem:[#allocation6 + $0x230] ss:$52 sps:$4 sm:$0xff]   ;;  %v14189_v60 = vld [vmem:[#allocation6 + $0x228] ss:$52 sps:$4 sm:$0xff]  }
 0x351   : > { %12743 = vmatmul.mubr.msk.bf16.gmra.mrb[72].mxu0 %vm5195_vm4, %v17212_v8  ;;  %12759 = vmatmul.mubr.msk.bf16.gmra.mrb[72].mxu1 %vm5195_vm4, %v17212_v8  ;;  %v14188_v13 = vld [vmem:[#allocation6 + $0x29c] ss:$52 sps:$4 sm:$0xff]  }
 0x352   : > { %6297 = vmatprep.mubr.bf16.mxu0 %v20912_v56  ;;  %6683 = vmatprep.mubr.bf16.mxu1 %v20912_v56 }
 0x353   : > { %7209 = vmatpush1.bf16.msra.mxu1 %v14174_v34  ;;  %6822 = vmatprep.subr.bf16.mxu0 %v14185_v15 }
 0x354   : > { %v5577_v41 = vpop.f32.mrb[32].mxu0  ;;  %v5963_v1 = vpop.f32.mrb[32].mxu1  ;;  %7210 = vmatprep.subr.bf16.mxu1 %v14182_v18  ;;  %6823 = vmatpush1.bf16.msra.mxu0 %v14183_v11  ;;  %v14186_v18 = vld [vmem:[#allocation6 + $0x298] ss:$52 sps:$4 sm:$0xff]   ;;  %v14197_v11 = vld [vmem:[#allocation6 + $0x294] ss:$52 sps:$4 sm:$0xff]  }
 0x355   : > { %8116 = vst [vmem:[%s17425_s29 + $0x680] sm:$0xff] %v5577_v41  ;;  %8118 = vst [vmem:[%s17425_s29 + $0x690] sm:$0xff] %v5963_v1  ;;  %v5579_v38 = vpop.f32.mrb[33].mxu0  ;;  %v5965_v17 = vpop.f32.mrb[33].mxu1  ;;  %6824 = vmatprep.subr.bf16.mxu0 %v14191_v3  ;;  %v14194_v41 = vld [vmem:[#allocation6 + $0x304] ss:$52 sps:$4 sm:$0xff]  }
 0x356   : > { %8117 = vst [vmem:[%s17425_s29 + $0x688] sm:$0xff] %v5579_v38  ;;  %8119 = vst [vmem:[%s17425_s29 + $0x698] sm:$0xff] %v5965_v17  ;;  %v5581_v28 = vpop.f32.mrb[34].mxu0  ;;  %v5967_v30 = vpop.f32.mrb[34].mxu1  ;;  %v14195_v1 = vld [vmem:[#allocation6 + $0x290] ss:$52 sps:$4 sm:$0xff]  }
 0x357   : > { %8129 = vst [vmem:[%s17425_s29 + $0x6e8] sm:$0xff] %v5581_v28  ;;  %8131 = vst [vmem:[%s17425_s29 + $0x6f8] sm:$0xff] %v5967_v30  ;;  %v5583_v34 = vpop.f32.mrb[35].mxu0  ;;  %v5969_v15 = vpop.f32.mrb[35].mxu1  ;;  %7211 = vmatpush1.bf16.msra.mxu1 %v14180_v33  ;;  %v14203_v3 = vld [vmem:[#allocation6 + $0x2fc] ss:$52 sps:$4 sm:$0xff]  }
 0x358   : > { %8130 = vst [vmem:[%s17425_s29 + $0x6f0] sm:$0xff] %v5583_v34  ;;  %8132 = vst [vmem:[%s17425_s29 + $0x700] sm:$0xff] %v5969_v15  ;;  %7212 = vmatprep.subr.bf16.mxu1 %v14188_v13  ;;  %6825 = vmatpush1.bf16.msra.mxu0 %v14189_v60  ;;  %v14192_v33 = vld [vmem:[#allocation6 + $0x300] ss:$52 sps:$4 sm:$0xff]   ;;  %v14201_v17 = vld [vmem:[#allocation6 + $0x2f8] ss:$52 sps:$4 sm:$0xff]  }
 0x359   : > { %12744 = vmatmul.mubr.msk.bf16.gmra.mrb[76].mxu0 %vm5195_vm4, %v17224_v22  ;;  %12760 = vmatmul.mubr.msk.bf16.gmra.mrb[76].mxu1 %vm5195_vm4, %v17224_v22  ;;  %v14200_v38 = vld [vmem:[#allocation6 + $0x36c] ss:$52 sps:$4 sm:$0xff]  }
 0x35a   : > { %6307 = vmatprep.mubr.bf16.mxu0 %v20912_v56  ;;  %6693 = vmatprep.mubr.bf16.mxu1 %v20912_v56 }
 0x35b   : > { %7213 = vmatpush1.bf16.msra.mxu1 %v14186_v18  ;;  %6826 = vmatprep.subr.bf16.mxu0 %v14197_v11 }
 0x35c   : > { %v5587_v13 = vpop.f32.mrb[36].mxu0  ;;  %v5973_v60 = vpop.f32.mrb[36].mxu1  ;;  %7214 = vmatprep.subr.bf16.mxu1 %v14194_v41  ;;  %6827 = vmatpush1.bf16.msra.mxu0 %v14195_v1  ;;  %v14198_v41 = vld [vmem:[#allocation6 + $0x368] ss:$52 sps:$4 sm:$0xff]   ;;  %v14209_v1 = vld [vmem:[#allocation6 + $0x364] ss:$52 sps:$4 sm:$0xff]  }
 0x35d   : > { %8142 = vst [vmem:[%s17425_s29 + $0x750] sm:$0xff] %v5587_v13  ;;  %8144 = vst [vmem:[%s17425_s29 + $0x760] sm:$0xff] %v5973_v60  ;;  %v5589_v28 = vpop.f32.mrb[37].mxu0  ;;  %v5975_v30 = vpop.f32.mrb[37].mxu1  ;;  %6828 = vmatprep.subr.bf16.mxu0 %v14203_v3  ;;  %v14206_v13 = vld [vmem:[#allocation6 + $0x3d4] ss:$52 sps:$4 sm:$0xff]  }
 0x35e   : > { %8143 = vst [vmem:[%s17425_s29 + $0x758] sm:$0xff] %v5589_v28  ;;  %8145 = vst [vmem:[%s17425_s29 + $0x768] sm:$0xff] %v5975_v30  ;;  %v5591_v34 = vpop.f32.mrb[38].mxu0  ;;  %v5977_v15 = vpop.f32.mrb[38].mxu1  ;;  %v14207_v60 = vld [vmem:[#allocation6 + $0x360] ss:$52 sps:$4 sm:$0xff]  }
 0x35f   : > { %8155 = vst [vmem:[%s17425_s29 + $0x7b8] sm:$0xff] %v5591_v34  ;;  %8157 = vst [vmem:[%s17425_s29 + $0x7c8] sm:$0xff] %v5977_v15  ;;  %v5593_v18 = vpop.f32.mrb[39].mxu0  ;;  %v5979_v11 = vpop.f32.mrb[39].mxu1  ;;  %7215 = vmatpush1.bf16.msra.mxu1 %v14192_v33  ;;  %v14215_v3 = vld [vmem:[#allocation6 + $0x3cc] ss:$52 sps:$4 sm:$0xff]  }
 0x360   : > { %8156 = vst [vmem:[%s17425_s29 + $0x7c0] sm:$0xff] %v5593_v18  ;;  %8158 = vst [vmem:[%s17425_s29 + $0x7d0] sm:$0xff] %v5979_v11  ;;  %7216 = vmatprep.subr.bf16.mxu1 %v14200_v38  ;;  %6829 = vmatpush1.bf16.msra.mxu0 %v14201_v17  ;;  %v14204_v33 = vld [vmem:[#allocation6 + $0x3d0] ss:$52 sps:$4 sm:$0xff]   ;;  %v14213_v30 = vld [vmem:[#allocation6 + $0x3c8] ss:$52 sps:$4 sm:$0xff]  }
 0x361   : > { %12745 = vmatmul.mubr.msk.bf16.gmra.mrb[80].mxu0 %vm5195_vm4, %v17236_v36  ;;  %12761 = vmatmul.mubr.msk.bf16.gmra.mrb[80].mxu1 %vm5195_vm4, %v17236_v36  ;;  %v14212_v28 = vld [vmem:[#allocation6 + $0x43c] ss:$52 sps:$4 sm:$0xff]  }
 0x362   : > { %6317 = vmatprep.mubr.bf16.mxu0 %v20912_v56  ;;  %6703 = vmatprep.mubr.bf16.mxu1 %v20912_v56 }
 0x363   : > { %7217 = vmatpush1.bf16.msra.mxu1 %v14198_v41  ;;  %6830 = vmatprep.subr.bf16.mxu0 %v14209_v1 }
 0x364   : > { %v5597_v38 = vpop.f32.mrb[40].mxu0  ;;  %v5983_v17 = vpop.f32.mrb[40].mxu1  ;;  %7218 = vmatprep.subr.bf16.mxu1 %v14206_v13  ;;  %6831 = vmatpush1.bf16.msra.mxu0 %v14207_v60  ;;  %v14210_v13 = vld [vmem:[#allocation6 + $0x438] ss:$52 sps:$4 sm:$0xff]   ;;  %v14221_v60 = vld [vmem:[#allocation6 + $0x434] ss:$52 sps:$4 sm:$0xff]  }
 0x365   : > { %8168 = vst [vmem:[%s17425_s29 + $0x820] sm:$0xff] %v5597_v38  ;;  %8170 = vst [vmem:[%s17425_s29 + $0x830] sm:$0xff] %v5983_v17  ;;  %v5599_v34 = vpop.f32.mrb[41].mxu0  ;;  %v5985_v15 = vpop.f32.mrb[41].mxu1  ;;  %6832 = vmatprep.subr.bf16.mxu0 %v14215_v3  ;;  %v14218_v38 = vld [vmem:[#allocation6 + $0x4a4] ss:$52 sps:$4 sm:$0xff]  }
 0x366   : > { %8169 = vst [vmem:[%s17425_s29 + $0x828] sm:$0xff] %v5599_v34  ;;  %8171 = vst [vmem:[%s17425_s29 + $0x838] sm:$0xff] %v5985_v15  ;;  %v5601_v18 = vpop.f32.mrb[42].mxu0  ;;  %v5987_v11 = vpop.f32.mrb[42].mxu1  ;;  %v14219_v17 = vld [vmem:[#allocation6 + $0x430] ss:$52 sps:$4 sm:$0xff]  }
 0x367   : > { %8181 = vst [vmem:[%s17425_s29 + $0x888] sm:$0xff] %v5601_v18  ;;  %8183 = vst [vmem:[%s17425_s29 + $0x898] sm:$0xff] %v5987_v11  ;;  %v5603_v41 = vpop.f32.mrb[43].mxu0  ;;  %v5989_v1 = vpop.f32.mrb[43].mxu1  ;;  %7219 = vmatpush1.bf16.msra.mxu1 %v14204_v33  ;;  %v14227_v3 = vld [vmem:[#allocation6 + $0x49c] ss:$52 sps:$4 sm:$0xff]  }
 0x368   : > { %8182 = vst [vmem:[%s17425_s29 + $0x890] sm:$0xff] %v5603_v41  ;;  %8184 = vst [vmem:[%s17425_s29 + $0x8a0] sm:$0xff] %v5989_v1  ;;  %7220 = vmatprep.subr.bf16.mxu1 %v14212_v28  ;;  %6833 = vmatpush1.bf16.msra.mxu0 %v14213_v30  ;;  %v14216_v33 = vld [vmem:[#allocation6 + $0x4a0] ss:$52 sps:$4 sm:$0xff]   ;;  %v14225_v15 = vld [vmem:[#allocation6 + $0x498] ss:$52 sps:$4 sm:$0xff]  }
 0x369   : > { %12746 = vmatmul.mubr.msk.bf16.gmra.mrb[84].mxu0 %vm5195_vm4, %v17248_v55  ;;  %12762 = vmatmul.mubr.msk.bf16.gmra.mrb[84].mxu1 %vm5195_vm4, %v17248_v55  ;;  %v14224_v34 = vld [vmem:[#allocation6 + $0x50c] ss:$52 sps:$4 sm:$0xff]  }
 0x36a   : > { %6327 = vmatprep.mubr.bf16.mxu0 %v20912_v56  ;;  %6713 = vmatprep.mubr.bf16.mxu1 %v20912_v56 }
 0x36b   : > { %7221 = vmatpush1.bf16.msra.mxu1 %v14210_v13  ;;  %6834 = vmatprep.subr.bf16.mxu0 %v14221_v60 }
 0x36c   : > { %v5607_v28 = vpop.f32.mrb[44].mxu0  ;;  %v5993_v30 = vpop.f32.mrb[44].mxu1  ;;  %7222 = vmatprep.subr.bf16.mxu1 %v14218_v38  ;;  %6835 = vmatpush1.bf16.msra.mxu0 %v14219_v17  ;;  %v14222_v38 = vld [vmem:[#allocation6 + $0x508] ss:$52 sps:$4 sm:$0xff]   ;;  %v14233_v17 = vld [vmem:[#allocation6 + $0x504] ss:$52 sps:$4 sm:$0xff]  }
 0x36d   : > { %8194 = vst [vmem:[%s17425_s29 + $0x8f0] sm:$0xff] %v5607_v28  ;;  %8196 = vst [vmem:[%s17425_s29 + $0x900] sm:$0xff] %v5993_v30  ;;  %v5609_v18 = vpop.f32.mrb[45].mxu0  ;;  %v5995_v11 = vpop.f32.mrb[45].mxu1  ;;  %6836 = vmatprep.subr.bf16.mxu0 %v14227_v3  ;;  %v14230_v28 = vld [vmem:[#allocation6 + $0x574] ss:$52 sps:$4 sm:$0xff]  }
 0x36e   : > { %8195 = vst [vmem:[%s17425_s29 + $0x8f8] sm:$0xff] %v5609_v18  ;;  %8197 = vst [vmem:[%s17425_s29 + $0x908] sm:$0xff] %v5995_v11  ;;  %v5611_v41 = vpop.f32.mrb[46].mxu0  ;;  %v5997_v1 = vpop.f32.mrb[46].mxu1  ;;  %v14231_v30 = vld [vmem:[#allocation6 + $0x500] ss:$52 sps:$4 sm:$0xff]  }
 0x36f   : > { %8207 = vst [vmem:[%s17425_s29 + $0x958] sm:$0xff] %v5611_v41  ;;  %8209 = vst [vmem:[%s17425_s29 + $0x968] sm:$0xff] %v5997_v1  ;;  %v5613_v13 = vpop.f32.mrb[47].mxu0  ;;  %v5999_v60 = vpop.f32.mrb[47].mxu1  ;;  %7223 = vmatpush1.bf16.msra.mxu1 %v14216_v33  ;;  %v14239_v3 = vld [vmem:[#allocation6 + $0x56c] ss:$52 sps:$4 sm:$0xff]  }
 0x370   : > { %8208 = vst [vmem:[%s17425_s29 + $0x960] sm:$0xff] %v5613_v13  ;;  %8210 = vst [vmem:[%s17425_s29 + $0x970] sm:$0xff] %v5999_v60  ;;  %7224 = vmatprep.subr.bf16.mxu1 %v14224_v34  ;;  %6837 = vmatpush1.bf16.msra.mxu0 %v14225_v15  ;;  %v14228_v33 = vld [vmem:[#allocation6 + $0x570] ss:$52 sps:$4 sm:$0xff]   ;;  %v14237_v11 = vld [vmem:[#allocation6 + $0x568] ss:$52 sps:$4 sm:$0xff]  }
 0x371   : > { %12747 = vmatmul.mubr.msk.bf16.gmra.mrb[88].mxu0 %vm5195_vm4, %v17260_v43  ;;  %12763 = vmatmul.mubr.msk.bf16.gmra.mrb[88].mxu1 %vm5195_vm4, %v17260_v43  ;;  %v14236_v18 = vld [vmem:[#allocation6 + $0x5dc] ss:$52 sps:$4 sm:$0xff]  }
 0x372   : > { %6337 = vmatprep.mubr.bf16.mxu0 %v20912_v56  ;;  %6723 = vmatprep.mubr.bf16.mxu1 %v20912_v56 }
 0x373   : > { %7225 = vmatpush1.bf16.msra.mxu1 %v14222_v38  ;;  %6838 = vmatprep.subr.bf16.mxu0 %v14233_v17 }
 0x374   : > { %v5617_v34 = vpop.f32.mrb[48].mxu0  ;;  %v6003_v15 = vpop.f32.mrb[48].mxu1  ;;  %7226 = vmatprep.subr.bf16.mxu1 %v14230_v28  ;;  %6839 = vmatpush1.bf16.msra.mxu0 %v14231_v30  ;;  %v14234_v28 = vld [vmem:[#allocation6 + $0x5d8] ss:$52 sps:$4 sm:$0xff]   ;;  %v14245_v30 = vld [vmem:[#allocation6 + $0x5d4] ss:$52 sps:$4 sm:$0xff]  }
 0x375   : > { %8220 = vst [vmem:[%s17425_s29 + $0x9c0] sm:$0xff] %v5617_v34  ;;  %8222 = vst [vmem:[%s17425_s29 + $0x9d0] sm:$0xff] %v6003_v15  ;;  %v5619_v41 = vpop.f32.mrb[49].mxu0  ;;  %v6005_v1 = vpop.f32.mrb[49].mxu1  ;;  %6840 = vmatprep.subr.bf16.mxu0 %v14239_v3  ;;  %v14242_v34 = vld [vmem:[#allocation6 + $0x644] ss:$52 sps:$4 sm:$0xff]  }
 0x376   : > { %8221 = vst [vmem:[%s17425_s29 + $0x9c8] sm:$0xff] %v5619_v41  ;;  %8223 = vst [vmem:[%s17425_s29 + $0x9d8] sm:$0xff] %v6005_v1  ;;  %v5621_v13 = vpop.f32.mrb[50].mxu0  ;;  %v6007_v60 = vpop.f32.mrb[50].mxu1  ;;  %v14243_v15 = vld [vmem:[#allocation6 + $0x5d0] ss:$52 sps:$4 sm:$0xff]  }
 0x377   : > { %8233 = vst [vmem:[%s17425_s29 + $0xa28] sm:$0xff] %v5621_v13  ;;  %8235 = vst [vmem:[%s17425_s29 + $0xa38] sm:$0xff] %v6007_v60  ;;  %v5623_v38 = vpop.f32.mrb[51].mxu0  ;;  %v6009_v17 = vpop.f32.mrb[51].mxu1  ;;  %7227 = vmatpush1.bf16.msra.mxu1 %v14228_v33  ;;  %v14248_v3 = vld [vmem:[#allocation6 + $0x63c] ss:$52 sps:$4 sm:$0xff]  }
 0x378   : > { %8234 = vst [vmem:[%s17425_s29 + $0xa30] sm:$0xff] %v5623_v38  ;;  %8236 = vst [vmem:[%s17425_s29 + $0xa40] sm:$0xff] %v6009_v17  ;;  %7228 = vmatprep.subr.bf16.mxu1 %v14236_v18  ;;  %6841 = vmatpush1.bf16.msra.mxu0 %v14237_v11  ;;  %v14240_v33 = vld [vmem:[#allocation6 + $0x640] ss:$52 sps:$4 sm:$0xff]   ;;  %v14246_v41 = vld [vmem:[#allocation6 + $0x638] ss:$52 sps:$4 sm:$0xff]  }
 0x379   : > { %12748 = vmatmul.mubr.msk.bf16.gmra.mrb[92].mxu0 %vm5195_vm4, %v17272_v40  ;;  %12764 = vmatmul.mubr.msk.bf16.gmra.mrb[92].mxu1 %vm5195_vm4, %v17272_v40  ;;  %v14251_v1 = vld [vmem:[#allocation6 + $0x6ac] ss:$52 sps:$4 sm:$0xff]  }
 0x37a   : > { %6347 = vmatprep.mubr.bf16.mxu0 %v20912_v56  ;;  %6733 = vmatprep.mubr.bf16.mxu1 %v20912_v56 }
 0x37b   : > { %7229 = vmatpush1.bf16.msra.mxu1 %v14234_v28  ;;  %6842 = vmatprep.subr.bf16.mxu0 %v14245_v30 }
 0x37c   : > { %v5627_v18 = vpop.f32.mrb[52].mxu0  ;;  %v6013_v11 = vpop.f32.mrb[52].mxu1  ;;  %7230 = vmatprep.subr.bf16.mxu1 %v14242_v34  ;;  %6843 = vmatpush1.bf16.msra.mxu0 %v14243_v15  ;;  %v14254_v34 = vld [vmem:[#allocation6 + $0x6a4] ss:$52 sps:$4 sm:$0xff]  }
 0x37d   : > { %8246 = vst [vmem:[%s17425_s29 + $0xa90] sm:$0xff] %v5627_v18  ;;  %8248 = vst [vmem:[%s17425_s29 + $0xaa0] sm:$0xff] %v6013_v11  ;;  %v5629_v13 = vpop.f32.mrb[53].mxu0  ;;  %v6015_v60 = vpop.f32.mrb[53].mxu1  ;;  %6844 = vmatprep.subr.bf16.mxu0 %v14248_v3 }
 0x37e   : > { %8247 = vst [vmem:[%s17425_s29 + $0xa98] sm:$0xff] %v5629_v13  ;;  %8249 = vst [vmem:[%s17425_s29 + $0xaa8] sm:$0xff] %v6015_v60  ;;  %v5631_v38 = vpop.f32.mrb[54].mxu0  ;;  %v6017_v17 = vpop.f32.mrb[54].mxu1 }
 0x37f   : > { %8259 = vst [vmem:[%s17425_s29 + $0xaf8] sm:$0xff] %v5631_v38  ;;  %8261 = vst [vmem:[%s17425_s29 + $0xb08] sm:$0xff] %v6017_v17  ;;  %v5633_v28 = vpop.f32.mrb[55].mxu0  ;;  %v6019_v30 = vpop.f32.mrb[55].mxu1  ;;  %7231 = vmatpush1.bf16.msra.mxu1 %v14240_v33 }
 0x380   : > { %8260 = vst [vmem:[%s17425_s29 + $0xb00] sm:$0xff] %v5633_v28  ;;  %8262 = vst [vmem:[%s17425_s29 + $0xb10] sm:$0xff] %v6019_v30  ;;  %6845 = vmatpush1.bf16.msra.mxu0 %v14246_v41  ;;  %7393 = vmatprep.subr.bf16.mxu1 %v14251_v1 }
 0x381   : > { %12749 = vmatmul.mubr.msk.bf16.gmra.mrb[96].mxu0 %vm5195_vm4, %v17284_v14  ;;  %12765 = vmatmul.mubr.msk.bf16.gmra.mrb[96].mxu1 %vm5195_vm4, %v17284_v14 }
 0x382   : > { %6357 = vmatprep.mubr.bf16.mxu0 %v20912_v56  ;;  %6743 = vmatprep.mubr.bf16.mxu1 %v20912_v56 }
 0x383   : > { %7007 = vmatprep.subr.bf16.mxu0 %v14254_v34 }
 0x384   : > { %v5637_v15 = vpop.f32.mrb[56].mxu0  ;;  %v6023_v3 = vpop.f32.mrb[56].mxu1 }
 0x385   : > { %8272 = vst [vmem:[%s17425_s29 + $0xb60] sm:$0xff] %v5637_v15  ;;  %8274 = vst [vmem:[%s17425_s29 + $0xb70] sm:$0xff] %v6023_v3  ;;  %v5639_v33 = vpop.f32.mrb[57].mxu0  ;;  %v6025_v18 = vpop.f32.mrb[57].mxu1 }
 0x386   : > { %8273 = vst [vmem:[%s17425_s29 + $0xb68] sm:$0xff] %v5639_v33  ;;  %8275 = vst [vmem:[%s17425_s29 + $0xb78] sm:$0xff] %v6025_v18  ;;  %v5641_v11 = vpop.f32.mrb[58].mxu0  ;;  %v6027_v41 = vpop.f32.mrb[58].mxu1  ;;  %v3972_v33 = vld [vmem:[#allocation6 + $0x778] sm:$0x11] }
 0x387   : > { %8285 = vst [vmem:[%s17425_s29 + $0xbc8] sm:$0xff] %v5641_v11  ;;  %8287 = vst [vmem:[%s17425_s29 + $0xbd8] sm:$0xff] %v6027_v41  ;;  %v5643_v1 = vpop.f32.mrb[59].mxu0  ;;  %v6029_v13 = vpop.f32.mrb[59].mxu1  ;;  %v3971_v18 = vld [vmem:[#allocation6 + $0x770] sm:$0x11] }
 0x388   : > { %8286 = vst [vmem:[%s17425_s29 + $0xbd0] sm:$0xff] %v5643_v1  ;;  %8288 = vst [vmem:[%s17425_s29 + $0xbe0] sm:$0xff] %v6029_v13  ;;  %v14249_v11 = vld [vmem:[#allocation6 + $0x6a8] ss:$52 sps:$4 sm:$0xff]   ;;  %v14252_v41 = vld [vmem:[#allocation6 + $0x6a0] ss:$52 sps:$4 sm:$0xff]   ;;  %v12707_v1 = vcombine.high %v3972_v33, %v3972_v33 }
 0x389   : > { %12750 = vmatmul.mubr.msk.bf16.gmra.mrb[100].mxu0 %vm5195_vm4, %v17296_v26  ;;  %12766 = vmatmul.mubr.msk.bf16.gmra.mrb[100].mxu1 %vm5195_vm4, %v17296_v26  ;;  %v14257_v13 = vld [vmem:[#allocation6 + $0x714] ss:$52 sps:$4 sm:$0xff]  }
 0x38a   : > { %6367 = vmatprep.mubr.bf16.mxu0 %v20912_v56  ;;  %6753 = vmatprep.mubr.bf16.mxu1 %v20912_v56 }
 0x38c   : > { %v5647_v60 = vpop.f32.mrb[60].mxu0  ;;  %v6033_v38 = vpop.f32.mrb[60].mxu1 }
 0x38d   : > { %8298 = vst [vmem:[%s17425_s29 + $0xc30] sm:$0xff] %v5647_v60  ;;  %8300 = vst [vmem:[%s17425_s29 + $0xc40] sm:$0xff] %v6033_v38  ;;  %v5649_v17 = vpop.f32.mrb[61].mxu0  ;;  %v6035_v28 = vpop.f32.mrb[61].mxu1  ;;  %v14260_v60 = vld [vmem:[#allocation6 + $0x70c] ss:$52 sps:$4 sm:$0xff]   ;;  %v12705_v38 = vcombine.high %v3971_v18, %v3971_v18 }
 0x38e   : > { %8299 = vst [vmem:[%s17425_s29 + $0xc38] sm:$0xff] %v5649_v17  ;;  %8301 = vst [vmem:[%s17425_s29 + $0xc48] sm:$0xff] %v6035_v28  ;;  %v5651_v30 = vpop.f32.mrb[62].mxu0  ;;  %v6037_v34 = vpop.f32.mrb[62].mxu1  ;;  %v14255_v17 = vld [vmem:[#allocation6 + $0x710] ss:$52 sps:$4 sm:$0xff]  }
 0x38f   : > { %8311 = vst [vmem:[%s17425_s29 + $0xc98] sm:$0xff] %v5651_v30  ;;  %8313 = vst [vmem:[%s17425_s29 + $0xca8] sm:$0xff] %v6037_v34  ;;  %v5653_v15 = vpop.f32.mrb[63].mxu0  ;;  %v6039_v3 = vpop.f32.mrb[63].mxu1  ;;  %v14258_v28 = vld [vmem:[#allocation6 + $0x708] ss:$52 sps:$4 sm:$0xff]   ;;  %v12706_v30 = vcombine.low %v3972_v33, %v3972_v33  ;;  %v5265_v34 = vand.u32 %v12707_v1, %v16848_v53 }
 0x390   : > { %8312 = vst [vmem:[%s17425_s29 + $0xca0] sm:$0xff] %v5653_v15  ;;  %8314 = vst [vmem:[%s17425_s29 + $0xcb0] sm:$0xff] %v6039_v3  ;;  %v12704_v15 = vcombine.low %v3971_v18, %v3971_v18  ;;  %v5259_v3 = vand.u32 %v12705_v38, %v16848_v53  ;;  %v14266_v33 = vld [vmem:[#allocation6 + $0x370] ss:$52 sps:$4 sm:$0xff]   ;;  %v8325_v18 = vld [vmem:[#allocation2 + $0x10] sm:$0xf] }
 0x391   : > { %12751 = vmatmul.mubr.msk.bf16.gmra.mrb[104].mxu0 %vm5195_vm4, %v17308_v48  ;;  %12767 = vmatmul.mubr.msk.bf16.gmra.mrb[104].mxu1 %vm5195_vm4, %v17308_v48  ;;  %v17716_v1 = vld [vmem:[#allocation2 + $0x14] ss:$0 sps:$4 sm:$0x11]  }
 0x392   : > { %6377 = vmatprep.mubr.bf16.mxu0 %v20912_v56  ;;  %6763 = vmatprep.mubr.bf16.mxu1 %v20912_v56 }
 0x399   : > { %12752 = vmatmul.mubr.msk.bf16.gmra.mrb[108].mxu0 %vm5195_vm4, %v17320_v37  ;;  %12768 = vmatmul.mubr.msk.bf16.gmra.mrb[108].mxu1 %vm5195_vm4, %v17320_v37 }
 0x39a   : > { %6387 = vmatprep.mubr.bf16.mxu0 %v20912_v56  ;;  %6773 = vmatprep.mubr.bf16.mxu1 %v20912_v56 }
 0x3a1   : > { %12753 = vmatmul.mubr.msk.bf16.gmra.mrb[112].mxu0 %vm5195_vm4, %v17332_v61  ;;  %12769 = vmatmul.mubr.msk.bf16.gmra.mrb[112].mxu1 %vm5195_vm4, %v17332_v61 }
 0x3a2   : > { %6397 = vmatprep.mubr.bf16.mxu0 %v20912_v56  ;;  %6783 = vmatprep.mubr.bf16.mxu1 %v20912_v56 }
 0x3a9   : > { %12754 = vmatmul.mubr.msk.bf16.gmra.mrb[116].mxu0 %vm5195_vm4, %v17344_v50  ;;  %12770 = vmatmul.mubr.msk.bf16.gmra.mrb[116].mxu1 %vm5195_vm4, %v17344_v50 }
 0x3aa   : > { %6407 = vmatprep.mubr.bf16.mxu0 %v20912_v56  ;;  %6793 = vmatprep.mubr.bf16.mxu1 %v20912_v56 }
 0x3b1   : > { %12755 = vmatmul.mubr.msk.bf16.gmra.mrb[120].mxu0 %vm5195_vm4, %v17356_v57  ;;  %12771 = vmatmul.mubr.msk.bf16.gmra.mrb[120].mxu1 %vm5195_vm4, %v17356_v57 }
 0x3b2   : > { %6417 = vmatprep.mubr.bf16.mxu0 %v20912_v56  ;;  %6803 = vmatprep.mubr.bf16.mxu1 %v20912_v56 }
 0x3b9   : > { %12756 = vmatmul.mubr.msk.bf16.gmra.mrb[124].mxu0 %vm5195_vm4, %v17368_v10  ;;  %12772 = vmatmul.mubr.msk.bf16.gmra.mrb[124].mxu1 %vm5195_vm4, %v17368_v10 }
 0x3ba   : > { %6846 = vmatprep.mubr.bf16.mxu0 %v20976_v25  ;;  %7232 = vmatprep.mubr.bf16.mxu1 %v20976_v25  ;;  %v17679_v25 = vld [vmem:[#allocation6 + $0x6b0] ss:$52 sps:$4 sm:$0xff]  }
 0x3c1   : > { %6847 = vmatmul.mubr.bf16.vlgmr.msra.gmra.mrb[128].mxu0 %v20977_v7  ;;  %7233 = vmatmul.mubr.bf16.vlgmr.msra.gmra.mrb[128].mxu1 %v20977_v7  ;;  %v5256_v7 = vand.u32 %v12704_v15, %v16848_v53 }
 0x3c2   : > { %7394 = vmatpush1.bf16.msra.mxu1 %v14249_v11  ;;  %6856 = vmatprep.mubr.bf16.mxu0 %v20978_v6  ;;  %v5262_v11 = vand.u32 %v12706_v30, %v16848_v53 }
 0x3c3   : > { %7242 = vmatprep.mubr.bf16.mxu1 %v20978_v6  ;;  %7008 = vmatpush1.bf16.msra.mxu0 %v14252_v41 }
 0x3c4   : > { %7395 = vmatprep.subr.bf16.mxu1 %v14257_v13  ;;  %7009 = vmatprep.subr.bf16.mxu0 %v14260_v60 }
 0x3c6   : > { %7396 = vmatpush1.bf16.msra.mxu1 %v14255_v17  ;;  %v8345_v17 = vshll.u32 %v17716_v1, 16 }
 0x3c7   : > { %7010 = vmatpush1.bf16.msra.mxu0 %v14258_v28  ;;  %7397 = vmatprep.subr.bf16.mxu1 %v5265_v34  ;;  %v8327_v28 = vld [vmem:[#allocation2 + $0xc] sm:$0xe] }
 0x3c8   : > { %7011 = vmatprep.subr.bf16.mxu0 %v5259_v3  ;;  %v12823_v30 = vcombine.low %v8327_v28, %v8325_v18  ;;  %v8347_v15 = vrot.slane %v8345_v17, 1 }
 0x3c9   : > { %6857 = vmatmul.mubr.bf16.gmra.mrb[132].mxu0 %v20979_v52  ;;  %7243 = vmatmul.mubr.bf16.gmra.mrb[132].mxu1 %v20979_v52 }
 0x3ca   : > { %6866 = vmatprep.mubr.bf16.mxu0 %v20980_v51  ;;  %7252 = vmatprep.mubr.bf16.mxu1 %v20980_v51  ;;  %v8355_v3 = vrot.slane %v12823_v30, 1 }
 0x3cb   : > { %7398 = vmatpush1.bf16.msra.mxu1 %v5262_v11  ;;  %7012 = vmatpush1.bf16.msra.mxu0 %v5256_v7  ;;  %v8324_v7 = vld [vmem:[#allocation2 + $0xc] sm:$0xf]  ;;  %v8356_v11 = vrot.slane %v17716_v1, 1 }
 0x3cc   : > { %13358 = vmatprep.subr.bf16.mxu1 %v17679_v25  ;;  %13211 = vmatprep.subr.bf16.mxu0 %v14266_v33  ;;  %v17714_v41 = vcombine.low %v8324_v7, %v8325_v18 }
 0x3cd   : > { %v8357_v7 = vsel %vm8354_vm6, %v8355_v3, %v8356_v11 }
 0x3ce   : > { %v8340_v13 = vshll.u32 %v17714_v41, 16  ;;  %v8338_v60 = vshrl.u32 %v17714_v41, 16  ;;  %8358 = vrot.lane.b32.xlu1 %v8357_v7, %s14753_s21 }
 0x3d0   : > { %v8342_v38 = vrot.slane %v8340_v13, 1 }
 0x3d1   : > { %6867 = vmatmul.mubr.bf16.gmra.mrb[136].mxu0 %v20981_v27  ;;  %7253 = vmatmul.mubr.bf16.gmra.mrb[136].mxu1 %v20981_v27 }
 0x3d2   : > { %6876 = vmatprep.mubr.bf16.mxu0 %v20982_v20  ;;  %7262 = vmatprep.mubr.bf16.mxu1 %v20982_v20  ;;  %v8343_v34 = vor.u32 %v8342_v38, %v8338_v60 }
 0x3d4   : > { %v8348_v33 = vsel %vm8336_vm5, %v8343_v34, %v8347_v15 }
 0x3d5   : > { %8349 = vrot.lane.b32.xlu0 %v8348_v33, %s14755_s9 }
 0x3d9   : > { %6877 = vmatmul.mubr.bf16.gmra.mrb[140].mxu0 %v20983_v5  ;;  %7263 = vmatmul.mubr.bf16.gmra.mrb[140].mxu1 %v20983_v5 }
 0x3da   : > { %6886 = vmatprep.mubr.bf16.mxu0 %v20984_v21  ;;  %7272 = vmatprep.mubr.bf16.mxu1 %v20984_v21 }
 0x3e1   : > { %6887 = vmatmul.mubr.bf16.gmra.mrb[144].mxu0 %v20985_v9  ;;  %7273 = vmatmul.mubr.bf16.gmra.mrb[144].mxu1 %v20985_v9 }
 0x3e2   : > { %6896 = vmatprep.mubr.bf16.mxu0 %v20986_v23  ;;  %7282 = vmatprep.mubr.bf16.mxu1 %v20986_v23 }
 0x3e9   : > { %6897 = vmatmul.mubr.bf16.gmra.mrb[148].mxu0 %v20987_v29  ;;  %7283 = vmatmul.mubr.bf16.gmra.mrb[148].mxu1 %v20987_v29 }
 0x3ea   : > { %6906 = vmatprep.mubr.bf16.mxu0 %v16734_v49  ;;  %7292 = vmatprep.mubr.bf16.mxu1 %v16734_v49 }
 0x3f1   : > { %6907 = vmatmul.mubr.bf16.gmra.mrb[152].mxu0 %v16742_v4  ;;  %7293 = vmatmul.mubr.bf16.gmra.mrb[152].mxu1 %v16742_v4 }
 0x3f2   : > { %6916 = vmatprep.mubr.bf16.mxu0 %v16768_v39  ;;  %7302 = vmatprep.mubr.bf16.mxu1 %v16768_v39 }
 0x3f9   : > { %6917 = vmatmul.mubr.bf16.gmra.mrb[156].mxu0 %v16779_v16  ;;  %7303 = vmatmul.mubr.bf16.gmra.mrb[156].mxu1 %v16779_v16 }
 0x3fa   : > { %6926 = vmatprep.mubr.bf16.mxu0 %v16803_v46  ;;  %7312 = vmatprep.mubr.bf16.mxu1 %v16803_v46 }
 0x401   : > { %6927 = vmatmul.mubr.bf16.gmra.mrb[160].mxu0 %v16835_v44  ;;  %7313 = vmatmul.mubr.bf16.gmra.mrb[160].mxu1 %v16835_v44 }
 0x402   : > { %6936 = vmatprep.mubr.bf16.mxu0 %v16831_v0  ;;  %7322 = vmatprep.mubr.bf16.mxu1 %v16831_v0 }
 0x409   : > { %6937 = vmatmul.mubr.bf16.gmra.mrb[164].mxu0 %v16843_v42  ;;  %7323 = vmatmul.mubr.bf16.gmra.mrb[164].mxu1 %v16843_v42 }
 0x40a   : > { %6946 = vmatprep.mubr.bf16.mxu0 %v20988_v2  ;;  %7332 = vmatprep.mubr.bf16.mxu1 %v20988_v2 }
 0x411   : > { %6947 = vmatmul.mubr.bf16.gmra.mrb[168].mxu0 %v20989_v62  ;;  %7333 = vmatmul.mubr.bf16.gmra.mrb[168].mxu1 %v20989_v62 }
 0x412   : > { %6956 = vmatprep.mubr.bf16.mxu0 %v20990_v45  ;;  %7342 = vmatprep.mubr.bf16.mxu1 %v20990_v45 }
 0x414   : > { %v6269_v18 = vpop.f32.mrb[64].mxu0  ;;  %v6655_v13 = vpop.f32.mrb[64].mxu1 }
 0x415   : > { %7912 = vst [vmem:[%s17425_s29 + $0x20] sm:$0xff] %v6269_v18  ;;  %7914 = vst [vmem:[%s17425_s29 + $0x30] sm:$0xff] %v6655_v13  ;;  %v6271_v60 = vpop.f32.mrb[65].mxu0  ;;  %v6657_v38 = vpop.f32.mrb[65].mxu1 }
 0x416   : > { %7913 = vst [vmem:[%s17425_s29 + $0x28] sm:$0xff] %v6271_v60  ;;  %7915 = vst [vmem:[%s17425_s29 + $0x38] sm:$0xff] %v6657_v38  ;;  %v6273_v17 = vpop.f32.mrb[66].mxu0  ;;  %v6659_v28 = vpop.f32.mrb[66].mxu1 }
 0x417   : > { %7925 = vst [vmem:[%s17425_s29 + $0x88] sm:$0xff] %v6273_v17  ;;  %7927 = vst [vmem:[%s17425_s29 + $0x98] sm:$0xff] %v6659_v28  ;;  %v6275_v30 = vpop.f32.mrb[67].mxu0  ;;  %v6661_v34 = vpop.f32.mrb[67].mxu1 }
 0x418   : > { %7926 = vst [vmem:[%s17425_s29 + $0x90] sm:$0xff] %v6275_v30  ;;  %7928 = vst [vmem:[%s17425_s29 + $0xa0] sm:$0xff] %v6661_v34 }
 0x419   : > { %6957 = vmatmul.mubr.bf16.gmra.mrb[172].mxu0 %v20991_v32  ;;  %7343 = vmatmul.mubr.bf16.gmra.mrb[172].mxu1 %v20991_v32 }
 0x41a   : > { %6966 = vmatprep.mubr.bf16.mxu0 %v20992_v24  ;;  %7352 = vmatprep.mubr.bf16.mxu1 %v20992_v24 }
 0x41c   : > { %v6279_v15 = vpop.f32.mrb[68].mxu0  ;;  %v6665_v3 = vpop.f32.mrb[68].mxu1 }
 0x41d   : > { %7938 = vst [vmem:[%s17425_s29 + $0xf0] sm:$0xff] %v6279_v15  ;;  %7940 = vst [vmem:[%s17425_s29 + $0x100] sm:$0xff] %v6665_v3  ;;  %v6281_v11 = vpop.f32.mrb[69].mxu0  ;;  %v6667_v33 = vpop.f32.mrb[69].mxu1 }
 0x41e   : > { %7939 = vst [vmem:[%s17425_s29 + $0xf8] sm:$0xff] %v6281_v11  ;;  %7941 = vst [vmem:[%s17425_s29 + $0x108] sm:$0xff] %v6667_v33  ;;  %v6283_v7 = vpop.f32.mrb[70].mxu0  ;;  %v6669_v18 = vpop.f32.mrb[70].mxu1 }
 0x41f   : > { %7951 = vst [vmem:[%s17425_s29 + $0x158] sm:$0xff] %v6283_v7  ;;  %7953 = vst [vmem:[%s17425_s29 + $0x168] sm:$0xff] %v6669_v18  ;;  %v6285_v13 = vpop.f32.mrb[71].mxu0  ;;  %v6671_v60 = vpop.f32.mrb[71].mxu1 }
 0x420   : > { %7952 = vst [vmem:[%s17425_s29 + $0x160] sm:$0xff] %v6285_v13  ;;  %7954 = vst [vmem:[%s17425_s29 + $0x170] sm:$0xff] %v6671_v60 }
 0x421   : > { %6967 = vmatmul.mubr.bf16.gmra.mrb[176].mxu0 %v20993_v12  ;;  %7353 = vmatmul.mubr.bf16.gmra.mrb[176].mxu1 %v20993_v12 }
 0x422   : > { %6976 = vmatprep.mubr.bf16.mxu0 %v20994_v54  ;;  %7362 = vmatprep.mubr.bf16.mxu1 %v20994_v54 }
 0x424   : > { %v6289_v38 = vpop.f32.mrb[72].mxu0  ;;  %v6675_v17 = vpop.f32.mrb[72].mxu1 }
 0x425   : > { %7964 = vst [vmem:[%s17425_s29 + $0x1c0] sm:$0xff] %v6289_v38  ;;  %7966 = vst [vmem:[%s17425_s29 + $0x1d0] sm:$0xff] %v6675_v17  ;;  %v6291_v28 = vpop.f32.mrb[73].mxu0  ;;  %v6677_v30 = vpop.f32.mrb[73].mxu1 }
 0x426   : > { %7965 = vst [vmem:[%s17425_s29 + $0x1c8] sm:$0xff] %v6291_v28  ;;  %7967 = vst [vmem:[%s17425_s29 + $0x1d8] sm:$0xff] %v6677_v30  ;;  %v6293_v34 = vpop.f32.mrb[74].mxu0  ;;  %v6679_v15 = vpop.f32.mrb[74].mxu1 }
 0x427   : > { %7977 = vst [vmem:[%s17425_s29 + $0x228] sm:$0xff] %v6293_v34  ;;  %7979 = vst [vmem:[%s17425_s29 + $0x238] sm:$0xff] %v6679_v15  ;;  %v6295_v3 = vpop.f32.mrb[75].mxu0  ;;  %v6681_v11 = vpop.f32.mrb[75].mxu1 }
 0x428   : > { %7978 = vst [vmem:[%s17425_s29 + $0x230] sm:$0xff] %v6295_v3  ;;  %7980 = vst [vmem:[%s17425_s29 + $0x240] sm:$0xff] %v6681_v11 }
 0x429   : > { %6977 = vmatmul.mubr.bf16.gmra.mrb[180].mxu0 %v20995_v47  ;;  %7363 = vmatmul.mubr.bf16.gmra.mrb[180].mxu1 %v20995_v47  ;;  %v14271_v47 = vld [vmem:[#allocation6 + $0x718] ss:$52 sps:$4 sm:$0xff]  }
 0x42a   : > { %6986 = vmatprep.mubr.bf16.mxu0 %v17138_v58  ;;  %7372 = vmatprep.mubr.bf16.mxu1 %v17138_v58  ;;  %v14267_v58 = vld [vmem:[#allocation6 + $0x30] ss:$52 sps:$4 sm:$0xff]  }
 0x42c   : > { %v6299_v33 = vpop.f32.mrb[76].mxu0  ;;  %v6685_v7 = vpop.f32.mrb[76].mxu1 }
 0x42d   : > { %7990 = vst [vmem:[%s17425_s29 + $0x290] sm:$0xff] %v6299_v33  ;;  %7992 = vst [vmem:[%s17425_s29 + $0x2a0] sm:$0xff] %v6685_v7  ;;  %v6301_v18 = vpop.f32.mrb[77].mxu0  ;;  %v6687_v13 = vpop.f32.mrb[77].mxu1 }
 0x42e   : > { %7991 = vst [vmem:[%s17425_s29 + $0x298] sm:$0xff] %v6301_v18  ;;  %7993 = vst [vmem:[%s17425_s29 + $0x2a8] sm:$0xff] %v6687_v13  ;;  %v6303_v60 = vpop.f32.mrb[78].mxu0  ;;  %v6689_v38 = vpop.f32.mrb[78].mxu1  ;;  %v8366_v13 = vld [vmem:[#allocation2 + $0xc0] sm:$0xf] }
 0x42f   : > { %8003 = vst [vmem:[%s17425_s29 + $0x2f8] sm:$0xff] %v6303_v60  ;;  %8005 = vst [vmem:[%s17425_s29 + $0x308] sm:$0xff] %v6689_v38  ;;  %v6305_v17 = vpop.f32.mrb[79].mxu0  ;;  %v6691_v28 = vpop.f32.mrb[79].mxu1  ;;  %v8367_v60 = vld [vmem:[#allocation2 + $0xc4] sm:$0xf] }
 0x430   : > { %8004 = vst [vmem:[%s17425_s29 + $0x300] sm:$0xff] %v6305_v17  ;;  %8006 = vst [vmem:[%s17425_s29 + $0x310] sm:$0xff] %v6691_v28  ;;  %v17794_v38 = vcombine.low %v8366_v13, %v8367_v60 }
 0x431   : > { %6987 = vmatmul.mubr.bf16.gmra.mrb[184].mxu0 %v17141_v35  ;;  %7373 = vmatmul.mubr.bf16.gmra.mrb[184].mxu1 %v17141_v35 }
 0x432   : > { %6996 = vmatprep.mubr.bf16.mxu0 %v17173_v19  ;;  %7382 = vmatprep.mubr.bf16.mxu1 %v17173_v19  ;;  %20996 = vst [vmem:[#allocation17_spill] sm:$0xff] %v17794_v38 }
 0x434   : > { %v6309_v30 = vpop.f32.mrb[80].mxu0  ;;  %v6695_v34 = vpop.f32.mrb[80].mxu1 }
 0x435   : > { %8016 = vst [vmem:[%s17425_s29 + $0x360] sm:$0xff] %v6309_v30  ;;  %8018 = vst [vmem:[%s17425_s29 + $0x370] sm:$0xff] %v6695_v34  ;;  %v6311_v15 = vpop.f32.mrb[81].mxu0  ;;  %v6697_v3 = vpop.f32.mrb[81].mxu1  ;;  %v8381_v34 = vshll.u32 %v17794_v38, 16 }
 0x436   : > { %8017 = vst [vmem:[%s17425_s29 + $0x368] sm:$0xff] %v6311_v15  ;;  %8019 = vst [vmem:[%s17425_s29 + $0x378] sm:$0xff] %v6697_v3  ;;  %v6313_v11 = vpop.f32.mrb[82].mxu0  ;;  %v6699_v33 = vpop.f32.mrb[82].mxu1 }
 0x437   : > { %8029 = vst [vmem:[%s17425_s29 + $0x3c8] sm:$0xff] %v6313_v11  ;;  %8031 = vst [vmem:[%s17425_s29 + $0x3d8] sm:$0xff] %v6699_v33  ;;  %v6315_v7 = vpop.f32.mrb[83].mxu0  ;;  %v6701_v18 = vpop.f32.mrb[83].mxu1  ;;  %v8383_v13 = vrot.slane %v8381_v34, 1 }
 0x438   : > { %8030 = vst [vmem:[%s17425_s29 + $0x3d0] sm:$0xff] %v6315_v7  ;;  %8032 = vst [vmem:[%s17425_s29 + $0x3e0] sm:$0xff] %v6701_v18  ;;  %v14292_v30 = vld [vmem:[#allocation2 + $0xc8] ss:$0 sps:$4 sm:$0x11]   ;;  %v8379_v18 = vshrl.u32 %v17794_v38, 16 }
 0x439   : > { %6997 = vmatmul.mubr.bf16.gmra.mrb[188].mxu0 %v17176_v31  ;;  %7383 = vmatmul.mubr.bf16.gmra.mrb[188].mxu1 %v17176_v31  ;;  %v14281_v11 = vld [vmem:[#allocation6 + $0x780] ss:$0 sps:$4 sm:$0x11]   ;;  %v8386_v31 = vshll.u32 %v14292_v30, 16  ;;  %v8396_v34 = vrot.slane %v14292_v30, 1 }
 0x43a   : > { %7039 = vmatprep.mubr.bf16.mxu0 %v20912_v56  ;;  %7425 = vmatprep.mubr.bf16.mxu1 %v20912_v56  ;;  %v8384_v54 = vor.u32 %v8383_v13, %v8379_v18  ;;  %v14302_v30 = vld [vmem:[#allocation2 + $0x24] ss:$0 sps:$4 sm:$0x11]   ;;  %v14272_v38 = vld [vmem:[#allocation6 + $0x100] ss:$52 sps:$4 sm:$0xff]  }
 0x43b   : > { %v8388_v12 = vrot.slane %v8386_v31, 1  ;;  %v14301_v31 = vld [vmem:[#allocation2 + $0x18] ss:$0 sps:$4 sm:$0x11]  }
 0x43c   : > { %v6319_v17 = vpop.f32.mrb[84].mxu0  ;;  %v6705_v28 = vpop.f32.mrb[84].mxu1 }
 0x43d   : > { %8042 = vst [vmem:[%s17425_s29 + $0x430] sm:$0xff] %v6319_v17  ;;  %8044 = vst [vmem:[%s17425_s29 + $0x440] sm:$0xff] %v6705_v28  ;;  %v6321_v15 = vpop.f32.mrb[85].mxu0  ;;  %v6707_v3 = vpop.f32.mrb[85].mxu1  ;;  %v8369_v17 = vld [vmem:[#allocation2 + $0xc0] sm:$0xe] }
 0x43e   : > { %8043 = vst [vmem:[%s17425_s29 + $0x438] sm:$0xff] %v6321_v15  ;;  %8045 = vst [vmem:[%s17425_s29 + $0x448] sm:$0xff] %v6707_v3  ;;  %v6323_v33 = vpop.f32.mrb[86].mxu0  ;;  %v6709_v7 = vpop.f32.mrb[86].mxu1  ;;  %v14268_v28 = vld [vmem:[#allocation6 + $0x3d8] ss:$52 sps:$4 sm:$0xff]   ;;  %v12826_v15 = vcombine.low %v8369_v17, %v8367_v60  ;;  %v8602_v17 = vunpack.c.l.b16 %v14301_v31 }
 0x43f   : > { %8055 = vst [vmem:[%s17425_s29 + $0x498] sm:$0xff] %v6323_v33  ;;  %8057 = vst [vmem:[%s17425_s29 + $0x4a8] sm:$0xff] %v6709_v7  ;;  %v6325_v19 = vpop.f32.mrb[87].mxu0  ;;  %v6711_v35 = vpop.f32.mrb[87].mxu1  ;;  %v14270_v60 = vld [vmem:[#allocation6 + $0x440] ss:$52 sps:$4 sm:$0xff]   ;;  %v5268_v7 = vand.u32 %v14281_v11, %v16848_v53 }
 0x440   : > { %8056 = vst [vmem:[%s17425_s29 + $0x4a0] sm:$0xff] %v6325_v19  ;;  %8058 = vst [vmem:[%s17425_s29 + $0x4b0] sm:$0xff] %v6711_v35  ;;  %v17810_v3 = vld [vmem:[#allocation2 + $0x60] ss:$0 sps:$4 sm:$0x11]   ;;  %v8389_v35 = vsel %vm8336_vm5, %v8384_v54, %v8388_v12  ;;  %v8395_v33 = vrot.slane %v12826_v15, 1 }
 0x441   : > { %12773 = vmatmul.mubr.msk.bf16.vlgmr.msra.gmra.mrb[128].mxu0 %vm5195_vm4, %v17188_v59  ;;  %12789 = vmatmul.mubr.msk.bf16.vlgmr.msra.gmra.mrb[128].mxu1 %vm5195_vm4, %v17188_v59  ;;  %v14269_v19 = vld [vmem:[#allocation6 + $0x98] ss:$52 sps:$4 sm:$0xff]   ;;  %v14300_v12 = vld [vmem:[#allocation2 + $0xc] ss:$0 sps:$4 sm:$0x11]   ;;  %v8617_v32 = vrot.slane %v8602_v17, 7 }
 0x442   : > { %13359 = vmatpush3.bf16.msra.mxu1 %v17679_v25  ;;  %7049 = vmatprep.mubr.bf16.mxu0 %v20912_v56  ;;  %v8397_v25 = vsel %vm8354_vm6, %v8395_v33, %v8396_v34  ;;  %v17818_v54 = vld [vmem:[#allocation2 + $0x6c] ss:$0 sps:$4 sm:$0x11]   ;;  %v14303_v11 = vld [vmem:[#allocation2 + $0x30] ss:$0 sps:$4 sm:$0x11]   ;;  %v8601_v24 = vunpack.c.l.b16 %v14300_v12 }
 0x443   : > { %7435 = vmatprep.mubr.bf16.mxu1 %v20912_v56  ;;  %13212 = vmatpush3.bf16.msra.mxu0 %v14267_v58  ;;  %v14273_v31 = vld [vmem:[#allocation6 + $0x4a8] ss:$52 sps:$4 sm:$0xff]   ;;  %vm10228_vm6 = vcmask 1047936  }
 0x444   : > { %v6329_v18 = vpop.f32.mrb[88].mxu0  ;;  %v6715_v13 = vpop.f32.mrb[88].mxu1  ;;  %13213 = vmatprep.subr.bf16.mxu0 %v14268_v28  ;;  %13360 = vmatprep.subr.bf16.mxu1 %v14271_v47  ;;  %v8603_v28 = vunpack.c.l.b16 %v14302_v30  ;;  %v8618_v12 = vsel %vm8518_vm7, %v8617_v32, %v8601_v24  ;;  %v14274_v24 = vld [vmem:[#allocation6 + $0x168] ss:$52 sps:$4 sm:$0xff]  }
 0x445   : > { %8068 = vst [vmem:[%s17425_s29 + $0x500] sm:$0xff] %v6329_v18  ;;  %8070 = vst [vmem:[%s17425_s29 + $0x510] sm:$0xff] %v6715_v13  ;;  %v6331_v15 = vpop.f32.mrb[89].mxu0  ;;  %v6717_v58 = vpop.f32.mrb[89].mxu1  ;;  %8390 = vrot.lane.b32.xlu0 %v8389_v35, %s14755_s9  ;;  %8398 = vrot.lane.b32.xlu1 %v8397_v25, %s14753_s21  ;;  %v8608_v35 = vunpack.c.l.b16 %v17810_v3 }
 0x446   : > { %8069 = vst [vmem:[%s17425_s29 + $0x508] sm:$0xff] %v6331_v15  ;;  %8071 = vst [vmem:[%s17425_s29 + $0x518] sm:$0xff] %v6717_v58  ;;  %v6333_v34 = vpop.f32.mrb[90].mxu0  ;;  %v6719_v33 = vpop.f32.mrb[90].mxu1  ;;  %13361 = vmatpush3.bf16.msra.mxu1 %v14271_v47  ;;  %v14290_v18 = vld [vmem:[%s20677_s2 + $0x4] ss:$16 sps:$4 sm:$0xff]   ;;  %v8604_v15 = vunpack.c.l.b16 %v14303_v11 }
 0x447   : > { %v14304_v13 = vld [vmem:[#allocation2 + $0x3c] ss:$0 sps:$4 sm:$0x11]   ;;  %8081 = vst [vmem:[%s17425_s29 + $0x568] sm:$0xff] %v6333_v34  ;;  %8083 = vst [vmem:[%s17425_s29 + $0x578] sm:$0xff] %v6719_v33  ;;  %v6335_v30 = vpop.f32.mrb[91].mxu0  ;;  %13214 = vmatpush3.bf16.msra.mxu0 %v14269_v19  ;;  %13362 = vmatprep.subr.bf16.mxu1 %v5268_v7 }
 0x448   : > { %v6721_v25 = vpop.f32.mrb[91].mxu1  ;;  %v14305_v47 = vld [vmem:[#allocation2 + $0x48] ss:$0 sps:$4 sm:$0x11]   ;;  %8082 = vst [vmem:[%s17425_s29 + $0x570] sm:$0xff] %v6335_v30  ;;  %13215 = vmatprep.subr.bf16.mxu0 %v14270_v60  ;;  %v8605_v45 = vunpack.c.l.b16 %v14304_v13  ;;  %v8619_v62 = vrot.slane %v8603_v28, 6  ;;  %v8609_v60 = vunpack.c.l.b16 %v17818_v54 }
 0x449   : > { %8084 = vst [vmem:[%s17425_s29 + $0x580] sm:$0xff] %v6721_v25  ;;  %v14306_v58 = vld [vmem:[#allocation2 + $0x54] ss:$0 sps:$4 sm:$0x11]   ;;  %12774 = vmatmul.mubr.msk.bf16.gmra.mrb[132].mxu0 %vm5195_vm4, %v17200_v63  ;;  %12790 = vmatmul.mubr.msk.bf16.gmra.mrb[132].mxu1 %vm5195_vm4, %v17200_v63  ;;  %v8606_v19 = vunpack.c.l.b16 %v14305_v47  ;;  %v8621_v17 = vrot.slane %v8604_v15, 5  ;;  %v8629_v32 = vrot.slane %v8608_v35, 1 }
 0x44a   : > { %v14309_v3 = vld [vmem:[#allocation2 + $0x78] ss:$0 sps:$4 sm:$0x11]   ;;  %7059 = vmatprep.mubr.bf16.mxu0 %v20912_v56  ;;  %7445 = vmatprep.mubr.bf16.mxu1 %v20912_v56  ;;  %v8620_v11 = vsel %vm8521_vm8, %v8619_v62, %v8618_v12  ;;  %v14278_v28 = vld [vmem:[#allocation6 + $0x510] ss:$52 sps:$4 sm:$0xff]   ;;  %v8607_v54 = vunpack.c.l.b16 %v14306_v58  ;;  %v8623_v35 = vrot.slane %v8605_v45, 4 }
 0x44b   : > { %13216 = vmatpush3.bf16.msra.mxu0 %v14272_v38  ;;  %13363 = vmatpush3.bf16.msra.mxu1 %v5268_v7  ;;  %v8610_v34 = vunpack.c.l.b16 %v14309_v3  ;;  %v14310_v30 = vld [vmem:[#allocation2 + $0x84] ss:$0 sps:$4 sm:$0x11]   ;;  %v8622_v62 = vsel %vm8524_vm9, %v8621_v17, %v8620_v11  ;;  %v14280_v7 = vld [vmem:[#allocation6 + $0x1d0] ss:$52 sps:$4 sm:$0xff]   ;;  %v8625_v15 = vrot.slane %v8606_v19, 3  ;;  %v8630_v17 = vsel %vm8536_vm10, %v8609_v60, %v8629_v32 }
 0x44c   : > { %v6339_v33 = vpop.f32.mrb[92].mxu0  ;;  %v6725_v13 = vpop.f32.mrb[92].mxu1  ;;  %13217 = vmatprep.subr.bf16.mxu0 %v14273_v31  ;;  %9263 = vmatprep.subr.bf16.mxu1 %v14290_v18  ;;  %v14311_v47 = vld [vmem:[#allocation2 + $0x90] ss:$0 sps:$4 sm:$0x11]   ;;  %v8611_v3 = vunpack.c.l.b16 %v14310_v30  ;;  %v8624_v45 = vsel %vm8527_vm11, %v8623_v35, %v8622_v62  ;;  %v8627_v42 = vrot.slane %v8607_v54, 2 }
 0x44d   : > { %8094 = vst [vmem:[%s17425_s29 + $0x5d0] sm:$0xff] %v6339_v33  ;;  %8096 = vst [vmem:[%s17425_s29 + $0x5e0] sm:$0xff] %v6725_v13  ;;  %v6341_v38 = vpop.f32.mrb[93].mxu0  ;;  %v6727_v25 = vpop.f32.mrb[93].mxu1  ;;  %v14282_v18 = vld [vmem:[#allocation6 + $0x578] ss:$52 sps:$4 sm:$0xff]   ;;  %v8612_v13 = vunpack.c.l.b16 %v14311_v47  ;;  %v8626_v32 = vsel %vm8530_vm12, %v8625_v15, %v8624_v45 }
 0x44e   : > { %8095 = vst [vmem:[%s17425_s29 + $0x5d8] sm:$0xff] %v6341_v38  ;;  %8097 = vst [vmem:[%s17425_s29 + $0x5e8] sm:$0xff] %v6727_v25  ;;  %v6343_v12 = vpop.f32.mrb[94].mxu0  ;;  %v6729_v31 = vpop.f32.mrb[94].mxu1  ;;  %v8631_v38 = vrot.slane %v8610_v34, 7  ;;  %v8633_v30 = vrot.slane %v8611_v3, 6 }
 0x44f   : > { %v14312_v58 = vld [vmem:[#allocation2 + $0x9c] ss:$0 sps:$4 sm:$0x11]   ;;  %8107 = vst [vmem:[%s17425_s29 + $0x638] sm:$0xff] %v6343_v12  ;;  %8109 = vst [vmem:[%s17425_s29 + $0x648] sm:$0xff] %v6729_v31  ;;  %v6345_v11 = vpop.f32.mrb[95].mxu0  ;;  %13218 = vmatpush3.bf16.msra.mxu0 %v14274_v24 }
 0x450   : > { %v6731_v33 = vpop.f32.mrb[95].mxu1  ;;  %v14313_v19 = vld [vmem:[#allocation2 + $0xa8] ss:$0 sps:$4 sm:$0x11]   ;;  %8108 = vst [vmem:[%s17425_s29 + $0x640] sm:$0xff] %v6345_v11  ;;  %13219 = vmatprep.subr.bf16.mxu0 %v14278_v28  ;;  %v8613_v2 = vunpack.c.l.b16 %v14312_v58  ;;  %v8632_v24 = vsel %vm8518_vm7, %v8631_v38, %v8630_v17  ;;  %v8635_v34 = vrot.slane %v8612_v13, 5 }
 0x451   : > { %8110 = vst [vmem:[%s17425_s29 + $0x650] sm:$0xff] %v6731_v33  ;;  %v14314_v25 = vld [vmem:[#allocation2 + $0xb4] ss:$0 sps:$4 sm:$0x11]   ;;  %12775 = vmatmul.mubr.msk.bf16.gmra.mrb[136].mxu0 %vm5195_vm4, %v17212_v8  ;;  %12791 = vmatmul.mubr.msk.bf16.gmra.mrb[136].mxu1 %vm5195_vm4, %v17212_v8  ;;  %v8614_v60 = vunpack.c.l.b16 %v14313_v19  ;;  %v14283_v28 = vld [vmem:[#allocation6 + $0x238] ss:$52 sps:$4 sm:$0xff]   ;;  %v8634_v35 = vsel %vm8521_vm8, %v8633_v30, %v8632_v24  ;;  %v8628_v33 = vsel %vm8533_vm13, %v8627_v42, %v8626_v32 }
 0x452   : > { %v14315_v62 = vld [vmem:[#allocation2 + $0xc0] ss:$0 sps:$4 sm:$0x11]   ;;  %7069 = vmatprep.mubr.bf16.mxu0 %v20912_v56  ;;  %7455 = vmatprep.mubr.bf16.mxu1 %v20912_v56  ;;  %v8615_v54 = vunpack.c.l.b16 %v14314_v25  ;;  %v8637_v47 = vrot.slane %v8613_v2, 4  ;;  %v14284_v31 = vld [vmem:[#allocation6 + $0x5e0] ss:$52 sps:$4 sm:$0xff]   ;;  %v8636_v15 = vsel %vm8524_vm9, %v8635_v34, %v8634_v35 }
 0x453   : > { %v17863_v12 = vld [vmem:[#allocation2 + $0x18] ss:$0 sps:$4 sm:$0x11]   ;;  %13220 = vmatpush3.bf16.msra.mxu0 %v14280_v7  ;;  %v8639_v58 = vrot.slane %v8614_v60, 3  ;;  %v8616_v3 = vunpack.c.l.b16 %v14315_v62  ;;  %v14286_v32 = vld [vmem:[#allocation6 + $0x648] ss:$52 sps:$4 sm:$0xff]  }
 0x454   : > { %v14317_v45 = vld [vmem:[#allocation2 + $0x24] ss:$0 sps:$4 sm:$0x11]   ;;  %v6349_v17 = vpop.f32.mrb[96].mxu0  ;;  %v6735_v11 = vpop.f32.mrb[96].mxu1  ;;  %13221 = vmatprep.subr.bf16.mxu0 %v14282_v18  ;;  %v8638_v19 = vsel %vm8527_vm11, %v8637_v47, %v8636_v15  ;;  %v8641_v2 = vrot.slane %v8615_v54, 2 }
 0x455   : > { %v14318_v13 = vld [vmem:[#allocation2 + $0x30] ss:$0 sps:$4 sm:$0x11]   ;;  %8120 = vst [vmem:[%s17425_s29 + $0x6a0] sm:$0xff] %v6349_v17  ;;  %8122 = vst [vmem:[%s17425_s29 + $0x6b0] sm:$0xff] %v6735_v11  ;;  %v6351_v7 = vpop.f32.mrb[97].mxu0  ;;  %v8640_v30 = vsel %vm8530_vm12, %v8639_v58, %v8638_v19  ;;  %v8699_v34 = vunpack.c.l.b16 %v14317_v45 }
 0x456   : > { %v6737_v38 = vpop.f32.mrb[97].mxu1  ;;  %v14285_v25 = vld [vmem:[#allocation6 + $0x2a0] ss:$52 sps:$4 sm:$0xff]   ;;  %v8643_v60 = vrot.slane %v8616_v3, 1  ;;  %8121 = vst [vmem:[%s17425_s29 + $0x6a8] sm:$0xff] %v6351_v7  ;;  %v6353_v42 = vpop.f32.mrb[98].mxu0  ;;  %v8642_v62 = vsel %vm8533_vm13, %v8641_v2, %v8640_v30  ;;  %v8698_v3 = vunpack.c.l.b16 %v17863_v12  ;;  %v8700_v7 = vunpack.c.l.b16 %v14318_v13 }
 0x457   : > { %v14319_v24 = vld [vmem:[#allocation2 + $0x3c] ss:$0 sps:$4 sm:$0x11]   ;;  %8123 = vst [vmem:[%s17425_s29 + $0x6b8] sm:$0xff] %v6737_v38  ;;  %v6739_v18 = vpop.f32.mrb[98].mxu1  ;;  %8133 = vst [vmem:[%s17425_s29 + $0x708] sm:$0xff] %v6353_v42  ;;  %13222 = vmatpush3.bf16.msra.mxu0 %v14283_v28  ;;  %v8644_v15 = vpack.c.b16 %v8642_v62, %v8628_v33 }
 0x458   : > { %v14320_v54 = vld [vmem:[#allocation2 + $0x48] ss:$0 sps:$4 sm:$0x11]   ;;  %8135 = vst [vmem:[%s17425_s29 + $0x718] sm:$0xff] %v6739_v18  ;;  %v6355_v35 = vpop.f32.mrb[99].mxu0  ;;  %v6741_v47 = vpop.f32.mrb[99].mxu1  ;;  %13223 = vmatprep.subr.bf16.mxu0 %v14284_v31  ;;  %v8645_v17 = vpack.c.b16 %v8643_v60, %v8643_v60  ;;  %v8701_v38 = vunpack.c.l.b16 %v14319_v24 }
 0x459   : > { %v14321_v58 = vld [vmem:[#allocation2 + $0x54] ss:$0 sps:$4 sm:$0x11]   ;;  %v8714_v45 = vrot.slane %v8699_v34, 7  ;;  %8134 = vst [vmem:[%s17425_s29 + $0x710] sm:$0xff] %v6355_v35  ;;  %8136 = vst [vmem:[%s17425_s29 + $0x720] sm:$0xff] %v6741_v47  ;;  %12776 = vmatmul.mubr.msk.bf16.gmra.mrb[140].mxu0 %vm5195_vm4, %v17224_v22  ;;  %12792 = vmatmul.mubr.msk.bf16.gmra.mrb[140].mxu1 %vm5195_vm4, %v17224_v22  ;;  %v8702_v12 = vunpack.c.l.b16 %v14320_v54 }
 0x45a   : > { %v17879_v11 = vld [vmem:[#allocation2 + $0x60] ss:$0 sps:$4 sm:$0x11]   ;;  %v14323_v19 = vld [vmem:[#allocation2 + $0x6c] ss:$0 sps:$4 sm:$0x11]   ;;  %7079 = vmatprep.mubr.bf16.mxu0 %v20912_v56  ;;  %7465 = vmatprep.mubr.bf16.mxu1 %v20912_v56  ;;  %v8703_v60 = vunpack.c.l.b16 %v14321_v58 }
 0x45b   : > { %v14287_v28 = vld [vmem:[#allocation6 + $0x308] ss:$52 sps:$4 sm:$0xff]   ;;  %v14324_v33 = vld [vmem:[#allocation2 + $0x78] ss:$0 sps:$4 sm:$0x11]   ;;  %13224 = vmatpush3.bf16.msra.mxu0 %v14285_v25  ;;  %8646 = vrot.lane.b32.xlu0 %v8644_v15, %s14755_s9  ;;  %v8705_v24 = vunpack.c.l.b16 %v14323_v19  ;;  %v8715_v62 = vsel %vm8518_vm7, %v8714_v45, %v8698_v3  ;;  %v8704_v25 = vunpack.c.l.b16 %v17879_v11  ;;  %v8716_v15 = vrot.slane %v8700_v7, 6 }
 0x45c   : > { %v14325_v2 = vld [vmem:[#allocation2 + $0x84] ss:$0 sps:$4 sm:$0x11]   ;;  %v14299_v31 = vld [vmem:[%s20677_s2 + $0xdc] ss:$16 sps:$4 sm:$0xff]   ;;  %v6359_v54 = vpop.f32.mrb[100].mxu0  ;;  %13225 = vmatprep.subr.bf16.mxu0 %v14286_v32  ;;  %8648 = vrot.lane.b32.xlu1 %v8645_v17, %s14755_s9  ;;  %v8706_v3 = vunpack.c.l.b16 %v14324_v33 }
 0x45d   : > { %v14326_v13 = vld [vmem:[#allocation2 + $0x90] ss:$0 sps:$4 sm:$0x11]   ;;  %v14327_v30 = vld [vmem:[#allocation2 + $0x9c] ss:$0 sps:$4 sm:$0x11]   ;;  %v8707_v18 = vunpack.c.l.b16 %v14325_v2  ;;  %v8717_v7 = vsel %vm8521_vm8, %v8716_v15, %v8715_v62 }
 0x45e   : > { %v14328_v34 = vld [vmem:[#allocation2 + $0xa8] ss:$0 sps:$4 sm:$0x11]   ;;  %v14329_v42 = vld [vmem:[#allocation2 + $0xb4] ss:$0 sps:$4 sm:$0x11]   ;;  %v8708_v58 = vunpack.c.l.b16 %v14326_v13  ;;  %v8709_v0 = vunpack.c.l.b16 %v14327_v30 }
 0x45f   : > { %v6745_v35 = vpop.f32.mrb[100].mxu1  ;;  %v14330_v47 = vld [vmem:[#allocation2 + $0xc0] ss:$0 sps:$4 sm:$0x11]   ;;  %8146 = vst [vmem:[%s17425_s29 + $0x770] sm:$0xff] %v6359_v54  ;;  %v6361_v19 = vpop.f32.mrb[101].mxu0  ;;  %v8710_v45 = vunpack.c.l.b16 %v14328_v34  ;;  %v8711_v11 = vunpack.c.l.b16 %v14329_v42  ;;  %13226 = vmatpush3.bf16.msra.mxu0 %v14287_v28 }
 0x460   : > { %8148 = vst [vmem:[%s17425_s29 + $0x780] sm:$0xff] %v6745_v35  ;;  %v6747_v2 = vpop.f32.mrb[101].mxu1  ;;  %v8718_v44 = vrot.slane %v8701_v38, 5  ;;  %v8720_v46 = vrot.slane %v8702_v12, 4  ;;  %8147 = vst [vmem:[%s17425_s29 + $0x778] sm:$0xff] %v6361_v19  ;;  %v6363_v32 = vpop.f32.mrb[102].mxu0  ;;  %v8712_v13 = vunpack.c.l.b16 %v14330_v47  ;;  %9563 = vmatprep.subr.bf16.mxu0 %v14299_v31 }
 0x461   : > { %8149 = vst [vmem:[%s17425_s29 + $0x788] sm:$0xff] %v6747_v2  ;;  %v6749_v17 = vpop.f32.mrb[102].mxu1  ;;  %v8722_v30 = vrot.slane %v8703_v60, 3  ;;  %8159 = vst [vmem:[%s17425_s29 + $0x7d8] sm:$0xff] %v6363_v32  ;;  %v6365_v54 = vpop.f32.mrb[103].mxu0  ;;  %v8726_v38 = vrot.slane %v8705_v24, 1  ;;  %12777 = vmatmul.mubr.msk.bf16.gmra.mrb[144].mxu0 %vm5195_vm4, %v17236_v36  ;;  %12793 = vmatmul.mubr.msk.bf16.gmra.mrb[144].mxu1 %vm5195_vm4, %v17236_v36 }
 0x462   : > { %8161 = vst [vmem:[%s17425_s29 + $0x7e8] sm:$0xff] %v6749_v17  ;;  %v6751_v35 = vpop.f32.mrb[103].mxu1  ;;  %v8719_v33 = vsel %vm8524_vm9, %v8718_v44, %v8717_v7  ;;  %v8728_v12 = vrot.slane %v8707_v18, 7  ;;  %v8730_v34 = vrot.slane %v8708_v58, 6  ;;  %8160 = vst [vmem:[%s17425_s29 + $0x7e0] sm:$0xff] %v6365_v54  ;;  %v8732_v42 = vrot.slane %v8709_v0, 5  ;;  %7089 = vmatprep.mubr.bf16.mxu0 %v20912_v56  ;;  %7475 = vmatprep.mubr.bf16.mxu1 %v20912_v56 }
 0x463   : > { %8162 = vst [vmem:[%s17425_s29 + $0x7f0] sm:$0xff] %v6751_v35  ;;  %v8721_v19 = vsel %vm8527_vm11, %v8720_v46, %v8719_v33  ;;  %v14334_v47 = vld [vmem:[#allocation2 + $0xcc] ss:$0 sps:$4 sm:$0x11]   ;;  %v8724_v28 = vrot.slane %v8704_v25, 2  ;;  %v8727_v44 = vsel %vm8536_vm10, %v8706_v3, %v8726_v38  ;;  %v8734_v60 = vrot.slane %v8710_v45, 4 }
 0x464   : > { %v8723_v46 = vsel %vm8530_vm12, %v8722_v30, %v8721_v19  ;;  %v8729_v0 = vsel %vm8518_vm7, %v8728_v12, %v8727_v44  ;;  %v8736_v31 = vrot.slane %v8711_v11, 3  ;;  %v8713_v24 = vunpack.c.l.b16 %v14334_v47  ;;  %v6369_v25 = vpop.f32.mrb[104].mxu0  ;;  %v6755_v58 = vpop.f32.mrb[104].mxu1  ;;  %v14277_v32 = vld [vmem:[#allocation2 + $0x20] ss:$0 sps:$4 sm:$0x11]  }
 0x465   : > { %v8731_v18 = vsel %vm8521_vm8, %v8730_v34, %v8729_v0  ;;  %v8738_v62 = vrot.slane %v8712_v13, 2  ;;  %8172 = vst [vmem:[%s17425_s29 + $0x840] sm:$0xff] %v6369_v25  ;;  %8174 = vst [vmem:[%s17425_s29 + $0x850] sm:$0xff] %v6755_v58  ;;  %v6371_v3 = vpop.f32.mrb[105].mxu0  ;;  %v6757_v45 = vpop.f32.mrb[105].mxu1  ;;  %v8725_v17 = vsel %vm8533_vm13, %v8724_v28, %v8723_v46  ;;  %v8945_v34 = vunpack.c.l.b16 %v14277_v32 }
 0x466   : > { %v8733_v15 = vsel %vm8524_vm9, %v8732_v42, %v8731_v18  ;;  %v8740_v2 = vrot.slane %v8713_v24, 1  ;;  %8173 = vst [vmem:[%s17425_s29 + $0x848] sm:$0xff] %v6371_v3  ;;  %8175 = vst [vmem:[%s17425_s29 + $0x858] sm:$0xff] %v6757_v45  ;;  %v6373_v13 = vpop.f32.mrb[106].mxu0  ;;  %v6759_v7 = vpop.f32.mrb[106].mxu1  ;;  %v8944_v44 = vunpack.c.l.b16 %v17716_v1 }
 0x467   : > { %v8735_v11 = vsel %vm8527_vm11, %v8734_v60, %v8733_v15  ;;  %8185 = vst [vmem:[%s17425_s29 + $0x8a8] sm:$0xff] %v6373_v13  ;;  %8187 = vst [vmem:[%s17425_s29 + $0x8b8] sm:$0xff] %v6759_v7  ;;  %v6375_v35 = vpop.f32.mrb[107].mxu0  ;;  %v6761_v33 = vpop.f32.mrb[107].mxu1  ;;  %v8960_v60 = vrot.slane %v8945_v34, 7 }
 0x468   : > { %v8737_v30 = vsel %vm8530_vm12, %v8736_v31, %v8735_v11  ;;  %v8742_v54 = vpack.c.b16 %v8740_v2, %v8740_v2  ;;  %8186 = vst [vmem:[%s17425_s29 + $0x8b0] sm:$0xff] %v6375_v35  ;;  %8188 = vst [vmem:[%s17425_s29 + $0x8c0] sm:$0xff] %v6761_v33  ;;  %v14352_v31 = vld [vmem:[#allocation2 + $0x2c] ss:$0 sps:$4 sm:$0x11]  }
 0x469   : > { %v8739_v38 = vsel %vm8533_vm13, %v8738_v62, %v8737_v30  ;;  %12778 = vmatmul.mubr.msk.bf16.gmra.mrb[148].mxu0 %vm5195_vm4, %v17248_v55  ;;  %12794 = vmatmul.mubr.msk.bf16.gmra.mrb[148].mxu1 %vm5195_vm4, %v17248_v55  ;;  %v14353_v62 = vld [vmem:[#allocation2 + $0x38] ss:$0 sps:$4 sm:$0x11]   ;;  %v14354_v25 = vld [vmem:[#allocation2 + $0x44] ss:$0 sps:$4 sm:$0x11]   ;;  %v8946_v15 = vunpack.c.l.b16 %v14352_v31  ;;  %v8961_v1 = vsel %vm8536_vm10, %v8960_v60, %v8944_v44 }
 0x46a   : > { %v8741_v12 = vpack.c.b16 %v8739_v38, %v8725_v17  ;;  %8745 = vrot.lane.b32.xlu1 %v8742_v54, %s14753_s21  ;;  %7099 = vmatprep.mubr.bf16.mxu0 %v20912_v56  ;;  %v14359_v58 = vld [vmem:[#allocation2 + $0x80] ss:$0 sps:$4 sm:$0x11]   ;;  %v14355_v2 = vld [vmem:[#allocation2 + $0x50] ss:$0 sps:$4 sm:$0x11]   ;;  %v8947_v32 = vunpack.c.l.b16 %v14353_v62  ;;  %v8948_v11 = vunpack.c.l.b16 %v14354_v25 }
 0x46b   : > { %7485 = vmatprep.mubr.bf16.mxu1 %v20912_v56  ;;  %v17950_v3 = vld [vmem:[#allocation2 + $0x74] ss:$0 sps:$4 sm:$0x11]   ;;  %v14360_v45 = vld [vmem:[#allocation2 + $0x8c] ss:$0 sps:$4 sm:$0x11]   ;;  %v8949_v54 = vunpack.c.l.b16 %v14355_v2  ;;  %v8953_v60 = vunpack.c.l.b16 %v14359_v58 }
 0x46c   : > { %8743 = vrot.lane.b32.xlu0 %v8741_v12, %s14753_s21  ;;  %v6379_v19 = vpop.f32.mrb[108].mxu0  ;;  %v6765_v42 = vpop.f32.mrb[108].mxu1  ;;  %v14356_v17 = vld [vmem:[#allocation2 + $0x5c] ss:$0 sps:$4 sm:$0x11]   ;;  %v8962_v13 = vrot.slane %v8946_v15, 6  ;;  %v8952_v58 = vunpack.c.l.b16 %v17950_v3 }
 0x46d   : > { %8198 = vst [vmem:[%s17425_s29 + $0x910] sm:$0xff] %v6379_v19  ;;  %8200 = vst [vmem:[%s17425_s29 + $0x920] sm:$0xff] %v6765_v42  ;;  %v6381_v47 = vpop.f32.mrb[109].mxu0  ;;  %v6767_v28 = vpop.f32.mrb[109].mxu1  ;;  %v8950_v12 = vunpack.c.l.b16 %v14356_v17  ;;  %v8964_v19 = vrot.slane %v8947_v32, 5  ;;  %v8966_v15 = vrot.slane %v8948_v11, 4 }
 0x46e   : > { %8199 = vst [vmem:[%s17425_s29 + $0x918] sm:$0xff] %v6381_v47  ;;  %8201 = vst [vmem:[%s17425_s29 + $0x928] sm:$0xff] %v6767_v28  ;;  %v6383_v46 = vpop.f32.mrb[110].mxu0  ;;  %v6769_v0 = vpop.f32.mrb[110].mxu1  ;;  %v8963_v34 = vsel %vm8518_vm7, %v8962_v13, %v8961_v1  ;;  %v8968_v17 = vrot.slane %v8949_v54, 3 }
 0x46f   : > { %8211 = vst [vmem:[%s17425_s29 + $0x978] sm:$0xff] %v6383_v46  ;;  %8213 = vst [vmem:[%s17425_s29 + $0x988] sm:$0xff] %v6769_v0  ;;  %v6385_v24 = vpop.f32.mrb[111].mxu0  ;;  %v6771_v18 = vpop.f32.mrb[111].mxu1  ;;  %v8954_v46 = vunpack.c.l.b16 %v14360_v45  ;;  %v8965_v25 = vsel %vm8521_vm8, %v8964_v19, %v8963_v34 }
 0x470   : > { %8212 = vst [vmem:[%s17425_s29 + $0x980] sm:$0xff] %v6385_v24  ;;  %8214 = vst [vmem:[%s17425_s29 + $0x990] sm:$0xff] %v6771_v18  ;;  %v14357_v7 = vld [vmem:[#allocation2 + $0x68] ss:$0 sps:$4 sm:$0x11]  }
 0x471   : > { %12779 = vmatmul.mubr.msk.bf16.gmra.mrb[152].mxu0 %vm5195_vm4, %v17260_v43  ;;  %12795 = vmatmul.mubr.msk.bf16.gmra.mrb[152].mxu1 %vm5195_vm4, %v17260_v43  ;;  %v14361_v30 = vld [vmem:[#allocation2 + $0x98] ss:$0 sps:$4 sm:$0x11]   ;;  %v14362_v38 = vld [vmem:[#allocation2 + $0xa4] ss:$0 sps:$4 sm:$0x11]   ;;  %v8951_v44 = vunpack.c.l.b16 %v14357_v7  ;;  %v8967_v7 = vsel %vm8524_vm9, %v8966_v15, %v8965_v25 }
 0x472   : > { %7109 = vmatprep.mubr.bf16.mxu0 %v20912_v56  ;;  %7495 = vmatprep.mubr.bf16.mxu1 %v20912_v56  ;;  %v14363_v28 = vld [vmem:[#allocation2 + $0xb0] ss:$0 sps:$4 sm:$0x11]   ;;  %v14364_v24 = vld [vmem:[#allocation2 + $0xbc] ss:$0 sps:$4 sm:$0x11]   ;;  %v8955_v18 = vunpack.c.l.b16 %v14361_v30  ;;  %v8956_v62 = vunpack.c.l.b16 %v14362_v38 }
 0x473   : > { %v14365_v32 = vld [vmem:[#allocation2 + $0xc8] ss:$0 sps:$4 sm:$0x11]   ;;  %v8957_v45 = vunpack.c.l.b16 %v14363_v28  ;;  %v8958_v13 = vunpack.c.l.b16 %v14364_v24  ;;  %v14366_v30 = vld [vmem:[#allocation2 + $0x20] ss:$0 sps:$4 sm:$0x11]  }
 0x474   : > { %v6389_v35 = vpop.f32.mrb[112].mxu0  ;;  %v6775_v33 = vpop.f32.mrb[112].mxu1  ;;  %v8959_v11 = vunpack.c.l.b16 %v14365_v32  ;;  %v8974_v38 = vrot.slane %v8953_v60, 7  ;;  %v8976_v3 = vrot.slane %v8954_v46, 6  ;;  %v8972_v54 = vrot.slane %v8951_v44, 1 }
 0x475   : > { %8224 = vst [vmem:[%s17425_s29 + $0x9e0] sm:$0xff] %v6389_v35  ;;  %8226 = vst [vmem:[%s17425_s29 + $0x9f0] sm:$0xff] %v6775_v33  ;;  %v6391_v42 = vpop.f32.mrb[113].mxu0  ;;  %v6777_v47 = vpop.f32.mrb[113].mxu1  ;;  %v8970_v35 = vrot.slane %v8950_v12, 2  ;;  %v8969_v33 = vsel %vm8527_vm11, %v8968_v17, %v8967_v7  ;;  %v8978_v12 = vrot.slane %v8955_v18, 5  ;;  %v9039_v15 = vunpack.c.l.b16 %v14366_v30 }
 0x476   : > { %8225 = vst [vmem:[%s17425_s29 + $0x9e8] sm:$0xff] %v6391_v42  ;;  %8227 = vst [vmem:[%s17425_s29 + $0x9f8] sm:$0xff] %v6777_v47  ;;  %v6393_v0 = vpop.f32.mrb[114].mxu0  ;;  %v6779_v31 = vpop.f32.mrb[114].mxu1  ;;  %v8980_v19 = vrot.slane %v8956_v62, 4  ;;  %v8975_v28 = vsel %vm8536_vm10, %v8974_v38, %v8952_v58  ;;  %v8986_v58 = vrot.slane %v8959_v11, 1 }
 0x477   : > { %8237 = vst [vmem:[%s17425_s29 + $0xa48] sm:$0xff] %v6393_v0  ;;  %8239 = vst [vmem:[%s17425_s29 + $0xa58] sm:$0xff] %v6779_v31  ;;  %v6395_v1 = vpop.f32.mrb[115].mxu0  ;;  %v6781_v2 = vpop.f32.mrb[115].mxu1  ;;  %v8971_v47 = vsel %vm8530_vm12, %v8970_v35, %v8969_v33  ;;  %v8982_v0 = vrot.slane %v8957_v45, 3  ;;  %v8984_v31 = vrot.slane %v8958_v13, 2  ;;  %v8977_v25 = vsel %vm8518_vm7, %v8976_v3, %v8975_v28 }
 0x478   : > { %8238 = vst [vmem:[%s17425_s29 + $0xa50] sm:$0xff] %v6395_v1  ;;  %8240 = vst [vmem:[%s17425_s29 + $0xa60] sm:$0xff] %v6781_v2  ;;  %v14367_v34 = vld [vmem:[#allocation2 + $0x2c] ss:$0 sps:$4 sm:$0x11]   ;;  %v8979_v32 = vsel %vm8521_vm8, %v8978_v12, %v8977_v25  ;;  %v8973_v3 = vsel %vm8533_vm13, %v8972_v54, %v8971_v47 }
 0x479   : > { %12780 = vmatmul.mubr.msk.bf16.gmra.mrb[156].mxu0 %vm5195_vm4, %v17272_v40  ;;  %12796 = vmatmul.mubr.msk.bf16.gmra.mrb[156].mxu1 %vm5195_vm4, %v17272_v40  ;;  %v14368_v42 = vld [vmem:[#allocation2 + $0x38] ss:$0 sps:$4 sm:$0x11]   ;;  %v17975_v60 = vld [vmem:[#allocation2 + $0x44] ss:$0 sps:$4 sm:$0x11]   ;;  %v9040_v18 = vunpack.c.l.b16 %v14367_v34  ;;  %v8981_v7 = vsel %vm8524_vm9, %v8980_v19, %v8979_v32 }
 0x47a   : > { %7119 = vmatprep.mubr.bf16.mxu0 %v20912_v56  ;;  %7505 = vmatprep.mubr.bf16.mxu1 %v20912_v56  ;;  %v14370_v44 = vld [vmem:[#allocation2 + $0x50] ss:$0 sps:$4 sm:$0x11]   ;;  %v9041_v62 = vunpack.c.l.b16 %v14368_v42  ;;  %v14371_v45 = vld [vmem:[#allocation2 + $0x5c] ss:$0 sps:$4 sm:$0x11]   ;;  %v8983_v34 = vsel %vm8527_vm11, %v8982_v0, %v8981_v7  ;;  %v9042_v19 = vunpack.c.l.b16 %v17975_v60 }
 0x47b   : > { %v14372_v35 = vld [vmem:[#allocation2 + $0x68] ss:$0 sps:$4 sm:$0x11]   ;;  %v9055_v30 = vrot.slane %v9040_v18, 7  ;;  %v8985_v42 = vsel %vm8530_vm12, %v8984_v31, %v8983_v34  ;;  %v9044_v18 = vunpack.c.l.b16 %v14371_v45 }
 0x47c   : > { %v6399_v46 = vpop.f32.mrb[116].mxu0  ;;  %v6785_v24 = vpop.f32.mrb[116].mxu1  ;;  %v17988_v11 = vld [vmem:[#allocation2 + $0x74] ss:$0 sps:$4 sm:$0x11]   ;;  %v9057_v12 = vrot.slane %v9041_v62, 6  ;;  %v8987_v54 = vsel %vm8533_vm13, %v8986_v58, %v8985_v42  ;;  %v9045_v62 = vunpack.c.l.b16 %v14372_v35 }
 0x47d   : > { %8250 = vst [vmem:[%s17425_s29 + $0xab0] sm:$0xff] %v6399_v46  ;;  %8252 = vst [vmem:[%s17425_s29 + $0xac0] sm:$0xff] %v6785_v24  ;;  %v6401_v1 = vpop.f32.mrb[117].mxu0  ;;  %v6787_v2 = vpop.f32.mrb[117].mxu1  ;;  %v9043_v24 = vunpack.c.l.b16 %v14370_v44  ;;  %v9056_v25 = vsel %vm8536_vm10, %v9055_v30, %v9039_v15  ;;  %v8988_v31 = vpack.c.b16 %v8987_v54, %v8973_v3  ;;  %v9046_v15 = vunpack.c.l.b16 %v17988_v11 }
 0x47e   : > { %8251 = vst [vmem:[%s17425_s29 + $0xab8] sm:$0xff] %v6401_v1  ;;  %8253 = vst [vmem:[%s17425_s29 + $0xac8] sm:$0xff] %v6787_v2  ;;  %v6403_v17 = vpop.f32.mrb[118].mxu0  ;;  %v6789_v13 = vpop.f32.mrb[118].mxu1  ;;  %v9058_v45 = vsel %vm8518_vm7, %v9057_v12, %v9056_v25 }
 0x47f   : > { %8263 = vst [vmem:[%s17425_s29 + $0xb18] sm:$0xff] %v6403_v17  ;;  %8265 = vst [vmem:[%s17425_s29 + $0xb28] sm:$0xff] %v6789_v13  ;;  %v6405_v33 = vpop.f32.mrb[119].mxu0  ;;  %v6791_v38 = vpop.f32.mrb[119].mxu1  ;;  %8989 = vrot.lane.b32.xlu0 %v8988_v31, %s14755_s9  ;;  %v9061_v3 = vrot.slane %v9043_v24, 4 }
 0x480   : > { %8264 = vst [vmem:[%s17425_s29 + $0xb20] sm:$0xff] %v6405_v33  ;;  %8266 = vst [vmem:[%s17425_s29 + $0xb30] sm:$0xff] %v6791_v38  ;;  %v14374_v28 = vld [vmem:[#allocation2 + $0x80] ss:$0 sps:$4 sm:$0x11]   ;;  %v9059_v38 = vrot.slane %v9042_v19, 5 }
 0x481   : > { %v14375_v46 = vld [vmem:[#allocation2 + $0x8c] ss:$0 sps:$4 sm:$0x11]   ;;  %12781 = vmatmul.mubr.msk.bf16.gmra.mrb[160].mxu0 %vm5195_vm4, %v17284_v14  ;;  %12797 = vmatmul.mubr.msk.bf16.gmra.mrb[160].mxu1 %vm5195_vm4, %v17284_v14  ;;  %v14376_v47 = vld [vmem:[#allocation2 + $0x98] ss:$0 sps:$4 sm:$0x11]   ;;  %v9047_v17 = vunpack.c.l.b16 %v14374_v28 }
 0x482   : > { %v14377_v0 = vld [vmem:[#allocation2 + $0xa4] ss:$0 sps:$4 sm:$0x11]   ;;  %7129 = vmatprep.mubr.bf16.mxu0 %v20912_v56  ;;  %7515 = vmatprep.mubr.bf16.mxu1 %v20912_v56  ;;  %v14378_v60 = vld [vmem:[#allocation2 + $0xb0] ss:$0 sps:$4 sm:$0x11]   ;;  %v9048_v1 = vunpack.c.l.b16 %v14375_v46  ;;  %v9049_v58 = vunpack.c.l.b16 %v14376_v47  ;;  %v9060_v47 = vsel %vm8521_vm8, %v9059_v38, %v9058_v45 }
 0x483   : > { %v14379_v44 = vld [vmem:[#allocation2 + $0xbc] ss:$0 sps:$4 sm:$0x11]   ;;  %v14380_v2 = vld [vmem:[#allocation2 + $0xc8] ss:$0 sps:$4 sm:$0x11]   ;;  %v9050_v13 = vunpack.c.l.b16 %v14377_v0  ;;  %v9051_v30 = vunpack.c.l.b16 %v14378_v60  ;;  %v9062_v60 = vsel %vm8524_vm9, %v9061_v3, %v9060_v47 }
 0x484   : > { %v14381_v32 = vld [vmem:[#allocation2 + $0xd4] ss:$0 sps:$4 sm:$0x11]   ;;  %v6409_v7 = vpop.f32.mrb[120].mxu0  ;;  %v6795_v35 = vpop.f32.mrb[120].mxu1  ;;  %v9052_v33 = vunpack.c.l.b16 %v14379_v44  ;;  %v9053_v42 = vunpack.c.l.b16 %v14380_v2  ;;  %v9063_v28 = vrot.slane %v9044_v18, 3 }
 0x485   : > { %8276 = vst [vmem:[%s17425_s29 + $0xb80] sm:$0xff] %v6409_v7  ;;  %8278 = vst [vmem:[%s17425_s29 + $0xb90] sm:$0xff] %v6795_v35  ;;  %v6411_v34 = vpop.f32.mrb[121].mxu0  ;;  %v6797_v11 = vpop.f32.mrb[121].mxu1  ;;  %v9065_v46 = vrot.slane %v9045_v62, 2  ;;  %v9054_v54 = vunpack.c.l.b16 %v14381_v32  ;;  %v9069_v19 = vrot.slane %v9048_v1, 7 }
 0x486   : > { %8277 = vst [vmem:[%s17425_s29 + $0xb88] sm:$0xff] %v6411_v34  ;;  %8279 = vst [vmem:[%s17425_s29 + $0xb98] sm:$0xff] %v6797_v11  ;;  %v6413_v12 = vpop.f32.mrb[122].mxu0  ;;  %v6799_v25 = vpop.f32.mrb[122].mxu1  ;;  %v9071_v24 = vrot.slane %v9049_v58, 6  ;;  %v9073_v44 = vrot.slane %v9050_v13, 5  ;;  %v9064_v62 = vsel %vm8527_vm11, %v9063_v28, %v9062_v60 }
 0x487   : > { %8289 = vst [vmem:[%s17425_s29 + $0xbe8] sm:$0xff] %v6413_v12  ;;  %8291 = vst [vmem:[%s17425_s29 + $0xbf8] sm:$0xff] %v6799_v25  ;;  %v6415_v0 = vpop.f32.mrb[123].mxu0  ;;  %v6801_v31 = vpop.f32.mrb[123].mxu1  ;;  %v9075_v18 = vrot.slane %v9051_v30, 4  ;;  %v9067_v2 = vrot.slane %v9046_v15, 1  ;;  %v9070_v7 = vsel %vm8536_vm10, %v9069_v19, %v9047_v17  ;;  %v9066_v1 = vsel %vm8530_vm12, %v9065_v46, %v9064_v62 }
 0x488   : > { %8290 = vst [vmem:[%s17425_s29 + $0xbf0] sm:$0xff] %v6415_v0  ;;  %8292 = vst [vmem:[%s17425_s29 + $0xc00] sm:$0xff] %v6801_v31  ;;  %v9077_v32 = vrot.slane %v9052_v33, 3  ;;  %v9072_v58 = vsel %vm8518_vm7, %v9071_v24, %v9070_v7  ;;  %v9079_v13 = vrot.slane %v9053_v42, 2  ;;  %v9081_v17 = vrot.slane %v9054_v54, 1  ;;  %v20997_v47 = vld [vmem:[#allocation39_spill] sm:$0xff] }
 0x489   : > { %12782 = vmatmul.mubr.msk.bf16.gmra.mrb[164].mxu0 %vm5195_vm4, %v17296_v26  ;;  %12798 = vmatmul.mubr.msk.bf16.gmra.mrb[164].mxu1 %vm5195_vm4, %v17296_v26  ;;  %v9074_v15 = vsel %vm8521_vm8, %v9073_v44, %v9072_v58  ;;  %v9068_v33 = vsel %vm8533_vm13, %v9067_v2, %v9066_v1  ;;  %v14288_v19 = vld [vmem:[%s20677_s2] ss:$16 sps:$4 sm:$0xff]   ;;  %v14296_v24 = vld [vmem:[%s20677_s2 + $0x24] ss:$16 sps:$4 sm:$0xff]   ;;  %v14297_v0 = vld [vmem:[%s20677_s2 + $0xd8] ss:$16 sps:$4 sm:$0xff]  }
 0x48a   : > { %7139 = vmatprep.mubr.bf16.mxu0 %v20912_v56  ;;  %7525 = vmatprep.mubr.bf16.mxu1 %v20912_v56  ;;  %v9076_v45 = vsel %vm8524_vm9, %v9075_v18, %v9074_v15  ;;  %v20998_v31 = vld [vmem:[#allocation47_spill] sm:$0xff]  ;;  %v14294_v60 = vld [vmem:[%s20677_s2 + $0x20] ss:$16 sps:$4 sm:$0xff]   ;;  %v14387_v2 = vld [vmem:[%s20677_s2 + $0x13c] ss:$16 sps:$4 sm:$0xff]  }
 0x48b   : > { %v9078_v38 = vsel %vm8527_vm11, %v9077_v32, %v9076_v45  ;;  %v14333_v44 = vld [vmem:[%s20677_s2 + $0x44] ss:$16 sps:$4 sm:$0xff]   ;;  %v14347_v62 = vld [vmem:[%s20677_s2 + $0x118] ss:$16 sps:$4 sm:$0xff]   ;;  %v14335_v7 = vld [vmem:[%s20677_s2 + $0x60] ss:$16 sps:$4 sm:$0xff]  }
 0x48c   : > { %v6419_v35 = vpop.f32.mrb[124].mxu0  ;;  %v6805_v30 = vpop.f32.mrb[124].mxu1  ;;  %v9080_v11 = vsel %vm8530_vm12, %v9079_v13, %v9078_v38  ;;  %v14337_v18 = vld [vmem:[%s20677_s2 + $0x64] ss:$16 sps:$4 sm:$0xff]   ;;  %v14405_v32 = vld [vmem:[%s20677_s2 + $0x15c] ss:$16 sps:$4 sm:$0xff]  }
 0x48d   : > { %8302 = vst [vmem:[%s17425_s29 + $0xc50] sm:$0xff] %v6419_v35  ;;  %8304 = vst [vmem:[%s17425_s29 + $0xc60] sm:$0xff] %v6805_v30  ;;  %v6421_v3 = vpop.f32.mrb[125].mxu0  ;;  %v6807_v34 = vpop.f32.mrb[125].mxu1  ;;  %v9082_v46 = vsel %vm8533_vm13, %v9081_v17, %v9080_v11  ;;  %v14346_v1 = vld [vmem:[%s20677_s2 + $0xa4] ss:$16 sps:$4 sm:$0xff]  }
 0x48e   : > { %8303 = vst [vmem:[%s17425_s29 + $0xc58] sm:$0xff] %v6421_v3  ;;  %8305 = vst [vmem:[%s17425_s29 + $0xc68] sm:$0xff] %v6807_v34  ;;  %v6423_v42 = vpop.f32.mrb[126].mxu0  ;;  %v6809_v28 = vpop.f32.mrb[126].mxu1  ;;  %v9083_v54 = vpack.c.b16 %v9082_v46, %v9068_v33  ;;  %v14403_v13 = vld [vmem:[%s20677_s2 + $0x158] ss:$16 sps:$4 sm:$0xff]  }
 0x48f   : > { %8315 = vst [vmem:[%s17425_s29 + $0xcb8] sm:$0xff] %v6423_v42  ;;  %8317 = vst [vmem:[%s17425_s29 + $0xcc8] sm:$0xff] %v6809_v28  ;;  %v6425_v12 = vpop.f32.mrb[127].mxu0  ;;  %v6811_v25 = vpop.f32.mrb[127].mxu1  ;;  %v12977_v15 = vld [vmem:[%s20677_s2 + $0x198] sm:$0x11] }
 0x490   : > { %8316 = vst [vmem:[%s17425_s29 + $0xcc0] sm:$0xff] %v6425_v12  ;;  %8318 = vst [vmem:[%s17425_s29 + $0xcd0] sm:$0xff] %v6811_v25  ;;  %9084 = vrot.lane.b32.xlu1 %v9083_v54, %s14753_s21  ;;  %v14419_v17 = vld [vmem:[%s20677_s2 + $0x17c] ss:$16 sps:$4 sm:$0xff]   ;;  %v21005_v12 = vld [vmem:[#allocation37_spill] sm:$0xff] }
 0x491   : > { %12783 = vmatmul.mubr.msk.bf16.gmra.mrb[168].mxu0 %vm5195_vm4, %v17308_v48  ;;  %12799 = vmatmul.mubr.msk.bf16.gmra.mrb[168].mxu1 %vm5195_vm4, %v17308_v48  ;;  %v14344_v45 = vld [vmem:[%s20677_s2 + $0xa0] ss:$16 sps:$4 sm:$0xff]   ;;  %v14417_v30 = vld [vmem:[%s20677_s2 + $0x178] ss:$16 sps:$4 sm:$0xff]   ;;  %v14384_v38 = vld [vmem:[%s20677_s2 + $0xc] ss:$16 sps:$4 sm:$0xff]  }
 0x492   : > { %7149 = vmatprep.mubr.bf16.mxu0 %v20912_v56  ;;  %7535 = vmatprep.mubr.bf16.mxu1 %v20912_v56  ;;  %v14444_v34 = vld [vmem:[%s20677_s2 + $0x1ac] ss:$16 sps:$4 sm:$0xff]   ;;  %v14397_v11 = vld [vmem:[%s20677_s2 + $0x88] ss:$16 sps:$4 sm:$0xff]  }
 0x493   : > { %v14402_v42 = vld [vmem:[%s20677_s2 + $0xac] ss:$16 sps:$4 sm:$0xff]   ;;  %v14400_v25 = vld [vmem:[%s20677_s2 + $0xa8] ss:$16 sps:$4 sm:$0xff]  }
 0x494   : > { %v21004_v46 = vld [vmem:[#allocation44_spill] sm:$0xff] }
 0x499   : > { %12784 = vmatmul.mubr.msk.bf16.gmra.mrb[172].mxu0 %vm5195_vm4, %v17320_v37  ;;  %12800 = vmatmul.mubr.msk.bf16.gmra.mrb[172].mxu1 %vm5195_vm4, %v17320_v37 }
 0x49a   : > { %7159 = vmatprep.mubr.bf16.mxu0 %v20912_v56  ;;  %7545 = vmatprep.mubr.bf16.mxu1 %v20912_v56 }
 0x4a1   : > { %12785 = vmatmul.mubr.msk.bf16.gmra.mrb[176].mxu0 %vm5195_vm4, %v17332_v61  ;;  %12801 = vmatmul.mubr.msk.bf16.gmra.mrb[176].mxu1 %vm5195_vm4, %v17332_v61 }
 0x4a2   : > { %7169 = vmatprep.mubr.bf16.mxu0 %v20912_v56  ;;  %7555 = vmatprep.mubr.bf16.mxu1 %v20912_v56 }
 0x4a9   : > { %12786 = vmatmul.mubr.msk.bf16.gmra.mrb[180].mxu0 %vm5195_vm4, %v17344_v50  ;;  %12802 = vmatmul.mubr.msk.bf16.gmra.mrb[180].mxu1 %vm5195_vm4, %v17344_v50 }
 0x4aa   : > { %7179 = vmatprep.mubr.bf16.mxu0 %v20912_v56  ;;  %7565 = vmatprep.mubr.bf16.mxu1 %v20912_v56 }
 0x4b1   : > { %12787 = vmatmul.mubr.msk.bf16.gmra.mrb[184].mxu0 %vm5195_vm4, %v17356_v57  ;;  %12803 = vmatmul.mubr.msk.bf16.gmra.mrb[184].mxu1 %vm5195_vm4, %v17356_v57 }
 0x4b2   : > { %7189 = vmatprep.mubr.bf16.mxu0 %v20912_v56  ;;  %7575 = vmatprep.mubr.bf16.mxu1 %v20912_v56 }
 0x4b9   : > { %12788 = vmatmul.mubr.msk.bf16.gmra.mrb[188].mxu0 %vm5195_vm4, %v17368_v10  ;;  %12804 = vmatmul.mubr.msk.bf16.gmra.mrb[188].mxu1 %vm5195_vm4, %v17368_v10 }
 0x4ba   : > { %7618 = vmatprep.mubr.bf16.mxu0 %v20997_v47  ;;  %13364 = vmatprep.mubr.msk.bf16.mxu1 %vm5195_vm4, %v17188_v59  ;;  %v14340_v59 = vld [vmem:[%s20677_s2 + $0xfc] ss:$16 sps:$4 sm:$0xff]  }
 0x4c1   : > { %7619 = vmatmul.mubr.bf16.vlgmr.msra.gmra.mrb[192].mxu0 %v20998_v31  ;;  %13365 = vmatmul.mubr.msk.bf16.vlgmr.msra.gmra.mrb[192].mxu1 %vm5195_vm4, %v17200_v63  ;;  %v14338_v63 = vld [vmem:[%s20677_s2 + $0xf8] ss:$16 sps:$4 sm:$0xff]  }
 0x4c2   : > { %9264 = vmatpush1.bf16.msra.mxu1 %v14288_v19  ;;  %7626 = vmatprep.mubr.bf16.mxu0 %v20978_v6  ;;  %v14331_v6 = vld [vmem:[%s20677_s2 + $0x40] ss:$16 sps:$4 sm:$0xff]  }
 0x4c3   : > { %13368 = vmatprep.mubr.msk.bf16.mxu1 %vm5195_vm4, %v17212_v8  ;;  %9265 = vmatprep.subr.bf16.mxu1 %v14296_v24  ;;  %v14349_v8 = vld [vmem:[%s20677_s2 + $0x11c] ss:$16 sps:$4 sm:$0xff]  }
 0x4c4   : > { %9564 = vmatpush1.bf16.msra.mxu0 %v14297_v0 }
 0x4c5   : > { %9565 = vmatprep.subr.bf16.mxu0 %v14340_v59 }
 0x4c6   : > { %9266 = vmatpush1.bf16.msra.mxu1 %v14294_v60 }
 0x4c7   : > { %9267 = vmatprep.subr.bf16.mxu1 %v14333_v44 }
 0x4c8   : > { %9566 = vmatpush1.bf16.msra.mxu0 %v14338_v63  ;;  %v14410_v63 = vld [vmem:[%s20677_s2 + $0xd4] ss:$16 sps:$4 sm:$0xff]  }
 0x4c9   : > { %7627 = vmatmul.mubr.bf16.gmra.mrb[196].mxu0 %v20979_v52  ;;  %13369 = vmatmul.mubr.msk.bf16.gmra.mrb[196].mxu1 %vm5195_vm4, %v17224_v22  ;;  %v14343_v22 = vld [vmem:[%s20677_s2 + $0x84] ss:$16 sps:$4 sm:$0xff]   ;;  %v14385_v52 = vld [vmem:[%s20677_s2 + $0x138] ss:$16 sps:$4 sm:$0xff]  }
 0x4ca   : > { %7634 = vmatprep.mubr.bf16.mxu0 %v20980_v51  ;;  %13372 = vmatprep.mubr.msk.bf16.mxu1 %vm5195_vm4, %v17236_v36  ;;  %v9116_v36 = vld [vmem:[%s20677_s2 + $0xc0] sm:$0x11] }
 0x4cb   : > { %9268 = vmatpush1.bf16.msra.mxu1 %v14331_v6  ;;  %9567 = vmatprep.subr.bf16.mxu0 %v14349_v8  ;;  %v14341_v51 = vld [vmem:[%s20677_s2 + $0x80] ss:$16 sps:$4 sm:$0xff]   ;;  %v12947_v58 = vcombine.high %v9116_v36, %v9116_v36  ;;  %v12946_v35 = vcombine.low %v9116_v36, %v9116_v36  ;;  %v14413_v36 = vld [vmem:[%s20677_s2 + $0xf4] ss:$16 sps:$4 sm:$0xff]  }
 0x4cc   : > { %9269 = vmatprep.subr.bf16.mxu1 %v14337_v18  ;;  %9568 = vmatpush1.bf16.msra.mxu0 %v14347_v62  ;;  %v14452_v18 = vld [vmem:[#allocation2 + $0x54] ss:$0 sps:$4 sm:$0x11]   ;;  %v21006_v62 = vld [vmem:[#allocation45_spill] sm:$0xff] }
 0x4cd   : > { %9569 = vmatprep.subr.bf16.mxu0 %v14387_v2  ;;  %v14408_v2 = vld [vmem:[%s20677_s2 + $0xd0] ss:$16 sps:$4 sm:$0xff]  }
 0x4cf   : > { %9270 = vmatpush1.bf16.msra.mxu1 %v14335_v7  ;;  %v21007_v7 = vld [vmem:[#allocation40_spill] sm:$0xff] }
 0x4d0   : > { %9271 = vmatprep.subr.bf16.mxu1 %v14343_v22  ;;  %9570 = vmatpush1.bf16.msra.mxu0 %v14385_v52  ;;  %v14446_v22 = vld [vmem:[#allocation2 + $0xc] ss:$0 sps:$4 sm:$0x11]  }
 0x4d1   : > { %7635 = vmatmul.mubr.bf16.gmra.mrb[200].mxu0 %v20981_v27  ;;  %13373 = vmatmul.mubr.msk.bf16.gmra.mrb[200].mxu1 %vm5195_vm4, %v17248_v55  ;;  %v13005_v27 = vcombine.high %v12977_v15, %v12977_v15  ;;  %v9255_v55 = vand.u32 %v12947_v58, %v16848_v53  ;;  %v14454_v52 = vld [vmem:[#allocation2 + $0x6c] ss:$0 sps:$4 sm:$0x11]  }
 0x4d2   : > { %7642 = vmatprep.mubr.bf16.mxu0 %v20982_v20  ;;  %13376 = vmatprep.mubr.msk.bf16.mxu1 %vm5195_vm4, %v17260_v43  ;;  %v13004_v20 = vcombine.low %v12977_v15, %v12977_v15  ;;  %v9252_v43 = vand.u32 %v12946_v35, %v16848_v53  ;;  %v14447_v15 = vld [vmem:[#allocation2 + $0x18] ss:$0 sps:$4 sm:$0x11]  }
 0x4d3   : > { %9272 = vmatpush1.bf16.msra.mxu1 %v14341_v51  ;;  %9571 = vmatprep.subr.bf16.mxu0 %v14405_v32  ;;  %v9518_v33 = vand.u32 %v13005_v27, %v16848_v53  ;;  %v14453_v51 = vld [vmem:[#allocation2 + $0x60] ss:$0 sps:$4 sm:$0x11]   ;;  %v8508_v32 = vunpack.c.l.b16 %v14452_v18  ;;  %v14455_v35 = vld [vmem:[#allocation2 + $0x78] ss:$0 sps:$4 sm:$0x11]  }
 0x4d4   : > { %9273 = vmatprep.subr.bf16.mxu1 %v14346_v1  ;;  %9572 = vmatpush1.bf16.msra.mxu0 %v14403_v13  ;;  %v9515_v3 = vand.u32 %v13004_v20, %v16848_v53  ;;  %v14411_v13 = vld [vmem:[%s20677_s2 + $0xf0] ss:$16 sps:$4 sm:$0xff]   ;;  %v8502_v20 = vunpack.c.l.b16 %v14446_v22 }
 0x4d5   : > { %9573 = vmatprep.subr.bf16.mxu0 %v14419_v17 }
 0x4d7   : > { %9274 = vmatpush1.bf16.msra.mxu1 %v14344_v45 }
 0x4d8   : > { %9275 = vmatprep.subr.bf16.mxu1 %v9255_v55  ;;  %9574 = vmatpush1.bf16.msra.mxu0 %v14417_v30  ;;  %v14445_v30 = vld [vmem:[#allocation2] ss:$0 sps:$4 sm:$0x11]  }
 0x4d9   : > { %7643 = vmatmul.mubr.bf16.gmra.mrb[204].mxu0 %v20983_v5  ;;  %13377 = vmatmul.mubr.msk.bf16.gmra.mrb[204].mxu1 %vm5195_vm4, %v17272_v40  ;;  %v8350_v40 = vpop.permute.xlu0 %8349  ;;  %v14396_v5 = vld [vmem:[%s20677_s2 + $0x6c] ss:$16 sps:$4 sm:$0xff]  }
 0x4da   : > { %7650 = vmatprep.mubr.bf16.mxu0 %v20984_v21  ;;  %13380 = vmatprep.mubr.msk.bf16.mxu1 %vm5195_vm4, %v17284_v14  ;;  %v8361_v14 = vsel %vm3423_vm15, %v17714_v41, %v8350_v40  ;;  %v21002_v21 = vld [vmem:[#allocation12_spill] sm:$0xff]  ;;  %v9117_v41 = vld [vmem:[%s20677_s2 + $0xc8] sm:$0x11]  ;;  %v8535_v40 = vrot.slane %v8508_v32, 1 }
 0x4db   : > { %9276 = vmatpush1.bf16.msra.mxu1 %v9252_v43  ;;  %9575 = vmatprep.subr.bf16.mxu0 %v9518_v33  ;;  %v12949_v28 = vcombine.high %v9117_v41, %v9117_v41  ;;  %v12948_v54 = vcombine.low %v9117_v41, %v9117_v41  ;;  %v8510_v43 = vunpack.c.l.b16 %v14454_v52 }
 0x4dc   : > { %9306 = vmatprep.subr.bf16.mxu1 %v14384_v38  ;;  %9576 = vmatpush1.bf16.msra.mxu0 %v9515_v3  ;;  %v14416_v3 = vld [vmem:[%s20677_s2 + $0x114] ss:$16 sps:$4 sm:$0xff]  }
 0x4dd   : > { %9831 = vmatprep.subr.bf16.mxu0 %v14444_v34  ;;  %v9261_v47 = vand.u32 %v12949_v28, %v16848_v53  ;;  %v9258_v44 = vand.u32 %v12948_v54, %v16848_v53  ;;  %v8509_v34 = vunpack.c.l.b16 %v14453_v51  ;;  %v14423_v51 = vld [vmem:[%s20677_s2 + $0x150] ss:$16 sps:$4 sm:$0xff]  }
 0x4e1   : > { %7651 = vmatmul.mubr.bf16.gmra.mrb[208].mxu0 %v20985_v9  ;;  %13381 = vmatmul.mubr.msk.bf16.gmra.mrb[208].mxu1 %vm5195_vm4, %v17296_v26  ;;  %v8359_v26 = vpop.permute.xlu1 %8358  ;;  %v21003_v9 = vld [vmem:[#allocation13_spill] sm:$0xff] }
 0x4e2   : > { %7658 = vmatprep.mubr.bf16.mxu0 %v20986_v23  ;;  %13384 = vmatprep.mubr.msk.bf16.mxu1 %vm5195_vm4, %v17308_v48  ;;  %v14382_v48 = vld [vmem:[%s20677_s2 + $0x8] ss:$16 sps:$4 sm:$0xff]  }
 0x4e3   : > { %v14394_v23 = vld [vmem:[%s20677_s2 + $0x68] ss:$16 sps:$4 sm:$0xff]  }
 0x4e9   : > { %7659 = vmatmul.mubr.bf16.gmra.mrb[212].mxu0 %v20987_v29  ;;  %13385 = vmatmul.mubr.msk.bf16.gmra.mrb[212].mxu1 %vm5195_vm4, %v17320_v37  ;;  %v21000_v37 = vld [vmem:[#allocation34_spill] sm:$0xff] }
 0x4ea   : > { %7666 = vmatprep.mubr.bf16.mxu0 %v16734_v49  ;;  %13388 = vmatprep.mubr.msk.bf16.mxu1 %vm5195_vm4, %v17332_v61  ;;  %v20999_v49 = vld [vmem:[#allocation31_spill] sm:$0xff]  ;;  %v21001_v61 = vld [vmem:[#allocation41_spill] sm:$0xff]  ;;  %v14399_v29 = vld [vmem:[%s20677_s2 + $0x8c] ss:$16 sps:$4 sm:$0xff]  }
 0x4f1   : > { %7667 = vmatmul.mubr.bf16.gmra.mrb[216].mxu0 %v16742_v4  ;;  %13389 = vmatmul.mubr.msk.bf16.gmra.mrb[216].mxu1 %vm5195_vm4, %v17344_v50  ;;  %v8363_v4 = vsel %vm3472_vm2, %v8361_v14, %v8359_v26  ;;  %v14388_v50 = vld [vmem:[%s20677_s2 + $0x28] ss:$16 sps:$4 sm:$0xff]   ;;  %v14448_v14 = vld [vmem:[#allocation2 + $0x24] ss:$0 sps:$4 sm:$0x11]  }
 0x4f2   : > { %7674 = vmatprep.mubr.bf16.mxu0 %v16768_v39  ;;  %13392 = vmatprep.mubr.msk.bf16.mxu1 %vm5195_vm4, %v17356_v57  ;;  %v18210_v39 = vsel %vm3505_vm3, %v8363_v4, 1065369472  ;;  %v14393_v57 = vld [vmem:[%s20677_s2 + $0x4c] ss:$16 sps:$4 sm:$0xff]   ;;  %v8503_v4 = vunpack.c.l.b16 %v14447_v15  ;;  %v8504_v41 = vunpack.c.l.b16 %v14448_v14  ;;  %v8391_v15 = vpop.permute.xlu0 %8390 }
 0x4f3   : > { %v14456_v26 = vld [vmem:[#allocation2 + $0x84] ss:$0 sps:$4 sm:$0x11]  }
 0x4f9   : > { %7675 = vmatmul.mubr.bf16.gmra.mrb[220].mxu0 %v16779_v16  ;;  %13393 = vmatmul.mubr.msk.bf16.gmra.mrb[220].mxu1 %vm5195_vm4, %v17368_v10  ;;  %v14390_v16 = vld [vmem:[%s20677_s2 + $0x2c] ss:$16 sps:$4 sm:$0xff]   ;;  %v14391_v10 = vld [vmem:[%s20677_s2 + $0x48] ss:$16 sps:$4 sm:$0xff]  }
 0x4fa   : > { %7682 = vmatprep.mubr.bf16.mxu0 %v20999_v49  ;;  %9295 = vmatprep.mubr.bf16.mxu1 %v20912_v56  ;;  %v21008_v49 = vld [vmem:[#allocation49_spill] sm:$0xff] }
 0x501   : > { %7683 = vmatmul.mubr.bf16.gmra.mrb[224].mxu0 %v21000_v37  ;;  %12950 = vmatmul.mubr.msk.bf16.vlgmr.msra.gmra.mrb[224].mxu1 %vm9248_vm14, %v18210_v39  ;;  %v14422_v37 = vld [vmem:[%s20677_s2 + $0x134] ss:$16 sps:$4 sm:$0xff]  }
 0x502   : > { %9307 = vmatpush1.bf16.msra.mxu1 %v14382_v48  ;;  %7690 = vmatprep.mubr.bf16.mxu0 %v21001_v61  ;;  %v21009_v48 = vld [vmem:[#allocation32_spill] sm:$0xff]  ;;  %v8501_v61 = vunpack.c.l.b16 %v14445_v30 }
 0x503   : > { %9308 = vmatprep.subr.bf16.mxu1 %v14390_v16  ;;  %9338 = vmatprep.mubr.bf16.mxu1 %v20912_v56  ;;  %v14414_v16 = vld [vmem:[%s20677_s2 + $0x110] ss:$16 sps:$4 sm:$0xff]  }
 0x506   : > { %9309 = vmatpush1.bf16.msra.mxu1 %v14388_v50  ;;  %v8517_v50 = vrot.slane %v8502_v20, 7 }
 0x507   : > { %9310 = vmatprep.subr.bf16.mxu1 %v14393_v57  ;;  %v8538_v57 = vrot.slane %v8510_v43, 7  ;;  %v14460_v43 = vld [vmem:[#allocation2 + $0xb4] ss:$0 sps:$4 sm:$0x11]  }
 0x509   : > { %7691 = vmatmul.mubr.bf16.gmra.mrb[228].mxu0 %v21002_v21  ;;  %v8537_v21 = vsel %vm8536_vm10, %v8509_v34, %v8535_v40 }
 0x50a   : > { %9311 = vmatpush1.bf16.msra.mxu1 %v14391_v10  ;;  %7698 = vmatprep.mubr.bf16.mxu0 %v21003_v9  ;;  %v14449_v10 = vld [vmem:[#allocation2 + $0x30] ss:$0 sps:$4 sm:$0x11]  }
 0x50b   : > { %9312 = vmatprep.subr.bf16.mxu1 %v14396_v5  ;;  %v14457_v5 = vld [vmem:[#allocation2 + $0x90] ss:$0 sps:$4 sm:$0x11]  }
 0x50e   : > { %9313 = vmatpush1.bf16.msra.mxu1 %v14394_v23 }
 0x50f   : > { %9314 = vmatprep.subr.bf16.mxu1 %v14399_v29  ;;  %v18304_v29 = vld [vmem:[#allocation2 + $0x3c] ss:$0 sps:$4 sm:$0x11]  }
 0x510   : > { %v8506_v32 = vunpack.c.l.b16 %v18304_v29  ;;  %v21014_v29 = vld [vmem:[#allocation54_spill] sm:$0xff] }
 0x511   : > { %7699 = vmatmul.mubr.bf16.gmra.mrb[232].mxu0 %v21004_v46  ;;  %v14420_v46 = vld [vmem:[%s20677_s2 + $0x130] ss:$16 sps:$4 sm:$0xff]  }
 0x512   : > { %9315 = vmatpush1.bf16.msra.mxu1 %v14397_v11  ;;  %7706 = vmatprep.mubr.bf16.mxu0 %v21005_v12  ;;  %v8512_v11 = vunpack.c.l.b16 %v14456_v26  ;;  %v8520_v12 = vrot.slane %v8503_v4, 6  ;;  %v14426_v26 = vld [vmem:[%s20677_s2 + $0x170] ss:$16 sps:$4 sm:$0xff]   ;;  %v8529_v4 = vrot.slane %v8506_v32, 3 }
 0x513   : > { %9316 = vmatprep.subr.bf16.mxu1 %v14402_v42 }
 0x514   : > { %v7041_v19 = vpop.f32.mrb[128].mxu0  ;;  %v7427_v24 = vpop.f32.mrb[128].mxu1  ;;  %v8542_v18 = vrot.slane %v8512_v11, 5 }
 0x515   : > { %7916 = vst [vmem:[%s17425_s29 + $0x40] sm:$0xff] %v7041_v19  ;;  %7918 = vst [vmem:[%s17425_s29 + $0x50] sm:$0xff] %v7427_v24  ;;  %v7043_v0 = vpop.f32.mrb[129].mxu0  ;;  %v7429_v31 = vpop.f32.mrb[129].mxu1  ;;  %v8519_v24 = vsel %vm8518_vm7, %v8517_v50, %v8501_v61 }
 0x516   : > { %7917 = vst [vmem:[%s17425_s29 + $0x48] sm:$0xff] %v7043_v0  ;;  %7919 = vst [vmem:[%s17425_s29 + $0x58] sm:$0xff] %v7429_v31  ;;  %9317 = vmatpush1.bf16.msra.mxu1 %v14400_v25  ;;  %v7045_v59 = vpop.f32.mrb[130].mxu0  ;;  %v7431_v60 = vpop.f32.mrb[130].mxu1  ;;  %v8539_v0 = vsel %vm8518_vm7, %v8538_v57, %v8537_v21  ;;  %v8522_v22 = vsel %vm8521_vm8, %v8520_v12, %v8519_v24  ;;  %v21012_v57 = vld [vmem:[#allocation17_spill] sm:$0xff]  ;;  %v21013_v21 = vld [vmem:[#allocation52_spill] sm:$0xff] }
 0x517   : > { %7929 = vst [vmem:[%s17425_s29 + $0xa8] sm:$0xff] %v7045_v59  ;;  %7931 = vst [vmem:[%s17425_s29 + $0xb8] sm:$0xff] %v7431_v60  ;;  %v7047_v6 = vpop.f32.mrb[131].mxu0  ;;  %v7433_v8 = vpop.f32.mrb[131].mxu1  ;;  %9318 = vmatprep.subr.bf16.mxu1 %v9261_v47  ;;  %v14425_v60 = vld [vmem:[%s20677_s2 + $0x154] ss:$16 sps:$4 sm:$0xff]  }
 0x518   : > { %7930 = vst [vmem:[%s17425_s29 + $0xb0] sm:$0xff] %v7047_v6  ;;  %7932 = vst [vmem:[%s17425_s29 + $0xc0] sm:$0xff] %v7433_v8  ;;  %v14458_v19 = vld [vmem:[#allocation2 + $0x9c] ss:$0 sps:$4 sm:$0x11]   ;;  %v8523_v8 = vrot.slane %v8504_v41, 5  ;;  %v8647_v12 = vpop.permute.xlu0 %8646 }
 0x519   : > { %7707 = vmatmul.mubr.bf16.gmra.mrb[236].mxu0 %v21006_v62  ;;  %v12976_v6 = vld [vmem:[%s20677_s2 + $0x190] sm:$0x11] }
 0x51a   : > { %9319 = vmatpush1.bf16.msra.mxu1 %v9258_v44  ;;  %7714 = vmatprep.mubr.bf16.mxu0 %v21007_v7  ;;  %v8505_v44 = vunpack.c.l.b16 %v14449_v10  ;;  %v21010_v62 = vld [vmem:[#allocation51_spill] sm:$0xff]  ;;  %v14459_v7 = vld [vmem:[#allocation2 + $0xa8] ss:$0 sps:$4 sm:$0x11]   ;;  %v8525_v30 = vsel %vm8524_vm9, %v8523_v8, %v8522_v22  ;;  %v8401_v10 = vsel %vm3423_vm15, %v21012_v57, %v8391_v15  ;;  %v14467_v57 = vld [vmem:[%s20677_s2 + $0x220] ss:$16 sps:$4 sm:$0xff]  }
 0x51b   : > { %9520 = vmatprep.subr.bf16.mxu1 %v14410_v63  ;;  %v8513_v63 = vunpack.c.l.b16 %v14457_v5  ;;  %v8515_v34 = vunpack.c.l.b16 %v14459_v7  ;;  %v8516_v5 = vunpack.c.l.b16 %v14460_v43  ;;  %v21015_v22 = vld [vmem:[#allocation19_spill] sm:$0xff] }
 0x51c   : > { %v7051_v1 = vpop.f32.mrb[132].mxu0  ;;  %v7437_v58 = vpop.f32.mrb[132].mxu1 }
 0x51d   : > { %7942 = vst [vmem:[%s17425_s29 + $0x110] sm:$0xff] %v7051_v1  ;;  %7944 = vst [vmem:[%s17425_s29 + $0x120] sm:$0xff] %v7437_v58  ;;  %12951 = vmatmul.mubr.msk.bf16.vlgmr.msra.gmra.mrb[228].mxu1 %vm9248_vm14, %v18210_v39  ;;  %v7053_v17 = vpop.f32.mrb[133].mxu0  ;;  %v7439_v45 = vpop.f32.mrb[133].mxu1  ;;  %v8511_v39 = vunpack.c.l.b16 %v14455_v35  ;;  %v8514_v1 = vunpack.c.l.b16 %v14458_v19  ;;  %v14428_v58 = vld [vmem:[%s20677_s2 + $0x174] ss:$16 sps:$4 sm:$0xff]  }
 0x51e   : > { %7943 = vst [vmem:[%s17425_s29 + $0x118] sm:$0xff] %v7053_v17  ;;  %7945 = vst [vmem:[%s17425_s29 + $0x128] sm:$0xff] %v7439_v45  ;;  %9521 = vmatpush1.bf16.msra.mxu1 %v14408_v2  ;;  %v7055_v27 = vpop.f32.mrb[134].mxu0  ;;  %v7441_v55 = vpop.f32.mrb[134].mxu1  ;;  %9552 = vmatprep.mubr.bf16.mxu1 %v20912_v56  ;;  %v8526_v45 = vrot.slane %v8505_v44, 4  ;;  %v8544_v35 = vrot.slane %v8513_v63, 4 }
 0x51f   : > { %7955 = vst [vmem:[%s17425_s29 + $0x178] sm:$0xff] %v7055_v27  ;;  %7957 = vst [vmem:[%s17425_s29 + $0x188] sm:$0xff] %v7441_v55  ;;  %v7057_v33 = vpop.f32.mrb[135].mxu0  ;;  %v7443_v38 = vpop.f32.mrb[135].mxu1  ;;  %9522 = vmatprep.subr.bf16.mxu1 %v14413_v36  ;;  %v8540_v25 = vrot.slane %v8511_v39, 6  ;;  %v21011_v36 = vld [vmem:[#allocation28_spill] sm:$0xff] }
 0x520   : > { %7956 = vst [vmem:[%s17425_s29 + $0x180] sm:$0xff] %v7057_v33  ;;  %7958 = vst [vmem:[%s17425_s29 + $0x190] sm:$0xff] %v7443_v38  ;;  %v14451_v2 = vld [vmem:[#allocation2 + $0x48] ss:$0 sps:$4 sm:$0x11]   ;;  %v8399_v17 = vpop.permute.xlu1 %8398  ;;  %v8546_v39 = vrot.slane %v8514_v1, 3  ;;  %v8528_v61 = vsel %vm8527_vm11, %v8526_v45, %v8525_v30 }
 0x521   : > { %7715 = vmatmul.mubr.bf16.gmra.mrb[240].mxu0 %v21008_v49  ;;  %v8541_v52 = vsel %vm8521_vm8, %v8540_v25, %v8539_v0  ;;  %v13002_v49 = vcombine.low %v12976_v6, %v12976_v6  ;;  %v8531_v11 = vsel %vm8530_vm12, %v8529_v4, %v8528_v61  ;;  %v8550_v19 = vrot.slane %v8516_v5, 1  ;;  %v14442_v30 = vld [vmem:[%s20677_s2 + $0x1a8] ss:$16 sps:$4 sm:$0xff]   ;;  %v18445_v5 = vld [vmem:[#allocation2 + $0x20] ss:$0 sps:$4 sm:$0x11]  }
 0x522   : > { %9523 = vmatpush1.bf16.msra.mxu1 %v14411_v13  ;;  %7722 = vmatprep.mubr.bf16.mxu0 %v21009_v48  ;;  %v13003_v13 = vcombine.high %v12976_v6, %v12976_v6  ;;  %v8543_v20 = vsel %vm8524_vm9, %v8542_v18, %v8541_v52  ;;  %v14431_v6 = vld [vmem:[%s20677_s2 + $0x1a0] ss:$16 sps:$4 sm:$0xff]  }
 0x523   : > { %9524 = vmatprep.subr.bf16.mxu1 %v14416_v3  ;;  %v8507_v3 = vunpack.c.l.b16 %v14451_v2  ;;  %v8545_v50 = vsel %vm8527_vm11, %v8544_v35, %v8543_v20  ;;  %v9509_v41 = vand.u32 %v13002_v49, %v16848_v53  ;;  %v8552_v7 = vpack.c.b16 %v8550_v19, %v8550_v19  ;;  %v14436_v52 = vld [vmem:[%s20677_s2 + $0x1c0] ss:$16 sps:$4 sm:$0xff]   ;;  %v14472_v49 = vld [vmem:[%s20677_s2 + $0x1ec] ss:$16 sps:$4 sm:$0xff]  }
 0x524   : > { %v7061_v9 = vpop.f32.mrb[136].mxu0  ;;  %v7447_v23 = vpop.f32.mrb[136].mxu1 }
 0x525   : > { %7968 = vst [vmem:[%s17425_s29 + $0x1e0] sm:$0xff] %v7061_v9  ;;  %7970 = vst [vmem:[%s17425_s29 + $0x1f0] sm:$0xff] %v7447_v23  ;;  %v7063_v42 = vpop.f32.mrb[137].mxu0  ;;  %v7449_v28 = vpop.f32.mrb[137].mxu1  ;;  %v8532_v9 = vrot.slane %v8507_v3, 2  ;;  %v8548_v23 = vrot.slane %v8515_v34, 2 }
 0x526   : > { %7969 = vst [vmem:[%s17425_s29 + $0x1e8] sm:$0xff] %v7063_v42  ;;  %7971 = vst [vmem:[%s17425_s29 + $0x1f8] sm:$0xff] %v7449_v28  ;;  %9525 = vmatpush1.bf16.msra.mxu1 %v14414_v16  ;;  %v7065_v54 = vpop.f32.mrb[138].mxu0  ;;  %v7451_v47 = vpop.f32.mrb[138].mxu1  ;;  %v8547_v42 = vsel %vm8530_vm12, %v8546_v39, %v8545_v50  ;;  %v8403_v28 = vsel %vm3472_vm2, %v8401_v10, %v8399_v17  ;;  %v14470_v10 = vld [vmem:[%s20677_s2 + $0x1e8] ss:$16 sps:$4 sm:$0xff]  }
 0x527   : > { %7981 = vst [vmem:[%s17425_s29 + $0x248] sm:$0xff] %v7065_v54  ;;  %7983 = vst [vmem:[%s17425_s29 + $0x258] sm:$0xff] %v7451_v47  ;;  %v7067_v31 = vpop.f32.mrb[139].mxu0  ;;  %v7453_v59 = vpop.f32.mrb[139].mxu1  ;;  %9526 = vmatprep.subr.bf16.mxu1 %v14422_v37  ;;  %v9512_v37 = vand.u32 %v13003_v13, %v16848_v53 }
 0x528   : > { %7982 = vst [vmem:[%s17425_s29 + $0x250] sm:$0xff] %v7067_v31  ;;  %7984 = vst [vmem:[%s17425_s29 + $0x260] sm:$0xff] %v7453_v59  ;;  %v8649_v25 = vpop.permute.xlu1 %8648  ;;  %v8534_v31 = vsel %vm8533_vm13, %v8532_v9, %v8531_v11  ;;  %v8549_v59 = vsel %vm8533_vm13, %v8548_v23, %v8547_v42  ;;  %v14475_v23 = vld [vmem:[%s20677_s2 + $0x244] ss:$16 sps:$4 sm:$0xff]  }
 0x529   : > { %7723 = vmatmul.mubr.bf16.gmra.mrb[244].mxu0 %v21010_v62  ;;  %v14438_v62 = vld [vmem:[%s20677_s2 + $0x1c4] ss:$16 sps:$4 sm:$0xff]   ;;  %v8551_v2 = vpack.c.b16 %v8549_v59, %v8534_v31  ;;  %v8752_v15 = vsel %vm3423_vm15, %v8552_v7, %v8649_v25  ;;  %v18457_v11 = vld [vmem:[#allocation2 + $0x8] ss:$0 sps:$4 sm:$0x11]  }
 0x52a   : > { %9527 = vmatpush1.bf16.msra.mxu1 %v14420_v46  ;;  %7730 = vmatprep.mubr.bf16.mxu0 %v21011_v36  ;;  %v14433_v46 = vld [vmem:[%s20677_s2 + $0x1a4] ss:$16 sps:$4 sm:$0xff]   ;;  %v14476_v31 = vld [vmem:[%s20677_s2 + $0x208] ss:$16 sps:$4 sm:$0xff]  }
 0x52b   : > { %9528 = vmatprep.subr.bf16.mxu1 %v14425_v60  ;;  %v8404_v60 = vsel %vm3505_vm3, %v8403_v28, 1065369472  ;;  %v14441_v36 = vld [vmem:[%s20677_s2 + $0x1e4] ss:$16 sps:$4 sm:$0xff]   ;;  %v8749_v13 = vsel %vm3423_vm15, %v8551_v2, %v8647_v12  ;;  %v8856_v2 = vunpack.c.l.b16 %v18445_v5 }
 0x52c   : > { %v7071_v27 = vpop.f32.mrb[140].mxu0  ;;  %v7457_v55 = vpop.f32.mrb[140].mxu1 }
 0x52d   : > { %7994 = vst [vmem:[%s17425_s29 + $0x2b0] sm:$0xff] %v7071_v27  ;;  %7996 = vst [vmem:[%s17425_s29 + $0x2c0] sm:$0xff] %v7457_v55  ;;  %v7073_v33 = vpop.f32.mrb[141].mxu0  ;;  %v7459_v38 = vpop.f32.mrb[141].mxu1  ;;  %v14439_v55 = vld [vmem:[%s20677_s2 + $0x1e0] ss:$16 sps:$4 sm:$0xff]  }
 0x52e   : > { %7995 = vst [vmem:[%s17425_s29 + $0x2b8] sm:$0xff] %v7073_v33  ;;  %7997 = vst [vmem:[%s17425_s29 + $0x2c8] sm:$0xff] %v7459_v38  ;;  %9529 = vmatpush1.bf16.msra.mxu1 %v14423_v51  ;;  %v7075_v40 = vpop.f32.mrb[142].mxu0  ;;  %v7461_v14 = vpop.f32.mrb[142].mxu1  ;;  %v14463_v33 = vld [vmem:[%s20677_s2 + $0x204] ss:$16 sps:$4 sm:$0xff]  }
 0x52f   : > { %8007 = vst [vmem:[%s17425_s29 + $0x318] sm:$0xff] %v7075_v40  ;;  %8009 = vst [vmem:[%s17425_s29 + $0x328] sm:$0xff] %v7461_v14  ;;  %v7077_v48 = vpop.f32.mrb[143].mxu0  ;;  %v7463_v16 = vpop.f32.mrb[143].mxu1  ;;  %9530 = vmatprep.subr.bf16.mxu1 %v14428_v58  ;;  %v14466_v38 = vld [vmem:[%s20677_s2 + $0x1cc] ss:$16 sps:$4 sm:$0xff]  }
 0x530   : > { %8008 = vst [vmem:[%s17425_s29 + $0x320] sm:$0xff] %v7077_v48  ;;  %8010 = vst [vmem:[%s17425_s29 + $0x330] sm:$0xff] %v7463_v16  ;;  %v8744_v51 = vpop.permute.xlu0 %8743  ;;  %v8746_v32 = vpop.permute.xlu1 %8745  ;;  %v14461_v40 = vld [vmem:[%s20677_s2 + $0x200] ss:$16 sps:$4 sm:$0xff]   ;;  %v14464_v14 = vld [vmem:[%s20677_s2 + $0x1c8] ss:$16 sps:$4 sm:$0xff]  }
 0x531   : > { %7731 = vmatmul.mubr.bf16.gmra.mrb[248].mxu0 %v21013_v21  ;;  %v8754_v3 = vsel %vm3472_vm2, %v8749_v13, %v8744_v51  ;;  %v8756_v34 = vsel %vm3472_vm2, %v8752_v15, %v8746_v32  ;;  %v18436_v48 = vld [vmem:[%s20677_s2 + $0x260] sm:$0x11]  ;;  %v14510_v16 = vld [vmem:[#allocation2 + $0x14] ss:$0 sps:$4 sm:$0x11]  }
 0x532   : > { %9531 = vmatpush1.bf16.msra.mxu1 %v14426_v26  ;;  %7738 = vmatprep.mubr.bf16.mxu0 %v21014_v29  ;;  %v14469_v26 = vld [vmem:[%s20677_s2 + $0x224] ss:$16 sps:$4 sm:$0xff]   ;;  %v18428_v4 = vsel %vm3505_vm3, %v8754_v3, 1065369472  ;;  %v18431_v39 = vsel %vm3505_vm3, %v8756_v34, 1065369472  ;;  %v13058_v59 = vcombine.low %v18436_v48, %v18436_v48 }
 0x533   : > { %9532 = vmatprep.subr.bf16.mxu1 %v9512_v37  ;;  %v14518_v37 = vld [vmem:[#allocation2 + $0x74] ss:$0 sps:$4 sm:$0x11]   ;;  %v14478_v29 = vld [vmem:[%s20677_s2 + $0x20c] ss:$16 sps:$4 sm:$0xff]   ;;  %v8872_v34 = vrot.slane %v8856_v2, 6 }
 0x534   : > { %v7081_v54 = vpop.f32.mrb[144].mxu0  ;;  %v7467_v47 = vpop.f32.mrb[144].mxu1  ;;  %v8863_v19 = vunpack.c.l.b16 %v14518_v37  ;;  %v14481_v15 = vld [vmem:[%s20677_s2 + $0x228] ss:$16 sps:$4 sm:$0xff]   ;;  %v14489_v3 = vld [vmem:[%s20677_s2 + $0x274] ss:$16 sps:$4 sm:$0xff]  }
 0x535   : > { %8020 = vst [vmem:[%s17425_s29 + $0x380] sm:$0xff] %v7081_v54  ;;  %8022 = vst [vmem:[%s17425_s29 + $0x390] sm:$0xff] %v7467_v47  ;;  %v7083_v24 = vpop.f32.mrb[145].mxu0  ;;  %v7469_v0 = vpop.f32.mrb[145].mxu1  ;;  %v8855_v47 = vunpack.c.l.b16 %v14510_v16 }
 0x536   : > { %8021 = vst [vmem:[%s17425_s29 + $0x388] sm:$0xff] %v7083_v24  ;;  %8023 = vst [vmem:[%s17425_s29 + $0x398] sm:$0xff] %v7469_v0  ;;  %9533 = vmatpush1.bf16.msra.mxu1 %v9509_v41  ;;  %v7085_v44 = vpop.f32.mrb[146].mxu0  ;;  %v7471_v63 = vpop.f32.mrb[146].mxu1  ;;  %v13059_v41 = vcombine.high %v18436_v48, %v18436_v48  ;;  %v9635_v24 = vshll.u32 %v18428_v4, 16  ;;  %v8884_v32 = vrot.slane %v8863_v19, 7 }
 0x537   : > { %8033 = vst [vmem:[%s17425_s29 + $0x3e8] sm:$0xff] %v7085_v44  ;;  %8035 = vst [vmem:[%s17425_s29 + $0x3f8] sm:$0xff] %v7471_v63  ;;  %v7087_v8 = vpop.f32.mrb[147].mxu0  ;;  %v7473_v18 = vpop.f32.mrb[147].mxu1  ;;  %9788 = vmatprep.subr.bf16.mxu1 %v14433_v46  ;;  %v14473_v0 = vld [vmem:[%s20677_s2 + $0x240] ss:$16 sps:$4 sm:$0xff]  }
 0x538   : > { %8034 = vst [vmem:[%s17425_s29 + $0x3f0] sm:$0xff] %v7087_v8  ;;  %8036 = vst [vmem:[%s17425_s29 + $0x400] sm:$0xff] %v7473_v18  ;;  %v14519_v46 = vld [vmem:[#allocation2 + $0x80] ss:$0 sps:$4 sm:$0x11]   ;;  %v9639_v8 = vshll.u32 %v18431_v39, 16 }
 0x539   : > { %13006 = vmatmul.mubr.msk.bf16.vlgmr.msra.gmra.mrb[232].mxu1 %vm9248_vm14, %v8404_v60  ;;  %7739 = vmatmul.mubr.bf16.gmra.mrb[252].mxu0 %v21015_v22  ;;  %v14517_v54 = vld [vmem:[#allocation2 + $0x68] ss:$0 sps:$4 sm:$0x11]   ;;  %v14512_v44 = vld [vmem:[#allocation2 + $0x2c] ss:$0 sps:$4 sm:$0x11]   ;;  %v8864_v7 = vunpack.c.l.b16 %v14519_v46 }
 0x53a   : > { %9789 = vmatpush1.bf16.msra.mxu1 %v14431_v6  ;;  %9595 = vmatprep.mubr.bf16.mxu0 %v20912_v56  ;;  %v14520_v63 = vld [vmem:[#allocation2 + $0x8c] ss:$0 sps:$4 sm:$0x11]   ;;  %v9633_v6 = vshrl.u32 %v18428_v4, 16  ;;  %v8870_v51 = vrot.slane %v8855_v47, 7  ;;  %v9641_v37 = vrot.slane %v9639_v8, 1 }
 0x53b   : > { %9790 = vmatprep.subr.bf16.mxu1 %v14438_v62  ;;  %9820 = vmatprep.mubr.bf16.mxu1 %v20912_v56  ;;  %v14483_v18 = vld [vmem:[%s20677_s2 + $0x22c] ss:$16 sps:$4 sm:$0xff]   ;;  %v18486_v22 = vld [vmem:[#allocation2 + $0x38] ss:$0 sps:$4 sm:$0x11]  }
 0x53c   : > { %v7091_v1 = vpop.f32.mrb[148].mxu0  ;;  %v7477_v58 = vpop.f32.mrb[148].mxu1  ;;  %v18483_v62 = vld [vmem:[%s20677_s2 + $0x268] sm:$0x11] }
 0x53d   : > { %8046 = vst [vmem:[%s17425_s29 + $0x450] sm:$0xff] %v7091_v1  ;;  %8048 = vst [vmem:[%s17425_s29 + $0x460] sm:$0xff] %v7477_v58  ;;  %v7093_v17 = vpop.f32.mrb[149].mxu0  ;;  %v7479_v45 = vpop.f32.mrb[149].mxu1  ;;  %v9637_v1 = vrot.slane %v9635_v24, 1 }
 0x53e   : > { %8047 = vst [vmem:[%s17425_s29 + $0x458] sm:$0xff] %v7093_v17  ;;  %8049 = vst [vmem:[%s17425_s29 + $0x468] sm:$0xff] %v7479_v45  ;;  %9791 = vmatpush1.bf16.msra.mxu1 %v14436_v52  ;;  %v7095_v35 = vpop.f32.mrb[150].mxu0  ;;  %v7481_v27 = vpop.f32.mrb[150].mxu1  ;;  %v8854_v52 = vunpack.c.l.b16 %v18457_v11 }
 0x53f   : > { %8059 = vst [vmem:[%s17425_s29 + $0x4b8] sm:$0xff] %v7095_v35  ;;  %8061 = vst [vmem:[%s17425_s29 + $0x4c8] sm:$0xff] %v7481_v27  ;;  %v7097_v20 = vpop.f32.mrb[151].mxu0  ;;  %v7483_v43 = vpop.f32.mrb[151].mxu1  ;;  %9792 = vmatprep.subr.bf16.mxu1 %v14441_v36  ;;  %v8862_v36 = vunpack.c.l.b16 %v14517_v54  ;;  %v14486_v27 = vld [vmem:[%s20677_s2 + $0x24c] ss:$16 sps:$4 sm:$0xff]   ;;  %v9638_v16 = vor.u32 %v9637_v1, %v9633_v6 }
 0x540   : > { %8060 = vst [vmem:[%s17425_s29 + $0x4c0] sm:$0xff] %v7097_v20  ;;  %8062 = vst [vmem:[%s17425_s29 + $0x4d0] sm:$0xff] %v7483_v43  ;;  %v14521_v17 = vld [vmem:[#allocation2 + $0x98] ss:$0 sps:$4 sm:$0x11]   ;;  %v8865_v20 = vunpack.c.l.b16 %v14520_v63  ;;  %v8871_v39 = vsel %vm8536_vm10, %v8870_v51, %v8854_v52 }
 0x541   : > { %13007 = vmatmul.mubr.msk.bf16.vlgmr.msra.gmra.mrb[0].mxu0 %vm9248_vm14, %v8404_v60  ;;  %v9780_v60 = vand.u32 %v13059_v41, %v16848_v53  ;;  %v14522_v4 = vld [vmem:[#allocation2 + $0xa4] ss:$0 sps:$4 sm:$0x11]   ;;  %v8885_v48 = vsel %vm8536_vm10, %v8884_v32, %v8862_v36  ;;  %v8873_v41 = vsel %vm8518_vm7, %v8872_v34, %v8871_v39  ;;  %v14516_v46 = vld [vmem:[#allocation2 + $0x5c] ss:$0 sps:$4 sm:$0x11]   ;;  %v9642_v19 = vsel %vm8336_vm5, %v9638_v16, %v9641_v37 }
 0x542   : > { %9793 = vmatpush1.bf16.msra.mxu1 %v14439_v55  ;;  %9832 = vmatpush1.bf16.msra.mxu0 %v14442_v30  ;;  %v18497_v55 = vld [vmem:[#allocation2 + $0x44] ss:$0 sps:$4 sm:$0x11]   ;;  %v8857_v30 = vunpack.c.l.b16 %v14512_v44  ;;  %v13088_v37 = vld [vmem:[%s20677_s2 + $0x330] sm:$0x11]  ;;  %vm10303_vm5 = vcmask 811008  }
 0x543   : > { %9794 = vmatprep.subr.bf16.mxu1 %v14463_v33  ;;  %9833 = vmatprep.subr.bf16.mxu0 %v14466_v38  ;;  %v9777_v38 = vand.u32 %v13058_v59, %v16848_v53  ;;  %v14497_v36 = vld [vmem:[%s20677_s2 + $0x2b4] ss:$16 sps:$4 sm:$0xff]   ;;  %vm11218_vm10 = vcmask 31744  }
 0x544   : > { %v7101_v61 = vpop.f32.mrb[152].mxu0  ;;  %v7487_v50 = vpop.f32.mrb[152].mxu1  ;;  %9863 = vmatprep.mubr.bf16.mxu0 %v20912_v56  ;;  %v8874_v5 = vrot.slane %v8857_v30, 5  ;;  %v14503_v16 = vld [vmem:[%s20677_s2 + $0x2f4] ss:$16 sps:$4 sm:$0xff]  }
 0x545   : > { %8072 = vst [vmem:[%s17425_s29 + $0x520] sm:$0xff] %v7101_v61  ;;  %8074 = vst [vmem:[%s17425_s29 + $0x530] sm:$0xff] %v7487_v50  ;;  %v7103_v21 = vpop.f32.mrb[153].mxu0  ;;  %v7489_v9 = vpop.f32.mrb[153].mxu1  ;;  %v8858_v61 = vunpack.c.l.b16 %v18486_v22  ;;  %v8866_v50 = vunpack.c.l.b16 %v14521_v17  ;;  %v14495_v17 = vld [vmem:[%s20677_s2 + $0x2b0] ss:$16 sps:$4 sm:$0xff]  }
 0x546   : > { %8073 = vst [vmem:[%s17425_s29 + $0x528] sm:$0xff] %v7103_v21  ;;  %8075 = vst [vmem:[%s17425_s29 + $0x538] sm:$0xff] %v7489_v9  ;;  %9795 = vmatpush1.bf16.msra.mxu1 %v14461_v40  ;;  %9834 = vmatpush1.bf16.msra.mxu0 %v14464_v14  ;;  %v7105_v42 = vpop.f32.mrb[154].mxu0  ;;  %v7491_v28 = vpop.f32.mrb[154].mxu1  ;;  %v8886_v40 = vrot.slane %v8864_v7, 6  ;;  %v8888_v21 = vrot.slane %v8865_v20, 5  ;;  %v13060_v9 = vcombine.low %v18483_v62, %v18483_v62 }
 0x547   : > { %8085 = vst [vmem:[%s17425_s29 + $0x588] sm:$0xff] %v7105_v42  ;;  %8087 = vst [vmem:[%s17425_s29 + $0x598] sm:$0xff] %v7491_v28  ;;  %v7107_v12 = vpop.f32.mrb[155].mxu0  ;;  %v7493_v25 = vpop.f32.mrb[155].mxu1  ;;  %9796 = vmatprep.subr.bf16.mxu1 %v14469_v26  ;;  %9835 = vmatprep.subr.bf16.mxu0 %v14472_v49  ;;  %v13061_v49 = vcombine.high %v18483_v62, %v18483_v62  ;;  %v14494_v28 = vld [vmem:[%s20677_s2 + $0x294] ss:$16 sps:$4 sm:$0xff]   ;;  %v8875_v44 = vsel %vm8521_vm8, %v8874_v5, %v8873_v41 }
 0x548   : > { %8086 = vst [vmem:[%s17425_s29 + $0x590] sm:$0xff] %v7107_v12  ;;  %8088 = vst [vmem:[%s17425_s29 + $0x5a0] sm:$0xff] %v7493_v25  ;;  %v8887_v11 = vsel %vm8518_vm7, %v8886_v40, %v8885_v48  ;;  %v8859_v12 = vunpack.c.l.b16 %v18497_v55  ;;  %v8867_v25 = vunpack.c.l.b16 %v14522_v4  ;;  %v8876_v24 = vrot.slane %v8858_v61, 4  ;;  %v8990_v5 = vpop.permute.xlu0 %8989 }
 0x549   : > { %v9786_v42 = vand.u32 %v13061_v49, %v16848_v53  ;;  %v8889_v63 = vsel %vm8521_vm8, %v8888_v21, %v8887_v11  ;;  %v9783_v62 = vand.u32 %v13060_v9, %v16848_v53  ;;  %vm10762_vm7 = vcmask 719872  }
 0x54a   : > { %9797 = vmatpush1.bf16.msra.mxu1 %v14467_v57  ;;  %9836 = vmatpush1.bf16.msra.mxu0 %v14470_v10  ;;  %v14484_v57 = vld [vmem:[%s20677_s2 + $0x248] ss:$16 sps:$4 sm:$0xff]   ;;  %v14487_v10 = vld [vmem:[%s20677_s2 + $0x270] ss:$16 sps:$4 sm:$0xff]   ;;  %v8878_v51 = vrot.slane %v8859_v12, 3  ;;  %v8892_v32 = vrot.slane %v8867_v25, 3  ;;  %v8877_v1 = vsel %vm8524_vm9, %v8876_v24, %v8875_v44 }
 0x54b   : > { %9798 = vmatprep.subr.bf16.mxu1 %v14475_v23  ;;  %9837 = vmatprep.subr.bf16.mxu0 %v14478_v29  ;;  %v14515_v23 = vld [vmem:[#allocation2 + $0x50] ss:$0 sps:$4 sm:$0x11]   ;;  %vm11072_vm8 = vcmask 24576  }
 0x54c   : > { %v7111_v58 = vpop.f32.mrb[156].mxu0  ;;  %v7497_v13 = vpop.f32.mrb[156].mxu1  ;;  %v14523_v29 = vld [vmem:[#allocation2 + $0xb0] ss:$0 sps:$4 sm:$0x11]   ;;  %v8860_v2 = vunpack.c.l.b16 %v14515_v23  ;;  %v8879_v55 = vsel %vm8527_vm11, %v8878_v51, %v8877_v1  ;;  %v14526_v1 = vld [vmem:[%s20678_s3 + $0x8] sm:$0xff]  }
 0x54d   : > { %8098 = vst [vmem:[%s17425_s29 + $0x5f0] sm:$0xff] %v7111_v58  ;;  %8100 = vst [vmem:[%s17425_s29 + $0x600] sm:$0xff] %v7497_v13  ;;  %v7113_v45 = vpop.f32.mrb[157].mxu0  ;;  %v7499_v35 = vpop.f32.mrb[157].mxu1  ;;  %v8868_v7 = vunpack.c.l.b16 %v14523_v29  ;;  %v8861_v13 = vunpack.c.l.b16 %v14516_v46  ;;  %v13114_v46 = vcombine.low %v13088_v37, %v13088_v37 }
 0x54e   : > { %8099 = vst [vmem:[%s17425_s29 + $0x5f8] sm:$0xff] %v7113_v45  ;;  %8101 = vst [vmem:[%s17425_s29 + $0x608] sm:$0xff] %v7499_v35  ;;  %9799 = vmatpush1.bf16.msra.mxu1 %v14473_v0  ;;  %9838 = vmatpush1.bf16.msra.mxu0 %v14476_v31  ;;  %v7115_v43 = vpop.f32.mrb[158].mxu0  ;;  %v7501_v33 = vpop.f32.mrb[158].mxu1  ;;  %v8890_v0 = vrot.slane %v8866_v50, 4  ;;  %v8880_v45 = vrot.slane %v8860_v2, 2 }
 0x54f   : > { %8111 = vst [vmem:[%s17425_s29 + $0x658] sm:$0xff] %v7115_v43  ;;  %8113 = vst [vmem:[%s17425_s29 + $0x668] sm:$0xff] %v7501_v33  ;;  %v7117_v14 = vpop.f32.mrb[159].mxu0  ;;  %v7503_v26 = vpop.f32.mrb[159].mxu1  ;;  %9800 = vmatprep.subr.bf16.mxu1 %v9780_v60  ;;  %9839 = vmatprep.subr.bf16.mxu0 %v14483_v18  ;;  %v14492_v18 = vld [vmem:[%s20677_s2 + $0x290] ss:$16 sps:$4 sm:$0xff]   ;;  %v10034_v24 = vand.u32 %v13114_v46, %v16848_v53 }
 0x550   : > { %8112 = vst [vmem:[%s17425_s29 + $0x660] sm:$0xff] %v7117_v14  ;;  %8114 = vst [vmem:[%s17425_s29 + $0x670] sm:$0xff] %v7503_v26  ;;  %v14524_v60 = vld [vmem:[#allocation2 + $0xbc] ss:$0 sps:$4 sm:$0x11]   ;;  %v8891_v58 = vsel %vm8524_vm9, %v8890_v0, %v8889_v63  ;;  %v8894_v35 = vrot.slane %v8868_v7, 2  ;;  %v8881_v49 = vsel %vm8530_vm12, %v8880_v45, %v8879_v55 }
 0x551   : > { %v8893_v30 = vsel %vm8527_vm11, %v8892_v32, %v8891_v58  ;;  %v14498_v26 = vld [vmem:[%s20677_s2 + $0x2d0] ss:$16 sps:$4 sm:$0xff]   ;;  %vm11070_vm9 = vcmask 1040640   ;;  %vm11527_vm11 = vcmask 1040768  }
 0x552   : > { %9801 = vmatpush1.bf16.msra.mxu1 %v9777_v38  ;;  %9840 = vmatpush1.bf16.msra.mxu0 %v14481_v15  ;;  %v8869_v15 = vunpack.c.l.b16 %v14524_v60  ;;  %v8895_v4 = vsel %vm8530_vm12, %v8894_v35, %v8893_v30  ;;  %v14501_v50 = vld [vmem:[%s20677_s2 + $0x2f0] ss:$16 sps:$4 sm:$0xff]   ;;  %v14528_v30 = vld [vmem:[%s20677_s2 + $0x278] ss:$16 sps:$4 sm:$0xff]   ;;  %vm11529_vm12 = vcmask 155648  }
 0x553   : > { %9841 = vmatprep.subr.bf16.mxu0 %v14486_v27  ;;  %10045 = vmatprep.subr.bf16.mxu1 %v14489_v3  ;;  %v14500_v27 = vld [vmem:[%s20677_s2 + $0x2d4] ss:$16 sps:$4 sm:$0xff]   ;;  %v8882_v3 = vrot.slane %v8861_v13, 1  ;;  %v14527_v58 = vld [vmem:[%s20678_s3 + $0x10] ss:$0 sps:$4 sm:$0x11]  }
 0x554   : > { %v7121_v54 = vpop.f32.mrb[160].mxu0  ;;  %v7507_v47 = vpop.f32.mrb[160].mxu1  ;;  %v8896_v34 = vrot.slane %v8869_v15, 1 }
 0x555   : > { %8124 = vst [vmem:[%s17425_s29 + $0x6c0] sm:$0xff] %v7121_v54  ;;  %8126 = vst [vmem:[%s17425_s29 + $0x6d0] sm:$0xff] %v7507_v47  ;;  %13062 = vmatmul.mubr.msk.bf16.vlgmr.msra.gmra.mrb[236].mxu1 %vm9248_vm14, %v9642_v19  ;;  %v7123_v31 = vpop.f32.mrb[161].mxu0  ;;  %v7509_v59 = vpop.f32.mrb[161].mxu1 }
 0x556   : > { %8125 = vst [vmem:[%s17425_s29 + $0x6c8] sm:$0xff] %v7123_v31  ;;  %8127 = vst [vmem:[%s17425_s29 + $0x6d8] sm:$0xff] %v7509_v59  ;;  %9842 = vmatpush1.bf16.msra.mxu0 %v14484_v57  ;;  %10046 = vmatpush1.bf16.msra.mxu1 %v14487_v10  ;;  %v7125_v6 = vpop.f32.mrb[162].mxu0  ;;  %v7511_v8 = vpop.f32.mrb[162].mxu1  ;;  %v8897_v61 = vsel %vm8533_vm13, %v8896_v34, %v8895_v4  ;;  %v14506_v57 = vld [vmem:[%s20677_s2 + $0x314] ss:$16 sps:$4 sm:$0xff]   ;;  %v13115_v10 = vcombine.high %v13088_v37, %v13088_v37 }
 0x557   : > { %8137 = vst [vmem:[%s17425_s29 + $0x728] sm:$0xff] %v7125_v6  ;;  %8139 = vst [vmem:[%s17425_s29 + $0x738] sm:$0xff] %v7511_v8  ;;  %v7127_v22 = vpop.f32.mrb[163].mxu0  ;;  %v7513_v52 = vpop.f32.mrb[163].mxu1  ;;  %9843 = vmatprep.subr.bf16.mxu0 %v9786_v42  ;;  %10047 = vmatprep.subr.bf16.mxu1 %v14494_v28  ;;  %v14504_v28 = vld [vmem:[%s20677_s2 + $0x310] ss:$16 sps:$4 sm:$0xff]   ;;  %v11796_v8 = vlaneseq }
 0x558   : > { %8138 = vst [vmem:[%s17425_s29 + $0x730] sm:$0xff] %v7127_v22  ;;  %8140 = vst [vmem:[%s17425_s29 + $0x740] sm:$0xff] %v7513_v52  ;;  %10077 = vmatprep.mubr.bf16.mxu1 %v20912_v56  ;;  %v10037_v54 = vand.u32 %v13115_v10, %v16848_v53  ;;  %v11790_v31 = vld [vmem:[#allocation2 + $0xc] sm:$0x1]  ;;  %v14525_v6 = vld [vmem:[%s20678_s3] sm:$0xff]  }
 0x559   : > { %v11792_v7 = vsel %vm3423_vm15, %v11790_v31, 1065369472  ;;  %v11797_v32 = vshrl.u32 %v11796_v8, 7  ;;  %v14533_v34 = vld [vmem:[%s20677_s2 + $0x29c] ss:$16 sps:$4 sm:$0xff]  }
 0x55a   : > { %9844 = vmatpush1.bf16.msra.mxu0 %v9783_v62  ;;  %10048 = vmatpush1.bf16.msra.mxu1 %v14492_v18  ;;  %v11793_v51 = vshrl.u32 %v11792_v7, 16  ;;  %v14536_v4 = vld [vmem:[%s20677_s2 + $0x2bc] ss:$16 sps:$4 sm:$0xff]   ;;  %v14537_v10 = vld [vmem:[%s20677_s2 + $0x2d8] ss:$16 sps:$4 sm:$0xff]  }
 0x55b   : > { %10049 = vmatprep.subr.bf16.mxu1 %v14497_v36  ;;  %v14756_v36 = vmov 0.0   ;;  %v18635_v55 = vsub.s32 0, %v11797_v32 }
 0x55c   : > { %v7131_v20 = vpop.f32.mrb[164].mxu0  ;;  %v7517_v43 = vpop.f32.mrb[164].mxu1 }
 0x55d   : > { %8150 = vst [vmem:[%s17425_s29 + $0x790] sm:$0xff] %v7131_v20  ;;  %8152 = vst [vmem:[%s17425_s29 + $0x7a0] sm:$0xff] %v7517_v43  ;;  %13063 = vmatmul.mubr.msk.bf16.vlgmr.msra.gmra.mrb[4].mxu0 %vm9248_vm14, %v9642_v19  ;;  %v7133_v33 = vpop.f32.mrb[165].mxu0  ;;  %v7519_v38 = vpop.f32.mrb[165].mxu1 }
 0x55e   : > { %8151 = vst [vmem:[%s17425_s29 + $0x798] sm:$0xff] %v7133_v33  ;;  %8153 = vst [vmem:[%s17425_s29 + $0x7a8] sm:$0xff] %v7519_v38  ;;  %10050 = vmatpush1.bf16.msra.mxu1 %v14495_v17  ;;  %v7135_v40 = vpop.f32.mrb[166].mxu0  ;;  %v7521_v14 = vpop.f32.mrb[166].mxu1  ;;  %10120 = vmatprep.mubr.bf16.mxu0 %v20912_v56  ;;  %v8883_v56 = vsel %vm8533_vm13, %v8882_v3, %v8881_v49  ;;  %v14530_v17 = vld [vmem:[%s20677_s2 + $0x27c] ss:$16 sps:$4 sm:$0xff]   ;;  %v11824_v33 = vand.u32 %v14527_v58, %v16848_v53 }
 0x55f   : > { %8163 = vst [vmem:[%s17425_s29 + $0x7f8] sm:$0xff] %v7135_v40  ;;  %8165 = vst [vmem:[%s17425_s29 + $0x808] sm:$0xff] %v7521_v14  ;;  %v7137_v39 = vpop.f32.mrb[167].mxu0  ;;  %v7523_v48 = vpop.f32.mrb[167].mxu1  ;;  %10051 = vmatprep.subr.bf16.mxu1 %v14500_v27  ;;  %v8898_v23 = vpack.c.b16 %v8897_v61, %v8883_v56  ;;  %v11794_v27 = vpack.i.b16 %v11793_v51, %v11793_v51  ;;  %10088 = vmatprep.subr.bf16.mxu0 %v14530_v17  ;;  %v14531_v14 = vld [vmem:[%s20677_s2 + $0x298] ss:$16 sps:$4 sm:$0xff]  }
 0x560   : > { %8164 = vst [vmem:[%s17425_s29 + $0x800] sm:$0xff] %v7137_v39  ;;  %8166 = vst [vmem:[%s17425_s29 + $0x810] sm:$0xff] %v7523_v48  ;;  %v9085_v19 = vpop.permute.xlu1 %9084  ;;  %10089 = vmatpush1.bf16.msra.mxu0 %v14528_v30  ;;  %vm10450_vm13 = vcmask 1040736  }
 0x561   : > { %v9088_v47 = vsel %vm3423_vm15, %v8898_v23, %v8990_v5  ;;  %v11799_v40 = vrot.slane %v11794_v27, %v18635_v55  ;;  %10090 = vmatprep.subr.bf16.mxu0 %v14533_v34 }
 0x562   : > { %10052 = vmatpush1.bf16.msra.mxu1 %v14498_v26  ;;  %v9090_v0 = vsel %vm3472_vm2, %v9088_v47, %v9085_v19 }
 0x563   : > { %10053 = vmatprep.subr.bf16.mxu1 %v14503_v16  ;;  %v18611_v18 = vsel %vm3505_vm3, %v9090_v0, 1065369472  ;;  %vm14757_vm3 = vmmov 0   ;;  %v14534_v16 = vld [vmem:[%s20677_s2 + $0x2b8] ss:$16 sps:$4 sm:$0xff]  }
 0x564   : > { %v7141_v21 = vpop.f32.mrb[168].mxu0  ;;  %v7527_v9 = vpop.f32.mrb[168].mxu1  ;;  %10091 = vmatpush1.bf16.msra.mxu0 %v14531_v14 }
 0x565   : > { %8176 = vst [vmem:[%s17425_s29 + $0x860] sm:$0xff] %v7141_v21  ;;  %8178 = vst [vmem:[%s17425_s29 + $0x870] sm:$0xff] %v7527_v9  ;;  %v7143_v29 = vpop.f32.mrb[169].mxu0  ;;  %v7529_v41 = vpop.f32.mrb[169].mxu1  ;;  %10092 = vmatprep.subr.bf16.mxu0 %v14536_v4  ;;  %v14542_v9 = vld [vmem:[%s20677_s2 + $0x2fc] ss:$16 sps:$4 sm:$0xff]  }
 0x566   : > { %8177 = vst [vmem:[%s17425_s29 + $0x868] sm:$0xff] %v7143_v29  ;;  %8179 = vst [vmem:[%s17425_s29 + $0x878] sm:$0xff] %v7529_v41  ;;  %10054 = vmatpush1.bf16.msra.mxu1 %v14501_v50  ;;  %v7145_v11 = vpop.f32.mrb[170].mxu0  ;;  %v7531_v42 = vpop.f32.mrb[170].mxu1  ;;  %v14540_v41 = vld [vmem:[%s20677_s2 + $0x2f8] ss:$16 sps:$4 sm:$0xff]  }
 0x567   : > { %8189 = vst [vmem:[%s17425_s29 + $0x8c8] sm:$0xff] %v7145_v11  ;;  %8191 = vst [vmem:[%s17425_s29 + $0x8d8] sm:$0xff] %v7531_v42  ;;  %v7147_v12 = vpop.f32.mrb[171].mxu0  ;;  %v7533_v25 = vpop.f32.mrb[171].mxu1  ;;  %10055 = vmatprep.subr.bf16.mxu1 %v14506_v57  ;;  %v14539_v57 = vld [vmem:[%s20677_s2 + $0x2dc] ss:$16 sps:$4 sm:$0xff]  }
 0x568   : > { %8190 = vst [vmem:[%s17425_s29 + $0x8d0] sm:$0xff] %v7147_v12  ;;  %8192 = vst [vmem:[%s17425_s29 + $0x8e0] sm:$0xff] %v7533_v25  ;;  %10093 = vmatpush1.bf16.msra.mxu0 %v14534_v16  ;;  %v14545_v12 = vld [vmem:[%s20677_s2 + $0x31c] ss:$16 sps:$4 sm:$0xff]   ;;  %v14543_v25 = vld [vmem:[%s20677_s2 + $0x318] ss:$16 sps:$4 sm:$0xff]  }
 0x569   : > { %10094 = vmatprep.subr.bf16.mxu0 %v14539_v57 }
 0x56a   : > { %10056 = vmatpush1.bf16.msra.mxu1 %v14504_v28 }
 0x56b   : > { %10057 = vmatprep.subr.bf16.mxu1 %v10037_v54  ;;  %v13089_v54 = vld [vmem:[%s20677_s2 + $0x338] sm:$0x11] }
 0x56c   : > { %v7151_v59 = vpop.f32.mrb[172].mxu0  ;;  %v7537_v60 = vpop.f32.mrb[172].mxu1  ;;  %10095 = vmatpush1.bf16.msra.mxu0 %v14537_v10  ;;  %v13117_v47 = vcombine.high %v13089_v54, %v13089_v54  ;;  %v13116_v19 = vcombine.low %v13089_v54, %v13089_v54 }
 0x56d   : > { %8202 = vst [vmem:[%s17425_s29 + $0x930] sm:$0xff] %v7151_v59  ;;  %8204 = vst [vmem:[%s17425_s29 + $0x940] sm:$0xff] %v7537_v60  ;;  %v7153_v44 = vpop.f32.mrb[173].mxu0  ;;  %v7539_v63 = vpop.f32.mrb[173].mxu1  ;;  %10096 = vmatprep.subr.bf16.mxu0 %v14542_v9 }
 0x56e   : > { %8203 = vst [vmem:[%s17425_s29 + $0x938] sm:$0xff] %v7153_v44  ;;  %8205 = vst [vmem:[%s17425_s29 + $0x948] sm:$0xff] %v7539_v63  ;;  %10058 = vmatpush1.bf16.msra.mxu1 %v10034_v24  ;;  %v7155_v62 = vpop.f32.mrb[174].mxu0  ;;  %v7541_v2 = vpop.f32.mrb[174].mxu1  ;;  %v10043_v31 = vand.u32 %v13117_v47, %v16848_v53  ;;  %v10040_v44 = vand.u32 %v13116_v19, %v16848_v53 }
 0x56f   : > { %8215 = vst [vmem:[%s17425_s29 + $0x998] sm:$0xff] %v7155_v62  ;;  %8217 = vst [vmem:[%s17425_s29 + $0x9a8] sm:$0xff] %v7541_v2  ;;  %v7157_v22 = vpop.f32.mrb[175].mxu0  ;;  %v7543_v52 = vpop.f32.mrb[175].mxu1  ;;  %13396 = vmatprep.subr.bf16.mxu1 %v14756_v36 }
 0x570   : > { %8216 = vst [vmem:[%s17425_s29 + $0x9a0] sm:$0xff] %v7157_v22  ;;  %8218 = vst [vmem:[%s17425_s29 + $0x9b0] sm:$0xff] %v7543_v52  ;;  %10097 = vmatpush1.bf16.msra.mxu0 %v14540_v41 }
 0x571   : > { %13118 = vmatmul.mubr.msk.bf16.vlgmr.msra.gmra.mrb[240].mxu1 %vm9248_vm14, %v18611_v18  ;;  %10098 = vmatprep.subr.bf16.mxu0 %v14545_v12 }
 0x572   : > { %13397 = vmatpush3.bf16.msra.mxu1 %v14525_v6  ;;  %13402 = vmatprep.mubr.msk.bf16.mxu1 %vm14757_vm3, %v14756_v36 }
 0x573   : > { %13398 = vmatprep.subr.bf16.mxu1 %v14756_v36 }
 0x574   : > { %v7161_v13 = vpop.f32.mrb[176].mxu0  ;;  %v7547_v15 = vpop.f32.mrb[176].mxu1  ;;  %10099 = vmatpush1.bf16.msra.mxu0 %v14543_v25 }
 0x575   : > { %8228 = vst [vmem:[%s17425_s29 + $0xa00] sm:$0xff] %v7161_v13  ;;  %8230 = vst [vmem:[%s17425_s29 + $0xa10] sm:$0xff] %v7547_v15  ;;  %v7163_v45 = vpop.f32.mrb[177].mxu0  ;;  %v7549_v35 = vpop.f32.mrb[177].mxu1  ;;  %10100 = vmatprep.subr.bf16.mxu0 %v10043_v31 }
 0x576   : > { %8229 = vst [vmem:[%s17425_s29 + $0xa08] sm:$0xff] %v7163_v45  ;;  %8231 = vst [vmem:[%s17425_s29 + $0xa18] sm:$0xff] %v7549_v35  ;;  %13399 = vmatpush3.bf16.msra.mxu1 %v14526_v1  ;;  %v7165_v20 = vpop.f32.mrb[178].mxu0  ;;  %v7551_v43 = vpop.f32.mrb[178].mxu1 }
 0x577   : > { %8241 = vst [vmem:[%s17425_s29 + $0xa68] sm:$0xff] %v7165_v20  ;;  %8243 = vst [vmem:[%s17425_s29 + $0xa78] sm:$0xff] %v7551_v43  ;;  %v7167_v38 = vpop.f32.mrb[179].mxu0  ;;  %v7553_v3 = vpop.f32.mrb[179].mxu1  ;;  %13400 = vmatprep.subr.bf16.mxu1 %v14756_v36 }
 0x578   : > { %8242 = vst [vmem:[%s17425_s29 + $0xa70] sm:$0xff] %v7167_v38  ;;  %8244 = vst [vmem:[%s17425_s29 + $0xa80] sm:$0xff] %v7553_v3  ;;  %10101 = vmatpush1.bf16.msra.mxu0 %v10040_v44 }
 0x579   : > { %13406 = vmatprep.subr.bf16.mxu0 %v14756_v36 }
 0x57a   : > { %13401 = vmatpush3.bf16.msra.mxu1 %v11824_v33 }
 0x57b   : > { %13416 = vmatprep.subr.bf16.mxu1 %v14756_v36  ;;  %13119 = vmatmul.mubr.msk.bf16.vlgmr.msra.gmra.mrb[8].mxu0 %vm9248_vm14, %v18611_v18  ;;  %vm10452_vm14 = vcmask 122880  }
 0x57c   : > { %v7171_v26 = vpop.f32.mrb[180].mxu0  ;;  %v7557_v49 = vpop.f32.mrb[180].mxu1  ;;  %13412 = vmatprep.mubr.msk.bf16.mxu0 %vm14757_vm3, %v14756_v36 }
 0x57d   : > { %8254 = vst [vmem:[%s17425_s29 + $0xad0] sm:$0xff] %v7171_v26  ;;  %8256 = vst [vmem:[%s17425_s29 + $0xae0] sm:$0xff] %v7557_v49  ;;  %13403 = vmatmul.mubr.msk.bf16.vlgmr.msra.gmra.mrb[244].mxu1 %vm5195_vm4, %v11799_v40  ;;  %v7173_v39 = vpop.f32.mrb[181].mxu0  ;;  %v7559_v48 = vpop.f32.mrb[181].mxu1 }
 0x57e   : > { %8255 = vst [vmem:[%s17425_s29 + $0xad8] sm:$0xff] %v7173_v39  ;;  %8257 = vst [vmem:[%s17425_s29 + $0xae8] sm:$0xff] %v7559_v48  ;;  %v7175_v37 = vpop.f32.mrb[182].mxu0  ;;  %v7561_v56 = vpop.f32.mrb[182].mxu1  ;;  %13422 = vmatprep.mubr.msk.bf16.mxu1 %vm14757_vm3, %v14756_v36 }
 0x57f   : > { %8267 = vst [vmem:[%s17425_s29 + $0xb38] sm:$0xff] %v7175_v37  ;;  %8269 = vst [vmem:[%s17425_s29 + $0xb48] sm:$0xff] %v7561_v56  ;;  %v7177_v61 = vpop.f32.mrb[183].mxu0  ;;  %v7563_v50 = vpop.f32.mrb[183].mxu1 }
 0x580   : > { %8268 = vst [vmem:[%s17425_s29 + $0xb40] sm:$0xff] %v7177_v61  ;;  %8270 = vst [vmem:[%s17425_s29 + $0xb50] sm:$0xff] %v7563_v50 }
 0x584   : > { %v7181_v5 = vpop.f32.mrb[184].mxu0  ;;  %v7567_v21 = vpop.f32.mrb[184].mxu1 }
 0x585   : > { %8280 = vst [vmem:[%s17425_s29 + $0xba0] sm:$0xff] %v7181_v5  ;;  %8282 = vst [vmem:[%s17425_s29 + $0xbb0] sm:$0xff] %v7567_v21  ;;  %v7183_v23 = vpop.f32.mrb[185].mxu0  ;;  %v7569_v29 = vpop.f32.mrb[185].mxu1 }
 0x586   : > { %8281 = vst [vmem:[%s17425_s29 + $0xba8] sm:$0xff] %v7183_v23  ;;  %8283 = vst [vmem:[%s17425_s29 + $0xbb8] sm:$0xff] %v7569_v29  ;;  %v7185_v11 = vpop.f32.mrb[186].mxu0  ;;  %v7571_v42 = vpop.f32.mrb[186].mxu1 }
 0x587   : > { %8293 = vst [vmem:[%s17425_s29 + $0xc08] sm:$0xff] %v7185_v11  ;;  %8295 = vst [vmem:[%s17425_s29 + $0xc18] sm:$0xff] %v7571_v42  ;;  %v7187_v28 = vpop.f32.mrb[187].mxu0  ;;  %v7573_v46 = vpop.f32.mrb[187].mxu1 }
 0x588   : > { %8294 = vst [vmem:[%s17425_s29 + $0xc10] sm:$0xff] %v7187_v28  ;;  %8296 = vst [vmem:[%s17425_s29 + $0xc20] sm:$0xff] %v7573_v46 }
 0x58c   : > { %v7191_v24 = vpop.f32.mrb[188].mxu0  ;;  %v18702_v0 = vpop.f32.mrb[188].mxu1 }
 0x58d   : > { %8306 = vst [vmem:[%s17425_s29 + $0xc70] sm:$0xff] %v7191_v24  ;;  %v18706_v59 = vpop.f32.mrb[189].mxu0  ;;  %v18708_v60 = vpop.f32.mrb[189].mxu1 }
 0x58e   : > { %8307 = vst [vmem:[%s17425_s29 + $0xc78] sm:$0xff] %v18706_v59  ;;  %v7195_v63 = vpop.f32.mrb[190].mxu0  ;;  %v18713_v6 = vpop.f32.mrb[190].mxu1 }
 0x58f   : > { %8319 = vst [vmem:[%s17425_s29 + $0xcd8] sm:$0xff] %v7195_v63  ;;  %v18716_v8 = vpop.f32.mrb[191].mxu0  ;;  %v18718_v62 = vpop.f32.mrb[191].mxu1 }
 0x590   : > { %8320 = vst [vmem:[%s17425_s29 + $0xce0] sm:$0xff] %v18716_v8 }
 0x594   : > { %v13227_v2 = vpop.f32.mrb[192].mxu0  ;;  %v13366_v7 = vpop.f32.mrb[192].mxu1 }
 0x595   : > { %v13228_v22 = vpop.f32.mrb[193].mxu0  ;;  %v7781_v52 = vpop.f32.mrb[193].mxu1 }
 0x596   : > { %v13229_v51 = vadd.f32 %v13228_v22, %v13227_v2  ;;  %v13230_v32 = vpop.f32.mrb[194].mxu0  ;;  %v13367_v1 = vpop.f32.mrb[194].mxu1 }
 0x597   : > { %v13231_v58 = vpop.f32.mrb[195].mxu0  ;;  %v7784_v13 = vpop.f32.mrb[195].mxu1 }
 0x598   : > { %v7782_v15 = vadd.f32 %v13229_v51, %v7781_v52  ;;  %v13232_v17 = vadd.f32 %v13231_v58, %v13230_v32 }
 0x59a   : > { %7920 = vst.msk [vmem:[%s17425_s29 + $0x60] sm:$0xff] %vm3472_vm2, %v7782_v15  ;;  %v7785_v45 = vadd.f32 %v13232_v17, %v7784_v13 }
 0x59c   : > { %7933 = vst.msk [vmem:[%s17425_s29 + $0xc8] sm:$0xff] %vm3472_vm2, %v7785_v45  ;;  %v13233_v18 = vpop.f32.mrb[196].mxu0  ;;  %v13370_v35 = vpop.f32.mrb[196].mxu1 }
 0x59d   : > { %v13234_v27 = vpop.f32.mrb[197].mxu0  ;;  %v7797_v30 = vpop.f32.mrb[197].mxu1 }
 0x59e   : > { %v13235_v20 = vadd.f32 %v13234_v27, %v13233_v18  ;;  %v13236_v43 = vpop.f32.mrb[198].mxu0  ;;  %v13371_v33 = vpop.f32.mrb[198].mxu1 }
 0x59f   : > { %v13237_v38 = vpop.f32.mrb[199].mxu0  ;;  %v7800_v3 = vpop.f32.mrb[199].mxu1 }
 0x5a0   : > { %v7790_v34 = vadd.f32 %v13366_v7, %v13235_v20  ;;  %v13238_v40 = vadd.f32 %v13237_v38, %v13236_v43 }
 0x5a2   : > { %7946 = vst.msk [vmem:[%s17425_s29 + $0x130] sm:$0xff] %vm3472_vm2, %v7790_v34  ;;  %v7793_v14 = vadd.f32 %v13367_v1, %v13238_v40 }
 0x5a4   : > { %7959 = vst.msk [vmem:[%s17425_s29 + $0x198] sm:$0xff] %vm3472_vm2, %v7793_v14  ;;  %v13239_v26 = vpop.f32.mrb[200].mxu0  ;;  %v13374_v49 = vpop.f32.mrb[200].mxu1 }
 0x5a5   : > { %v13240_v4 = vpop.f32.mrb[201].mxu0  ;;  %v7813_v39 = vpop.f32.mrb[201].mxu1 }
 0x5a6   : > { %v13241_v48 = vadd.f32 %v13240_v4, %v13239_v26  ;;  %v13242_v16 = vpop.f32.mrb[202].mxu0  ;;  %v13375_v37 = vpop.f32.mrb[202].mxu1 }
 0x5a7   : > { %v13243_v56 = vpop.f32.mrb[203].mxu0  ;;  %v7816_v61 = vpop.f32.mrb[203].mxu1 }
 0x5a8   : > { %v7798_v50 = vadd.f32 %v13241_v48, %v7797_v30  ;;  %v13244_v57 = vadd.f32 %v13243_v56, %v13242_v16 }
 0x5aa   : > { %7972 = vst.msk [vmem:[%s17425_s29 + $0x200] sm:$0xff] %vm3472_vm2, %v7798_v50  ;;  %v7801_v10 = vadd.f32 %v13244_v57, %v7800_v3 }
 0x5ac   : > { %7985 = vst.msk [vmem:[%s17425_s29 + $0x268] sm:$0xff] %vm3472_vm2, %v7801_v10  ;;  %v13245_v5 = vpop.f32.mrb[204].mxu0  ;;  %v18739_v21 = vpop.f32.mrb[204].mxu1 }
 0x5ad   : > { %v13246_v9 = vpop.f32.mrb[205].mxu0  ;;  %v7829_v23 = vpop.f32.mrb[205].mxu1 }
 0x5ae   : > { %v13247_v29 = vadd.f32 %v13246_v9, %v13245_v5  ;;  %v13248_v41 = vpop.f32.mrb[206].mxu0  ;;  %v13379_v11 = vpop.f32.mrb[206].mxu1 }
 0x5af   : > { %v13249_v42 = vpop.f32.mrb[207].mxu0  ;;  %v7832_v28 = vpop.f32.mrb[207].mxu1 }
 0x5b0   : > { %v7806_v46 = vadd.f32 %v13370_v35, %v13247_v29  ;;  %v13250_v12 = vadd.f32 %v13249_v42, %v13248_v41 }
 0x5b2   : > { %7998 = vst.msk [vmem:[%s17425_s29 + $0x2d0] sm:$0xff] %vm3472_vm2, %v7806_v46  ;;  %v7809_v25 = vadd.f32 %v13371_v33, %v13250_v12 }
 0x5b4   : > { %8011 = vst.msk [vmem:[%s17425_s29 + $0x338] sm:$0xff] %vm3472_vm2, %v7809_v25  ;;  %v13251_v54 = vpop.f32.mrb[208].mxu0  ;;  %v18745_v47 = vpop.f32.mrb[208].mxu1 }
 0x5b5   : > { %v13252_v19 = vpop.f32.mrb[209].mxu0  ;;  %v18747_v24 = vpop.f32.mrb[209].mxu1 }
 0x5b6   : > { %v13253_v31 = vadd.f32 %v13252_v19, %v13251_v54  ;;  %v13254_v44 = vpop.f32.mrb[210].mxu0  ;;  %v18749_v63 = vpop.f32.mrb[210].mxu1  ;;  %v10131_v54 = vld [vmem:[%s17425_s29] sm:$0xff] }
 0x5b7   : > { %v13255_v2 = vpop.f32.mrb[211].mxu0  ;;  %v18751_v7 = vpop.f32.mrb[211].mxu1 }
 0x5b8   : > { %v7814_v22 = vadd.f32 %v13253_v31, %v7813_v39  ;;  %v13256_v52 = vadd.f32 %v13255_v2, %v13254_v44 }
 0x5ba   : > { %8024 = vst.msk [vmem:[%s17425_s29 + $0x3a0] sm:$0xff] %vm3472_vm2, %v7814_v22  ;;  %v7817_v51 = vadd.f32 %v13256_v52, %v7816_v61  ;;  %v10132_v22 = vld [vmem:[%s17425_s29 + $0x8] sm:$0xff] }
 0x5bc   : > { %8037 = vst.msk [vmem:[%s17425_s29 + $0x408] sm:$0xff] %vm3472_vm2, %v7817_v51  ;;  %v13257_v32 = vpop.f32.mrb[212].mxu0  ;;  %v18757_v1 = vpop.f32.mrb[212].mxu1 }
 0x5bd   : > { %v13258_v58 = vpop.f32.mrb[213].mxu0  ;;  %v18759_v13 = vpop.f32.mrb[213].mxu1 }
 0x5be   : > { %v13259_v15 = vadd.f32 %v13258_v58, %v13257_v32  ;;  %v13260_v17 = vpop.f32.mrb[214].mxu0  ;;  %v18761_v45 = vpop.f32.mrb[214].mxu1 }
 0x5bf   : > { %v13261_v18 = vpop.f32.mrb[215].mxu0  ;;  %v18763_v35 = vpop.f32.mrb[215].mxu1 }
 0x5c0   : > { %v7822_v27 = vadd.f32 %v13374_v49, %v13259_v15  ;;  %v13262_v30 = vadd.f32 %v13261_v18, %v13260_v17  ;;  %v10135_v15 = vld [vmem:[%s17425_s29 + $0x68] sm:$0xff] }
 0x5c2   : > { %8050 = vst.msk [vmem:[%s17425_s29 + $0x470] sm:$0xff] %vm3472_vm2, %v7822_v27  ;;  %v7825_v20 = vadd.f32 %v13375_v37, %v13262_v30  ;;  %v10136_v30 = vld [vmem:[%s17425_s29 + $0x70] sm:$0xff] }
 0x5c4   : > { %8063 = vst.msk [vmem:[%s17425_s29 + $0x4d8] sm:$0xff] %vm3472_vm2, %v7825_v20  ;;  %v13263_v43 = vpop.f32.mrb[216].mxu0  ;;  %v18769_v33 = vpop.f32.mrb[216].mxu1 }
 0x5c5   : > { %v13264_v38 = vpop.f32.mrb[217].mxu0  ;;  %v18771_v3 = vpop.f32.mrb[217].mxu1 }
 0x5c6   : > { %v13265_v34 = vadd.f32 %v13264_v38, %v13263_v43  ;;  %v13266_v40 = vpop.f32.mrb[218].mxu0  ;;  %v18773_v14 = vpop.f32.mrb[218].mxu1 }
 0x5c7   : > { %v13267_v26 = vpop.f32.mrb[219].mxu0  ;;  %v18775_v49 = vpop.f32.mrb[219].mxu1 }
 0x5c8   : > { %v7830_v4 = vadd.f32 %v13265_v34, %v7829_v23  ;;  %v13268_v39 = vadd.f32 %v13267_v26, %v13266_v40 }
 0x5ca   : > { %8076 = vst.msk [vmem:[%s17425_s29 + $0x540] sm:$0xff] %vm3472_vm2, %v7830_v4  ;;  %v7833_v48 = vadd.f32 %v13268_v39, %v7832_v28 }
 0x5cc   : > { %8089 = vst.msk [vmem:[%s17425_s29 + $0x5a8] sm:$0xff] %vm3472_vm2, %v7833_v48  ;;  %v13269_v16 = vpop.f32.mrb[220].mxu0  ;;  %v18781_v37 = vpop.f32.mrb[220].mxu1 }
 0x5cd   : > { %v13270_v56 = vpop.f32.mrb[221].mxu0  ;;  %v18783_v61 = vpop.f32.mrb[221].mxu1 }
 0x5ce   : > { %v13271_v50 = vadd.f32 %v13270_v56, %v13269_v16  ;;  %v13272_v57 = vpop.f32.mrb[222].mxu0  ;;  %v18785_v10 = vpop.f32.mrb[222].mxu1 }
 0x5cf   : > { %v13273_v5 = vpop.f32.mrb[223].mxu0  ;;  %v18787_v9 = vpop.f32.mrb[223].mxu1 }
 0x5d0   : > { %v7838_v23 = vadd.f32 %v18739_v21, %v13271_v50  ;;  %v13274_v29 = vadd.f32 %v13273_v5, %v13272_v57 }
 0x5d2   : > { %8102 = vst.msk [vmem:[%s17425_s29 + $0x610] sm:$0xff] %vm3472_vm2, %v7838_v23  ;;  %v7841_v41 = vadd.f32 %v13379_v11, %v13274_v29 }
 0x5d4   : > { %8115 = vst.msk [vmem:[%s17425_s29 + $0x678] sm:$0xff] %vm3472_vm2, %v7841_v41  ;;  %v13275_v42 = vpop.f32.mrb[224].mxu0  ;;  %v9297_v28 = vpop.f32.mrb[224].mxu1 }
 0x5d5   : > { %v10139_v46 = vmul.f32 0.25, %v9297_v28  ;;  %v13276_v12 = vpop.f32.mrb[225].mxu0  ;;  %v9299_v25 = vpop.f32.mrb[225].mxu1 }
 0x5d6   : > { %v13277_v19 = vadd.f32 %v13276_v12, %v13275_v42  ;;  %v10140_v31 = vmul.f32 0.25, %v9299_v25  ;;  %v13278_v21 = vpop.f32.mrb[226].mxu0  ;;  %v9301_v44 = vpop.f32.mrb[226].mxu1 }
 0x5d7   : > { %v10147_v2 = vsub.f32 %v10131_v54, %v10139_v46  ;;  %v10143_v11 = vmul.f32 0.25, %v9301_v44  ;;  %v13279_v52 = vpop.f32.mrb[227].mxu0  ;;  %v9303_v51 = vpop.f32.mrb[227].mxu1 }
 0x5d8   : > { %v7846_v32 = vadd.f32 %v13277_v19, %v18747_v24  ;;  %v10148_v58 = vsub.f32 %v10132_v22, %v10140_v31  ;;  %v13280_v17 = vadd.f32 %v13279_v52, %v13278_v21  ;;  %v10144_v18 = vmul.f32 0.25, %v9303_v51  ;;  %v10133_v19 = vld [vmem:[%s17425_s29 + $0x10] sm:$0xff]  ;;  %v10137_v52 = vld [vmem:[%s17425_s29 + $0x78] sm:$0xff] }
 0x5d9   : > { %10155 = vst [vmem:[%s17425_s29] sm:$0xff] %v10147_v2  ;;  %v10151_v27 = vsub.f32 %v10135_v15, %v10143_v11  ;;  %v10134_v2 = vld [vmem:[%s17425_s29 + $0x18] sm:$0xff] }
 0x5da   : > { %8128 = vst.msk [vmem:[%s17425_s29 + $0x6e0] sm:$0xff] %vm3472_vm2, %v7846_v32  ;;  %10156 = vst [vmem:[%s17425_s29 + $0x8] sm:$0xff] %v10148_v58  ;;  %v7849_v20 = vadd.f32 %v13280_v17, %v18751_v7  ;;  %v10152_v43 = vsub.f32 %v10136_v30, %v10144_v18  ;;  %v10138_v58 = vld [vmem:[%s17425_s29 + $0x80] sm:$0xff] }
 0x5db   : > { %10160 = vst [vmem:[%s17425_s29 + $0x68] sm:$0xff] %v10151_v27 }
 0x5dc   : > { %8141 = vst.msk [vmem:[%s17425_s29 + $0x748] sm:$0xff] %vm3472_vm2, %v7849_v20  ;;  %10161 = vst [vmem:[%s17425_s29 + $0x70] sm:$0xff] %v10152_v43  ;;  %v13281_v24 = vpop.f32.mrb[228].mxu0 }
 0x5dd   : > { %v13282_v38 = vpop.f32.mrb[229].mxu0 }
 0x5de   : > { %v13283_v34 = vadd.f32 %v13282_v38, %v13281_v24  ;;  %v13284_v40 = vpop.f32.mrb[230].mxu0 }
 0x5df   : > { %v13285_v26 = vpop.f32.mrb[231].mxu0 }
 0x5e0   : > { %v7854_v4 = vadd.f32 %v18745_v47, %v13283_v34  ;;  %v13286_v39 = vadd.f32 %v13285_v26, %v13284_v40 }
 0x5e2   : > { %8154 = vst.msk [vmem:[%s17425_s29 + $0x7b0] sm:$0xff] %vm3472_vm2, %v7854_v4  ;;  %v7857_v48 = vadd.f32 %v18749_v63, %v13286_v39 }
 0x5e4   : > { %8167 = vst.msk [vmem:[%s17425_s29 + $0x818] sm:$0xff] %vm3472_vm2, %v7857_v48  ;;  %v13287_v7 = vpop.f32.mrb[232].mxu0 }
 0x5e5   : > { %v13288_v16 = vpop.f32.mrb[233].mxu0 }
 0x5e6   : > { %v13289_v56 = vadd.f32 %v13288_v16, %v13287_v7  ;;  %v13290_v50 = vpop.f32.mrb[234].mxu0 }
 0x5e7   : > { %v13291_v57 = vpop.f32.mrb[235].mxu0 }
 0x5e8   : > { %v7862_v5 = vadd.f32 %v13289_v56, %v18759_v13  ;;  %v13292_v23 = vadd.f32 %v13291_v57, %v13290_v50 }
 0x5ea   : > { %8180 = vst.msk [vmem:[%s17425_s29 + $0x880] sm:$0xff] %vm3472_vm2, %v7862_v5  ;;  %v7865_v47 = vadd.f32 %v13292_v23, %v18763_v35 }
 0x5ec   : > { %8193 = vst.msk [vmem:[%s17425_s29 + $0x8e8] sm:$0xff] %vm3472_vm2, %v7865_v47  ;;  %v13293_v29 = vpop.f32.mrb[236].mxu0 }
 0x5ed   : > { %v13294_v63 = vpop.f32.mrb[237].mxu0 }
 0x5ee   : > { %v13295_v41 = vadd.f32 %v13294_v63, %v13293_v29  ;;  %v13296_v42 = vpop.f32.mrb[238].mxu0 }
 0x5ef   : > { %v13297_v28 = vpop.f32.mrb[239].mxu0 }
 0x5f0   : > { %v7870_v46 = vadd.f32 %v18757_v1, %v13295_v41  ;;  %v13298_v12 = vadd.f32 %v13297_v28, %v13296_v42  ;;  %v9340_v13 = vpop.f32.mrb[228].mxu1 }
 0x5f1   : > { %v10141_v25 = vmul.f32 0.25, %v9340_v13  ;;  %v9342_v54 = vpop.f32.mrb[229].mxu1 }
 0x5f2   : > { %8206 = vst.msk [vmem:[%s17425_s29 + $0x950] sm:$0xff] %vm3472_vm2, %v7870_v46  ;;  %v7873_v35 = vadd.f32 %v18761_v45, %v13298_v12  ;;  %v10142_v31 = vmul.f32 0.25, %v9342_v54  ;;  %v9344_v21 = vpop.f32.mrb[230].mxu1 }
 0x5f3   : > { %v10149_v44 = vsub.f32 %v10133_v19, %v10141_v25  ;;  %v10145_v1 = vmul.f32 0.25, %v9344_v21  ;;  %v9346_v22 = vpop.f32.mrb[231].mxu1 }
 0x5f4   : > { %8219 = vst.msk [vmem:[%s17425_s29 + $0x9b8] sm:$0xff] %vm3472_vm2, %v7873_v35  ;;  %v10150_v11 = vsub.f32 %v10134_v2, %v10142_v31  ;;  %v10146_v51 = vmul.f32 0.25, %v9346_v22  ;;  %v13299_v32 = vpop.f32.mrb[240].mxu0 }
 0x5f5   : > { %10157 = vst [vmem:[%s17425_s29 + $0x10] sm:$0xff] %v10149_v44  ;;  %v10153_v45 = vsub.f32 %v10137_v52, %v10145_v1  ;;  %v13300_v15 = vpop.f32.mrb[241].mxu0 }
 0x5f6   : > { %10159 = vst.msk [vmem:[%s17425_s29 + $0x18] sm:$0xff] %vm10158_vm0, %v10150_v11  ;;  %v10154_v17 = vsub.f32 %v10138_v58, %v10146_v51  ;;  %v13301_v18 = vadd.f32 %v13300_v15, %v13299_v32  ;;  %v13302_v27 = vpop.f32.mrb[242].mxu0  ;;  %v10239_v58 = vld [vmem:[%s17425_s29 + $0x1a0] ss:$0 sm:$0xff] }
 0x5f7   : > { %10162 = vst [vmem:[%s17425_s29 + $0x78] sm:$0xff] %v10153_v45  ;;  %v13303_v30 = vpop.f32.mrb[243].mxu0  ;;  %v10238_v45 = vld [vmem:[%s17425_s29 + $0xd0] ss:$0 sm:$0xff] }
 0x5f8   : > { %10163 = vst.msk [vmem:[%s17425_s29 + $0x80] sm:$0xff] %vm10158_vm0, %v10154_v17  ;;  %v7878_v20 = vadd.f32 %v13301_v18, %v18771_v3  ;;  %v13304_v43 = vadd.f32 %v13303_v30, %v13302_v27  ;;  %vm11299_vm0 = vcmask 1040992  }
 0x5fa   : > { %8232 = vst.msk [vmem:[%s17425_s29 + $0xa20] sm:$0xff] %vm3472_vm2, %v7878_v20  ;;  %v7881_v24 = vadd.f32 %v13304_v43, %v18775_v49  ;;  %v10245_v20 = vld [vmem:[%s17425_s29 + $0x680] ss:$0 sm:$0xff]  ;;  %v10240_v43 = vld [vmem:[%s17425_s29 + $0x270] ss:$0 sm:$0xff] }
 0x5fc   : > { %8245 = vst.msk [vmem:[%s17425_s29 + $0xa88] sm:$0xff] %vm3472_vm2, %v7881_v24  ;;  %v13305_v38 = vpop.f32.mrb[244].mxu0 }
 0x5fd   : > { %v13306_v34 = vpop.f32.mrb[245].mxu0 }
 0x5fe   : > { %v13307_v40 = vadd.f32 %v13306_v34, %v13305_v38  ;;  %v13308_v26 = vpop.f32.mrb[246].mxu0 }
 0x5ff   : > { %v13309_v4 = vpop.f32.mrb[247].mxu0 }
 0x600   : > { %v7886_v39 = vadd.f32 %v18769_v33, %v13307_v40  ;;  %v13310_v48 = vadd.f32 %v13309_v4, %v13308_v26  ;;  %v10241_v4 = vld [vmem:[%s17425_s29 + $0x340] ss:$0 sm:$0xff] }
 0x602   : > { %8258 = vst.msk [vmem:[%s17425_s29 + $0xaf0] sm:$0xff] %vm3472_vm2, %v7886_v39  ;;  %v7889_v3 = vadd.f32 %v18773_v14, %v13310_v48 }
 0x604   : > { %8271 = vst.msk [vmem:[%s17425_s29 + $0xb58] sm:$0xff] %vm3472_vm2, %v7889_v3  ;;  %v13311_v7 = vpop.f32.mrb[248].mxu0  ;;  %v10242_v3 = vld [vmem:[%s17425_s29 + $0x410] ss:$0 sm:$0xff] }
 0x605   : > { %v13312_v49 = vpop.f32.mrb[249].mxu0 }
 0x606   : > { %v13313_v16 = vadd.f32 %v13312_v49, %v13311_v7  ;;  %v13314_v56 = vpop.f32.mrb[250].mxu0 }
 0x607   : > { %v13315_v50 = vpop.f32.mrb[251].mxu0 }
 0x608   : > { %v7894_v57 = vadd.f32 %v13313_v16, %v18783_v61  ;;  %v13316_v5 = vadd.f32 %v13315_v50, %v13314_v56  ;;  %v10237_v16 = vld [vmem:[%s17425_s29] ss:$0 sm:$0xff] }
 0x60a   : > { %8284 = vst.msk [vmem:[%s17425_s29 + $0xbc0] sm:$0xff] %vm3472_vm2, %v7894_v57  ;;  %v7897_v23 = vadd.f32 %v13316_v5, %v18787_v9  ;;  %v10243_v5 = vld [vmem:[%s17425_s29 + $0x4e0] ss:$0 sm:$0xff] }
 0x60c   : > { %8297 = vst.msk [vmem:[%s17425_s29 + $0xc28] sm:$0xff] %vm3472_vm2, %v7897_v23  ;;  %v9554_v33 = vpop.f32.mrb[232].mxu1  ;;  %v13317_v47 = vpop.f32.mrb[252].mxu0  ;;  %v10244_v23 = vld [vmem:[%s17425_s29 + $0x5b0] ss:$0 sm:$0xff] }
 0x60d   : > { %v10173_v14 = vmul.f32 0.25, %v9554_v33  ;;  %v9556_v29 = vpop.f32.mrb[233].mxu1  ;;  %v13318_v63 = vpop.f32.mrb[253].mxu0 }
 0x60e   : > { %v10174_v41 = vmul.f32 0.25, %v9556_v29  ;;  %v13319_v42 = vadd.f32 %v13318_v63, %v13317_v47  ;;  %v9558_v28 = vpop.f32.mrb[234].mxu1  ;;  %v13320_v46 = vpop.f32.mrb[254].mxu0 }
 0x60f   : > { %10189 = vrot.lane.b32.xlu0 %v10173_v14, %s14758_s26  ;;  %v9560_v61 = vpop.f32.mrb[235].mxu1  ;;  %v13321_v12 = vpop.f32.mrb[255].mxu0  ;;  %v10177_v25 = vmul.f32 0.25, %v9558_v28 }
 0x610   : > { %v7902_v9 = vadd.f32 %v18781_v37, %v13319_v42  ;;  %v13322_v13 = vadd.f32 %v13321_v12, %v13320_v46  ;;  %10191 = vrot.lane.b32.xlu1 %v10174_v41, %s14758_s26  ;;  %v10178_v54 = vmul.f32 0.25, %v9560_v61  ;;  %v10246_v46 = vld [vmem:[%s17425_s29 + $0x750] ss:$0 sm:$0xff] }
 0x612   : > { %8310 = vst.msk [vmem:[%s17425_s29 + $0xc90] sm:$0xff] %vm3472_vm2, %v7902_v9  ;;  %v7905_v35 = vadd.f32 %v18785_v10, %v13322_v13  ;;  %v10247_v9 = vld [vmem:[%s17425_s29 + $0x820] ss:$0 sm:$0xff] }
 0x613   : > { %10197 = vrot.lane.b32.xlu0 %v10177_v25, %s14758_s26 }
 0x614   : > { %8323 = vst.msk [vmem:[%s17425_s29 + $0xcf8] sm:$0xff] %vm3472_vm2, %v7905_v35  ;;  %10199 = vrot.lane.b32.xlu1 %v10178_v54, %s14758_s26  ;;  %v9597_v19 = vpop.f32.mrb[0].mxu0 }
 0x615   : > { %v10175_v31 = vmul.f32 0.25, %v9597_v19  ;;  %v9599_v21 = vpop.f32.mrb[1].mxu0  ;;  %v10248_v19 = vld [vmem:[%s17425_s29 + $0x8f0] ss:$0 sm:$0xff] }
 0x616   : > { %v10176_v37 = vmul.f32 0.25, %v9599_v21  ;;  %v9601_v44 = vpop.f32.mrb[2].mxu0 }
 0x617   : > { %v9603_v2 = vpop.f32.mrb[3].mxu0  ;;  %10193 = vrot.lane.b32.xlu0 %v10175_v31, %s14758_s26  ;;  %v10179_v1 = vmul.f32 0.25, %v9601_v44  ;;  %v10249_v31 = vld [vmem:[%s17425_s29 + $0x9c0] ss:$0 sm:$0xff] }
 0x618   : > { %10195 = vrot.lane.b32.xlu1 %v10176_v37, %s14758_s26  ;;  %v10180_v10 = vmul.f32 0.25, %v9603_v2  ;;  %v10250_v2 = vld [vmem:[%s17425_s29 + $0xa90] ss:$0 sm:$0xff] }
 0x61b   : > { %10201 = vrot.lane.b32.xlu0 %v10179_v1, %s14758_s26 }
 0x61c   : > { %10203 = vrot.lane.b32.xlu1 %v10180_v10, %s14758_s26 }
 0x628   : > { %v9822_v22 = vpop.f32.mrb[236].mxu1 }
 0x629   : > { %v18868_v11 = vmul.f32 0.25, %v9822_v22  ;;  %v9824_v52 = vpop.f32.mrb[237].mxu1  ;;  %v10251_v22 = vld [vmem:[%s17425_s29 + $0xb60] ss:$0 sm:$0xff] }
 0x62a   : > { %v18870_v51 = vmul.f32 0.25, %v9824_v52  ;;  %v9826_v32 = vpop.f32.mrb[238].mxu1 }
 0x62b   : > { %v18874_v15 = vmul.f32 0.25, %v9826_v32  ;;  %10518 = vrot.lane.b32.xlu0 %v18868_v11, %s14759_s8  ;;  %v18878_v17 = vpop.f32.mrb[239].mxu1  ;;  %v10257_v18 = vrot.slane %v18868_v11, 1  ;;  %v10258_v27 = vrot.slane %v18868_v11, 2  ;;  %v10259_v30 = vrot.slane %v18868_v11, 3 }
 0x62c   : > { %10520 = vrot.lane.b32.xlu1 %v18870_v51, %s14759_s8  ;;  %v10504_v26 = vrot.slane %v18870_v51, 1  ;;  %v10260_v39 = vrot.slane %v18868_v11, 4  ;;  %v10261_v48 = vrot.slane %v18868_v11, 5  ;;  %v10262_v7 = vrot.slane %v18868_v11, 6 }
 0x62d   : > { %v10295_v24 = vsub.f32 %v10245_v20, %v18874_v15  ;;  %v10288_v38 = vsub.f32 %v10238_v45, %v10257_v18  ;;  %v10289_v34 = vsub.f32 %v10239_v58, %v10258_v27  ;;  %v10290_v40 = vsub.f32 %v10240_v43, %v10259_v30  ;;  %v10252_v45 = vld [vmem:[%s17425_s29 + $0xc30] ss:$0 sm:$0xff] }
 0x62e   : > { %v10263_v49 = vrot.slane %v18868_v11, 7  ;;  %v10291_v50 = vsub.f32 %v10241_v4, %v10260_v39  ;;  %v10292_v57 = vsub.f32 %v10242_v3, %v10261_v48  ;;  %v10287_v33 = vsub.f32 %v10237_v16, %v18868_v11 }
 0x62f   : > { %10312 = vst.msk [vmem:[%s17425_s29 + $0x680] sm:$0x1] %vm10303_vm5, %v10295_v24  ;;  %10926 = vrot.lane.b32.xlu0 %v18870_v51, %s14760_s25  ;;  %10305 = vst.msk [vmem:[%s17425_s29 + $0xd0] sm:$0x1] %vm10303_vm5, %v10288_v38  ;;  %v10293_v14 = vsub.f32 %v10243_v5, %v10262_v7  ;;  %v10505_v41 = vrot.slane %v18870_v51, 2  ;;  %v10264_v28 = vrot.slane %v18874_v15, 1 }
 0x630   : > { %10306 = vst.msk [vmem:[%s17425_s29 + $0x1a0] sm:$0x1] %vm10303_vm5, %v10289_v34  ;;  %10307 = vst.msk [vmem:[%s17425_s29 + $0x270] sm:$0x1] %vm10303_vm5, %v10290_v40  ;;  %v18908_v56 = vpop.f32.mrb[4].mxu0  ;;  %10524 = vrot.lane.b32.xlu1 %v10504_v26, %s14759_s8  ;;  %v10294_v29 = vsub.f32 %v10244_v23, %v10263_v49  ;;  %v10265_v61 = vrot.slane %v18874_v15, 2 }
 0x631   : > { %v18920_v47 = vpop.f32.mrb[5].mxu0  ;;  %10308 = vst.msk [vmem:[%s17425_s29 + $0x340] sm:$0x1] %vm10303_vm5, %v10291_v50  ;;  %10309 = vst.msk [vmem:[%s17425_s29 + $0x410] sm:$0x1] %vm10303_vm5, %v10292_v57  ;;  %v10296_v12 = vsub.f32 %v10246_v46, %v10264_v28  ;;  %v10266_v13 = vrot.slane %v18874_v15, 3 }
 0x632   : > { %v18926_v63 = vpop.f32.mrb[6].mxu0  ;;  %10304 = vst.msk [vmem:[%s17425_s29] sm:$0x1] %vm10303_vm5, %v10287_v33  ;;  %10310 = vst.msk [vmem:[%s17425_s29 + $0x4e0] sm:$0x1] %vm10303_vm5, %v10293_v14  ;;  %v10267_v25 = vrot.slane %v18874_v15, 4  ;;  %v10297_v35 = vsub.f32 %v10247_v9, %v10265_v61 }
 0x633   : > { %v18935_v42 = vpop.f32.mrb[7].mxu0  ;;  %10522 = vrot.lane.b32.xlu0 %v10257_v18, %s14759_s8  ;;  %10311 = vst.msk [vmem:[%s17425_s29 + $0x5b0] sm:$0x1] %vm10303_vm5, %v10294_v29  ;;  %v10506_v54 = vrot.slane %v18870_v51, 3  ;;  %v10268_v21 = vrot.slane %v18874_v15, 5  ;;  %v10298_v37 = vsub.f32 %v10248_v19, %v10266_v13  ;;  %v10269_v1 = vrot.slane %v18874_v15, 6 }
 0x634   : > { %10528 = vrot.lane.b32.xlu1 %v10505_v41, %s14759_s8  ;;  %10313 = vst.msk [vmem:[%s17425_s29 + $0x750] sm:$0x1] %vm10303_vm5, %v10296_v12  ;;  %v10299_v44 = vsub.f32 %v10249_v31, %v10267_v25  ;;  %10314 = vst.msk [vmem:[%s17425_s29 + $0x820] sm:$0x1] %vm10303_vm5, %v10297_v35  ;;  %v10270_v52 = vrot.slane %v18874_v15, 7  ;;  %v10507_v58 = vrot.slane %v18870_v51, 4 }
 0x635   : > { %v10300_v10 = vsub.f32 %v10250_v2, %v10268_v21  ;;  %10315 = vst.msk [vmem:[%s17425_s29 + $0x8f0] sm:$0x1] %vm10303_vm5, %v10298_v37  ;;  %v10301_v32 = vsub.f32 %v10251_v22, %v10269_v1  ;;  %v10509_v20 = vrot.slane %v18870_v51, 6  ;;  %v10510_v24 = vrot.slane %v18870_v51, 7  ;;  %v14548_v5 = vld [vmem:[%s20678_s3 + $0x14] sm:$0xff]   ;;  %v14549_v33 = vld [vmem:[%s20678_s3 + $0x1c] sm:$0xff]  }
 0x636   : > { %10316 = vst.msk [vmem:[%s17425_s29 + $0x9c0] sm:$0x1] %vm10303_vm5, %v10299_v44  ;;  %v10302_v18 = vsub.f32 %v10252_v45, %v10270_v52  ;;  %v19019_v40 = vmul.f32 0.25, %v18878_v17  ;;  %v11871_v23 = vld [vmem:[#allocation2 + $0x14] sm:$0x1]  ;;  %13407 = vmatpush3.bf16.msra.mxu0 %v14548_v5  ;;  %v19081_v12 = vmul.f32 0.25, %v18908_v56 }
 0x637   : > { %10526 = vrot.lane.b32.xlu0 %v10258_v27, %s14759_s8  ;;  %10317 = vst.msk [vmem:[%s17425_s29 + $0xa90] sm:$0x1] %vm10303_vm5, %v10300_v10  ;;  %10318 = vst.msk [vmem:[%s17425_s29 + $0xb60] sm:$0x1] %vm10303_vm5, %v10301_v32  ;;  %v10508_v27 = vrot.slane %v18870_v51, 5  ;;  %13408 = vmatprep.subr.bf16.mxu0 %v14756_v36  ;;  %v19098_v37 = vmul.f32 0.25, %v18920_v47 }
 0x638   : > { %10532 = vrot.lane.b32.xlu1 %v10506_v54, %s14759_s8  ;;  %10319 = vst.msk [vmem:[%s17425_s29 + $0xc30] sm:$0x1] %vm10303_vm5, %v10302_v18  ;;  %v10511_v4 = vrot.slane %v19019_v40, 1  ;;  %v10512_v11 = vrot.slane %v19019_v40, 2  ;;  %v10513_v50 = vrot.slane %v19019_v40, 3  ;;  %v10514_v57 = vrot.slane %v19019_v40, 4 }
 0x639   : > { %v11789_v3 = vld [vmem:[%s17425_s29] ss:$0 sm:$0xff]  ;;  %v10516_v51 = vrot.slane %v19019_v40, 6  ;;  %v11873_v29 = vsel %vm3423_vm15, %v11871_v23, 1065369472  ;;  %v14551_v44 = vld [vmem:[%s20678_s3 + $0x28] sm:$0xff]  }
 0x63a   : > { %13409 = vmatpush3.bf16.msra.mxu0 %v14549_v33  ;;  %v11874_v46 = vpack.i.b16 %v11873_v29, %v11873_v29  ;;  %v14552_v2 = vld [vmem:[%s20678_s3 + $0x3c] sm:$0xff]   ;;  %v12046_v10 = vld [vmem:[#allocation2 + $0xc8] sm:$0x1]  ;;  %13417 = vmatpush3.bf16.msra.mxu1 %v14551_v44  ;;  %v10912_v22 = vrot.slane %v19081_v12, 1  ;;  %v14553_v32 = vld [vmem:[%s20678_s3 + $0x30] sm:$0xff]   ;;  %v10913_v18 = vrot.slane %v19081_v12, 2 }
 0x63b   : > { %10530 = vrot.lane.b32.xlu0 %v10259_v30, %s14759_s8  ;;  %13410 = vmatprep.subr.bf16.mxu0 %v14756_v36  ;;  %v12048_v47 = vsel %vm3423_vm15, %v12046_v10, 1065369472  ;;  %v14554_v45 = vld [vmem:[%s20678_s3 + $0x44] sm:$0xff]   ;;  %v10916_v5 = vrot.slane %v19081_v12, 5  ;;  %v10917_v29 = vrot.slane %v19081_v12, 6  ;;  %v19205_v10 = vmul.f32 0.25, %v18926_v63 }
 0x63c   : > { %10536 = vrot.lane.b32.xlu1 %v10507_v58, %s14759_s8  ;;  %v11879_v56 = vrot.slane %v11874_v46, %v18635_v55  ;;  %13418 = vmatprep.subr.bf16.mxu1 %v14756_v36  ;;  %v11369_v63 = vrot.slane %v19098_v37, 1 }
 0x63e   : > { %13419 = vmatpush3.bf16.msra.mxu1 %v14553_v32  ;;  %v13127_v32 = vld [vmem:[%s17425_s29 + $0xcf8] sm:$0xff] }
 0x63f   : > { %10534 = vrot.lane.b32.xlu0 %v10260_v39, %s14759_s8  ;;  %13420 = vmatprep.subr.bf16.mxu1 %v14756_v36 }
 0x640   : > { %10540 = vrot.lane.b32.xlu1 %v10508_v27, %s14759_s8 }
 0x643   : > { %10538 = vrot.lane.b32.xlu0 %v10261_v48, %s14759_s8 }
 0x644   : > { %10544 = vrot.lane.b32.xlu1 %v10509_v20, %s14759_s8  ;;  %v19005_v30 = vpop.f32.mrb[240].mxu1 }
 0x645   : > { %v19007_v43 = vpop.f32.mrb[241].mxu1 }
 0x646   : > { %v19010_v38 = vpop.f32.mrb[242].mxu1 }
 0x647   : > { %10542 = vrot.lane.b32.xlu0 %v10262_v7, %s14759_s8  ;;  %v19015_v34 = vpop.f32.mrb[243].mxu1 }
 0x648   : > { %10548 = vrot.lane.b32.xlu1 %v10510_v24, %s14759_s8 }
 0x64b   : > { %10546 = vrot.lane.b32.xlu0 %v10263_v49, %s14759_s8 }
 0x64c   : > { %10552 = vrot.lane.b32.xlu1 %v19019_v40, %s14759_s8 }
 0x64e   : > { %v19071_v14 = vpop.f32.mrb[8].mxu0 }
 0x64f   : > { %10550 = vrot.lane.b32.xlu0 %v18874_v15, %s14759_s8  ;;  %v19083_v9 = vpop.f32.mrb[9].mxu0 }
 0x650   : > { %10556 = vrot.lane.b32.xlu1 %v10511_v4, %s14759_s8  ;;  %v11860_v39 = vpop.f32.mrb[244].mxu1  ;;  %v19089_v35 = vpop.f32.mrb[10].mxu0 }
 0x651   : > { %v11866_v17 = vmul.f32 0.0625, %v11860_v39  ;;  %v13404_v48 = vpop.f32.mrb[245].mxu1  ;;  %v19094_v31 = vpop.f32.mrb[11].mxu0 }
 0x652   : > { %v11863_v7 = vpop.f32.mrb[246].mxu1  ;;  %v10914_v48 = vrot.slane %v19081_v12, 3 }
 0x653   : > { %v11867_v49 = vadd.f32 %v11866_v17, %v11789_v3  ;;  %10930 = vrot.lane.b32.xlu0 %v10504_v26, %s14760_s25  ;;  %v13405_v16 = vpop.f32.mrb[247].mxu1  ;;  %v10515_v26 = vrot.slane %v19019_v40, 5  ;;  %v11958_v17 = vld [vmem:[#allocation2 + $0xc0] sm:$0x1] }
 0x654   : > { %10560 = vrot.lane.b32.xlu1 %v10512_v11, %s14759_s8  ;;  %v11960_v3 = vsel %vm3423_vm15, %v11958_v17, 1065369472  ;;  %vm10205_vm15 = vcmask 392192  }
 0x655   : > { %11868 = vst.msk [vmem:[%s17425_s29] sm:$0x1] %vm10303_vm5, %v11867_v49  ;;  %vm11301_vm5 = vcmask 385024  }
 0x657   : > { %10934 = vrot.lane.b32.xlu0 %v10505_v41, %s14760_s25  ;;  %v10517_v41 = vrot.slane %v19019_v40, 7 }
 0x658   : > { %10564 = vrot.lane.b32.xlu1 %v10513_v50, %s14759_s8 }
 0x65b   : > { %10938 = vrot.lane.b32.xlu0 %v10506_v54, %s14760_s25  ;;  %v14550_v54 = vld [vmem:[%s20678_s3 + $0x24] ss:$0 sps:$4 sm:$0x11]  }
 0x65c   : > { %10568 = vrot.lane.b32.xlu1 %v10514_v57, %s14759_s8  ;;  %v11905_v19 = vand.u32 %v14550_v54, %v16848_v53 }
 0x65e   : > { %13411 = vmatpush3.bf16.msra.mxu0 %v11905_v19  ;;  %v10918_v19 = vrot.slane %v19081_v12, 7 }
 0x65f   : > { %10942 = vrot.lane.b32.xlu0 %v10507_v58, %s14760_s25  ;;  %13426 = vmatprep.subr.bf16.mxu0 %v14756_v36  ;;  %v12049_v58 = vpack.i.b16 %v12048_v47, %v12048_v47 }
 0x660   : > { %10572 = vrot.lane.b32.xlu1 %v10515_v26, %s14759_s8 }
 0x661   : > { %13413 = vmatmul.mubr.msk.bf16.vlgmr.msra.gmra.mrb[12].mxu0 %vm5195_vm4, %v11879_v56  ;;  %v12054_v39 = vrot.slane %v12049_v58, %v18635_v55 }
 0x662   : > { %13427 = vmatpush3.bf16.msra.mxu0 %v14552_v2  ;;  %13432 = vmatprep.mubr.msk.bf16.mxu0 %vm14757_vm3, %v14756_v36  ;;  %vm10843_vm3 = vcmask 1040864  }
 0x663   : > { %10946 = vrot.lane.b32.xlu0 %v10508_v27, %s14760_s25  ;;  %13428 = vmatprep.subr.bf16.mxu0 %v14756_v36  ;;  %v14555_v27 = vld [vmem:[%s20678_s3 + $0x38] ss:$0 sps:$4 sm:$0x11]  }
 0x664   : > { %10576 = vrot.lane.b32.xlu1 %v10516_v51, %s14759_s8 }
 0x666   : > { %13429 = vmatpush3.bf16.msra.mxu0 %v14554_v45 }
 0x667   : > { %10950 = vrot.lane.b32.xlu0 %v10509_v20, %s14760_s25  ;;  %13430 = vmatprep.subr.bf16.mxu0 %v14756_v36  ;;  %v11993_v20 = vand.u32 %v14555_v27, %v16848_v53  ;;  %v11961_v36 = vshrl.u32 %v11960_v3, 16  ;;  %v11372_v27 = vrot.slane %v19098_v37, 4 }
 0x668   : > { %10580 = vrot.lane.b32.xlu1 %v10517_v41, %s14759_s8 }
 0x669   : > { %13421 = vmatpush3.bf16.msra.mxu1 %v11993_v20 }
 0x66b   : > { %10954 = vrot.lane.b32.xlu0 %v10510_v24, %s14760_s25 }
 0x66c   : > { %10928 = vrot.lane.b32.xlu1 %v19081_v12, %s14760_s25 }
 0x66f   : > { %10958 = vrot.lane.b32.xlu0 %v19019_v40, %s14760_s25 }
 0x670   : > { %11385 = vrot.lane.b32.xlu1 %v19098_v37, %s14761_s5 }
 0x673   : > { %10554 = vrot.lane.b32.xlu0 %v10264_v28, %s14759_s8  ;;  %v14556_v28 = vld [vmem:[%s20678_s3 + $0x4c] ss:$0 sps:$4 sm:$0x11]  }
 0x674   : > { %10932 = vrot.lane.b32.xlu1 %v10912_v22, %s14760_s25  ;;  %v12080_v24 = vand.u32 %v14556_v28, %v16848_v53  ;;  %v11962_v53 = vpack.i.b16 %v11961_v36, %v11961_v36  ;;  %v10484_v28 = vld [vmem:[%s17425_s29 + $0x18] ss:$0 sm:$0xff] }
 0x676   : > { %13431 = vmatpush3.bf16.msra.mxu0 %v12080_v24  ;;  %v11967_v7 = vrot.slane %v11962_v53, %v18635_v55  ;;  %v11374_v53 = vrot.slane %v19098_v37, 6 }
 0x677   : > { %10558 = vrot.lane.b32.xlu0 %v10265_v61, %s14759_s8  ;;  %v10915_v61 = vrot.slane %v19081_v12, 4 }
 0x678   : > { %10936 = vrot.lane.b32.xlu1 %v10913_v18, %s14760_s25  ;;  %13423 = vmatmul.mubr.msk.bf16.vlgmr.msra.gmra.mrb[248].mxu1 %vm5195_vm4, %v11967_v7 }
 0x679   : > { %13433 = vmatmul.mubr.msk.bf16.vlgmr.msra.gmra.mrb[16].mxu0 %vm5195_vm4, %v12054_v39  ;;  %vm10631_vm4 = vcmask 942208   ;;  %v11373_v39 = vrot.slane %v19098_v37, 5 }
 0x67b   : > { %10562 = vrot.lane.b32.xlu0 %v10266_v13, %s14759_s8 }
 0x67c   : > { %10940 = vrot.lane.b32.xlu1 %v10914_v48, %s14760_s25 }
 0x67f   : > { %10566 = vrot.lane.b32.xlu0 %v10267_v25, %s14759_s8 }
 0x680   : > { %10944 = vrot.lane.b32.xlu1 %v10915_v61, %s14760_s25 }
 0x681   : > { %v10190_v13 = vpop.permute.xlu0 %10189 }
 0x682   : > { %v10220_v49 = vsub.f32 %v18706_v59, %v10190_v13  ;;  %v10192_v16 = vpop.permute.xlu1 %10191 }
 0x683   : > { %v10206_v25 = vsel %vm10205_vm15, %v10190_v13, %v10192_v16  ;;  %10570 = vrot.lane.b32.xlu0 %v10268_v21, %s14759_s8  ;;  %v10486_v13 = vld [vmem:[%s17425_s29 + $0x1b8] ss:$0 sm:$0xff] }
 0x684   : > { %13128 = vst.msk [vmem:[%s17425_s29 + $0xc78] sm:$0xff] %vm10228_vm6, %v10220_v49  ;;  %v10221_v55 = vsub.f32 %v18702_v0, %v10206_v25  ;;  %10948 = vrot.lane.b32.xlu1 %v10916_v5, %s14760_s25  ;;  %v11375_v25 = vrot.slane %v19098_v37, 7 }
 0x685   : > { %v10198_v23 = vpop.permute.xlu0 %10197 }
 0x686   : > { %13129 = vst [vmem:[%s17425_s29 + $0xc80] sm:$0xff] %v10221_v55  ;;  %v10224_v59 = vsub.f32 %v18716_v8, %v10198_v23  ;;  %v10200_v33 = vpop.permute.xlu1 %10199 }
 0x687   : > { %v10209_v46 = vsel %vm10205_vm15, %v10198_v23, %v10200_v33  ;;  %10574 = vrot.lane.b32.xlu0 %v10269_v1, %s14759_s8  ;;  %v13123_v1 = vld [vmem:[%s17425_s29 + $0xc90] sm:$0xff]  ;;  %v10487_v23 = vld [vmem:[%s17425_s29 + $0x288] ss:$0 sm:$0xff] }
 0x688   : > { %13132 = vst.msk [vmem:[%s17425_s29 + $0xce0] sm:$0xff] %vm10228_vm6, %v10224_v59  ;;  %v10225_v0 = vsub.f32 %v18713_v6, %v10209_v46  ;;  %10952 = vrot.lane.b32.xlu1 %v10917_v29, %s14760_s25  ;;  %vm11757_vm6 = vcmask 516096  }
 0x689   : > { %v10194_v8 = vpop.permute.xlu0 %10193 }
 0x68a   : > { %13133 = vst [vmem:[%s17425_s29 + $0xce8] sm:$0xff] %v10225_v0  ;;  %v10207_v21 = vsel %vm10205_vm15, %v10192_v16, %v10194_v8  ;;  %v10196_v54 = vpop.permute.xlu1 %10195  ;;  %v10488_v0 = vld [vmem:[%s17425_s29 + $0x358] ss:$0 sm:$0xff] }
 0x68b   : > { %v10222_v56 = vsub.f32 %v18708_v60, %v10207_v21  ;;  %v10208_v44 = vsel %vm10205_vm15, %v10194_v8, %v10196_v54  ;;  %10578 = vrot.lane.b32.xlu0 %v10270_v52, %s14759_s8  ;;  %v10919_v21 = vrot.slane %v19205_v10, 1 }
 0x68c   : > { %v10223_v6 = vsub.f32 %v13123_v1, %v10208_v44  ;;  %10956 = vrot.lane.b32.xlu1 %v10918_v19, %s14760_s25 }
 0x68d   : > { %13130 = vst [vmem:[%s17425_s29 + $0xc88] sm:$0xff] %v10222_v56  ;;  %v10202_v2 = vpop.permute.xlu0 %10201  ;;  %v10489_v56 = vld [vmem:[%s17425_s29 + $0x428] ss:$0 sm:$0xff] }
 0x68e   : > { %13131 = vst.msk [vmem:[%s17425_s29 + $0xc90] sm:$0xff] %vm3472_vm2, %v10223_v6  ;;  %v10210_v60 = vsel %vm10205_vm15, %v10200_v33, %v10202_v2  ;;  %v10204_v47 = vpop.permute.xlu1 %10203  ;;  %v10920_v6 = vrot.slane %v19205_v10, 2 }
 0x68f   : > { %v10226_v15 = vsub.f32 %v18718_v62, %v10210_v60  ;;  %v10211_v52 = vsel %vm10205_vm15, %v10202_v2, %v10204_v47  ;;  %10962 = vrot.lane.b32.xlu0 %v10511_v4, %s14760_s25  ;;  %v11370_v62 = vrot.slane %v19098_v37, 2  ;;  %v11371_v4 = vrot.slane %v19098_v37, 3  ;;  %v10490_v60 = vld [vmem:[%s17425_s29 + $0x4f8] ss:$0 sm:$0xff] }
 0x690   : > { %v10227_v45 = vsub.f32 %v13127_v32, %v10211_v52  ;;  %10960 = vrot.lane.b32.xlu1 %v19205_v10, %s14760_s25  ;;  %v10921_v32 = vrot.slane %v19205_v10, 3 }
 0x691   : > { %13134 = vst [vmem:[%s17425_s29 + $0xcf0] sm:$0xff] %v10226_v15 }
 0x692   : > { %13135 = vst.msk [vmem:[%s17425_s29 + $0xcf8] sm:$0xff] %vm3472_vm2, %v10227_v45  ;;  %vm10582_vm2 = vcmask 359424   ;;  %v10491_v45 = vld [vmem:[%s17425_s29 + $0x5c8] ss:$0 sm:$0xff] }
 0x693   : > { %10966 = vrot.lane.b32.xlu0 %v10512_v11, %s14760_s25 }
 0x694   : > { %11389 = vrot.lane.b32.xlu1 %v11369_v63, %s14761_s5 }
 0x697   : > { %10970 = vrot.lane.b32.xlu0 %v10513_v50, %s14760_s25 }
 0x698   : > { %11393 = vrot.lane.b32.xlu1 %v11370_v62, %s14761_s5 }
 0x69b   : > { %10974 = vrot.lane.b32.xlu0 %v10514_v57, %s14760_s25 }
 0x69c   : > { %11397 = vrot.lane.b32.xlu1 %v11371_v4, %s14761_s5  ;;  %v10922_v4 = vrot.slane %v19205_v10, 4 }
 0x69d   : > { %v10519_v11 = vpop.permute.xlu0 %10518 }
 0x69e   : > { %v10521_v58 = vpop.permute.xlu1 %10520 }
 0x69f   : > { %v10583_v50 = vsel %vm10582_vm2, %v10519_v11, %v10521_v58  ;;  %10978 = vrot.lane.b32.xlu0 %v10515_v26, %s14760_s25  ;;  %v10485_v26 = vld [vmem:[%s17425_s29 + $0xe8] ss:$0 sm:$0xff]  ;;  %v10492_v58 = vld [vmem:[%s17425_s29 + $0x698] ss:$0 sm:$0xff] }
 0x6a0   : > { %v10615_v20 = vsub.f32 %v10484_v28, %v10583_v50  ;;  %11401 = vrot.lane.b32.xlu1 %v11372_v27, %s14761_s5  ;;  %v10923_v50 = vrot.slane %v19205_v10, 5 }
 0x6a1   : > { %v19243_v57 = vpop.permute.xlu0 %10926 }
 0x6a2   : > { %10632 = vst.msk [vmem:[%s17425_s29 + $0x18] sm:$0x1] %vm10631_vm4, %v10615_v20  ;;  %v10525_v24 = vpop.permute.xlu1 %10524 }
 0x6a3   : > { %10982 = vrot.lane.b32.xlu0 %v10516_v51, %s14760_s25 }
 0x6a4   : > { %11405 = vrot.lane.b32.xlu1 %v11373_v39, %s14761_s5  ;;  %v10924_v39 = vrot.slane %v19205_v10, 6 }
 0x6a5   : > { %v10523_v17 = vpop.permute.xlu0 %10522 }
 0x6a6   : > { %v10584_v3 = vsel %vm10582_vm2, %v10523_v17, %v10525_v24  ;;  %v10529_v36 = vpop.permute.xlu1 %10528 }
 0x6a7   : > { %v10616_v7 = vsub.f32 %v10485_v26, %v10584_v3  ;;  %10986 = vrot.lane.b32.xlu0 %v10517_v41, %s14760_s25  ;;  %v19270_v41 = vmul.f32 0.25, %v18935_v42 }
 0x6a8   : > { %11409 = vrot.lane.b32.xlu1 %v11374_v53, %s14761_s5 }
 0x6a9   : > { %10633 = vst.msk [vmem:[%s17425_s29 + $0xe8] sm:$0x1] %vm10631_vm4, %v10616_v7  ;;  %v10527_v51 = vpop.permute.xlu0 %10526  ;;  %v11377_v7 = vrot.slane %v19270_v41, 2 }
 0x6aa   : > { %v10585_v49 = vsel %vm10582_vm2, %v10527_v51, %v10529_v36  ;;  %v10533_v16 = vpop.permute.xlu1 %10532 }
 0x6ab   : > { %v10617_v55 = vsub.f32 %v10486_v13, %v10585_v49  ;;  %11383 = vrot.lane.b32.xlu0 %v19081_v12, %s14761_s5  ;;  %v11376_v12 = vrot.slane %v19270_v41, 1  ;;  %v11378_v13 = vrot.slane %v19270_v41, 3 }
 0x6ac   : > { %11413 = vrot.lane.b32.xlu1 %v11375_v25, %s14761_s5  ;;  %v11379_v25 = vrot.slane %v19270_v41, 4 }
 0x6ad   : > { %10634 = vst.msk [vmem:[%s17425_s29 + $0x1b8] sm:$0x1] %vm10631_vm4, %v10617_v55  ;;  %v10531_v40 = vpop.permute.xlu0 %10530 }
 0x6ae   : > { %v10586_v59 = vsel %vm10582_vm2, %v10531_v40, %v10533_v16  ;;  %v10537_v33 = vpop.permute.xlu1 %10536  ;;  %v10877_v40 = vld [vmem:[%s17425_s29 + $0x38] ss:$0 sm:$0xff] }
 0x6af   : > { %v10618_v46 = vsub.f32 %v10487_v23, %v10586_v59  ;;  %11387 = vrot.lane.b32.xlu0 %v10912_v22, %s14761_s5  ;;  %v11380_v59 = vrot.slane %v19270_v41, 5 }
 0x6b0   : > { %11417 = vrot.lane.b32.xlu1 %v19270_v41, %s14761_s5 }
 0x6b1   : > { %10635 = vst.msk [vmem:[%s17425_s29 + $0x288] sm:$0x1] %vm10631_vm4, %v10618_v46  ;;  %v10535_v37 = vpop.permute.xlu0 %10534 }
 0x6b2   : > { %v10587_v42 = vsel %vm10582_vm2, %v10535_v37, %v10537_v33  ;;  %v10541_v8 = vpop.permute.xlu1 %10540  ;;  %v10876_v33 = vld [vmem:[%s17425_s29 + $0x30] ss:$0 sm:$0xff] }
 0x6b3   : > { %v10619_v54 = vsub.f32 %v10488_v0, %v10587_v42  ;;  %11391 = vrot.lane.b32.xlu0 %v10913_v18, %s14761_s5 }
 0x6b4   : > { %10964 = vrot.lane.b32.xlu1 %v10919_v21, %s14760_s25 }
 0x6b5   : > { %10636 = vst.msk [vmem:[%s17425_s29 + $0x358] sm:$0x1] %vm10631_vm4, %v10619_v54  ;;  %v10539_v22 = vpop.permute.xlu0 %10538  ;;  %v10493_v54 = vld [vmem:[%s17425_s29 + $0x768] ss:$0 sm:$0xff] }
 0x6b6   : > { %v10588_v1 = vsel %vm10582_vm2, %v10539_v22, %v10541_v8  ;;  %v10545_v44 = vpop.permute.xlu1 %10544 }
 0x6b7   : > { %v10620_v2 = vsub.f32 %v10489_v56, %v10588_v1  ;;  %11395 = vrot.lane.b32.xlu0 %v10914_v48, %s14761_s5  ;;  %v10879_v56 = vld [vmem:[%s17425_s29 + $0x108] ss:$0 sm:$0xff] }
 0x6b8   : > { %10968 = vrot.lane.b32.xlu1 %v10920_v6, %s14760_s25 }
 0x6b9   : > { %10637 = vst.msk [vmem:[%s17425_s29 + $0x428] sm:$0x1] %vm10631_vm4, %v10620_v2  ;;  %v10543_v18 = vpop.permute.xlu0 %10542 }
 0x6ba   : > { %v10589_v47 = vsel %vm10582_vm2, %v10543_v18, %v10545_v44  ;;  %v10549_v15 = vpop.permute.xlu1 %10548  ;;  %v11382_v44 = vrot.slane %v19270_v41, 7  ;;  %v10878_v18 = vld [vmem:[%s17425_s29 + $0x100] ss:$0 sm:$0xff] }
 0x6bb   : > { %v10621_v52 = vsub.f32 %v10490_v60, %v10589_v47  ;;  %11399 = vrot.lane.b32.xlu0 %v10915_v61, %s14761_s5 }
 0x6bc   : > { %10972 = vrot.lane.b32.xlu1 %v10921_v32, %s14760_s25 }
 0x6bd   : > { %10638 = vst.msk [vmem:[%s17425_s29 + $0x4f8] sm:$0x1] %vm10631_vm4, %v10621_v52  ;;  %v10547_v48 = vpop.permute.xlu0 %10546 }
 0x6be   : > { %v10590_v63 = vsel %vm10582_vm2, %v10547_v48, %v10549_v15  ;;  %v10553_v62 = vpop.permute.xlu1 %10552  ;;  %v19400_v15 = vmul.f32 0.25, %v19007_v43  ;;  %v10881_v43 = vld [vmem:[%s17425_s29 + $0x1d8] ss:$0 sm:$0xff] }
 0x6bf   : > { %v10622_v11 = vsub.f32 %v10491_v45, %v10590_v63  ;;  %11403 = vrot.lane.b32.xlu0 %v10916_v5, %s14761_s5  ;;  %v10880_v63 = vld [vmem:[%s17425_s29 + $0x1d0] ss:$0 sm:$0xff] }
 0x6c0   : > { %10976 = vrot.lane.b32.xlu1 %v10922_v4, %s14760_s25 }
 0x6c1   : > { %10639 = vst.msk [vmem:[%s17425_s29 + $0x5c8] sm:$0x1] %vm10631_vm4, %v10622_v11  ;;  %v10551_v61 = vpop.permute.xlu0 %10550 }
 0x6c2   : > { %v10591_v27 = vsel %vm10582_vm2, %v10551_v61, %v10553_v62  ;;  %v10557_v28 = vpop.permute.xlu1 %10556 }
 0x6c3   : > { %v10623_v20 = vsub.f32 %v10492_v58, %v10591_v27  ;;  %11407 = vrot.lane.b32.xlu0 %v10917_v29, %s14761_s5  ;;  %v10925_v29 = vrot.slane %v19205_v10, 7  ;;  %v10495_v58 = vld [vmem:[%s17425_s29 + $0x908] ss:$0 sm:$0xff] }
 0x6c4   : > { %10980 = vrot.lane.b32.xlu1 %v10923_v50, %s14760_s25 }
 0x6c5   : > { %10640 = vst.msk [vmem:[%s17425_s29 + $0x698] sm:$0x1] %vm10631_vm4, %v10623_v20  ;;  %v10931_v5 = vpop.permute.xlu0 %10930 }
 0x6c6   : > { %v19326_v24 = vpop.permute.xlu1 %10560 }
 0x6c7   : > { %11411 = vrot.lane.b32.xlu0 %v10918_v19, %s14761_s5 }
 0x6c8   : > { %10984 = vrot.lane.b32.xlu1 %v10924_v39, %s14760_s25 }
 0x6c9   : > { %v19333_v17 = vpop.permute.xlu0 %10934 }
 0x6ca   : > { %v19335_v26 = vpop.permute.xlu1 %10564 }
 0x6cb   : > { %11415 = vrot.lane.b32.xlu0 %v19205_v10, %s14761_s5 }
 0x6cc   : > { %10988 = vrot.lane.b32.xlu1 %v10925_v29, %s14760_s25 }
 0x6cd   : > { %v19341_v3 = vpop.permute.xlu0 %10938 }
 0x6ce   : > { %v19343_v36 = vpop.permute.xlu1 %10568 }
 0x6cf   : > { %11419 = vrot.lane.b32.xlu0 %v10919_v21, %s14761_s5  ;;  %v11381_v21 = vrot.slane %v19270_v41, 6  ;;  %v10494_v41 = vld [vmem:[%s17425_s29 + $0x838] ss:$0 sm:$0xff] }
 0x6d0   : > { %11421 = vrot.lane.b32.xlu1 %v11376_v12, %s14761_s5  ;;  %v10496_v12 = vld [vmem:[%s17425_s29 + $0x9d8] ss:$0 sm:$0xff] }
 0x6d1   : > { %v19348_v19 = vpop.permute.xlu0 %10942 }
 0x6d2   : > { %v19350_v53 = vpop.permute.xlu1 %10572 }
 0x6d3   : > { %11423 = vrot.lane.b32.xlu0 %v10920_v6, %s14761_s5  ;;  %v19394_v6 = vmul.f32 0.25, %v19005_v30 }
 0x6d4   : > { %11425 = vrot.lane.b32.xlu1 %v11377_v7, %s14761_s5  ;;  %v10885_v7 = vld [vmem:[%s17425_s29 + $0x378] ss:$0 sm:$0xff] }
 0x6d5   : > { %v19355_v10 = vpop.permute.xlu0 %10946  ;;  %v10356_v20 = vrot.slane %v19394_v6, 1 }
 0x6d6   : > { %v19357_v51 = vpop.permute.xlu1 %10576 }
 0x6d7   : > { %11427 = vrot.lane.b32.xlu0 %v10921_v32, %s14761_s5 }
 0x6d8   : > { %11429 = vrot.lane.b32.xlu1 %v11378_v13, %s14761_s5 }
 0x6d9   : > { %v19362_v49 = vpop.permute.xlu0 %10950 }
 0x6da   : > { %v19364_v16 = vpop.permute.xlu1 %10580 }
 0x6db   : > { %11431 = vrot.lane.b32.xlu0 %v10922_v4, %s14761_s5 }
 0x6dc   : > { %11433 = vrot.lane.b32.xlu1 %v11379_v25, %s14761_s5  ;;  %v10358_v25 = vrot.slane %v19394_v6, 3 }
 0x6dd   : > { %v19369_v55 = vpop.permute.xlu0 %10954 }
 0x6de   : > { %v10929_v23 = vpop.permute.xlu1 %10928 }
 0x6df   : > { %v10990_v46 = vsel %vm10762_vm7, %v19243_v57, %v10929_v23  ;;  %v11039_v37 = vsub.f32 %v10877_v40, %v10929_v23  ;;  %11435 = vrot.lane.b32.xlu0 %v10923_v50, %s14761_s5  ;;  %v10884_v23 = vld [vmem:[%s17425_s29 + $0x370] ss:$0 sm:$0xff] }
 0x6e0   : > { %v11038_v0 = vsub.f32 %v10876_v33, %v10990_v46  ;;  %11437 = vrot.lane.b32.xlu1 %v11380_v59, %s14761_s5 }
 0x6e1   : > { %11073 = vst.msk [vmem:[%s17425_s29 + $0x38] sm:$0x1] %vm11072_vm8, %v11039_v37  ;;  %v19380_v42 = vpop.permute.xlu0 %10958  ;;  %v10357_v37 = vrot.slane %v19394_v6, 2 }
 0x6e2   : > { %11071 = vst.msk [vmem:[%s17425_s29 + $0x30] sm:$0x1] %vm11070_vm9, %v11038_v0  ;;  %v19384_v8 = vpop.permute.xlu1 %11385 }
 0x6e3   : > { %11439 = vrot.lane.b32.xlu0 %v10924_v39, %s14761_s5 }
 0x6e4   : > { %11441 = vrot.lane.b32.xlu1 %v11381_v21, %s14761_s5  ;;  %v10887_v21 = vld [vmem:[%s17425_s29 + $0x448] ss:$0 sm:$0xff] }
 0x6e5   : > { %v10555_v57 = vpop.permute.xlu0 %10554 }
 0x6e6   : > { %v10592_v22 = vsel %vm10582_vm2, %v10555_v57, %v10557_v28  ;;  %v10933_v1 = vpop.permute.xlu1 %10932  ;;  %v10883_v28 = vld [vmem:[%s17425_s29 + $0x2a8] ss:$0 sm:$0xff] }
 0x6e7   : > { %v10624_v2 = vsub.f32 %v10493_v54, %v10592_v22  ;;  %v10991_v60 = vsel %vm10762_vm7, %v10931_v5, %v10933_v1  ;;  %v11041_v47 = vsub.f32 %v10879_v56, %v10933_v1  ;;  %11443 = vrot.lane.b32.xlu0 %v10925_v29, %s14761_s5  ;;  %v10360_v54 = vrot.slane %v19394_v6, 5  ;;  %v10886_v56 = vld [vmem:[%s17425_s29 + $0x440] ss:$0 sm:$0xff] }
 0x6e8   : > { %v11040_v32 = vsub.f32 %v10878_v18, %v10991_v60  ;;  %11445 = vrot.lane.b32.xlu1 %v11382_v44, %s14761_s5  ;;  %v10498_v18 = vld [vmem:[%s17425_s29 + $0xb78] ss:$0 sm:$0xff] }
 0x6e9   : > { %10641 = vst.msk [vmem:[%s17425_s29 + $0x768] sm:$0x1] %vm10631_vm4, %v10624_v2  ;;  %v10559_v30 = vpop.permute.xlu0 %10558 }
 0x6ea   : > { %11075 = vst.msk [vmem:[%s17425_s29 + $0x108] sm:$0x1] %vm11072_vm8, %v11041_v47  ;;  %v10593_v52 = vsel %vm10582_vm2, %v10559_v30, %v19326_v24  ;;  %v10937_v48 = vpop.permute.xlu1 %10936  ;;  %v10882_v24 = vld [vmem:[%s17425_s29 + $0x2a0] ss:$0 sm:$0xff]  ;;  %v10889_v47 = vld [vmem:[%s17425_s29 + $0x518] ss:$0 sm:$0xff] }
 0x6eb   : > { %11074 = vst.msk [vmem:[%s17425_s29 + $0x100] sm:$0x1] %vm11070_vm9, %v11040_v32  ;;  %v10625_v45 = vsub.f32 %v10494_v41, %v10593_v52  ;;  %v10992_v62 = vsel %vm10762_vm7, %v19333_v17, %v10937_v48  ;;  %v11043_v4 = vsub.f32 %v10881_v43, %v10937_v48  ;;  %10370 = vrot.lane.b32.xlu0 %v19394_v6, %s14759_s8  ;;  %v10362_v30 = vrot.slane %v19394_v6, 7  ;;  %v10888_v52 = vld [vmem:[%s17425_s29 + $0x510] ss:$0 sm:$0xff] }
 0x6ec   : > { %v11042_v11 = vsub.f32 %v10880_v63, %v10992_v62  ;;  %10700 = vrot.lane.b32.xlu1 %v19400_v15, %s14760_s25  ;;  %v10361_v63 = vrot.slane %v19394_v6, 6 }
 0x6ed   : > { %10642 = vst.msk [vmem:[%s17425_s29 + $0x838] sm:$0x1] %vm10631_vm4, %v10625_v45  ;;  %v10563_v61 = vpop.permute.xlu0 %10562 }
 0x6ee   : > { %11077 = vst.msk [vmem:[%s17425_s29 + $0x1d8] sm:$0x1] %vm11072_vm8, %v11043_v4  ;;  %v10594_v27 = vsel %vm10582_vm2, %v10563_v61, %v19335_v26  ;;  %v10941_v50 = vpop.permute.xlu1 %10940  ;;  %v10891_v4 = vld [vmem:[%s17425_s29 + $0x5e8] ss:$0 sm:$0xff]  ;;  %v10684_v61 = vrot.slane %v19400_v15, 1 }
 0x6ef   : > { %11076 = vst.msk [vmem:[%s17425_s29 + $0x1d0] sm:$0x1] %vm11070_vm9, %v11042_v11  ;;  %v10626_v5 = vsub.f32 %v10495_v58, %v10594_v27  ;;  %v10993_v39 = vsel %vm10762_vm7, %v19341_v3, %v10941_v50  ;;  %v11045_v17 = vsub.f32 %v10883_v28, %v10941_v50  ;;  %10698 = vrot.lane.b32.xlu0 %v19394_v6, %s14760_s25  ;;  %v10890_v27 = vld [vmem:[%s17425_s29 + $0x5e0] ss:$0 sm:$0xff] }
 0x6f0   : > { %v11044_v29 = vsub.f32 %v10882_v24, %v10993_v39  ;;  %10372 = vrot.lane.b32.xlu1 %v10356_v20, %s14759_s8 }
 0x6f1   : > { %10643 = vst.msk [vmem:[%s17425_s29 + $0x908] sm:$0x1] %vm10631_vm4, %v10626_v5  ;;  %v10567_v26 = vpop.permute.xlu0 %10566 }
 0x6f2   : > { %11079 = vst.msk [vmem:[%s17425_s29 + $0x2a8] sm:$0x1] %vm11072_vm8, %v11045_v17  ;;  %v10595_v3 = vsel %vm10582_vm2, %v10567_v26, %v19343_v36  ;;  %v10945_v13 = vpop.permute.xlu1 %10944  ;;  %v10685_v17 = vrot.slane %v19400_v15, 2 }
 0x6f3   : > { %11078 = vst.msk [vmem:[%s17425_s29 + $0x2a0] sm:$0x1] %vm11070_vm9, %v11044_v29  ;;  %v10627_v40 = vsub.f32 %v10496_v12, %v10595_v3  ;;  %v10994_v59 = vsel %vm10762_vm7, %v19348_v19, %v10945_v13  ;;  %v11047_v33 = vsub.f32 %v10885_v7, %v10945_v13  ;;  %11154 = vrot.lane.b32.xlu0 %v19400_v15, %s14761_s5  ;;  %v10497_v19 = vld [vmem:[%s17425_s29 + $0xaa8] ss:$0 sm:$0xff]  ;;  %v10892_v29 = vld [vmem:[%s17425_s29 + $0x6b0] ss:$0 sm:$0xff] }
 0x6f4   : > { %v11046_v46 = vsub.f32 %v10884_v23, %v10994_v59  ;;  %10376 = vrot.lane.b32.xlu1 %v10358_v25, %s14759_s8  ;;  %v10686_v13 = vrot.slane %v19400_v15, 3  ;;  %v10687_v23 = vrot.slane %v19400_v15, 4 }
 0x6f5   : > { %10644 = vst.msk [vmem:[%s17425_s29 + $0x9d8] sm:$0x1] %vm10631_vm4, %v10627_v40  ;;  %v10571_v36 = vpop.permute.xlu0 %10570 }
 0x6f6   : > { %11081 = vst.msk [vmem:[%s17425_s29 + $0x378] sm:$0x1] %vm11072_vm8, %v11047_v33  ;;  %v10596_v0 = vsel %vm10582_vm2, %v10571_v36, %v19350_v53  ;;  %v10949_v57 = vpop.permute.xlu1 %10948  ;;  %v10688_v33 = vrot.slane %v19400_v15, 5 }
 0x6f7   : > { %11080 = vst.msk [vmem:[%s17425_s29 + $0x370] sm:$0x1] %vm11070_vm9, %v11046_v46  ;;  %v10628_v22 = vsub.f32 %v10497_v19, %v10596_v0  ;;  %v10995_v1 = vsel %vm10762_vm7, %v19355_v10, %v10949_v57  ;;  %v11049_v44 = vsub.f32 %v10887_v21, %v10949_v57  ;;  %10374 = vrot.lane.b32.xlu0 %v10357_v37, %s14759_s8  ;;  %v10359_v10 = vrot.slane %v19394_v6, 4 }
 0x6f8   : > { %v11048_v2 = vsub.f32 %v10886_v56, %v10995_v1  ;;  %10380 = vrot.lane.b32.xlu1 %v10360_v54, %s14759_s8  ;;  %v10690_v0 = vrot.slane %v19400_v15, 7  ;;  %v19598_v57 = vmul.f32 0.25, %v19015_v34  ;;  %v11334_v1 = vld [vmem:[%s17425_s29 + $0x50] ss:$0 sm:$0xff] }
 0x6f9   : > { %10645 = vst.msk [vmem:[%s17425_s29 + $0xaa8] sm:$0x1] %vm10631_vm4, %v10628_v22  ;;  %v10575_v53 = vpop.permute.xlu0 %10574 }
 0x6fa   : > { %11083 = vst.msk [vmem:[%s17425_s29 + $0x448] sm:$0x1] %vm11072_vm8, %v11049_v44  ;;  %v10597_v60 = vsel %vm10582_vm2, %v10575_v53, %v19357_v51  ;;  %v10953_v32 = vpop.permute.xlu1 %10952 }
 0x6fb   : > { %11082 = vst.msk [vmem:[%s17425_s29 + $0x440] sm:$0x1] %vm11070_vm9, %v11048_v2  ;;  %v10629_v41 = vsub.f32 %v10498_v18, %v10597_v60  ;;  %v10996_v43 = vsel %vm10762_vm7, %v19362_v49, %v10953_v32  ;;  %v11051_v48 = vsub.f32 %v10889_v47, %v10953_v32  ;;  %10378 = vrot.lane.b32.xlu0 %v10359_v10, %s14759_s8  ;;  %v10499_v49 = vld [vmem:[%s17425_s29 + $0xc48] ss:$0 sm:$0xff]  ;;  %v11336_v60 = vld [vmem:[%s17425_s29 + $0x120] ss:$0 sm:$0xff] }
 0x6fc   : > { %v11050_v45 = vsub.f32 %v10888_v52, %v10996_v43  ;;  %10384 = vrot.lane.b32.xlu1 %v10362_v30, %s14759_s8  ;;  %v11337_v52 = vld [vmem:[%s17425_s29 + $0x1e8] ss:$0 sm:$0xff] }
 0x6fd   : > { %10646 = vst.msk [vmem:[%s17425_s29 + $0xb78] sm:$0x1] %vm10631_vm4, %v10629_v41  ;;  %v10579_v51 = vpop.permute.xlu0 %10578 }
 0x6fe   : > { %11085 = vst.msk [vmem:[%s17425_s29 + $0x518] sm:$0x1] %vm11072_vm8, %v11051_v48  ;;  %v10598_v62 = vsel %vm10582_vm2, %v10579_v51, %v19364_v16  ;;  %v10957_v11 = vpop.permute.xlu1 %10956  ;;  %v19520_v16 = vmul.f32 0.25, %v19010_v38  ;;  %v11338_v48 = vld [vmem:[%s17425_s29 + $0x1f0] ss:$0 sm:$0xff] }
 0x6ff   : > { %11084 = vst.msk [vmem:[%s17425_s29 + $0x510] sm:$0x1] %vm11070_vm9, %v11050_v45  ;;  %v10630_v58 = vsub.f32 %v10499_v49, %v10598_v62  ;;  %v10997_v28 = vsel %vm10762_vm7, %v19369_v55, %v10957_v11  ;;  %v11053_v50 = vsub.f32 %v10891_v4, %v10957_v11  ;;  %10382 = vrot.lane.b32.xlu0 %v10361_v63, %s14759_s8  ;;  %v10893_v55 = vld [vmem:[%s17425_s29 + $0x6b8] ss:$0 sm:$0xff]  ;;  %v10894_v11 = vld [vmem:[%s17425_s29 + $0x780] ss:$0 sm:$0xff] }
 0x700   : > { %v11052_v5 = vsub.f32 %v10890_v27, %v10997_v28  ;;  %10704 = vrot.lane.b32.xlu1 %v10684_v61, %s14760_s25  ;;  %v10363_v53 = vrot.slane %v19520_v16, 1  ;;  %v10367_v62 = vrot.slane %v19520_v16, 5 }
 0x701   : > { %10647 = vst.msk [vmem:[%s17425_s29 + $0xc48] sm:$0x1] %vm10631_vm4, %v10630_v58  ;;  %v19526_v24 = vpop.permute.xlu0 %10962 }
 0x702   : > { %11087 = vst.msk [vmem:[%s17425_s29 + $0x5e8] sm:$0x1] %vm11072_vm8, %v11053_v50  ;;  %v10961_v39 = vpop.permute.xlu1 %10960  ;;  %v11339_v50 = vld [vmem:[%s17425_s29 + $0x2b8] ss:$0 sm:$0xff] }
 0x703   : > { %11086 = vst.msk [vmem:[%s17425_s29 + $0x5e0] sm:$0x1] %vm11070_vm9, %v11052_v5  ;;  %v10998_v26 = vsel %vm10762_vm7, %v19380_v42, %v10961_v39  ;;  %v11055_v12 = vsub.f32 %v10893_v55, %v10961_v39  ;;  %10386 = vrot.lane.b32.xlu0 %v19520_v16, %s14759_s8  ;;  %v10897_v39 = vld [vmem:[%s17425_s29 + $0x858] ss:$0 sm:$0xff] }
 0x704   : > { %v11054_v38 = vsub.f32 %v10892_v29, %v10998_v26  ;;  %10708 = vrot.lane.b32.xlu1 %v10685_v17, %s14760_s25  ;;  %v10369_v26 = vrot.slane %v19520_v16, 7 }
 0x705   : > { %11089 = vst.msk [vmem:[%s17425_s29 + $0x6b8] sm:$0x1] %vm11072_vm8, %v11055_v12  ;;  %v19542_v3 = vpop.permute.xlu0 %10966 }
 0x706   : > { %11088 = vst.msk [vmem:[%s17425_s29 + $0x6b0] sm:$0x1] %vm11070_vm9, %v11054_v38  ;;  %v11390_v7 = vpop.permute.xlu1 %11389  ;;  %v10896_v38 = vld [vmem:[%s17425_s29 + $0x850] ss:$0 sm:$0xff] }
 0x707   : > { %10702 = vrot.lane.b32.xlu0 %v10356_v20, %s14760_s25 }
 0x708   : > { %10712 = vrot.lane.b32.xlu1 %v10686_v13, %s14760_s25 }
 0x709   : > { %v19553_v42 = vpop.permute.xlu0 %10970 }
 0x70a   : > { %v11394_v40 = vpop.permute.xlu1 %11393 }
 0x70b   : > { %10706 = vrot.lane.b32.xlu0 %v10357_v37, %s14760_s25  ;;  %v10689_v37 = vrot.slane %v19400_v15, 6 }
 0x70c   : > { %10716 = vrot.lane.b32.xlu1 %v10687_v23, %s14760_s25 }
 0x70d   : > { %v19562_v59 = vpop.permute.xlu0 %10974 }
 0x70e   : > { %v19564_v20 = vpop.permute.xlu1 %11397 }
 0x70f   : > { %10710 = vrot.lane.b32.xlu0 %v10358_v25, %s14760_s25 }
 0x710   : > { %10720 = vrot.lane.b32.xlu1 %v10688_v33, %s14760_s25 }
 0x711   : > { %v19573_v46 = vpop.permute.xlu0 %10978 }
 0x712   : > { %v19575_v36 = vpop.permute.xlu1 %11401 }
 0x713   : > { %10714 = vrot.lane.b32.xlu0 %v10359_v10, %s14760_s25 }
 0x714   : > { %10724 = vrot.lane.b32.xlu1 %v10689_v37, %s14760_s25 }
 0x715   : > { %v19584_v25 = vpop.permute.xlu0 %10982 }
 0x716   : > { %v19586_v19 = vpop.permute.xlu1 %11405 }
 0x717   : > { %10718 = vrot.lane.b32.xlu0 %v10360_v54, %s14760_s25  ;;  %v11333_v54 = vld [vmem:[%s17425_s29 + $0x48] ss:$0 sm:$0xff] }
 0x718   : > { %10728 = vrot.lane.b32.xlu1 %v10690_v0, %s14760_s25 }
 0x719   : > { %v19595_v21 = vpop.permute.xlu0 %10986 }
 0x71a   : > { %v19600_v22 = vpop.permute.xlu1 %11409 }
 0x71b   : > { %10722 = vrot.lane.b32.xlu0 %v10361_v63, %s14760_s25  ;;  %v10895_v63 = vld [vmem:[%s17425_s29 + $0x788] ss:$0 sm:$0xff] }
 0x71c   : > { %10732 = vrot.lane.b32.xlu1 %v19598_v57, %s14760_s25 }
 0x71d   : > { %v11384_v56 = vpop.permute.xlu0 %11383 }
 0x71e   : > { %v11447_v34 = vsel %vm11218_vm10, %v11384_v56, %v19384_v8  ;;  %v11495_v44 = vsub.f32 %v11333_v54, %v11384_v56  ;;  %v19609_v2 = vpop.permute.xlu1 %11413  ;;  %v11335_v8 = vld [vmem:[%s17425_s29 + $0x118] ss:$0 sm:$0xff]  ;;  %v11341_v54 = vld [vmem:[%s17425_s29 + $0x388] ss:$0 sm:$0xff] }
 0x71f   : > { %v11496_v10 = vsub.f32 %v11334_v1, %v11447_v34  ;;  %10726 = vrot.lane.b32.xlu0 %v10362_v30, %s14760_s25  ;;  %v10365_v30 = vrot.slane %v19520_v16, 3  ;;  %v10899_v34 = vld [vmem:[%s17425_s29 + $0x928] ss:$0 sm:$0xff] }
 0x720   : > { %11528 = vst.msk [vmem:[%s17425_s29 + $0x48] sm:$0x1] %vm11527_vm11, %v11495_v44  ;;  %10388 = vrot.lane.b32.xlu1 %v10363_v53, %s14759_s8 }
 0x721   : > { %11530 = vst.msk [vmem:[%s17425_s29 + $0x50] sm:$0x1] %vm11529_vm12, %v11496_v10  ;;  %v11388_v18 = vpop.permute.xlu0 %11387  ;;  %v10691_v10 = vrot.slane %v19598_v57, 1 }
 0x722   : > { %v11448_v47 = vsel %vm11218_vm10, %v11388_v18, %v11390_v7  ;;  %v11497_v32 = vsub.f32 %v11335_v8, %v11388_v18  ;;  %v19625_v6 = vpop.permute.xlu1 %11417  ;;  %v10898_v18 = vld [vmem:[%s17425_s29 + $0x920] ss:$0 sm:$0xff] }
 0x723   : > { %v11498_v41 = vsub.f32 %v11336_v60, %v11448_v47  ;;  %10730 = vrot.lane.b32.xlu0 %v19520_v16, %s14760_s25 }
 0x724   : > { %11531 = vst.msk [vmem:[%s17425_s29 + $0x118] sm:$0x1] %vm11527_vm11, %v11497_v32  ;;  %10392 = vrot.lane.b32.xlu1 %v10365_v30, %s14759_s8  ;;  %v11343_v32 = vld [vmem:[%s17425_s29 + $0x458] ss:$0 sm:$0xff] }
 0x725   : > { %11532 = vst.msk [vmem:[%s17425_s29 + $0x120] sm:$0x1] %vm11529_vm12, %v11498_v41  ;;  %v11392_v43 = vpop.permute.xlu0 %11391 }
 0x726   : > { %v11449_v45 = vsel %vm11218_vm10, %v11392_v43, %v11394_v40  ;;  %v11499_v51 = vsub.f32 %v11337_v52, %v11392_v43  ;;  %v10965_v49 = vpop.permute.xlu1 %10964  ;;  %v10901_v43 = vld [vmem:[%s17425_s29 + $0x9f8] ss:$0 sm:$0xff] }
 0x727   : > { %v11500_v4 = vsub.f32 %v11338_v48, %v11449_v45  ;;  %v10999_v58 = vsel %vm10762_vm7, %v19526_v24, %v10965_v49  ;;  %v11057_v27 = vsub.f32 %v10895_v63, %v10965_v49  ;;  %11158 = vrot.lane.b32.xlu0 %v10684_v61, %s14761_s5  ;;  %v11340_v61 = vld [vmem:[%s17425_s29 + $0x2c0] ss:$0 sm:$0xff]  ;;  %v10692_v45 = vrot.slane %v19598_v57, 2  ;;  %v10900_v63 = vld [vmem:[%s17425_s29 + $0x9f0] ss:$0 sm:$0xff] }
 0x728   : > { %11533 = vst.msk [vmem:[%s17425_s29 + $0x1e8] sm:$0x1] %vm11527_vm11, %v11499_v51  ;;  %v11056_v28 = vsub.f32 %v10894_v11, %v10999_v58  ;;  %10396 = vrot.lane.b32.xlu1 %v10367_v62, %s14759_s8  ;;  %v11345_v11 = vld [vmem:[%s17425_s29 + $0x528] ss:$0 sm:$0xff] }
 0x729   : > { %11534 = vst.msk [vmem:[%s17425_s29 + $0x1f0] sm:$0x1] %vm11529_vm12, %v11500_v4  ;;  %v11396_v5 = vpop.permute.xlu0 %11395 }
 0x72a   : > { %11091 = vst.msk [vmem:[%s17425_s29 + $0x788] sm:$0x1] %vm11072_vm8, %v11057_v27  ;;  %v11450_v24 = vsel %vm11218_vm10, %v11396_v5, %v19564_v20  ;;  %v11501_v55 = vsub.f32 %v11339_v50, %v11396_v5  ;;  %v10969_v29 = vpop.permute.xlu1 %10968  ;;  %v10693_v5 = vrot.slane %v19598_v57, 3 }
 0x72b   : > { %11090 = vst.msk [vmem:[%s17425_s29 + $0x780] sm:$0x1] %vm11070_vm9, %v11056_v28  ;;  %v11502_v12 = vsub.f32 %v11340_v61, %v11450_v24  ;;  %v11000_v7 = vsel %vm10762_vm7, %v19542_v3, %v10969_v29  ;;  %v11059_v40 = vsub.f32 %v10897_v39, %v10969_v29  ;;  %11162 = vrot.lane.b32.xlu0 %v10685_v17, %s14761_s5  ;;  %v11342_v17 = vld [vmem:[%s17425_s29 + $0x390] ss:$0 sm:$0xff]  ;;  %v10903_v28 = vld [vmem:[%s17425_s29 + $0xac8] ss:$0 sm:$0xff] }
 0x72c   : > { %11535 = vst.msk [vmem:[%s17425_s29 + $0x2b8] sm:$0x1] %vm11527_vm11, %v11501_v55  ;;  %v11058_v20 = vsub.f32 %v10896_v38, %v11000_v7  ;;  %10400 = vrot.lane.b32.xlu1 %v10369_v26, %s14759_s8  ;;  %v10902_v24 = vld [vmem:[%s17425_s29 + $0xac0] ss:$0 sm:$0xff]  ;;  %v11347_v29 = vld [vmem:[%s17425_s29 + $0x5f8] ss:$0 sm:$0xff] }
 0x72d   : > { %11536 = vst.msk [vmem:[%s17425_s29 + $0x2c0] sm:$0x1] %vm11529_vm12, %v11502_v12  ;;  %v11400_v3 = vpop.permute.xlu0 %11399  ;;  %v10905_v7 = vld [vmem:[%s17425_s29 + $0xb98] ss:$0 sm:$0xff] }
 0x72e   : > { %11093 = vst.msk [vmem:[%s17425_s29 + $0x858] sm:$0x1] %vm11072_vm8, %v11059_v40  ;;  %v11451_v56 = vsel %vm11218_vm10, %v11400_v3, %v19575_v36  ;;  %v11503_v1 = vsub.f32 %v11341_v54, %v11400_v3  ;;  %v10973_v44 = vpop.permute.xlu1 %10972  ;;  %v10904_v3 = vld [vmem:[%s17425_s29 + $0xb90] ss:$0 sm:$0xff] }
 0x72f   : > { %11092 = vst.msk [vmem:[%s17425_s29 + $0x850] sm:$0x1] %vm11070_vm9, %v11058_v20  ;;  %v11504_v8 = vsub.f32 %v11342_v17, %v11451_v56  ;;  %v11001_v60 = vsel %vm10762_vm7, %v19553_v42, %v10973_v44  ;;  %v11061_v47 = vsub.f32 %v10899_v34, %v10973_v44  ;;  %11166 = vrot.lane.b32.xlu0 %v10686_v13, %s14761_s5  ;;  %v11344_v13 = vld [vmem:[%s17425_s29 + $0x460] ss:$0 sm:$0xff]  ;;  %v10694_v20 = vrot.slane %v19598_v57, 4 }
 0x730   : > { %11537 = vst.msk [vmem:[%s17425_s29 + $0x388] sm:$0x1] %vm11527_vm11, %v11503_v1  ;;  %v11060_v36 = vsub.f32 %v10898_v18, %v11001_v60  ;;  %10736 = vrot.lane.b32.xlu1 %v10691_v10, %s14760_s25  ;;  %v11349_v1 = vld [vmem:[%s17425_s29 + $0x6c8] ss:$0 sm:$0xff]  ;;  %v10695_v60 = vrot.slane %v19598_v57, 5 }
 0x731   : > { %11538 = vst.msk [vmem:[%s17425_s29 + $0x390] sm:$0x1] %vm11529_vm12, %v11504_v8  ;;  %v11404_v42 = vpop.permute.xlu0 %11403  ;;  %v10907_v8 = vld [vmem:[%s17425_s29 + $0xc68] ss:$0 sm:$0xff] }
 0x732   : > { %11095 = vst.msk [vmem:[%s17425_s29 + $0x928] sm:$0x1] %vm11072_vm8, %v11061_v47  ;;  %v11452_v41 = vsel %vm11218_vm10, %v11404_v42, %v19586_v19  ;;  %v11505_v52 = vsub.f32 %v11343_v32, %v11404_v42  ;;  %v10977_v48 = vpop.permute.xlu1 %10976 }
 0x733   : > { %11094 = vst.msk [vmem:[%s17425_s29 + $0x920] sm:$0x1] %vm11070_vm9, %v11060_v36  ;;  %v11506_v51 = vsub.f32 %v11344_v13, %v11452_v41  ;;  %v11002_v49 = vsel %vm10762_vm7, %v19562_v59, %v10977_v48  ;;  %v11063_v4 = vsub.f32 %v10901_v43, %v10977_v48  ;;  %11170 = vrot.lane.b32.xlu0 %v10687_v23, %s14761_s5  ;;  %v11346_v23 = vld [vmem:[%s17425_s29 + $0x530] ss:$0 sm:$0xff]  ;;  %v10906_v36 = vld [vmem:[%s17425_s29 + $0xc60] ss:$0 sm:$0xff] }
 0x734   : > { %11539 = vst.msk [vmem:[%s17425_s29 + $0x458] sm:$0x1] %vm11527_vm11, %v11505_v52  ;;  %v11062_v19 = vsub.f32 %v10900_v63, %v11002_v49  ;;  %10740 = vrot.lane.b32.xlu1 %v10692_v45, %s14760_s25  ;;  %v11351_v13 = vld [vmem:[%s17425_s29 + $0x798] ss:$0 sm:$0xff]  ;;  %v11352_v52 = vld [vmem:[%s17425_s29 + $0x7a0] ss:$0 sm:$0xff] }
 0x735   : > { %11540 = vst.msk [vmem:[%s17425_s29 + $0x460] sm:$0x1] %vm11529_vm12, %v11506_v51  ;;  %v11408_v59 = vpop.permute.xlu0 %11407  ;;  %v19808_v51 = vpop.f32.mrb[12].mxu0  ;;  %v11353_v63 = vld [vmem:[%s17425_s29 + $0x868] ss:$0 sm:$0xff] }
 0x736   : > { %11097 = vst.msk [vmem:[%s17425_s29 + $0x9f8] sm:$0x1] %vm11072_vm8, %v11063_v4  ;;  %v11453_v58 = vsel %vm11218_vm10, %v11408_v59, %v19600_v22  ;;  %v11507_v27 = vsub.f32 %v11345_v11, %v11408_v59  ;;  %v10981_v50 = vpop.permute.xlu1 %10980  ;;  %v10364_v4 = vrot.slane %v19520_v16, 2 }
 0x737   : > { %11096 = vst.msk [vmem:[%s17425_s29 + $0x9f0] sm:$0x1] %vm11070_vm9, %v11062_v19  ;;  %v11508_v61 = vsub.f32 %v11346_v23, %v11453_v58  ;;  %v11003_v55 = vsel %vm10762_vm7, %v19573_v46, %v10981_v50  ;;  %v11065_v39 = vsub.f32 %v10903_v28, %v10981_v50  ;;  %11174 = vrot.lane.b32.xlu0 %v10688_v33, %s14761_s5  ;;  %v11348_v33 = vld [vmem:[%s17425_s29 + $0x600] ss:$0 sm:$0xff]  ;;  %v13414_v19 = vpop.f32.mrb[13].mxu0  ;;  %v10697_v23 = vrot.slane %v19598_v57, 7 }
 0x738   : > { %11541 = vst.msk [vmem:[%s17425_s29 + $0x528] sm:$0x1] %vm11527_vm11, %v11507_v27  ;;  %v11064_v22 = vsub.f32 %v10902_v24, %v11003_v55  ;;  %10744 = vrot.lane.b32.xlu1 %v10693_v5, %s14760_s25  ;;  %v11944_v58 = vpop.f32.mrb[14].mxu0  ;;  %v11354_v27 = vld [vmem:[%s17425_s29 + $0x870] ss:$0 sm:$0xff] }
 0x739   : > { %11542 = vst.msk [vmem:[%s17425_s29 + $0x530] sm:$0x1] %vm11529_vm12, %v11508_v61  ;;  %v11412_v46 = vpop.permute.xlu0 %11411  ;;  %v13415_v50 = vpop.f32.mrb[15].mxu0  ;;  %v11355_v24 = vld [vmem:[%s17425_s29 + $0x938] ss:$0 sm:$0xff] }
 0x73a   : > { %11099 = vst.msk [vmem:[%s17425_s29 + $0xac8] sm:$0x1] %vm11072_vm8, %v11065_v39  ;;  %v11454_v12 = vsel %vm11218_vm10, %v11412_v46, %v19609_v2  ;;  %v11509_v38 = vsub.f32 %v11347_v29, %v11412_v46  ;;  %v10985_v40 = vpop.permute.xlu1 %10984  ;;  %v10366_v39 = vrot.slane %v19520_v16, 4  ;;  %v11364_v50 = vld [vmem:[%s17425_s29 + $0xc80] ss:$0 sm:$0xff] }
 0x73b   : > { %11098 = vst.msk [vmem:[%s17425_s29 + $0xac0] sm:$0x1] %vm11070_vm9, %v11064_v22  ;;  %v11510_v54 = vsub.f32 %v11348_v33, %v11454_v12  ;;  %v11004_v17 = vsel %vm10762_vm7, %v19584_v25, %v10985_v40  ;;  %v11067_v56 = vsub.f32 %v10905_v7, %v10985_v40  ;;  %11178 = vrot.lane.b32.xlu0 %v10689_v37, %s14761_s5  ;;  %v11350_v37 = vld [vmem:[%s17425_s29 + $0x6d0] ss:$0 sm:$0xff]  ;;  %v19828_v22 = vmul.f32 0.25, %v19071_v14 }
 0x73c   : > { %11543 = vst.msk [vmem:[%s17425_s29 + $0x5f8] sm:$0x1] %vm11527_vm11, %v11509_v38  ;;  %v11066_v2 = vsub.f32 %v10904_v3, %v11004_v17  ;;  %10748 = vrot.lane.b32.xlu1 %v10694_v20, %s14760_s25  ;;  %v11356_v33 = vld [vmem:[%s17425_s29 + $0x940] ss:$0 sm:$0xff]  ;;  %v11357_v14 = vld [vmem:[%s17425_s29 + $0xa08] ss:$0 sm:$0xff] }
 0x73d   : > { %11544 = vst.msk [vmem:[%s17425_s29 + $0x600] sm:$0x1] %vm11529_vm12, %v11510_v54  ;;  %v11416_v25 = vpop.permute.xlu0 %11415  ;;  %v10368_v40 = vrot.slane %v19520_v16, 6  ;;  %v19844_v54 = vmul.f32 0.25, %v19083_v9 }
 0x73e   : > { %11101 = vst.msk [vmem:[%s17425_s29 + $0xb98] sm:$0x1] %vm11072_vm8, %v11067_v56  ;;  %v11455_v34 = vsel %vm11218_vm10, %v11416_v25, %v19625_v6  ;;  %v11511_v44 = vsub.f32 %v11349_v1, %v11416_v25  ;;  %v10989_v18 = vpop.permute.xlu1 %10988  ;;  %v11358_v56 = vld [vmem:[%s17425_s29 + $0xa10] ss:$0 sm:$0xff]  ;;  %v11359_v25 = vld [vmem:[%s17425_s29 + $0xad8] ss:$0 sm:$0xff] }
 0x73f   : > { %11100 = vst.msk [vmem:[%s17425_s29 + $0xb90] sm:$0x1] %vm11070_vm9, %v11066_v2  ;;  %v11512_v47 = vsub.f32 %v11350_v37, %v11455_v34  ;;  %v11005_v32 = vsel %vm10762_vm7, %v19595_v21, %v10989_v18  ;;  %v11069_v42 = vsub.f32 %v10907_v8, %v10989_v18  ;;  %11182 = vrot.lane.b32.xlu0 %v10690_v0, %s14761_s5  ;;  %v10696_v0 = vrot.slane %v19598_v57, 6 }
 0x740   : > { %11545 = vst.msk [vmem:[%s17425_s29 + $0x6c8] sm:$0x1] %vm11527_vm11, %v11511_v44  ;;  %v11068_v6 = vsub.f32 %v10906_v36, %v11005_v32  ;;  %10752 = vrot.lane.b32.xlu1 %v10695_v60, %s14760_s25  ;;  %v11140_v18 = vrot.slane %v19828_v22, 1  ;;  %v11360_v36 = vld [vmem:[%s17425_s29 + $0xae0] ss:$0 sm:$0xff] }
 0x741   : > { %11546 = vst.msk [vmem:[%s17425_s29 + $0x6d0] sm:$0x1] %vm11529_vm12, %v11512_v47  ;;  %v11420_v21 = vpop.permute.xlu0 %11419 }
 0x742   : > { %11103 = vst.msk [vmem:[%s17425_s29 + $0xc68] sm:$0x1] %vm11072_vm8, %v11069_v42  ;;  %v11513_v15 = vsub.f32 %v11351_v13, %v11420_v21  ;;  %v11422_v41 = vpop.permute.xlu1 %11421 }
 0x743   : > { %11102 = vst.msk [vmem:[%s17425_s29 + $0xc60] sm:$0x1] %vm11070_vm9, %v11068_v6  ;;  %v11456_v43 = vsel %vm11218_vm10, %v11420_v21, %v11422_v41  ;;  %11186 = vrot.lane.b32.xlu0 %v19598_v57, %s14761_s5  ;;  %v11361_v21 = vld [vmem:[%s17425_s29 + $0xba8] ss:$0 sm:$0xff] }
 0x744   : > { %11547 = vst.msk [vmem:[%s17425_s29 + $0x798] sm:$0x1] %vm11527_vm11, %v11513_v15  ;;  %v11514_v48 = vsub.f32 %v11352_v52, %v11456_v43  ;;  %10756 = vrot.lane.b32.xlu1 %v10696_v0, %s14760_s25  ;;  %v11141_v43 = vrot.slane %v19828_v22, 2 }
 0x745   : > { %v11424_v49 = vpop.permute.xlu0 %11423 }
 0x746   : > { %11548 = vst.msk [vmem:[%s17425_s29 + $0x7a0] sm:$0x1] %vm11529_vm12, %v11514_v48  ;;  %v11515_v11 = vsub.f32 %v11353_v63, %v11424_v49  ;;  %v11426_v59 = vpop.permute.xlu1 %11425  ;;  %v11362_v63 = vld [vmem:[%s17425_s29 + $0xbb0] ss:$0 sm:$0xff] }
 0x747   : > { %v11457_v28 = vsel %vm11218_vm10, %v11424_v49, %v11426_v59  ;;  %10390 = vrot.lane.b32.xlu0 %v10364_v4, %s14759_s8  ;;  %v11363_v59 = vld [vmem:[%s17425_s29 + $0xc78] ss:$0 sm:$0xff] }
 0x748   : > { %11549 = vst.msk [vmem:[%s17425_s29 + $0x868] sm:$0x1] %vm11527_vm11, %v11515_v11  ;;  %v11516_v61 = vsub.f32 %v11354_v27, %v11457_v28  ;;  %10760 = vrot.lane.b32.xlu1 %v10697_v23, %s14760_s25 }
 0x749   : > { %v11428_v55 = vpop.permute.xlu0 %11427 }
 0x74a   : > { %11550 = vst.msk [vmem:[%s17425_s29 + $0x870] sm:$0x1] %vm11529_vm12, %v11516_v61  ;;  %v11517_v29 = vsub.f32 %v11355_v24, %v11428_v55  ;;  %v11430_v46 = vpop.permute.xlu1 %11429 }
 0x74b   : > { %v11458_v12 = vsel %vm11218_vm10, %v11428_v55, %v11430_v46  ;;  %10394 = vrot.lane.b32.xlu0 %v10366_v39, %s14759_s8  ;;  %v19873_v13 = vpop.f32.mrb[248].mxu1  ;;  %v10320_v55 = vld [vmem:[%s17425_s29 + $0x7f] ss:$0 sm:$0xff] }
 0x74c   : > { %11551 = vst.msk [vmem:[%s17425_s29 + $0x938] sm:$0x1] %vm11527_vm11, %v11517_v29  ;;  %v11518_v38 = vsub.f32 %v11356_v33, %v11458_v12  ;;  %11156 = vrot.lane.b32.xlu1 %v19828_v22, %s14761_s5  ;;  %v19857_v9 = vpop.f32.mrb[16].mxu0  ;;  %v13424_v41 = vpop.f32.mrb[249].mxu1  ;;  %v10321_v29 = vld [vmem:[%s17425_s29 + $0x87] ss:$0 sm:$0xff] }
 0x74d   : > { %v11432_v7 = vpop.permute.xlu0 %11431  ;;  %v13434_v34 = vpop.f32.mrb[17].mxu0  ;;  %v10649_v12 = vld [vmem:[%s17425_s29 + $0x9f] ss:$0 sm:$0xff] }
 0x74e   : > { %11552 = vst.msk [vmem:[%s17425_s29 + $0x940] sm:$0x1] %vm11529_vm12, %v11518_v38  ;;  %v11519_v3 = vsub.f32 %v11357_v14, %v11432_v7  ;;  %v11434_v17 = vpop.permute.xlu1 %11433  ;;  %v12119_v47 = vpop.f32.mrb[18].mxu0  ;;  %v11143_v14 = vrot.slane %v19828_v22, 4  ;;  %v10324_v41 = vld [vmem:[%s17425_s29 + $0x21f] ss:$0 sm:$0xff] }
 0x74f   : > { %v11459_v2 = vsel %vm11218_vm10, %v11432_v7, %v11434_v17  ;;  %10398 = vrot.lane.b32.xlu0 %v10368_v40, %s14759_s8  ;;  %v13435_v42 = vpop.f32.mrb[19].mxu0  ;;  %v12032_v48 = vpop.f32.mrb[250].mxu1  ;;  %v10322_v17 = vld [vmem:[%s17425_s29 + $0x14f] ss:$0 sm:$0xff] }
 0x750   : > { %11553 = vst.msk [vmem:[%s17425_s29 + $0xa08] sm:$0x1] %vm11527_vm11, %v11519_v3  ;;  %v11520_v1 = vsub.f32 %v11358_v56, %v11459_v2  ;;  %11613 = vrot.lane.b32.xlu1 %v19844_v54, %s14758_s26  ;;  %v13425_v19 = vpop.f32.mrb[251].mxu1  ;;  %v10648_v56 = vld [vmem:[%s17425_s29 + $0x97] ss:$0 sm:$0xff] }
 0x751   : > { %v11436_v37 = vpop.permute.xlu0 %11435  ;;  %v10323_v2 = vld [vmem:[%s17425_s29 + $0x157] ss:$0 sm:$0xff] }
 0x752   : > { %11554 = vst.msk [vmem:[%s17425_s29 + $0xa10] sm:$0x1] %vm11529_vm12, %v11520_v1  ;;  %v11521_v44 = vsub.f32 %v11359_v25, %v11436_v37  ;;  %v11438_v8 = vpop.permute.xlu1 %11437  ;;  %v11144_v25 = vrot.slane %v19828_v22, 5 }
 0x753   : > { %v11460_v32 = vsel %vm11218_vm10, %v11436_v37, %v11438_v8  ;;  %10734 = vrot.lane.b32.xlu0 %v10363_v53, %s14760_s25  ;;  %v11104_v8 = vld [vmem:[%s17425_s29 + $0xaf] ss:$0 sm:$0xff] }
 0x754   : > { %11555 = vst.msk [vmem:[%s17425_s29 + $0xad8] sm:$0x1] %vm11527_vm11, %v11521_v44  ;;  %v11522_v6 = vsub.f32 %v11360_v36, %v11460_v32  ;;  %11160 = vrot.lane.b32.xlu1 %v11140_v18, %s14761_s5  ;;  %v10326_v36 = vld [vmem:[%s17425_s29 + $0x2ef] ss:$0 sm:$0xff]  ;;  %v10327_v32 = vld [vmem:[%s17425_s29 + $0x2f7] ss:$0 sm:$0xff] }
 0x755   : > { %v11440_v15 = vpop.permute.xlu0 %11439 }
 0x756   : > { %11556 = vst.msk [vmem:[%s17425_s29 + $0xae0] sm:$0x1] %vm11529_vm12, %v11522_v6  ;;  %v11523_v52 = vsub.f32 %v11361_v21, %v11440_v15  ;;  %v11442_v53 = vpop.permute.xlu1 %11441  ;;  %v11145_v6 = vrot.slane %v19828_v22, 6 }
 0x757   : > { %v11461_v49 = vsel %vm11218_vm10, %v11440_v15, %v11442_v53  ;;  %10738 = vrot.lane.b32.xlu0 %v10364_v4, %s14760_s25  ;;  %v11142_v4 = vrot.slane %v19828_v22, 3 }
 0x758   : > { %11557 = vst.msk [vmem:[%s17425_s29 + $0xba8] sm:$0x1] %vm11527_vm11, %v11523_v52  ;;  %v11524_v11 = vsub.f32 %v11362_v63, %v11461_v49  ;;  %11164 = vrot.lane.b32.xlu1 %v11141_v43, %s14761_s5  ;;  %v10325_v52 = vld [vmem:[%s17425_s29 + $0x227] ss:$0 sm:$0xff]  ;;  %v10330_v63 = vld [vmem:[%s17425_s29 + $0x48f] ss:$0 sm:$0xff] }
 0x759   : > { %v11444_v58 = vpop.permute.xlu0 %11443  ;;  %v10331_v49 = vld [vmem:[%s17425_s29 + $0x497] ss:$0 sm:$0xff] }
 0x75a   : > { %11558 = vst.msk [vmem:[%s17425_s29 + $0xbb0] sm:$0x1] %vm11529_vm12, %v11524_v11  ;;  %v11525_v27 = vsub.f32 %v11363_v59, %v11444_v58  ;;  %v11446_v28 = vpop.permute.xlu1 %11445  ;;  %v11146_v11 = vrot.slane %v19828_v22, 7 }
 0x75b   : > { %v11462_v61 = vsel %vm11218_vm10, %v11444_v58, %v11446_v28  ;;  %10742 = vrot.lane.b32.xlu0 %v10365_v30, %s14760_s25  ;;  %v10329_v28 = vld [vmem:[%s17425_s29 + $0x3c7] ss:$0 sm:$0xff] }
 0x75c   : > { %11559 = vst.msk [vmem:[%s17425_s29 + $0xc78] sm:$0x1] %vm11527_vm11, %v11525_v27  ;;  %v11526_v24 = vsub.f32 %v11364_v50, %v11462_v61  ;;  %11168 = vrot.lane.b32.xlu1 %v11142_v4, %s14761_s5  ;;  %v10328_v27 = vld [vmem:[%s17425_s29 + $0x3bf] ss:$0 sm:$0xff] }
 0x75d   : > { %v10371_v46 = vpop.permute.xlu0 %10370 }
 0x75e   : > { %11560 = vst.msk [vmem:[%s17425_s29 + $0xc80] sm:$0x1] %vm11529_vm12, %v11526_v24  ;;  %v10418_v30 = vsub.f32 %v10320_v55, %v10371_v46  ;;  %v10419_v33 = vsub.f32 %v10321_v29, %v10371_v46  ;;  %v10701_v38 = vpop.permute.xlu1 %10700  ;;  %v10334_v24 = vld [vmem:[%s17425_s29 + $0x62f] ss:$0 sm:$0xff]  ;;  %v10335_v55 = vld [vmem:[%s17425_s29 + $0x637] ss:$0 sm:$0xff] }
 0x75f   : > { %v10812_v7 = vsub.f32 %v10649_v12, %v10701_v38  ;;  %10746 = vrot.lane.b32.xlu0 %v10366_v39, %s14760_s25 }
 0x760   : > { %10451 = vst.msk [vmem:[%s17425_s29 + $0x7f] sm:$0x1] %vm10450_vm13, %v10418_v30  ;;  %11172 = vrot.lane.b32.xlu1 %v11143_v14, %s14761_s5 }
 0x761   : > { %10453 = vst.msk [vmem:[%s17425_s29 + $0x87] sm:$0x1] %vm10452_vm14, %v10419_v33  ;;  %v10699_v3 = vpop.permute.xlu0 %10698  ;;  %v10333_v33 = vld [vmem:[%s17425_s29 + $0x567] ss:$0 sm:$0xff] }
 0x762   : > { %10845 = vst.msk [vmem:[%s17425_s29 + $0x9f] sm:$0x1] %vm236_vm1, %v10812_v7  ;;  %v10763_v39 = vsel %vm10762_vm7, %v10699_v3, %v10701_v38  ;;  %v10373_v1 = vpop.permute.xlu1 %10372  ;;  %v10651_v7 = vld [vmem:[%s17425_s29 + $0x16f] ss:$0 sm:$0xff] }
 0x763   : > { %v10811_v37 = vsub.f32 %v10648_v56, %v10763_v39  ;;  %v10420_v34 = vsub.f32 %v10322_v17, %v10373_v1  ;;  %v10421_v44 = vsub.f32 %v10323_v2, %v10373_v1  ;;  %10750 = vrot.lane.b32.xlu0 %v10367_v62, %s14760_s25  ;;  %v11597_v17 = vrot.slane %v19844_v54, 1  ;;  %v10336_v39 = vld [vmem:[%s17425_s29 + $0x6ff] ss:$0 sm:$0xff]  ;;  %v10337_v2 = vld [vmem:[%s17425_s29 + $0x707] ss:$0 sm:$0xff] }
 0x764   : > { %11176 = vrot.lane.b32.xlu1 %v11144_v25, %s14761_s5 }
 0x765   : > { %10844 = vst.msk [vmem:[%s17425_s29 + $0x97] sm:$0x1] %vm10843_vm3, %v10811_v37  ;;  %v19939_v47 = vpop.permute.xlu0 %11154 }
 0x766   : > { %10454 = vst.msk [vmem:[%s17425_s29 + $0x14f] sm:$0x1] %vm10450_vm13, %v10420_v34  ;;  %v11267_v62 = vsub.f32 %v11104_v8, %v19939_v47  ;;  %v10377_v42 = vpop.permute.xlu1 %10376 }
 0x767   : > { %10455 = vst.msk [vmem:[%s17425_s29 + $0x157] sm:$0x1] %vm10452_vm14, %v10421_v44  ;;  %v10424_v21 = vsub.f32 %v10326_v36, %v10377_v42  ;;  %v10425_v15 = vsub.f32 %v10327_v32, %v10377_v42  ;;  %10754 = vrot.lane.b32.xlu0 %v10368_v40, %s14760_s25  ;;  %v10653_v44 = vld [vmem:[%s17425_s29 + $0x23f] ss:$0 sm:$0xff]  ;;  %v10650_v32 = vld [vmem:[%s17425_s29 + $0x167] ss:$0 sm:$0xff] }
 0x768   : > { %11300 = vst.msk [vmem:[%s17425_s29 + $0xaf] sm:$0x1] %vm11299_vm0, %v11267_v62  ;;  %11180 = vrot.lane.b32.xlu1 %v11145_v6, %s14761_s5 }
 0x769   : > { %10458 = vst.msk [vmem:[%s17425_s29 + $0x2ef] sm:$0x1] %vm10450_vm13, %v10424_v21  ;;  %v10375_v53 = vpop.permute.xlu0 %10374  ;;  %v10655_v21 = vld [vmem:[%s17425_s29 + $0x30f] ss:$0 sm:$0xff] }
 0x76a   : > { %10459 = vst.msk [vmem:[%s17425_s29 + $0x2f7] sm:$0x1] %vm10452_vm14, %v10425_v15  ;;  %v10422_v40 = vsub.f32 %v10324_v41, %v10375_v53  ;;  %v10423_v48 = vsub.f32 %v10325_v52, %v10375_v53  ;;  %v10381_v19 = vpop.permute.xlu1 %10380  ;;  %v11599_v41 = vrot.slane %v19844_v54, 3 }
 0x76b   : > { %v10428_v59 = vsub.f32 %v10330_v63, %v10381_v19  ;;  %v10429_v58 = vsub.f32 %v10331_v49, %v10381_v19  ;;  %10758 = vrot.lane.b32.xlu0 %v10369_v26, %s14760_s25  ;;  %v19979_v26 = vmul.f32 0.25, %v19089_v35  ;;  %v10332_v35 = vld [vmem:[%s17425_s29 + $0x55f] ss:$0 sm:$0xff]  ;;  %v11600_v19 = vrot.slane %v19844_v54, 4  ;;  %s12145_s25 = sshll.u32 %s17425_s29, 4  ;;  %s20627_s25 = int_to_ptr.vmem [resolvable:$true] %s12145_s25 }
 0x76c   : > { %10456 = vst.msk [vmem:[%s17425_s29 + $0x21f] sm:$0x1] %vm10450_vm13, %v10422_v40  ;;  %11184 = vrot.lane.b32.xlu1 %v11146_v11, %s14761_s5  ;;  %v10652_v40 = vld [vmem:[%s17425_s29 + $0x237] ss:$0 sm:$0xff]  ;;  %v10657_v63 = vld [vmem:[%s17425_s29 + $0x3df] ss:$0 sm:$0xff]  ;;  %p14681_p10 = scmp.lt.s32.totalorder %s20627_s25, %s14679_s11 }
 0x76d   : > { %10457 = vst.msk [vmem:[%s17425_s29 + $0x227] sm:$0x1] %vm10452_vm14, %v10423_v48  ;;  %10463 = vst.msk [vmem:[%s17425_s29 + $0x497] sm:$0x1] %vm10452_vm14, %v10429_v58  ;;  %v10379_v16 = vpop.permute.xlu0 %10378 }
 0x76e   : > { %10462 = vst.msk [vmem:[%s17425_s29 + $0x48f] sm:$0x1] %vm10450_vm13, %v10428_v59  ;;  %v10426_v50 = vsub.f32 %v10328_v27, %v10379_v16  ;;  %v10427_v61 = vsub.f32 %v10329_v28, %v10379_v16  ;;  %v10385_v29 = vpop.permute.xlu1 %10384  ;;  %v10654_v27 = vld [vmem:[%s17425_s29 + $0x307] ss:$0 sm:$0xff]  ;;  %v10659_v16 = vld [vmem:[%s17425_s29 + $0x4af] ss:$0 sm:$0xff] }
 0x76f   : > { %v10432_v46 = vsub.f32 %v10334_v24, %v10385_v29  ;;  %v10433_v30 = vsub.f32 %v10335_v55, %v10385_v29  ;;  %11190 = vrot.lane.b32.xlu0 %v10691_v10, %s14761_s5  ;;  %v10656_v29 = vld [vmem:[%s17425_s29 + $0x3d7] ss:$0 sm:$0xff] }
 0x770   : > { %10460 = vst.msk [vmem:[%s17425_s29 + $0x3bf] sm:$0x1] %vm10450_vm13, %v10426_v50  ;;  %11188 = vrot.lane.b32.xlu1 %v19979_v26, %s14761_s5 }
 0x771   : > { %10461 = vst.msk [vmem:[%s17425_s29 + $0x3c7] sm:$0x1] %vm10452_vm14, %v10427_v61  ;;  %10467 = vst.msk [vmem:[%s17425_s29 + $0x637] sm:$0x1] %vm10452_vm14, %v10433_v30  ;;  %v10383_v12 = vpop.permute.xlu0 %10382  ;;  %v11601_v61 = vrot.slane %v19844_v54, 5 }
 0x772   : > { %10466 = vst.msk [vmem:[%s17425_s29 + $0x62f] sm:$0x1] %vm10450_vm13, %v10432_v46  ;;  %v10430_v10 = vsub.f32 %v10332_v35, %v10383_v12  ;;  %v10431_v38 = vsub.f32 %v10333_v33, %v10383_v12  ;;  %v10705_v3 = vpop.permute.xlu1 %10704  ;;  %v10661_v30 = vld [vmem:[%s17425_s29 + $0x57f] ss:$0 sm:$0xff]  ;;  %v11602_v33 = vrot.slane %v19844_v54, 6 }
 0x773   : > { %v10814_v56 = vsub.f32 %v10651_v7, %v10705_v3  ;;  %11194 = vrot.lane.b32.xlu0 %v10692_v45, %s14761_s5  ;;  %v11598_v45 = vrot.slane %v19844_v54, 2 }
 0x774   : > { %10464 = vst.msk [vmem:[%s17425_s29 + $0x55f] sm:$0x1] %vm10450_vm13, %v10430_v10  ;;  %11617 = vrot.lane.b32.xlu1 %v11597_v17, %s14758_s26 }
 0x775   : > { %10465 = vst.msk [vmem:[%s17425_s29 + $0x567] sm:$0x1] %vm10452_vm14, %v10431_v38  ;;  %v10387_v1 = vpop.permute.xlu0 %10386  ;;  %v10658_v38 = vld [vmem:[%s17425_s29 + $0x4a7] ss:$0 sm:$0xff] }
 0x776   : > { %10847 = vst.msk [vmem:[%s17425_s29 + $0x16f] sm:$0x1] %vm236_vm1, %v10814_v56  ;;  %v10434_v37 = vsub.f32 %v10336_v39, %v10387_v1  ;;  %v10435_v34 = vsub.f32 %v10337_v2, %v10387_v1  ;;  %v10709_v8 = vpop.permute.xlu1 %10708  ;;  %v11603_v56 = vrot.slane %v19844_v54, 7  ;;  %v20084_v2 = vmul.f32 0.25, %v19094_v31  ;;  %v10660_v54 = vld [vmem:[%s17425_s29 + $0x577] ss:$0 sm:$0xff] }
 0x777   : > { %v10816_v62 = vsub.f32 %v10653_v44, %v10709_v8  ;;  %11198 = vrot.lane.b32.xlu0 %v10693_v5, %s14761_s5 }
 0x778   : > { %10468 = vst.msk [vmem:[%s17425_s29 + $0x6ff] sm:$0x1] %vm10450_vm13, %v10434_v37  ;;  %11621 = vrot.lane.b32.xlu1 %v11598_v45, %s14758_s26  ;;  %v10665_v37 = vld [vmem:[%s17425_s29 + $0x71f] ss:$0 sm:$0xff]  ;;  %v10338_v45 = vld [vmem:[%s17425_s29 + $0x7cf] ss:$0 sm:$0xff] }
 0x779   : > { %10469 = vst.msk [vmem:[%s17425_s29 + $0x707] sm:$0x1] %vm10452_vm14, %v10435_v34  ;;  %v10703_v36 = vpop.permute.xlu0 %10702 }
 0x77a   : > { %10849 = vst.msk [vmem:[%s17425_s29 + $0x23f] sm:$0x1] %vm236_vm1, %v10816_v62  ;;  %v10764_v42 = vsel %vm10762_vm7, %v10703_v36, %v10705_v3  ;;  %v10713_v15 = vpop.permute.xlu1 %10712  ;;  %v10663_v3 = vld [vmem:[%s17425_s29 + $0x64f] ss:$0 sm:$0xff]  ;;  %v10662_v62 = vld [vmem:[%s17425_s29 + $0x647] ss:$0 sm:$0xff] }
 0x77b   : > { %v10813_v5 = vsub.f32 %v10650_v32, %v10764_v42  ;;  %v10818_v52 = vsub.f32 %v10655_v21, %v10713_v15  ;;  %11202 = vrot.lane.b32.xlu0 %v10694_v20, %s14761_s5  ;;  %v10339_v32 = vld [vmem:[%s17425_s29 + $0x7d7] ss:$0 sm:$0xff]  ;;  %v11147_v42 = vrot.slane %v19979_v26, 1 }
 0x77c   : > { %11625 = vrot.lane.b32.xlu1 %v11599_v41, %s14758_s26 }
 0x77d   : > { %10846 = vst.msk [vmem:[%s17425_s29 + $0x167] sm:$0x1] %vm10843_vm3, %v10813_v5  ;;  %v10707_v53 = vpop.permute.xlu0 %10706 }
 0x77e   : > { %10851 = vst.msk [vmem:[%s17425_s29 + $0x30f] sm:$0x1] %vm236_vm1, %v10818_v52  ;;  %v10765_v48 = vsel %vm10762_vm7, %v10707_v53, %v10709_v8  ;;  %v10717_v49 = vpop.permute.xlu1 %10716  ;;  %v10342_v52 = vld [vmem:[%s17425_s29 + $0x96f] ss:$0 sm:$0xff]  ;;  %v10664_v53 = vld [vmem:[%s17425_s29 + $0x717] ss:$0 sm:$0xff] }
 0x77f   : > { %v10815_v59 = vsub.f32 %v10652_v40, %v10765_v48  ;;  %v10820_v58 = vsub.f32 %v10657_v63, %v10717_v49  ;;  %11206 = vrot.lane.b32.xlu0 %v10695_v60, %s14761_s5  ;;  %v10343_v40 = vld [vmem:[%s17425_s29 + $0x977] ss:$0 sm:$0xff]  ;;  %v11148_v63 = vrot.slane %v19979_v26, 2 }
 0x780   : > { %11629 = vrot.lane.b32.xlu1 %v11600_v19, %s14758_s26 }
 0x781   : > { %10848 = vst.msk [vmem:[%s17425_s29 + $0x237] sm:$0x1] %vm10843_vm3, %v10815_v59  ;;  %v10711_v20 = vpop.permute.xlu0 %10710 }
 0x782   : > { %10853 = vst.msk [vmem:[%s17425_s29 + $0x3df] sm:$0x1] %vm236_vm1, %v10820_v58  ;;  %v10766_v28 = vsel %vm10762_vm7, %v10711_v20, %v10713_v15  ;;  %v10721_v50 = vpop.permute.xlu1 %10720  ;;  %v11106_v58 = vld [vmem:[%s17425_s29 + $0x17f] ss:$0 sm:$0xff] }
 0x783   : > { %v10817_v24 = vsub.f32 %v10654_v27, %v10766_v28  ;;  %v10822_v55 = vsub.f32 %v10659_v16, %v10721_v50  ;;  %11210 = vrot.lane.b32.xlu0 %v10696_v0, %s14761_s5  ;;  %v10347_v28 = vld [vmem:[%s17425_s29 + $0xb17] ss:$0 sm:$0xff] }
 0x784   : > { %11633 = vrot.lane.b32.xlu1 %v11601_v61, %s14758_s26 }
 0x785   : > { %10850 = vst.msk [vmem:[%s17425_s29 + $0x307] sm:$0x1] %vm10843_vm3, %v10817_v24  ;;  %v10715_v60 = vpop.permute.xlu0 %10714 }
 0x786   : > { %10855 = vst.msk [vmem:[%s17425_s29 + $0x4af] sm:$0x1] %vm236_vm1, %v10822_v55  ;;  %v10767_v46 = vsel %vm10762_vm7, %v10715_v60, %v10717_v49  ;;  %v10725_v35 = vpop.permute.xlu1 %10724  ;;  %v11108_v55 = vld [vmem:[%s17425_s29 + $0x24f] ss:$0 sm:$0xff] }
 0x787   : > { %v10819_v12 = vsub.f32 %v10656_v29, %v10767_v46  ;;  %v10824_v10 = vsub.f32 %v10661_v30, %v10725_v35  ;;  %11214 = vrot.lane.b32.xlu0 %v10697_v23, %s14761_s5  ;;  %v10351_v46 = vld [vmem:[%s17425_s29 + $0xcb7] ss:$0 sm:$0xff] }
 0x788   : > { %11637 = vrot.lane.b32.xlu1 %v11602_v33, %s14758_s26 }
 0x789   : > { %10852 = vst.msk [vmem:[%s17425_s29 + $0x3d7] sm:$0x1] %vm10843_vm3, %v10819_v12  ;;  %v10719_v0 = vpop.permute.xlu0 %10718 }
 0x78a   : > { %10857 = vst.msk [vmem:[%s17425_s29 + $0x57f] sm:$0x1] %vm236_vm1, %v10824_v10  ;;  %v10768_v7 = vsel %vm10762_vm7, %v10719_v0, %v10721_v50  ;;  %v10729_v17 = vpop.permute.xlu1 %10728  ;;  %v11149_v50 = vrot.slane %v19979_v26, 3  ;;  %v11110_v10 = vld [vmem:[%s17425_s29 + $0x31f] ss:$0 sm:$0xff] }
 0x78b   : > { %v10821_v39 = vsub.f32 %v10658_v38, %v10768_v7  ;;  %v10826_v57 = vsub.f32 %v10663_v3, %v10729_v17  ;;  %11611 = vrot.lane.b32.xlu0 %v19828_v22, %s14758_s26  ;;  %v10667_v7 = vld [vmem:[%s17425_s29 + $0x7ef] ss:$0 sm:$0xff]  ;;  %v11151_v3 = vrot.slane %v19979_v26, 5  ;;  %v11153_v22 = vrot.slane %v19979_v26, 7 }
 0x78c   : > { %11641 = vrot.lane.b32.xlu1 %v11603_v56, %s14758_s26  ;;  %v11112_v56 = vld [vmem:[%s17425_s29 + $0x3ef] ss:$0 sm:$0xff] }
 0x78d   : > { %10854 = vst.msk [vmem:[%s17425_s29 + $0x4a7] sm:$0x1] %vm10843_vm3, %v10821_v39  ;;  %v10723_v23 = vpop.permute.xlu0 %10722 }
 0x78e   : > { %10859 = vst.msk [vmem:[%s17425_s29 + $0x64f] sm:$0x1] %vm236_vm1, %v10826_v57  ;;  %v10769_v1 = vsel %vm10762_vm7, %v10723_v23, %v10725_v35  ;;  %v10733_v34 = vpop.permute.xlu1 %10732  ;;  %v11150_v35 = vrot.slane %v19979_v26, 4  ;;  %v10669_v23 = vld [vmem:[%s17425_s29 + $0x8bf] ss:$0 sm:$0xff] }
 0x78f   : > { %v10823_v44 = vsub.f32 %v10660_v54, %v10769_v1  ;;  %v10828_v8 = vsub.f32 %v10665_v37, %v10733_v34  ;;  %11615 = vrot.lane.b32.xlu0 %v11140_v18, %s14758_s26  ;;  %v11114_v37 = vld [vmem:[%s17425_s29 + $0x4bf] ss:$0 sm:$0xff] }
 0x790   : > { %11645 = vrot.lane.b32.xlu1 %v20084_v2, %s14758_s26 }
 0x791   : > { %10856 = vst.msk [vmem:[%s17425_s29 + $0x577] sm:$0x1] %vm10843_vm3, %v10823_v44  ;;  %v10727_v31 = vpop.permute.xlu0 %10726 }
 0x792   : > { %10861 = vst.msk [vmem:[%s17425_s29 + $0x71f] sm:$0x1] %vm236_vm1, %v10828_v8  ;;  %v10770_v36 = vsel %vm10762_vm7, %v10727_v31, %v10729_v17  ;;  %v10389_v18 = vpop.permute.xlu1 %10388  ;;  %v10671_v8 = vld [vmem:[%s17425_s29 + $0x98f] ss:$0 sm:$0xff] }
 0x793   : > { %v10825_v21 = vsub.f32 %v10662_v62, %v10770_v36  ;;  %v10436_v15 = vsub.f32 %v10338_v45, %v10389_v18  ;;  %v10437_v41 = vsub.f32 %v10339_v32, %v10389_v18  ;;  %11619 = vrot.lane.b32.xlu0 %v11141_v43, %s14758_s26  ;;  %v11116_v45 = vld [vmem:[%s17425_s29 + $0x58f] ss:$0 sm:$0xff]  ;;  %v10673_v32 = vld [vmem:[%s17425_s29 + $0xa5f] ss:$0 sm:$0xff] }
 0x794   : > { %11192 = vrot.lane.b32.xlu1 %v11147_v42, %s14761_s5 }
 0x795   : > { %10858 = vst.msk [vmem:[%s17425_s29 + $0x647] sm:$0x1] %vm10843_vm3, %v10825_v21  ;;  %v10731_v5 = vpop.permute.xlu0 %10730  ;;  %v11610_v21 = vrot.slane %v20084_v2, 7 }
 0x796   : > { %10470 = vst.msk [vmem:[%s17425_s29 + $0x7cf] sm:$0x1] %vm10450_vm13, %v10436_v15  ;;  %v10771_v43 = vsel %vm10762_vm7, %v10731_v5, %v10733_v34  ;;  %v10393_v48 = vpop.permute.xlu1 %10392 }
 0x797   : > { %10471 = vst.msk [vmem:[%s17425_s29 + $0x7d7] sm:$0x1] %vm10452_vm14, %v10437_v41  ;;  %v10827_v49 = vsub.f32 %v10664_v53, %v10771_v43  ;;  %v10440_v19 = vsub.f32 %v10342_v52, %v10393_v48  ;;  %v10441_v59 = vsub.f32 %v10343_v40, %v10393_v48  ;;  %11623 = vrot.lane.b32.xlu0 %v11142_v4, %s14758_s26  ;;  %v10346_v4 = vld [vmem:[%s17425_s29 + $0xb0f] ss:$0 sm:$0xff]  ;;  %v11118_v41 = vld [vmem:[%s17425_s29 + $0x65f] ss:$0 sm:$0xff] }
 0x798   : > { %11196 = vrot.lane.b32.xlu1 %v11148_v63, %s14761_s5  ;;  %v10675_v53 = vld [vmem:[%s17425_s29 + $0xb2f] ss:$0 sm:$0xff]  ;;  %v11604_v40 = vrot.slane %v20084_v2, 1 }
 0x799   : > { %10860 = vst.msk [vmem:[%s17425_s29 + $0x717] sm:$0x1] %vm10843_vm3, %v10827_v49  ;;  %v20133_v20 = vpop.permute.xlu0 %11158  ;;  %v11120_v49 = vld [vmem:[%s17425_s29 + $0x72f] ss:$0 sm:$0xff] }
 0x79a   : > { %10474 = vst.msk [vmem:[%s17425_s29 + $0x96f] sm:$0x1] %vm10450_vm13, %v10440_v19  ;;  %v11269_v27 = vsub.f32 %v11106_v58, %v20133_v20  ;;  %v10397_v16 = vpop.permute.xlu1 %10396  ;;  %v10677_v58 = vld [vmem:[%s17425_s29 + $0xbff] ss:$0 sm:$0xff] }
 0x79b   : > { %10475 = vst.msk [vmem:[%s17425_s29 + $0x977] sm:$0x1] %vm10452_vm14, %v10441_v59  ;;  %v10444_v61 = vsub.f32 %v10346_v4, %v10397_v16  ;;  %v10445_v24 = vsub.f32 %v10347_v28, %v10397_v16  ;;  %11627 = vrot.lane.b32.xlu0 %v11143_v14, %s14758_s26  ;;  %v10350_v14 = vld [vmem:[%s17425_s29 + $0xcaf] ss:$0 sm:$0xff]  ;;  %v11605_v4 = vrot.slane %v20084_v2, 2 }
 0x79c   : > { %11303 = vst.msk [vmem:[%s17425_s29 + $0x17f] sm:$0x1] %vm11299_vm0, %v11269_v27  ;;  %11200 = vrot.lane.b32.xlu1 %v11149_v50, %s14761_s5  ;;  %v10340_v28 = vld [vmem:[%s17425_s29 + $0x89f] ss:$0 sm:$0xff]  ;;  %v10341_v16 = vld [vmem:[%s17425_s29 + $0x8a7] ss:$0 sm:$0xff] }
 0x79d   : > { %10478 = vst.msk [vmem:[%s17425_s29 + $0xb0f] sm:$0x1] %vm10450_vm13, %v10444_v61  ;;  %v20152_v60 = vpop.permute.xlu0 %11162 }
 0x79e   : > { %10479 = vst.msk [vmem:[%s17425_s29 + $0xb17] sm:$0x1] %vm10452_vm14, %v10445_v24  ;;  %v11271_v29 = vsub.f32 %v11108_v55, %v20152_v60  ;;  %v10401_v30 = vpop.permute.xlu1 %10400 }
 0x79f   : > { %v10448_v33 = vsub.f32 %v10350_v14, %v10401_v30  ;;  %v10449_v12 = vsub.f32 %v10351_v46, %v10401_v30  ;;  %11631 = vrot.lane.b32.xlu0 %v11144_v25, %s14758_s26  ;;  %v10344_v30 = vld [vmem:[%s17425_s29 + $0xa3f] ss:$0 sm:$0xff] }
 0x7a0   : > { %11305 = vst.msk [vmem:[%s17425_s29 + $0x24f] sm:$0x1] %vm11299_vm0, %v11271_v29  ;;  %11204 = vrot.lane.b32.xlu1 %v11150_v35, %s14761_s5  ;;  %v10679_v29 = vld [vmem:[%s17425_s29 + $0xccf] ss:$0 sm:$0xff] }
 0x7a1   : > { %10482 = vst.msk [vmem:[%s17425_s29 + $0xcaf] sm:$0x1] %vm10450_vm13, %v10448_v33  ;;  %v20171_v0 = vpop.permute.xlu0 %11166  ;;  %v10345_v33 = vld [vmem:[%s17425_s29 + $0xa47] ss:$0 sm:$0xff] }
 0x7a2   : > { %10483 = vst.msk [vmem:[%s17425_s29 + $0xcb7] sm:$0x1] %vm10452_vm14, %v10449_v12  ;;  %v11273_v38 = vsub.f32 %v11110_v10, %v20171_v0  ;;  %v20175_v25 = vpop.permute.xlu1 %10736 }
 0x7a3   : > { %v10830_v17 = vsub.f32 %v10667_v7, %v20175_v25  ;;  %11635 = vrot.lane.b32.xlu0 %v11145_v6, %s14758_s26  ;;  %v11152_v6 = vrot.slane %v19979_v26, 6 }
 0x7a4   : > { %11307 = vst.msk [vmem:[%s17425_s29 + $0x31f] sm:$0x1] %vm11299_vm0, %v11273_v38  ;;  %11208 = vrot.lane.b32.xlu1 %v11151_v3, %s14761_s5 }
 0x7a5   : > { %10863 = vst.msk [vmem:[%s17425_s29 + $0x7ef] sm:$0x1] %vm236_vm1, %v10830_v17  ;;  %v20190_v39 = vpop.permute.xlu0 %11170  ;;  %v11105_v17 = vld [vmem:[%s17425_s29 + $0xb7] ss:$0 sm:$0xff] }
 0x7a6   : > { %v11275_v57 = vsub.f32 %v11112_v56, %v20190_v39  ;;  %v20194_v54 = vpop.permute.xlu1 %10740 }
 0x7a7   : > { %v10832_v1 = vsub.f32 %v10669_v23, %v20194_v54  ;;  %11639 = vrot.lane.b32.xlu0 %v11146_v11, %s14758_s26  ;;  %v10348_v23 = vld [vmem:[%s17425_s29 + $0xbdf] ss:$0 sm:$0xff] }
 0x7a8   : > { %11309 = vst.msk [vmem:[%s17425_s29 + $0x3ef] sm:$0x1] %vm11299_vm0, %v11275_v57  ;;  %11212 = vrot.lane.b32.xlu1 %v11152_v6, %s14761_s5 }
 0x7a9   : > { %10865 = vst.msk [vmem:[%s17425_s29 + $0x8bf] sm:$0x1] %vm236_vm1, %v10832_v1  ;;  %v20209_v34 = vpop.permute.xlu0 %11174  ;;  %v10349_v1 = vld [vmem:[%s17425_s29 + $0xbe7] ss:$0 sm:$0xff] }
 0x7aa   : > { %v11277_v44 = vsub.f32 %v11114_v37, %v20209_v34  ;;  %v20213_v31 = vpop.permute.xlu1 %10744 }
 0x7ab   : > { %v10834_v11 = vsub.f32 %v10671_v8, %v20213_v31  ;;  %11643 = vrot.lane.b32.xlu0 %v19979_v26, %s14758_s26 }
 0x7ac   : > { %11311 = vst.msk [vmem:[%s17425_s29 + $0x4bf] sm:$0x1] %vm11299_vm0, %v11277_v44  ;;  %11216 = vrot.lane.b32.xlu1 %v11153_v22, %s14761_s5  ;;  %s14674_s5 = scalar_lea.vmem %s20627_s25, 53248 }
 0x7ad   : > { %10867 = vst.msk [vmem:[%s17425_s29 + $0x98f] sm:$0x1] %vm236_vm1, %v10834_v11  ;;  %v20225_v62 = vpop.permute.xlu0 %11178  ;;  %v10666_v11 = vld [vmem:[%s17425_s29 + $0x7e7] ss:$0 sm:$0xff]  ;;  %p14675_p4 = scmp.ne.s32.totalorder %s20627_s25, %s14674_s5  ;;  %p14682_p13 = scmp.lt.s32.totalorder %s14680_s13, %s14674_s5 }
 0x7ae   : > { %v11279_v36 = vsub.f32 %v11116_v45, %v20225_v62  ;;  %v20229_v18 = vpop.permute.xlu1 %10748 }
 0x7af   : > { %v10836_v15 = vsub.f32 %v10673_v32, %v20229_v18  ;;  %11671 = vrot.lane.b32.xlu0 %v11153_v22, %s14758_s26  ;;  %v11609_v32 = vrot.slane %v20084_v2, 6  ;;  %p14676_p6 = pnand %p14675_p4, %p14882_p12  ;;  %p14683_p3 = por %p14682_p13, %p14681_p10 }
 0x7b0   : > { %11313 = vst.msk [vmem:[%s17425_s29 + $0x58f] sm:$0x1] %vm11299_vm0, %v11279_v36  ;;  %11673 = vrot.lane.b32.xlu1 %v11610_v21, %s14758_s26 }
 0x7b1   : > { %10869 = vst.msk [vmem:[%s17425_s29 + $0xa5f] sm:$0x1] %vm236_vm1, %v10836_v15  ;;  %v20240_v5 = vpop.permute.xlu0 %11182  ;;  %p14677_p8 = pneg %p14676_p6 }
 0x7b2   : > { %v11281_v52 = vsub.f32 %v11118_v41, %v20240_v5  ;;  %v20244_v43 = vpop.permute.xlu1 %10752 }
 0x7b3   : > { %v10838_v48 = vsub.f32 %v10675_v53, %v20244_v43  ;;  %11647 = vrot.lane.b32.xlu0 %v11147_v42, %s14758_s26  ;;  %v12122_v53 = vmul.f32 0.0625, %v19857_v9  ;;  %p14684_p7 = pnand %p14683_p3, %p14677_p8 }
 0x7b4   : > { %11315 = vst.msk [vmem:[%s17425_s29 + $0x65f] sm:$0x1] %vm11299_vm0, %v11281_v52  ;;  %11649 = vrot.lane.b32.xlu1 %v11604_v40, %s14758_s26  ;;  %v12035_v52 = vmul.f32 0.0625, %v19873_v13 }
 0x7b5   : > { %10871 = vst.msk [vmem:[%s17425_s29 + $0xb2f] sm:$0x1] %vm236_vm1, %v10838_v48  ;;  %v20257_v19 = vpop.permute.xlu0 %11186  ;;  %v11109_v48 = vld [vmem:[%s17425_s29 + $0x257] ss:$0 sm:$0xff] }
 0x7b6   : > { %v11283_v59 = vsub.f32 %v11120_v49, %v20257_v19  ;;  %v20261_v27 = vpop.permute.xlu1 %10756  ;;  %v10670_v49 = vld [vmem:[%s17425_s29 + $0x987] ss:$0 sm:$0xff] }
 0x7b7   : > { %v10840_v42 = vsub.f32 %v10677_v58, %v20261_v27  ;;  %11651 = vrot.lane.b32.xlu0 %v11148_v63, %s14758_s26  ;;  %v11606_v63 = vrot.slane %v20084_v2, 3  ;;  %v11111_v58 = vld [vmem:[%s17425_s29 + $0x327] ss:$0 sm:$0xff] }
 0x7b8   : > { %11317 = vst.msk [vmem:[%s17425_s29 + $0x72f] sm:$0x1] %vm11299_vm0, %v11283_v59  ;;  %11653 = vrot.lane.b32.xlu1 %v11605_v4, %s14758_s26 }
 0x7b9   : > { %10873 = vst.msk [vmem:[%s17425_s29 + $0xbff] sm:$0x1] %vm236_vm1, %v10840_v42  ;;  %v10391_v61 = vpop.permute.xlu0 %10390 }
 0x7ba   : > { %v10438_v24 = vsub.f32 %v10340_v28, %v10391_v61  ;;  %v10439_v55 = vsub.f32 %v10341_v16, %v10391_v61  ;;  %v20276_v14 = vpop.permute.xlu1 %10760  ;;  %v10672_v16 = vld [vmem:[%s17425_s29 + $0xa57] ss:$0 sm:$0xff] }
 0x7bb   : > { %v10842_v46 = vsub.f32 %v10679_v29, %v20276_v14  ;;  %11655 = vrot.lane.b32.xlu0 %v11149_v50, %s14758_s26  ;;  %v11607_v50 = vrot.slane %v20084_v2, 4 }
 0x7bc   : > { %10472 = vst.msk [vmem:[%s17425_s29 + $0x89f] sm:$0x1] %vm10450_vm13, %v10438_v24  ;;  %11657 = vrot.lane.b32.xlu1 %v11606_v63, %s14758_s26 }
 0x7bd   : > { %10473 = vst.msk [vmem:[%s17425_s29 + $0x8a7] sm:$0x1] %vm10452_vm14, %v10439_v55  ;;  %v10395_v12 = vpop.permute.xlu0 %10394 }
 0x7be   : > { %10875 = vst.msk [vmem:[%s17425_s29 + $0xccf] sm:$0x1] %vm236_vm1, %v10842_v46  ;;  %v10442_v10 = vsub.f32 %v10344_v30, %v10395_v12  ;;  %v10443_v38 = vsub.f32 %v10345_v33, %v10395_v12  ;;  %v11157_v7 = vpop.permute.xlu1 %11156  ;;  %v10674_v46 = vld [vmem:[%s17425_s29 + $0xb27] ss:$0 sm:$0xff]  ;;  %vm11755_vm1 = vcmask 1041120  }
 0x7bf   : > { %v11219_v56 = vsel %vm11218_vm10, %v19939_v47, %v11157_v7  ;;  %11659 = vrot.lane.b32.xlu0 %v11150_v35, %s14758_s26  ;;  %v11608_v35 = vrot.slane %v20084_v2, 5  ;;  %v11115_v12 = vld [vmem:[%s17425_s29 + $0x4c7] ss:$0 sm:$0xff]  ;;  %v10676_v7 = vld [vmem:[%s17425_s29 + $0xbf7] ss:$0 sm:$0xff] }
 0x7c0   : > { %10476 = vst.msk [vmem:[%s17425_s29 + $0xa3f] sm:$0x1] %vm10450_vm13, %v10442_v10  ;;  %v11268_v57 = vsub.f32 %v11105_v17, %v11219_v56  ;;  %11661 = vrot.lane.b32.xlu1 %v11607_v50, %s14758_s26  ;;  %v11117_v56 = vld [vmem:[%s17425_s29 + $0x597] ss:$0 sm:$0xff] }
 0x7c1   : > { %10477 = vst.msk [vmem:[%s17425_s29 + $0xa47] sm:$0x1] %vm10452_vm14, %v10443_v38  ;;  %v10399_v37 = vpop.permute.xlu0 %10398 }
 0x7c2   : > { %11302 = vst.msk [vmem:[%s17425_s29 + $0xb7] sm:$0x1] %vm11301_vm5, %v11268_v57  ;;  %v10446_v47 = vsub.f32 %v10348_v23, %v10399_v37  ;;  %v10447_v44 = vsub.f32 %v10349_v1, %v10399_v37  ;;  %v20308_v8 = vpop.permute.xlu1 %11613  ;;  %v10678_v1 = vld [vmem:[%s17425_s29 + $0xcc7] ss:$0 sm:$0xff] }
 0x7c3   : > { %11663 = vrot.lane.b32.xlu0 %v11151_v3, %s14758_s26  ;;  %v11107_v3 = vld [vmem:[%s17425_s29 + $0x187] ss:$0 sm:$0xff] }
 0x7c4   : > { %10480 = vst.msk [vmem:[%s17425_s29 + $0xbdf] sm:$0x1] %vm10450_vm13, %v10446_v47  ;;  %11665 = vrot.lane.b32.xlu1 %v11608_v35, %s14758_s26 }
 0x7c5   : > { %10481 = vst.msk [vmem:[%s17425_s29 + $0xbe7] sm:$0x1] %vm10452_vm14, %v10447_v44  ;;  %v10735_v22 = vpop.permute.xlu0 %10734  ;;  %v11119_v44 = vld [vmem:[%s17425_s29 + $0x667] ss:$0 sm:$0xff] }
 0x7c6   : > { %v10772_v45 = vsel %vm10762_vm7, %v10735_v22, %v20175_v25  ;;  %v11161_v36 = vpop.permute.xlu1 %11160  ;;  %v11947_v25 = vmul.f32 0.0625, %v19808_v51  ;;  %v11122_v22 = vld [vmem:[%s17425_s29 + $0x7ff] ss:$0 sm:$0xff] }
 0x7c7   : > { %v10829_v21 = vsub.f32 %v10666_v11, %v10772_v45  ;;  %v11220_v15 = vsel %vm11218_vm10, %v20133_v20, %v11161_v36  ;;  %11667 = vrot.lane.b32.xlu0 %v11152_v6, %s14758_s26  ;;  %v10668_v20 = vld [vmem:[%s17425_s29 + $0x8b7] ss:$0 sm:$0xff] }
 0x7c8   : > { %v11270_v41 = vsub.f32 %v11107_v3, %v11220_v15  ;;  %11669 = vrot.lane.b32.xlu1 %v11609_v32, %s14758_s26  ;;  %v11121_v36 = vld [vmem:[%s17425_s29 + $0x737] ss:$0 sm:$0xff] }
 0x7c9   : > { %10862 = vst.msk [vmem:[%s17425_s29 + $0x7e7] sm:$0x1] %vm10843_vm3, %v10829_v21  ;;  %v10739_v2 = vpop.permute.xlu0 %10738  ;;  %v11124_v21 = vld [vmem:[%s17425_s29 + $0x8cf] ss:$0 sm:$0xff] }
 0x7ca   : > { %11304 = vst.msk [vmem:[%s17425_s29 + $0x187] sm:$0x1] %vm11301_vm5, %v11270_v41  ;;  %v10773_v26 = vsel %vm10762_vm7, %v10739_v2, %v20194_v54  ;;  %v11165_v6 = vpop.permute.xlu1 %11164 }
 0x7cb   : > { %v10831_v40 = vsub.f32 %v10668_v20, %v10773_v26  ;;  %v11221_v51 = vsel %vm11218_vm10, %v20152_v60, %v11165_v6  ;;  %11949 = vrot.lane.b32.xlu0 %v11947_v25, %s14759_s8  ;;  %v11128_v20 = vld [vmem:[%s17425_s29 + $0xa6f] ss:$0 sm:$0xff]  ;;  %s13821_s8 = smul.u32 53248, %s14812_s19 }
 0x7cc   : > { %v11272_v13 = vsub.f32 %v11109_v48, %v11221_v51  ;;  %12037 = vrot.lane.b32.xlu1 %v12035_v52, %s14758_s26  ;;  %s14762_s26 = smov 92   ;;  %v11126_v52 = vld [vmem:[%s17425_s29 + $0x99f] ss:$0 sm:$0xff] }
 0x7cd   : > { %10864 = vst.msk [vmem:[%s17425_s29 + $0x8b7] sm:$0x1] %vm10843_vm3, %v10831_v40  ;;  %v10743_v54 = vpop.permute.xlu0 %10742  ;;  %v11130_v40 = vld [vmem:[%s17425_s29 + $0xb3f] ss:$0 sm:$0xff]  ;;  %s20625_s10 = scalar_lea.hbm %s20679_s4, %s13821_s8 }
 0x7ce   : > { %11306 = vst.msk [vmem:[%s17425_s29 + $0x257] sm:$0x1] %vm11301_vm5, %v11272_v13  ;;  %v10774_v9 = vsel %vm10762_vm7, %v10743_v54, %v20213_v31  ;;  %v11169_v59 = vpop.permute.xlu1 %11168  ;;  %v11132_v54 = vld [vmem:[%s17425_s29 + $0xc0f] ss:$0 sm:$0xff] }
 0x7cf   : > { %v10833_v60 = vsub.f32 %v10670_v49, %v10774_v9  ;;  %v11222_v4 = vsel %vm11218_vm10, %v20171_v0, %v11169_v59  ;;  %12124 = vrot.lane.b32.xlu0 %v12122_v53, %s14762_s26  ;;  %v11113_v0 = vld [vmem:[%s17425_s29 + $0x3f7] ss:$0 sm:$0xff] }
 0x7d0   : > { %v11274_v42 = vsub.f32 %v11111_v58, %v11222_v4 }
 0x7d1   : > { %10866 = vst.msk [vmem:[%s17425_s29 + $0x987] sm:$0x1] %vm10843_vm3, %v10833_v60  ;;  %v10747_v28 = vpop.permute.xlu0 %10746  ;;  %v11134_v60 = vld [vmem:[%s17425_s29 + $0xcdf] ss:$0 sm:$0xff] }
 0x7d2   : > { %11308 = vst.msk [vmem:[%s17425_s29 + $0x327] sm:$0x1] %vm11301_vm5, %v11274_v42  ;;  %v10775_v31 = vsel %vm10762_vm7, %v10747_v28, %v20229_v18  ;;  %v11173_v61 = vpop.permute.xlu1 %11172  ;;  %v11561_v28 = vld [vmem:[%s17425_s29 + $0xc7] ss:$0 sm:$0xff] }
 0x7d3   : > { %v10835_v24 = vsub.f32 %v10672_v16, %v10775_v31  ;;  %v11223_v55 = vsel %vm11218_vm10, %v20190_v39, %v11173_v61  ;;  %v11562_v31 = vld [vmem:[%s17425_s29 + $0xcf] ss:$0 sm:$0xff] }
 0x7d4   : > { %v11276_v29 = vsub.f32 %v11113_v0, %v11223_v55 }
 0x7d5   : > { %10868 = vst.msk [vmem:[%s17425_s29 + $0xa57] sm:$0x1] %vm10843_vm3, %v10835_v24  ;;  %v10751_v63 = vpop.permute.xlu0 %10750 }
 0x7d6   : > { %11310 = vst.msk [vmem:[%s17425_s29 + $0x3f7] sm:$0x1] %vm11301_vm5, %v11276_v29  ;;  %v10776_v18 = vsel %vm10762_vm7, %v10751_v63, %v20244_v43  ;;  %v11177_v30 = vpop.permute.xlu1 %11176  ;;  %v11563_v29 = vld [vmem:[%s17425_s29 + $0x197] ss:$0 sm:$0xff] }
 0x7d7   : > { %v10837_v33 = vsub.f32 %v10674_v46, %v10776_v18  ;;  %v11224_v39 = vsel %vm11218_vm10, %v20209_v34, %v11177_v30  ;;  %v11564_v46 = vld [vmem:[%s17425_s29 + $0x19f] ss:$0 sm:$0xff] }
 0x7d8   : > { %v11278_v10 = vsub.f32 %v11115_v12, %v11224_v39  ;;  %v11565_v12 = vld [vmem:[%s17425_s29 + $0x267] ss:$0 sm:$0xff] }
 0x7d9   : > { %10870 = vst.msk [vmem:[%s17425_s29 + $0xb27] sm:$0x1] %vm10843_vm3, %v10837_v33  ;;  %v10755_v38 = vpop.permute.xlu0 %10754 }
 0x7da   : > { %11312 = vst.msk [vmem:[%s17425_s29 + $0x4c7] sm:$0x1] %vm11301_vm5, %v11278_v10  ;;  %v10777_v43 = vsel %vm10762_vm7, %v10755_v38, %v20261_v27  ;;  %v11181_v50 = vpop.permute.xlu1 %11180  ;;  %v11566_v10 = vld [vmem:[%s17425_s29 + $0x26f] ss:$0 sm:$0xff] }
 0x7db   : > { %v10839_v17 = vsub.f32 %v10676_v7, %v10777_v43  ;;  %v11225_v34 = vsel %vm11218_vm10, %v20225_v62, %v11181_v50 }
 0x7dc   : > { %v11280_v57 = vsub.f32 %v11117_v56, %v11225_v34 }
 0x7dd   : > { %10872 = vst.msk [vmem:[%s17425_s29 + $0xbf7] sm:$0x1] %vm10843_vm3, %v10839_v17  ;;  %v10759_v23 = vpop.permute.xlu0 %10758  ;;  %v11123_v17 = vld [vmem:[%s17425_s29 + $0x807] ss:$0 sm:$0xff] }
 0x7de   : > { %11314 = vst.msk [vmem:[%s17425_s29 + $0x597] sm:$0x1] %vm11301_vm5, %v11280_v57  ;;  %v10778_v27 = vsel %vm10762_vm7, %v10759_v23, %v20276_v14  ;;  %v11185_v37 = vpop.permute.xlu1 %11184  ;;  %v11567_v57 = vld [vmem:[%s17425_s29 + $0x337] ss:$0 sm:$0xff] }
 0x7df   : > { %v10841_v47 = vsub.f32 %v10678_v1, %v10778_v27  ;;  %v11226_v62 = vsel %vm11218_vm10, %v20240_v5, %v11185_v37  ;;  %v11568_v1 = vld [vmem:[%s17425_s29 + $0x33f] ss:$0 sm:$0xff] }
 0x7e0   : > { %v11282_v35 = vsub.f32 %v11119_v44, %v11226_v62  ;;  %v11125_v62 = vld [vmem:[%s17425_s29 + $0x8d7] ss:$0 sm:$0xff] }
 0x7e1   : > { %10874 = vst.msk [vmem:[%s17425_s29 + $0xcc7] sm:$0x1] %vm10843_vm3, %v10841_v47  ;;  %v20398_v11 = vpop.permute.xlu0 %11190 }
 0x7e2   : > { %11316 = vst.msk [vmem:[%s17425_s29 + $0x667] sm:$0x1] %vm11301_vm5, %v11282_v35  ;;  %v11285_v14 = vsub.f32 %v11122_v22, %v20398_v11  ;;  %v11189_v45 = vpop.permute.xlu1 %11188 }
 0x7e3   : > { %v11227_v32 = vsel %vm11218_vm10, %v20257_v19, %v11189_v45  ;;  %v11570_v45 = vld [vmem:[%s17425_s29 + $0x40f] ss:$0 sm:$0xff] }
 0x7e4   : > { %11319 = vst.msk [vmem:[%s17425_s29 + $0x7ff] sm:$0x1] %vm11299_vm0, %v11285_v14  ;;  %v11284_v5 = vsub.f32 %v11121_v36, %v11227_v32 }
 0x7e5   : > { %v20409_v3 = vpop.permute.xlu0 %11194 }
 0x7e6   : > { %11318 = vst.msk [vmem:[%s17425_s29 + $0x737] sm:$0x1] %vm11301_vm5, %v11284_v5  ;;  %v11287_v15 = vsub.f32 %v11124_v21, %v20409_v3  ;;  %v11618_v41 = vpop.permute.xlu1 %11617 }
 0x7e8   : > { %11321 = vst.msk [vmem:[%s17425_s29 + $0x8cf] sm:$0x1] %vm11299_vm0, %v11287_v15 }
 0x7e9   : > { %v20417_v25 = vpop.permute.xlu0 %11198 }
 0x7ea   : > { %v11289_v19 = vsub.f32 %v11126_v52, %v20417_v25  ;;  %v11622_v2 = vpop.permute.xlu1 %11621  ;;  %v11571_v52 = vld [vmem:[%s17425_s29 + $0x4d7] ss:$0 sm:$0xff] }
 0x7ec   : > { %11323 = vst.msk [vmem:[%s17425_s29 + $0x99f] sm:$0x1] %vm11299_vm0, %v11289_v19 }
 0x7ed   : > { %v20423_v26 = vpop.permute.xlu0 %11202 }
 0x7ee   : > { %v11291_v6 = vsub.f32 %v11128_v20, %v20423_v26  ;;  %v11626_v53 = vpop.permute.xlu1 %11625 }
 0x7f0   : > { %11325 = vst.msk [vmem:[%s17425_s29 + $0xa6f] sm:$0x1] %vm11299_vm0, %v11291_v6 }
 0x7f1   : > { %v20429_v48 = vpop.permute.xlu0 %11206 }
 0x7f2   : > { %v11293_v51 = vsub.f32 %v11130_v40, %v20429_v48  ;;  %v11630_v13 = vpop.permute.xlu1 %11629  ;;  %v11129_v40 = vld [vmem:[%s17425_s29 + $0xa77] ss:$0 sm:$0xff] }
 0x7f4   : > { %11327 = vst.msk [vmem:[%s17425_s29 + $0xb3f] sm:$0x1] %vm11299_vm0, %v11293_v51 }
 0x7f5   : > { %v20435_v49 = vpop.permute.xlu0 %11210 }
 0x7f6   : > { %v11295_v9 = vsub.f32 %v11132_v54, %v20435_v49  ;;  %v20438_v59 = vpop.permute.xlu1 %11633  ;;  %v11573_v54 = vld [vmem:[%s17425_s29 + $0x5a7] ss:$0 sm:$0xff] }
 0x7f8   : > { %11329 = vst.msk [vmem:[%s17425_s29 + $0xc0f] sm:$0x1] %vm11299_vm0, %v11295_v9 }
 0x7f9   : > { %v20443_v58 = vpop.permute.xlu0 %11214 }
 0x7fa   : > { %v11297_v4 = vsub.f32 %v11134_v60, %v20443_v58  ;;  %v20446_v42 = vpop.permute.xlu1 %11637 }
 0x7fc   : > { %11331 = vst.msk [vmem:[%s17425_s29 + $0xcdf] sm:$0x1] %vm11299_vm0, %v11297_v4 }
 0x7fd   : > { %v11612_v16 = vpop.permute.xlu0 %11611 }
 0x7fe   : > { %v11675_v61 = vsel %vm10205_vm15, %v11612_v16, %v20308_v8  ;;  %v11723_v24 = vsub.f32 %v11561_v28, %v11612_v16  ;;  %v20454_v0 = vpop.permute.xlu1 %11641  ;;  %v11131_v16 = vld [vmem:[%s17425_s29 + $0xb47] ss:$0 sm:$0xff] }
 0x7ff   : > { %v11724_v55 = vsub.f32 %v11562_v31, %v11675_v61 }
 0x800   : > { %11756 = vst.msk [vmem:[%s17425_s29 + $0xc7] sm:$0x1] %vm11755_vm1, %v11723_v24  ;;  %v11575_v24 = vld [vmem:[%s17425_s29 + $0x677] ss:$0 sm:$0xff] }
 0x801   : > { %11758 = vst.msk [vmem:[%s17425_s29 + $0xcf] sm:$0x1] %vm11757_vm6, %v11724_v55  ;;  %v11616_v63 = vpop.permute.xlu0 %11615  ;;  %v11576_v55 = vld [vmem:[%s17425_s29 + $0x67f] ss:$0 sm:$0xff] }
 0x802   : > { %v11676_v18 = vsel %vm10205_vm15, %v11616_v63, %v11618_v41  ;;  %v11725_v30 = vsub.f32 %v11563_v29, %v11616_v63  ;;  %v20463_v33 = vpop.permute.xlu1 %11645 }
 0x803   : > { %v11726_v8 = vsub.f32 %v11564_v46, %v11676_v18  ;;  %v11133_v18 = vld [vmem:[%s17425_s29 + $0xc17] ss:$0 sm:$0xff] }
 0x804   : > { %11759 = vst.msk [vmem:[%s17425_s29 + $0x197] sm:$0x1] %vm11755_vm1, %v11725_v30 }
 0x805   : > { %11760 = vst.msk [vmem:[%s17425_s29 + $0x19f] sm:$0x1] %vm11757_vm6, %v11726_v8  ;;  %v11620_v39 = vpop.permute.xlu0 %11619 }
 0x806   : > { %v11677_v38 = vsel %vm10205_vm15, %v11620_v39, %v11622_v2  ;;  %v11727_v7 = vsub.f32 %v11565_v12, %v11620_v39  ;;  %v11193_v43 = vpop.permute.xlu1 %11192  ;;  %v11572_v2 = vld [vmem:[%s17425_s29 + $0x4df] ss:$0 sm:$0xff]  ;;  %v11577_v12 = vld [vmem:[%s17425_s29 + $0x747] ss:$0 sm:$0xff] }
 0x807   : > { %v11728_v50 = vsub.f32 %v11566_v10, %v11677_v38  ;;  %v11228_v56 = vsel %vm11218_vm10, %v20398_v11, %v11193_v43  ;;  %v11569_v11 = vld [vmem:[%s17425_s29 + $0x407] ss:$0 sm:$0xff] }
 0x808   : > { %11761 = vst.msk [vmem:[%s17425_s29 + $0x267] sm:$0x1] %vm11755_vm1, %v11727_v7  ;;  %v11286_v34 = vsub.f32 %v11123_v17, %v11228_v56  ;;  %v11135_v43 = vld [vmem:[%s17425_s29 + $0xce7] ss:$0 sm:$0xff]  ;;  %v11591_v56 = vld [vmem:[%s17425_s29 + $0xcf7] ss:$0 sm:$0xff] }
 0x809   : > { %11762 = vst.msk [vmem:[%s17425_s29 + $0x26f] sm:$0x1] %vm11757_vm6, %v11728_v50  ;;  %v11624_v23 = vpop.permute.xlu0 %11623 }
 0x80a   : > { %11320 = vst.msk [vmem:[%s17425_s29 + $0x807] sm:$0x1] %vm11301_vm5, %v11286_v34  ;;  %v11678_v27 = vsel %vm10205_vm15, %v11624_v23, %v11626_v53  ;;  %v11729_v37 = vsub.f32 %v11567_v57, %v11624_v23  ;;  %v11197_v47 = vpop.permute.xlu1 %11196  ;;  %v11592_v23 = vld [vmem:[%s17425_s29 + $0xcff] ss:$0 sm:$0xff] }
 0x80b   : > { %v11730_v44 = vsub.f32 %v11568_v1, %v11678_v27  ;;  %v11229_v35 = vsel %vm11218_vm10, %v20409_v3, %v11197_v47  ;;  %v11127_v3 = vld [vmem:[%s17425_s29 + $0x9a7] ss:$0 sm:$0xff]  ;;  %v11579_v27 = vld [vmem:[%s17425_s29 + $0x817] ss:$0 sm:$0xff] }
 0x80c   : > { %11763 = vst.msk [vmem:[%s17425_s29 + $0x337] sm:$0x1] %vm11755_vm1, %v11729_v37  ;;  %v11288_v22 = vsub.f32 %v11125_v62, %v11229_v35  ;;  %v11580_v62 = vld [vmem:[%s17425_s29 + $0x81f] ss:$0 sm:$0xff] }
 0x80d   : > { %11764 = vst.msk [vmem:[%s17425_s29 + $0x33f] sm:$0x1] %vm11757_vm6, %v11730_v44  ;;  %v11628_v14 = vpop.permute.xlu0 %11627 }
 0x80e   : > { %11322 = vst.msk [vmem:[%s17425_s29 + $0x8d7] sm:$0x1] %vm11301_vm5, %v11288_v22  ;;  %v11679_v36 = vsel %vm10205_vm15, %v11628_v14, %v11630_v13  ;;  %v11731_v32 = vsub.f32 %v11569_v11, %v11628_v14  ;;  %v11201_v5 = vpop.permute.xlu1 %11200  ;;  %v11581_v11 = vld [vmem:[%s17425_s29 + $0x8e7] ss:$0 sm:$0xff] }
 0x80f   : > { %v11732_v21 = vsub.f32 %v11570_v45, %v11679_v36  ;;  %v11230_v15 = vsel %vm11218_vm10, %v20417_v25, %v11201_v5 }
 0x810   : > { %11765 = vst.msk [vmem:[%s17425_s29 + $0x407] sm:$0x1] %vm11755_vm1, %v11731_v32  ;;  %v11290_v41 = vsub.f32 %v11127_v3, %v11230_v15  ;;  %v11582_v32 = vld [vmem:[%s17425_s29 + $0x8ef] ss:$0 sm:$0xff]  ;;  %v11583_v3 = vld [vmem:[%s17425_s29 + $0x9b7] ss:$0 sm:$0xff] }
 0x811   : > { %11766 = vst.msk [vmem:[%s17425_s29 + $0x40f] sm:$0x1] %vm11757_vm6, %v11732_v21  ;;  %v11632_v19 = vpop.permute.xlu0 %11631 }
 0x812   : > { %11324 = vst.msk [vmem:[%s17425_s29 + $0x9a7] sm:$0x1] %vm11301_vm5, %v11290_v41  ;;  %v11680_v20 = vsel %vm10205_vm15, %v11632_v19, %v20438_v59  ;;  %v11733_v6 = vsub.f32 %v11571_v52, %v11632_v19  ;;  %v11205_v25 = vpop.permute.xlu1 %11204  ;;  %v11574_v59 = vld [vmem:[%s17425_s29 + $0x5af] ss:$0 sm:$0xff]  ;;  %v11584_v19 = vld [vmem:[%s17425_s29 + $0x9bf] ss:$0 sm:$0xff] }
 0x813   : > { %v11734_v53 = vsub.f32 %v11572_v2, %v11680_v20  ;;  %v11231_v51 = vsel %vm11218_vm10, %v20423_v26, %v11205_v25 }
 0x814   : > { %11767 = vst.msk [vmem:[%s17425_s29 + $0x4d7] sm:$0x1] %vm11755_vm1, %v11733_v6  ;;  %v11292_v13 = vsub.f32 %v11129_v40, %v11231_v51  ;;  %v11585_v6 = vld [vmem:[%s17425_s29 + $0xa87] ss:$0 sm:$0xff]  ;;  %v11586_v51 = vld [vmem:[%s17425_s29 + $0xa8f] ss:$0 sm:$0xff] }
 0x815   : > { %11768 = vst.msk [vmem:[%s17425_s29 + $0x4df] sm:$0x1] %vm11757_vm6, %v11734_v53  ;;  %v11636_v9 = vpop.permute.xlu0 %11635 }
 0x816   : > { %11326 = vst.msk [vmem:[%s17425_s29 + $0xa77] sm:$0x1] %vm11301_vm5, %v11292_v13  ;;  %v11681_v60 = vsel %vm10205_vm15, %v11636_v9, %v20446_v42  ;;  %v11735_v4 = vsub.f32 %v11573_v54, %v11636_v9  ;;  %v11209_v26 = vpop.permute.xlu1 %11208  ;;  %v11587_v9 = vld [vmem:[%s17425_s29 + $0xb57] ss:$0 sm:$0xff] }
 0x817   : > { %v11736_v28 = vsub.f32 %v11574_v59, %v11681_v60  ;;  %v11232_v31 = vsel %vm11218_vm10, %v20429_v48, %v11209_v26  ;;  %v11588_v26 = vld [vmem:[%s17425_s29 + $0xb5f] ss:$0 sm:$0xff] }
 0x818   : > { %11769 = vst.msk [vmem:[%s17425_s29 + $0x5a7] sm:$0x1] %vm11755_vm1, %v11735_v4  ;;  %v11294_v61 = vsub.f32 %v11131_v16, %v11232_v31  ;;  %v11589_v31 = vld [vmem:[%s17425_s29 + $0xc27] ss:$0 sm:$0xff] }
 0x819   : > { %11770 = vst.msk [vmem:[%s17425_s29 + $0x5af] sm:$0x1] %vm11757_vm6, %v11736_v28  ;;  %v11640_v42 = vpop.permute.xlu0 %11639 }
 0x81a   : > { %11328 = vst.msk [vmem:[%s17425_s29 + $0xb47] sm:$0x1] %vm11301_vm5, %v11294_v61  ;;  %v11682_v29 = vsel %vm10205_vm15, %v11640_v42, %v20454_v0  ;;  %v11737_v63 = vsub.f32 %v11575_v24, %v11640_v42  ;;  %v11213_v48 = vpop.permute.xlu1 %11212  ;;  %v11578_v0 = vld [vmem:[%s17425_s29 + $0x74f] ss:$0 sm:$0xff] }
 0x81b   : > { %v11738_v46 = vsub.f32 %v11576_v55, %v11682_v29  ;;  %v11233_v30 = vsel %vm11218_vm10, %v20435_v49, %v11213_v48  ;;  %v11590_v55 = vld [vmem:[%s17425_s29 + $0xc2f] ss:$0 sm:$0xff]  ;;  %v11869_v48 = vld [vmem:[%s17425_s29 + $0x7f] ss:$0 sm:$0xff] }
 0x81c   : > { %11771 = vst.msk [vmem:[%s17425_s29 + $0x677] sm:$0x1] %vm11755_vm1, %v11737_v63  ;;  %v11296_v8 = vsub.f32 %v11133_v18, %v11233_v30 }
 0x81d   : > { %11772 = vst.msk [vmem:[%s17425_s29 + $0x67f] sm:$0x1] %vm11757_vm6, %v11738_v46  ;;  %v11644_v39 = vpop.permute.xlu0 %11643  ;;  %v11870_v46 = vld [vmem:[%s17425_s29 + $0x87] ss:$0 sm:$0xff] }
 0x81e   : > { %11330 = vst.msk [vmem:[%s17425_s29 + $0xc17] sm:$0x1] %vm11301_vm5, %v11296_v8  ;;  %v11683_v10 = vsel %vm10205_vm15, %v11644_v39, %v20463_v33  ;;  %v11739_v38 = vsub.f32 %v11577_v12, %v11644_v39  ;;  %v11217_v49 = vpop.permute.xlu1 %11216  ;;  %v13149_v39 = vld [vmem:[%s17425_s29 + $0xc78] ss:$0 sm:$0xff] }
 0x81f   : > { %v11740_v7 = vsub.f32 %v11578_v0, %v11683_v10  ;;  %v11234_v50 = vsel %vm11218_vm10, %v20443_v58, %v11217_v49  ;;  %v13150_v0 = vld [vmem:[%s17425_s29 + $0xc80] ss:$0 sm:$0xff] }
 0x820   : > { %11773 = vst.msk [vmem:[%s17425_s29 + $0x747] sm:$0x1] %vm11755_vm1, %v11739_v38  ;;  %v11298_v17 = vsub.f32 %v11135_v43, %v11234_v50 }
 0x821   : > { %11774 = vst.msk [vmem:[%s17425_s29 + $0x74f] sm:$0x1] %vm11757_vm6, %v11740_v7  ;;  %v11672_v34 = vpop.permute.xlu0 %11671 }
 0x822   : > { %11332 = vst.msk [vmem:[%s17425_s29 + $0xce7] sm:$0x1] %vm11301_vm5, %v11298_v17  ;;  %v11753_v33 = vsub.f32 %v11591_v56, %v11672_v34  ;;  %v11674_v57 = vpop.permute.xlu1 %11673 }
 0x823   : > { %v11690_v1 = vsel %vm10205_vm15, %v11672_v34, %v11674_v57 }
 0x824   : > { %11787 = vst.msk [vmem:[%s17425_s29 + $0xcf7] sm:$0x1] %vm11755_vm1, %v11753_v33  ;;  %v11754_v58 = vsub.f32 %v11592_v23, %v11690_v1 }
 0x825   : > { %v11648_v37 = vpop.permute.xlu0 %11647 }
 0x826   : > { %11788 = vst.msk [vmem:[%s17425_s29 + $0xcff] sm:$0x1] %vm11757_vm6, %v11754_v58  ;;  %v11741_v47 = vsub.f32 %v11579_v27, %v11648_v37  ;;  %v11650_v44 = vpop.permute.xlu1 %11649 }
 0x827   : > { %v11684_v35 = vsel %vm10205_vm15, %v11648_v37, %v11650_v44 }
 0x828   : > { %11775 = vst.msk [vmem:[%s17425_s29 + $0x817] sm:$0x1] %vm11755_vm1, %v11741_v47  ;;  %v11742_v22 = vsub.f32 %v11580_v62, %v11684_v35 }
 0x829   : > { %v11652_v14 = vpop.permute.xlu0 %11651 }
 0x82a   : > { %11776 = vst.msk [vmem:[%s17425_s29 + $0x81f] sm:$0x1] %vm11757_vm6, %v11742_v22  ;;  %v11743_v45 = vsub.f32 %v11581_v11, %v11652_v14  ;;  %v11654_v36 = vpop.permute.xlu1 %11653 }
 0x82b   : > { %v11685_v5 = vsel %vm10205_vm15, %v11652_v14, %v11654_v36  ;;  %v13162_v49 = vld [vmem:[%s17425_s29 + $0xcf7] ss:$0 sm:$0xff] }
 0x82c   : > { %11777 = vst.msk [vmem:[%s17425_s29 + $0x8e7] sm:$0x1] %vm11755_vm1, %v11743_v45  ;;  %v11744_v21 = vsub.f32 %v11582_v32, %v11685_v5 }
 0x82d   : > { %v11656_v15 = vpop.permute.xlu0 %11655  ;;  %v13163_v7 = vld [vmem:[%s17425_s29 + $0xcff] ss:$0 sm:$0xff] }
 0x82e   : > { %11778 = vst.msk [vmem:[%s17425_s29 + $0x8ef] sm:$0x1] %vm11757_vm6, %v11744_v21  ;;  %v11745_v41 = vsub.f32 %v11583_v3, %v11656_v15  ;;  %v11658_v52 = vpop.permute.xlu1 %11657 }
 0x82f   : > { %v11686_v2 = vsel %vm10205_vm15, %v11656_v15, %v11658_v52 }
 0x830   : > { %11779 = vst.msk [vmem:[%s17425_s29 + $0x9b7] sm:$0x1] %vm11755_vm1, %v11745_v41  ;;  %v11746_v20 = vsub.f32 %v11584_v19, %v11686_v2 }
 0x831   : > { %v11660_v25 = vpop.permute.xlu0 %11659 }
 0x832   : > { %11780 = vst.msk [vmem:[%s17425_s29 + $0x9bf] sm:$0x1] %vm11757_vm6, %v11746_v20  ;;  %v11747_v53 = vsub.f32 %v11585_v6, %v11660_v25  ;;  %v11662_v40 = vpop.permute.xlu1 %11661 }
 0x833   : > { %v11687_v13 = vsel %vm10205_vm15, %v11660_v25, %v11662_v40 }
 0x834   : > { %11781 = vst.msk [vmem:[%s17425_s29 + $0xa87] sm:$0x1] %vm11755_vm1, %v11747_v53  ;;  %v11748_v54 = vsub.f32 %v11586_v51, %v11687_v13 }
 0x835   : > { %v11664_v59 = vpop.permute.xlu0 %11663 }
 0x836   : > { %11782 = vst.msk [vmem:[%s17425_s29 + $0xa8f] sm:$0x1] %vm11757_vm6, %v11748_v54  ;;  %v11749_v60 = vsub.f32 %v11587_v9, %v11664_v59  ;;  %v11666_v4 = vpop.permute.xlu1 %11665 }
 0x837   : > { %v11688_v28 = vsel %vm10205_vm15, %v11664_v59, %v11666_v4 }
 0x838   : > { %11783 = vst.msk [vmem:[%s17425_s29 + $0xb57] sm:$0x1] %vm11755_vm1, %v11749_v60  ;;  %v11750_v16 = vsub.f32 %v11588_v26, %v11688_v28 }
 0x839   : > { %v11668_v61 = vpop.permute.xlu0 %11667 }
 0x83a   : > { %11784 = vst.msk [vmem:[%s17425_s29 + $0xb5f] sm:$0x1] %vm11757_vm6, %v11750_v16  ;;  %v11751_v24 = vsub.f32 %v11589_v31, %v11668_v61  ;;  %v11670_v42 = vpop.permute.xlu1 %11669 }
 0x83b   : > { %v11689_v29 = vsel %vm10205_vm15, %v11668_v61, %v11670_v42 }
 0x83c   : > { %11785 = vst.msk [vmem:[%s17425_s29 + $0xc27] sm:$0x1] %vm11755_vm1, %v11751_v24  ;;  %v11752_v63 = vsub.f32 %v11590_v55, %v11689_v29 }
 0x83d   : > { %v11950_v18 = vpop.permute.xlu0 %11949 }
 0x83e   : > { %11786 = vst.msk [vmem:[%s17425_s29 + $0xc2f] sm:$0x1] %vm11757_vm6, %v11752_v63  ;;  %v11952_v30 = vadd.f32 %v11950_v18, %v11869_v48  ;;  %v11953_v8 = vadd.f32 %v11950_v18, %v11870_v46  ;;  %v12038_v12 = vpop.permute.xlu1 %12037 }
 0x83f   : > { %v12040_v10 = vadd.f32 %v13149_v39, %v12038_v12  ;;  %v12041_v38 = vadd.f32 %v13150_v0, %v12038_v12 }
 0x840   : > { %11954 = vst.msk [vmem:[%s17425_s29 + $0x7f] sm:$0x1] %vm10450_vm13, %v11952_v30 }
 0x841   : > { %11955 = vst.msk [vmem:[%s17425_s29 + $0x87] sm:$0x1] %vm10452_vm14, %v11953_v8  ;;  %v12125_v43 = vpop.permute.xlu0 %12124 }
 0x842   : > { %13160 = vst.msk [vmem:[%s17425_s29 + $0xc78] sm:$0x1] %vm11527_vm11, %v12040_v10  ;;  %v12127_v50 = vadd.f32 %v13162_v49, %v12125_v43  ;;  %v12128_v17 = vadd.f32 %v13163_v7, %v12125_v43 }
 0x843   : > { %13161 = vst.msk [vmem:[%s17425_s29 + $0xc80] sm:$0x1] %vm11529_vm12, %v12041_v38 }
 0x844   : > { %13173 = vst.msk [vmem:[%s17425_s29 + $0xcf7] sm:$0x1] %vm11755_vm1, %v12127_v50 }
 0x845   : > { %13174 = vst.msk [vmem:[%s17425_s29 + $0xcff] sm:$0x1] %vm11757_vm6, %v12128_v17 }
 0x846   : > { %14687 = shalt.err (!%p14684_p7)
}
 0x847   : > { %s14688_s29 = scalar_lea.hbm %s20625_s10, 53248  ;;  %s14692_s21 = scalar_lea.hbm %s20679_s4, 106496 }
 0x848   : > { %p14689_p9 = scmp.ne.s32.totalorder %s20625_s10, %s14688_s29  ;;  %p14693_p5 = scmp.lt.u32.totalorder %s20625_s10, %s20679_s4 }
 0x849   : > { %p14694_p11 = scmp.lt.u32.totalorder %s14692_s21, %s14688_s29  ;;  %p14696_p4 = scmp.lt.u32.totalorder %s14688_s29, %s20625_s10 }
 0x84a   : > { %p14690_p2 = pnand %p14689_p9, %p14882_p12 }
 0x84b   : > { %p14695_p1 = por %p14694_p11, %p14693_p5 }
 0x84c   : > { %p14691_p0 = pneg %p14690_p2 }
 0x84d   : > { %p14697_p6 = por %p14696_p4, %p14695_p1 }
 0x84f   : > { %p14698_p8 = pnand %p14697_p6, %p14691_p0 }
 0x851   : > { %14701 = shalt.err (!%p14698_p8)
}
 0x852   : > { %s14764_s26 = smov 1664   ;;  %s14765_s8 = smov 104  }
 0x853   : > { %13828 = dma.vmem_to_hbm [thread:$0]  (%p14882_p12), %s20627_s25, 53248, %s20625_s10, %s12132_s6, %s14764_s26, %s14764_s26, %s14765_s8  }
 0x854 PF: > { %s12160_s19 = sand.u32 1, %s14732_s15   ;;  %p21016_p10 = scmp.ne.s32.totalorder %s20778_s22, 0 }
 0x855   : > { %p21017_p13 = scmp.ge.s32.totalorder %s14744_s18, 2  ;;  %s12161_s28 = scalar_lea.sflag [#allocation5], %s12160_s19 }
 0x857   : > { %p13839_p3 = pnand %p21017_p13, %p21016_p10 }
 0x859   : > { %14727 = dma.done.wait (!%p13839_p3), %s12161_s28, 53248  }
 0x85a   : > { %14729 = vsyncadd (!%p13839_p3), %s12161_s28, 4294914048  ;;  %p18_p7 = scmp.ge.s32.totalorder %s14847_s27, 4   ;;  %s21018_s15 = smov %s14736_s16 }
 0x85b   : > { %s21019_s16 = smov %s14740_s17  ;;  %s21020_s17 = smov %s14878_s24 }
 0x85c   : > { %s21021_s18 = smov %s14847_s27  ;;  %20 = sbr.rel (!%p18_p7) target bundleno = 6 (0x6), region = 96 }
 0x863   :  { %12166 = vsyncpa [#allocation4], 1 }
 0x864   :  { %12168 = vsyncpa [#allocation4 + $0x1], 1 }
 0x865   :  { %12169 = vsyncpa [#allocation7], 1 }
 0x866   :  { %12170 = vsyncpa [#allocation5], 1 }
 0x867   :  { %12172 = vsyncpa [#allocation5 + $0x1], 1 }

</bundles_post_ra>
